<compile_context>
chip_gen: v7x
topology: tpu7x:2x2x1
jax: 0.10.0
libtpu: 0.0.40
codegen_flags: <defaults>
</compile_context>

<pallas_src>
import math

import jax
import jax.numpy as jnp
from jax.experimental import pallas as pl
from jax.experimental.pallas import tpu as pltpu


# ----------------------------------------------------------------------------
# Kernel 1: conv1 (8x8 / stride 4) as 4 row-batched, K=128 MXU dots per image.
#   xe, xo : (990, 128) bf16   rows = h*22 + m ; lanes = [col 2m | col 2m+1]
#   wd     : (2, 128, 64) bf16 per-di tap, K ordered (dj, rr, ss, c)
#   b      : (1, 64) f32
#   out    : (968, 128) bf16   rows = oh*22 + m ; lanes = [ow=2m | ow=2m+1]
# ----------------------------------------------------------------------------
def _conv1_kernel(xe_ref, xo_ref, wd_ref, b_ref, o_ref):
    w0 = wd_ref[0]                      # (128, 64) bf16  tap di=0
    w1 = wd_ref[1]                      # (128, 64) bf16  tap di=1
    bias = b_ref[...]                   # (1, 64) f32

    # di=0 operand rows: h = oh      -> rows [0, 968)
    # di=1 operand rows: h = oh + 1  -> rows [22, 990)
    acc_e = jnp.dot(xe_ref[0:968, :], w0, preferred_element_type=jnp.float32)
    acc_e = acc_e + jnp.dot(xe_ref[22:990, :], w1,
                            preferred_element_type=jnp.float32)
    acc_o = jnp.dot(xo_ref[0:968, :], w0, preferred_element_type=jnp.float32)
    acc_o = acc_o + jnp.dot(xo_ref[22:990, :], w1,
                            preferred_element_type=jnp.float32)

    h_e = jnp.maximum(acc_e + bias, 0.0)          # even output columns
    h_o = jnp.maximum(acc_o + bias, 0.0)          # odd  output columns
    # Lane-dense packed store: (968, 128), one unmasked full-tile store.
    o_ref[...] = jnp.concatenate([h_e, h_o], axis=-1).astype(o_ref.dtype)


def conv1(xe, xo, wd, b1):
    B = xe.shape[0]
    return pl.pallas_call(
        _conv1_kernel,
        out_shape=jax.ShapeDtypeStruct((B, 968, 128), jnp.bfloat16),
        grid=(B,),
        in_specs=[
            pl.BlockSpec((None, 990, 128), lambda b: (b, 0, 0)),
            pl.BlockSpec((None, 990, 128), lambda b: (b, 0, 0)),
            pl.BlockSpec((2, 128, 64), lambda b: (0, 0, 0)),     # resident
            pl.BlockSpec((1, 64), lambda b: (0, 0)),             # resident
        ],
        out_specs=pl.BlockSpec((None, 968, 128), lambda b: (b, 0, 0)),
        compiler_params=pltpu.CompilerParams(
            dimension_semantics=("parallel",)),
    )(xe, xo, wd, b1)


# ----------------------------------------------------------------------------
# Kernel 2: fused tail = conv2 + conv3 + conv4 + FC + actor head per image.
#   p2  : (81, 1024) bf16  conv2 patches, rows ordered (i, j, p, q) where
#         (i, j) is the conv3 tap and (p, q) the conv3 output position;
#         K ordered (a, b, c) to match w2.
#   w2  : (1024, 64)   w3 : (9, 64, 128)   w4 : (1152, 256)
#   wfc : (256, 256)   wh : (256, 2A)   (mu ‖ std heads fused)
# ----------------------------------------------------------------------------
_HALF_LOG_2PI = 0.5 * math.log(2.0 * math.pi)


def _tail_kernel(p2_ref, w2_ref, b2_ref, w3_ref, b3_ref, w4_ref, b4_ref,
                 wfc_ref, bfc_ref, wh_ref, bh_ref, eps_ref,
                 act_ref, logp_ref):
    # conv2: one (81,1024)@(1024,64) dot (only the 81 positions conv3 reads).
    h2 = jnp.dot(p2_ref[...], w2_ref[...], preferred_element_type=jnp.float32)
    h2 = jnp.maximum(h2 + b2_ref[...], 0.0)                     # (81, 64) f32

    # conv3: 9 taps; tap t = i*3+j reads the contiguous row block [9t, 9t+9).
    acc3 = jnp.zeros((9, 128), jnp.float32)
    for t in range(9):
        acc3 = acc3 + jnp.dot(h2[9 * t:9 * (t + 1), :].astype(jnp.bfloat16),
                              w3_ref[t], preferred_element_type=jnp.float32)
    h3 = jnp.maximum(acc3 + b3_ref[...], 0.0)                   # (9, 128) f32

    # conv4 (3x3 map, 3x3 kernel -> single output): flatten (p,q,c) along
    # lanes (9 aligned 128-wide pieces) and do one K=1152 dot.
    h3row = jnp.concatenate([h3[p:p + 1, :] for p in range(9)], axis=-1)
    h4 = jnp.dot(h3row.astype(jnp.bfloat16), w4_ref[...],
                 preferred_element_type=jnp.float32) + b4_ref[...]
    h4 = jnp.maximum(h4, 0.0)                                   # (1, 256)

    h5 = jnp.dot(h4.astype(jnp.bfloat16), wfc_ref[...],
                 preferred_element_type=jnp.float32) + bfc_ref[...]
    h5 = jnp.maximum(h5, 0.0)                                   # (1, 256)

    # Fused mu / std-pre head: one (1,256)@(256,2A) dot.
    ho = jnp.dot(h5.astype(jnp.bfloat16), wh_ref[...],
                 preferred_element_type=jnp.float32) + bh_ref[...]
    A = act_ref.shape[-1]
    mu = ho[:, :A]
    pre = ho[:, A:]
    # torch.nn.Softplus (beta=1, threshold=20).  Note: if softplus underflows
    # to exactly 0, log(std) is -inf — same behaviour as the PyTorch module.
    std = jnp.where(pre > 20.0, pre,
                    jnp.log1p(jnp.exp(jnp.minimum(pre, 20.0))))
    eps = eps_ref[...]                                          # (1, A)
    u = mu + std * eps                                          # rsample()
    # Normal(mu, std).log_prob(u): (u - mu)/std == eps exactly -> no divide.
    logp = -0.5 * eps * eps - jnp.log(std) - _HALF_LOG_2PI
    t = jnp.tanh(u)
    logp = logp - jnp.log(1.0 - t * t + 1e-7)                   # tanh squash
    act_ref[...] = t
    logp_ref[...] = logp


def actor_tail(p2, prep, eps3):
    B = p2.shape[0]
    A = eps3.shape[-1]

    def fixed(shape):
        return pl.BlockSpec(shape, lambda b: (0,) * len(shape))

    return pl.pallas_call(
        _tail_kernel,
        out_shape=(jax.ShapeDtypeStruct((B, 1, A), jnp.float32),
                   jax.ShapeDtypeStruct((B, 1, A), jnp.float32)),
        grid=(B,),
        in_specs=[
            pl.BlockSpec((None, 81, 1024), lambda b: (b, 0, 0)),
            fixed((1024, 64)), fixed((1, 64)),           # conv2
            fixed((9, 64, 128)), fixed((1, 128)),        # conv3
            fixed((1152, 256)), fixed((1, 256)),         # conv4
            fixed((256, 256)), fixed((1, 256)),          # fc
            fixed((256, 2 * A)), fixed((1, 2 * A)),      # mu ‖ std head
            pl.BlockSpec((None, 1, A), lambda b: (b, 0, 0)),   # eps
        ],
        out_specs=(pl.BlockSpec((None, 1, A), lambda b: (b, 0, 0)),
                   pl.BlockSpec((None, 1, A), lambda b: (b, 0, 0))),
        compiler_params=pltpu.CompilerParams(
            dimension_semantics=("parallel",)),
    )(p2, prep["w2"], prep["b2"], prep["w3"], prep["b3"],
      prep["w4"], prep["b4"], prep["wfc"], prep["bfc"],
      prep["wh"], prep["bh"], eps3)


# ----------------------------------------------------------------------------
# XLA glue: pure, non-expanding relayouts (no im2col duplication).
# ----------------------------------------------------------------------------
def _space_to_depth4(x_nhwc):
    """(B,H,W,C) -> (B,H/4,W/4,16C); channel index k = rr*4C + ss*C + c."""
    B, H, W, C = x_nhwc.shape
    x = x_nhwc.reshape(B, H // 4, 4, W // 4, 4, C)
    x = jnp.transpose(x, (0, 1, 3, 2, 4, 5))
    return x.reshape(B, H // 4, W // 4, 16 * C)


def _conv1_operands(xs):
    """Column-pair views: XE (even output cols) / XO (odd) -> (B, 990, 128)."""
    B = xs.shape[0]
    xe = xs[:, :, 0:44, :].reshape(B, 45 * 22, 128)
    xo = xs[:, :, 1:45, :].reshape(B, 45 * 22, 128)
    return xe, xo


def _conv2_patches(x1):
    """conv2 is 4x4/stride-4 (non-overlapping): im2col == reshape+transpose.
    Keep only the 81 conv2 outputs conv3 reads, ordered (i, j, p, q)."""
    B = x1.shape[0]
    p = x1.reshape(B, 11, 4, 11, 4, 64)
    p = jnp.transpose(p, (0, 1, 3, 2, 4, 5)).reshape(B, 11, 11, 1024)
    ridx, sidx = [], []
    for i in range(3):
        for j in range(3):
            for pp in range(3):
                for q in range(3):
                    ridx.append(4 * pp + i)
                    sidx.append(4 * q + j)
    ridx = jnp.array(ridx, jnp.int32)
    sidx = jnp.array(sidx, jnp.int32)
    return p[:, ridx, sidx, :]                        # (B, 81, 1024)


# ----------------------------------------------------------------------------
# Parameters (deterministic synthetic init, PyTorch-like uniform(-1/sqrt(fan_in)))
# ----------------------------------------------------------------------------
def init_params(key, n_state=4, n_action=2):
    def uinit(k, shape, fan_in):
        bound = 1.0 / math.sqrt(fan_in)
        return jax.random.uniform(k, shape, jnp.float32, -bound, bound)

    ks = jax.random.split(key, 14)
    p = {}
    p["c1w"] = uinit(ks[0], (64, n_state, 8, 8), n_state * 8 * 8)
    p["c1b"] = uinit(ks[1], (64,), n_state * 8 * 8)
    p["c2w"] = uinit(ks[2], (64, 64, 4, 4), 64 * 4 * 4)
    p["c2b"] = uinit(ks[3], (64,), 64 * 4 * 4)
    p["c3w"] = uinit(ks[4], (128, 64, 3, 3), 64 * 3 * 3)
    p["c3b"] = uinit(ks[5], (128,), 64 * 3 * 3)
    p["c4w"] = uinit(ks[6], (256, 128, 3, 3), 128 * 3 * 3)
    p["c4b"] = uinit(ks[7], (256,), 128 * 3 * 3)
    p["fcw"] = uinit(ks[8], (256, 256), 256)          # stored (in, out)
    p["fcb"] = uinit(ks[9], (256,), 256)
    p["muw"] = uinit(ks[10], (256, n_action), 256)
    p["mub"] = uinit(ks[11], (n_action,), 256)
    p["stdw"] = uinit(ks[12], (256, n_action), 256)
    p["stdb"] = uinit(ks[13], (n_action,), 256)
    return p


def prepare_params(p):
    """One-time layout prep (hoisted out of the forward path)."""
    C = p["c1w"].shape[1]                                   # n_state
    f = {}
    # conv1: OIHW -> per-di tap matrices with dj K-concatenated.
    w1 = jnp.transpose(p["c1w"], (2, 3, 1, 0))              # (kh, kw, c, oc)
    w1 = w1.reshape(2, 4, 2, 4, C, 64)                      # (di, rr, dj, ss, c, oc)
    w1 = jnp.transpose(w1, (0, 2, 1, 3, 4, 5))              # (di, dj, rr, ss, c, oc)
    f["wd1"] = w1.reshape(2, 2 * 16 * C, 64).astype(jnp.bfloat16)   # (2, 128, 64)
    f["b1"] = p["c1b"].reshape(1, 64).astype(jnp.float32)
    # conv2..conv4: (KH*KW*C, OC), K ordered (kh, kw, c).
    f["w2"] = jnp.transpose(p["c2w"], (2, 3, 1, 0)).reshape(1024, 64).astype(jnp.bfloat16)
    f["b2"] = p["c2b"].reshape(1, 64).astype(jnp.float32)
    f["w3"] = jnp.transpose(p["c3w"], (2, 3, 1, 0)).reshape(9, 64, 128).astype(jnp.bfloat16)
    f["b3"] = p["c3b"].reshape(1, 128).astype(jnp.float32)
    f["w4"] = jnp.transpose(p["c4w"], (2, 3, 1, 0)).reshape(1152, 256).astype(jnp.bfloat16)
    f["b4"] = p["c4b"].reshape(1, 256).astype(jnp.float32)
    f["wfc"] = p["fcw"].astype(jnp.bfloat16)
    f["bfc"] = p["fcb"].reshape(1, 256).astype(jnp.float32)
    # Fused mu ‖ std head.
    f["wh"] = jnp.concatenate([p["muw"], p["stdw"]], axis=1).astype(jnp.bfloat16)
    f["bh"] = jnp.concatenate([p["mub"], p["stdb"]]).reshape(1, -1).astype(jnp.float32)
    return f


# ----------------------------------------------------------------------------
# Full forward pass (mirrors ActorNetwork.forward); 2 pallas_calls total.
# ----------------------------------------------------------------------------
def actor_forward(prep, state_nchw, eps):
    B = state_nchw.shape[0]
    A = eps.shape[-1]
    # bf16 cast BEFORE the relayouts (halves XLA relayout bytes).
    x = jnp.transpose(state_nchw.astype(jnp.bfloat16), (0, 2, 3, 1))   # NHWC
    xs = _space_to_depth4(x)                                           # (B,45,45,64)
    xe, xo = _conv1_operands(xs)                                       # 2 x (B,990,128)
    x1p = conv1(xe, xo, prep["wd1"], prep["b1"])                       # (B,968,128) bf16
    x1 = x1p.reshape(B, 44, 44, 64)                                    # free relayout
    p2 = _conv2_patches(x1)                                            # (B,81,1024)
    act, logp = actor_tail(p2, prep, eps.reshape(B, 1, A))
    return act.reshape(B, A), logp.reshape(B, A)


if __name__ == "__main__":
    # The four stride-4 convs reduce 180x180 -> 44 -> 11 -> 3 -> 1, so Flatten
    # yields exactly 256 features; input spatial must therefore be 180x180.
    B, n_state, n_action = 2, 4, 2
    H = W = 180

    key = jax.random.PRNGKey(0)
    k_param, k_state, k_eps = jax.random.split(key, 3)

    params = init_params(k_param, n_state=n_state, n_action=n_action)
    prep = prepare_params(params)                  # one-time weight layout prep
    state = jax.random.normal(k_state, (B, n_state, H, W), dtype=jnp.float32)
    # Standard-normal noise for Normal(mu, std).rsample() (reparameterization).
    eps = jax.random.normal(k_eps, (B, n_action), dtype=jnp.float32)

    action, logprob = jax.jit(actor_forward)(prep, state, eps)
    jax.block_until_ready((action, logprob))

    assert action.shape == (B, n_action) and logprob.shape == (B, n_action)
    assert bool(jnp.all(jnp.isfinite(action))) and bool(jnp.all(jnp.isfinite(logprob)))
    print("KERNEL_OK")
</pallas_src>

<mosaic_0001>
module attributes {stable_mosaic.version = 11 : i64} {
  func.func @_conv1_kernel(%arg0: i32, %arg1: memref<1x990x128xbf16, #tpu.memory_space<vmem>>, %arg2: memref<1x990x128xbf16, #tpu.memory_space<vmem>>, %arg3: memref<2x128x64xbf16, #tpu.memory_space<vmem>>, %arg4: memref<1x64xf32, #tpu.memory_space<vmem>>, %arg5: memref<1x968x128xbf16, #tpu.memory_space<vmem>>) attributes {dimension_semantics = [#tpu.dimension_semantics<parallel>], iteration_bounds = array<i64: 2>, scalar_prefetch = 0 : i64, scratch_operands = 0 : i64, tpu.core_type = #tpu.core_type<tc>, window_params = [{transform_indices = @transform_0, window_bounds = array<i64: 1, 990, 128>}, {transform_indices = @transform_1, window_bounds = array<i64: 1, 990, 128>}, {pipeline_mode = #tpu.pipeline_mode<synchronous>, transform_indices = @transform_2, window_bounds = array<i64: 2, 128, 64>}, {pipeline_mode = #tpu.pipeline_mode<synchronous>, transform_indices = @transform_3, window_bounds = array<i64: 1, 64>}, {transform_indices = @transform_4, window_bounds = array<i64: 1, 968, 128>}]} {
    %c0 = arith.constant 0 : index
    %c0_0 = arith.constant 0 : index
    %c0_1 = arith.constant 0 : index
    %0 = vector.load %arg3[%c0, %c0_0, %c0_1] : memref<2x128x64xbf16, #tpu.memory_space<vmem>>, vector<1x128x64xbf16>
    %1 = vector.shape_cast %0 : vector<1x128x64xbf16> to vector<128x64xbf16>
    %c1 = arith.constant 1 : index
    %c0_2 = arith.constant 0 : index
    %c0_3 = arith.constant 0 : index
    %2 = vector.load %arg3[%c1, %c0_2, %c0_3] : memref<2x128x64xbf16, #tpu.memory_space<vmem>>, vector<1x128x64xbf16>
    %3 = vector.shape_cast %2 : vector<1x128x64xbf16> to vector<128x64xbf16>
    %c0_4 = arith.constant 0 : index
    %c0_5 = arith.constant 0 : index
    %4 = vector.load %arg4[%c0_4, %c0_5] : memref<1x64xf32, #tpu.memory_space<vmem>>, vector<1x64xf32>
    %c0_6 = arith.constant 0 : index
    %c0_7 = arith.constant 0 : index
    %c0_8 = arith.constant 0 : index
    %5 = vector.load %arg1[%c0_6, %c0_7, %c0_8] : memref<1x990x128xbf16, #tpu.memory_space<vmem>>, vector<1x968x128xbf16>
    %6 = vector.shape_cast %5 : vector<1x968x128xbf16> to vector<968x128xbf16>
    %cst = arith.constant dense<0.000000e+00> : vector<968x64xf32>
    %7 = tpu.matmul %6, %1, %cst {dimension_numbers = #tpu.dot_dimension_numbers<[1], [0], [0], [1], [0, 0, 1, 1], [], []>} : vector<968x128xbf16>, vector<128x64xbf16>, vector<968x64xf32> -> vector<968x64xf32>
    %c0_9 = arith.constant 0 : index
    %c22 = arith.constant 22 : index
    %c0_10 = arith.constant 0 : index
    %8 = vector.load %arg1[%c0_9, %c22, %c0_10] : memref<1x990x128xbf16, #tpu.memory_space<vmem>>, vector<1x968x128xbf16>
    %9 = vector.shape_cast %8 : vector<1x968x128xbf16> to vector<968x128xbf16>
    %cst_11 = arith.constant dense<0.000000e+00> : vector<968x64xf32>
    %10 = tpu.matmul %9, %3, %cst_11 {dimension_numbers = #tpu.dot_dimension_numbers<[1], [0], [0], [1], [0, 0, 1, 1], [], []>} : vector<968x128xbf16>, vector<128x64xbf16>, vector<968x64xf32> -> vector<968x64xf32>
    %11 = arith.addf %7, %10 : vector<968x64xf32>
    %c0_12 = arith.constant 0 : index
    %c0_13 = arith.constant 0 : index
    %c0_14 = arith.constant 0 : index
    %12 = vector.load %arg2[%c0_12, %c0_13, %c0_14] : memref<1x990x128xbf16, #tpu.memory_space<vmem>>, vector<1x968x128xbf16>
    %13 = vector.shape_cast %12 : vector<1x968x128xbf16> to vector<968x128xbf16>
    %cst_15 = arith.constant dense<0.000000e+00> : vector<968x64xf32>
    %14 = tpu.matmul %13, %1, %cst_15 {dimension_numbers = #tpu.dot_dimension_numbers<[1], [0], [0], [1], [0, 0, 1, 1], [], []>} : vector<968x128xbf16>, vector<128x64xbf16>, vector<968x64xf32> -> vector<968x64xf32>
    %c0_16 = arith.constant 0 : index
    %c22_17 = arith.constant 22 : index
    %c0_18 = arith.constant 0 : index
    %15 = vector.load %arg2[%c0_16, %c22_17, %c0_18] : memref<1x990x128xbf16, #tpu.memory_space<vmem>>, vector<1x968x128xbf16>
    %16 = vector.shape_cast %15 : vector<1x968x128xbf16> to vector<968x128xbf16>
    %cst_19 = arith.constant dense<0.000000e+00> : vector<968x64xf32>
    %17 = tpu.matmul %16, %3, %cst_19 {dimension_numbers = #tpu.dot_dimension_numbers<[1], [0], [0], [1], [0, 0, 1, 1], [], []>} : vector<968x128xbf16>, vector<128x64xbf16>, vector<968x64xf32> -> vector<968x64xf32>
    %18 = arith.addf %14, %17 : vector<968x64xf32>
    %19 = vector.broadcast %4 : vector<1x64xf32> to vector<968x64xf32>
    %20 = arith.addf %11, %19 : vector<968x64xf32>
    %cst_20 = arith.constant 0.000000e+00 : f32
    %21 = vector.broadcast %cst_20 : f32 to vector<968x64xf32>
    %22 = arith.maximumf %20, %21 : vector<968x64xf32>
    %23 = vector.broadcast %4 : vector<1x64xf32> to vector<968x64xf32>
    %24 = arith.addf %18, %23 : vector<968x64xf32>
    %cst_21 = arith.constant 0.000000e+00 : f32
    %25 = vector.broadcast %cst_21 : f32 to vector<968x64xf32>
    %26 = arith.maximumf %24, %25 : vector<968x64xf32>
    %27 = tpu.concatenate %22, %26 in 1 : vector<968x64xf32>, vector<968x64xf32> -> vector<968x128xf32>
    %28 = arith.truncf %27 : vector<968x128xf32> to vector<968x128xbf16>
    %c0_22 = arith.constant 0 : index
    %c0_23 = arith.constant 0 : index
    %c0_24 = arith.constant 0 : index
    %29 = vector.load %arg5[%c0_22, %c0_23, %c0_24] : memref<1x968x128xbf16, #tpu.memory_space<vmem>>, vector<1x968x128xbf16>
    %30 = vector.shape_cast %29 : vector<1x968x128xbf16> to vector<968x128xbf16>
    %31 = vector.shape_cast %28 : vector<968x128xbf16> to vector<1x968x128xbf16>
    tpu.vector_store %arg5[%c0_22, %c0_23, %c0_24], %31 {strides = array<i32>} : memref<1x968x128xbf16, #tpu.memory_space<vmem>>, vector<1x968x128xbf16>,
    return
  }
  func.func @transform_0(%arg0: i32) -> (i32, i32, i32) {
    %c0_i32 = arith.constant 0 : i32
    %c0_i32_0 = arith.constant 0 : i32
    %c0_i32_1 = arith.constant 0 : i32
    return %arg0, %c0_i32, %c0_i32_0 : i32, i32, i32
  }
  func.func @transform_1(%arg0: i32) -> (i32, i32, i32) {
    %c0_i32 = arith.constant 0 : i32
    %c0_i32_0 = arith.constant 0 : i32
    %c0_i32_1 = arith.constant 0 : i32
    return %arg0, %c0_i32, %c0_i32_0 : i32, i32, i32
  }
  func.func @transform_2(%arg0: i32) -> (i32, i32, i32) {
    %c0_i32 = arith.constant 0 : i32
    %c0_i32_0 = arith.constant 0 : i32
    %c0_i32_1 = arith.constant 0 : i32
    %c0_i32_2 = arith.constant 0 : i32
    return %c0_i32, %c0_i32_0, %c0_i32_1 : i32, i32, i32
  }
  func.func @transform_3(%arg0: i32) -> (i32, i32) {
    %c0_i32 = arith.constant 0 : i32
    %c0_i32_0 = arith.constant 0 : i32
    %c0_i32_1 = arith.constant 0 : i32
    return %c0_i32, %c0_i32_0 : i32, i32
  }
  func.func @transform_4(%arg0: i32) -> (i32, i32, i32) {
    %c0_i32 = arith.constant 0 : i32
    %c0_i32_0 = arith.constant 0 : i32
    %c0_i32_1 = arith.constant 0 : i32
    return %arg0, %c0_i32, %c0_i32_0 : i32, i32, i32
  }
}

module attributes {stable_mosaic.version = 11 : i64} {
  func.func @_tail_kernel(%arg0: i32, %arg1: memref<1x81x1024xbf16, #tpu.memory_space<vmem>>, %arg2: memref<1024x64xbf16, #tpu.memory_space<vmem>>, %arg3: memref<1x64xf32, #tpu.memory_space<vmem>>, %arg4: memref<9x64x128xbf16, #tpu.memory_space<vmem>>, %arg5: memref<1x128xf32, #tpu.memory_space<vmem>>, %arg6: memref<1152x256xbf16, #tpu.memory_space<vmem>>, %arg7: memref<1x256xf32, #tpu.memory_space<vmem>>, %arg8: memref<256x256xbf16, #tpu.memory_space<vmem>>, %arg9: memref<1x256xf32, #tpu.memory_space<vmem>>, %arg10: memref<256x4xbf16, #tpu.memory_space<vmem>>, %arg11: memref<1x4xf32, #tpu.memory_space<vmem>>, %arg12: memref<1x1x2xf32, #tpu.memory_space<vmem>>, %arg13: memref<1x1x2xf32, #tpu.memory_space<vmem>>, %arg14: memref<1x1x2xf32, #tpu.memory_space<vmem>>) attributes {dimension_semantics = [#tpu.dimension_semantics<parallel>], iteration_bounds = array<i64: 2>, scalar_prefetch = 0 : i64, scratch_operands = 0 : i64, tpu.core_type = #tpu.core_type<tc>, window_params = [{transform_indices = @transform_0, window_bounds = array<i64: 1, 81, 1024>}, {pipeline_mode = #tpu.pipeline_mode<synchronous>, transform_indices = @transform_1, window_bounds = array<i64: 1024, 64>}, {pipeline_mode = #tpu.pipeline_mode<synchronous>, transform_indices = @transform_2, window_bounds = array<i64: 1, 64>}, {pipeline_mode = #tpu.pipeline_mode<synchronous>, transform_indices = @transform_3, window_bounds = array<i64: 9, 64, 128>}, {pipeline_mode = #tpu.pipeline_mode<synchronous>, transform_indices = @transform_4, window_bounds = array<i64: 1, 128>}, {pipeline_mode = #tpu.pipeline_mode<synchronous>, transform_indices = @transform_5, window_bounds = array<i64: 1152, 256>}, {pipeline_mode = #tpu.pipeline_mode<synchronous>, transform_indices = @transform_6, window_bounds = array<i64: 1, 256>}, {pipeline_mode = #tpu.pipeline_mode<synchronous>, transform_indices = @transform_7, window_bounds = array<i64: 256, 256>}, {pipeline_mode = #tpu.pipeline_mode<synchronous>, transform_indices = @transform_8, window_bounds = array<i64: 1, 256>}, {pipeline_mode = #tpu.pipeline_mode<synchronous>, transform_indices = @transform_9, window_bounds = array<i64: 256, 4>}, {pipeline_mode = #tpu.pipeline_mode<synchronous>, transform_indices = @transform_10, window_bounds = array<i64: 1, 4>}, {transform_indices = @transform_11, window_bounds = array<i64: 1, 1, 2>}, {transform_indices = @transform_12, window_bounds = array<i64: 1, 1, 2>}, {transform_indices = @transform_13, window_bounds = array<i64: 1, 1, 2>}]} {
    %c0 = arith.constant 0 : index
    %c0_0 = arith.constant 0 : index
    %c0_1 = arith.constant 0 : index
    %0 = vector.load %arg1[%c0, %c0_0, %c0_1] : memref<1x81x1024xbf16, #tpu.memory_space<vmem>>, vector<1x81x1024xbf16>
    %1 = vector.shape_cast %0 : vector<1x81x1024xbf16> to vector<81x1024xbf16>
    %c0_2 = arith.constant 0 : index
    %c0_3 = arith.constant 0 : index
    %2 = vector.load %arg2[%c0_2, %c0_3] : memref<1024x64xbf16, #tpu.memory_space<vmem>>, vector<1024x64xbf16>
    %cst = arith.constant dense<0.000000e+00> : vector<81x64xf32>
    %3 = tpu.matmul %1, %2, %cst {dimension_numbers = #tpu.dot_dimension_numbers<[1], [0], [0], [1], [0, 0, 1, 1], [], []>} : vector<81x1024xbf16>, vector<1024x64xbf16>, vector<81x64xf32> -> vector<81x64xf32>
    %c0_4 = arith.constant 0 : index
    %c0_5 = arith.constant 0 : index
    %4 = vector.load %arg3[%c0_4, %c0_5] : memref<1x64xf32, #tpu.memory_space<vmem>>, vector<1x64xf32>
    %5 = vector.broadcast %4 : vector<1x64xf32> to vector<81x64xf32>
    %6 = arith.addf %3, %5 : vector<81x64xf32>
    %cst_6 = arith.constant 0.000000e+00 : f32
    %7 = vector.broadcast %cst_6 : f32 to vector<81x64xf32>
    %8 = arith.maximumf %6, %7 : vector<81x64xf32>
    %cst_7 = arith.constant 0.000000e+00 : f32
    %9 = vector.broadcast %cst_7 : f32 to vector<9x128xf32>
    %10 = vector.extract_strided_slice %8 {offsets = [0, 0], sizes = [9, 64], strides = [1, 1]} : vector<81x64xf32> to vector<9x64xf32>
    %11 = arith.truncf %10 : vector<9x64xf32> to vector<9x64xbf16>
    %c0_8 = arith.constant 0 : index
    %c0_9 = arith.constant 0 : index
    %c0_10 = arith.constant 0 : index
    %12 = vector.load %arg4[%c0_8, %c0_9, %c0_10] : memref<9x64x128xbf16, #tpu.memory_space<vmem>>, vector<1x64x128xbf16>
    %13 = vector.shape_cast %12 : vector<1x64x128xbf16> to vector<64x128xbf16>
    %cst_11 = arith.constant dense<0.000000e+00> : vector<9x128xf32>
    %14 = tpu.matmul %11, %13, %cst_11 {dimension_numbers = #tpu.dot_dimension_numbers<[1], [0], [0], [1], [0, 0, 1, 1], [], []>} : vector<9x64xbf16>, vector<64x128xbf16>, vector<9x128xf32> -> vector<9x128xf32>
    %15 = arith.addf %9, %14 : vector<9x128xf32>
    %16 = vector.extract_strided_slice %8 {offsets = [9, 0], sizes = [9, 64], strides = [1, 1]} : vector<81x64xf32> to vector<9x64xf32>
    %17 = arith.truncf %16 : vector<9x64xf32> to vector<9x64xbf16>
    %c1 = arith.constant 1 : index
    %c0_12 = arith.constant 0 : index
    %c0_13 = arith.constant 0 : index
    %18 = vector.load %arg4[%c1, %c0_12, %c0_13] : memref<9x64x128xbf16, #tpu.memory_space<vmem>>, vector<1x64x128xbf16>
    %19 = vector.shape_cast %18 : vector<1x64x128xbf16> to vector<64x128xbf16>
    %cst_14 = arith.constant dense<0.000000e+00> : vector<9x128xf32>
    %20 = tpu.matmul %17, %19, %cst_14 {dimension_numbers = #tpu.dot_dimension_numbers<[1], [0], [0], [1], [0, 0, 1, 1], [], []>} : vector<9x64xbf16>, vector<64x128xbf16>, vector<9x128xf32> -> vector<9x128xf32>
    %21 = arith.addf %15, %20 : vector<9x128xf32>
    %22 = vector.extract_strided_slice %8 {offsets = [18, 0], sizes = [9, 64], strides = [1, 1]} : vector<81x64xf32> to vector<9x64xf32>
    %23 = arith.truncf %22 : vector<9x64xf32> to vector<9x64xbf16>
    %c2 = arith.constant 2 : index
    %c0_15 = arith.constant 0 : index
    %c0_16 = arith.constant 0 : index
    %24 = vector.load %arg4[%c2, %c0_15, %c0_16] : memref<9x64x128xbf16, #tpu.memory_space<vmem>>, vector<1x64x128xbf16>
    %25 = vector.shape_cast %24 : vector<1x64x128xbf16> to vector<64x128xbf16>
    %cst_17 = arith.constant dense<0.000000e+00> : vector<9x128xf32>
    %26 = tpu.matmul %23, %25, %cst_17 {dimension_numbers = #tpu.dot_dimension_numbers<[1], [0], [0], [1], [0, 0, 1, 1], [], []>} : vector<9x64xbf16>, vector<64x128xbf16>, vector<9x128xf32> -> vector<9x128xf32>
    %27 = arith.addf %21, %26 : vector<9x128xf32>
    %28 = vector.extract_strided_slice %8 {offsets = [27, 0], sizes = [9, 64], strides = [1, 1]} : vector<81x64xf32> to vector<9x64xf32>
    %29 = arith.truncf %28 : vector<9x64xf32> to vector<9x64xbf16>
    %c3 = arith.constant 3 : index
    %c0_18 = arith.constant 0 : index
    %c0_19 = arith.constant 0 : index
    %30 = vector.load %arg4[%c3, %c0_18, %c0_19] : memref<9x64x128xbf16, #tpu.memory_space<vmem>>, vector<1x64x128xbf16>
    %31 = vector.shape_cast %30 : vector<1x64x128xbf16> to vector<64x128xbf16>
    %cst_20 = arith.constant dense<0.000000e+00> : vector<9x128xf32>
    %32 = tpu.matmul %29, %31, %cst_20 {dimension_numbers = #tpu.dot_dimension_numbers<[1], [0], [0], [1], [0, 0, 1, 1], [], []>} : vector<9x64xbf16>, vector<64x128xbf16>, vector<9x128xf32> -> vector<9x128xf32>
    %33 = arith.addf %27, %32 : vector<9x128xf32>
    %34 = vector.extract_strided_slice %8 {offsets = [36, 0], sizes = [9, 64], strides = [1, 1]} : vector<81x64xf32> to vector<9x64xf32>
    %35 = arith.truncf %34 : vector<9x64xf32> to vector<9x64xbf16>
    %c4 = arith.constant 4 : index
    %c0_21 = arith.constant 0 : index
    %c0_22 = arith.constant 0 : index
    %36 = vector.load %arg4[%c4, %c0_21, %c0_22] : memref<9x64x128xbf16, #tpu.memory_space<vmem>>, vector<1x64x128xbf16>
    %37 = vector.shape_cast %36 : vector<1x64x128xbf16> to vector<64x128xbf16>
    %cst_23 = arith.constant dense<0.000000e+00> : vector<9x128xf32>
    %38 = tpu.matmul %35, %37, %cst_23 {dimension_numbers = #tpu.dot_dimension_numbers<[1], [0], [0], [1], [0, 0, 1, 1], [], []>} : vector<9x64xbf16>, vector<64x128xbf16>, vector<9x128xf32> -> vector<9x128xf32>
    %39 = arith.addf %33, %38 : vector<9x128xf32>
    %40 = vector.extract_strided_slice %8 {offsets = [45, 0], sizes = [9, 64], strides = [1, 1]} : vector<81x64xf32> to vector<9x64xf32>
    %41 = arith.truncf %40 : vector<9x64xf32> to vector<9x64xbf16>
    %c5 = arith.constant 5 : index
    %c0_24 = arith.constant 0 : index
    %c0_25 = arith.constant 0 : index
    %42 = vector.load %arg4[%c5, %c0_24, %c0_25] : memref<9x64x128xbf16, #tpu.memory_space<vmem>>, vector<1x64x128xbf16>
    %43 = vector.shape_cast %42 : vector<1x64x128xbf16> to vector<64x128xbf16>
    %cst_26 = arith.constant dense<0.000000e+00> : vector<9x128xf32>
    %44 = tpu.matmul %41, %43, %cst_26 {dimension_numbers = #tpu.dot_dimension_numbers<[1], [0], [0], [1], [0, 0, 1, 1], [], []>} : vector<9x64xbf16>, vector<64x128xbf16>, vector<9x128xf32> -> vector<9x128xf32>
    %45 = arith.addf %39, %44 : vector<9x128xf32>
    %46 = vector.extract_strided_slice %8 {offsets = [54, 0], sizes = [9, 64], strides = [1, 1]} : vector<81x64xf32> to vector<9x64xf32>
    %47 = arith.truncf %46 : vector<9x64xf32> to vector<9x64xbf16>
    %c6 = arith.constant 6 : index
    %c0_27 = arith.constant 0 : index
    %c0_28 = arith.constant 0 : index
    %48 = vector.load %arg4[%c6, %c0_27, %c0_28] : memref<9x64x128xbf16, #tpu.memory_space<vmem>>, vector<1x64x128xbf16>
    %49 = vector.shape_cast %48 : vector<1x64x128xbf16> to vector<64x128xbf16>
    %cst_29 = arith.constant dense<0.000000e+00> : vector<9x128xf32>
    %50 = tpu.matmul %47, %49, %cst_29 {dimension_numbers = #tpu.dot_dimension_numbers<[1], [0], [0], [1], [0, 0, 1, 1], [], []>} : vector<9x64xbf16>, vector<64x128xbf16>, vector<9x128xf32> -> vector<9x128xf32>
    %51 = arith.addf %45, %50 : vector<9x128xf32>
    %52 = vector.extract_strided_slice %8 {offsets = [63, 0], sizes = [9, 64], strides = [1, 1]} : vector<81x64xf32> to vector<9x64xf32>
    %53 = arith.truncf %52 : vector<9x64xf32> to vector<9x64xbf16>
    %c7 = arith.constant 7 : index
    %c0_30 = arith.constant 0 : index
    %c0_31 = arith.constant 0 : index
    %54 = vector.load %arg4[%c7, %c0_30, %c0_31] : memref<9x64x128xbf16, #tpu.memory_space<vmem>>, vector<1x64x128xbf16>
    %55 = vector.shape_cast %54 : vector<1x64x128xbf16> to vector<64x128xbf16>
    %cst_32 = arith.constant dense<0.000000e+00> : vector<9x128xf32>
    %56 = tpu.matmul %53, %55, %cst_32 {dimension_numbers = #tpu.dot_dimension_numbers<[1], [0], [0], [1], [0, 0, 1, 1], [], []>} : vector<9x64xbf16>, vector<64x128xbf16>, vector<9x128xf32> -> vector<9x128xf32>
    %57 = arith.addf %51, %56 : vector<9x128xf32>
    %58 = vector.extract_strided_slice %8 {offsets = [72, 0], sizes = [9, 64], strides = [1, 1]} : vector<81x64xf32> to vector<9x64xf32>
    %59 = arith.truncf %58 : vector<9x64xf32> to vector<9x64xbf16>
    %c8 = arith.constant 8 : index
    %c0_33 = arith.constant 0 : index
    %c0_34 = arith.constant 0 : index
    %60 = vector.load %arg4[%c8, %c0_33, %c0_34] : memref<9x64x128xbf16, #tpu.memory_space<vmem>>, vector<1x64x128xbf16>
    %61 = vector.shape_cast %60 : vector<1x64x128xbf16> to vector<64x128xbf16>
    %cst_35 = arith.constant dense<0.000000e+00> : vector<9x128xf32>
    %62 = tpu.matmul %59, %61, %cst_35 {dimension_numbers = #tpu.dot_dimension_numbers<[1], [0], [0], [1], [0, 0, 1, 1], [], []>} : vector<9x64xbf16>, vector<64x128xbf16>, vector<9x128xf32> -> vector<9x128xf32>
    %63 = arith.addf %57, %62 : vector<9x128xf32>
    %c0_36 = arith.constant 0 : index
    %c0_37 = arith.constant 0 : index
    %64 = vector.load %arg5[%c0_36, %c0_37] : memref<1x128xf32, #tpu.memory_space<vmem>>, vector<1x128xf32>
    %65 = vector.broadcast %64 : vector<1x128xf32> to vector<9x128xf32>
    %66 = arith.addf %63, %65 : vector<9x128xf32>
    %cst_38 = arith.constant 0.000000e+00 : f32
    %67 = vector.broadcast %cst_38 : f32 to vector<9x128xf32>
    %68 = arith.maximumf %66, %67 : vector<9x128xf32>
    %69 = vector.extract_strided_slice %68 {offsets = [0, 0], sizes = [1, 128], strides = [1, 1]} : vector<9x128xf32> to vector<1x128xf32>
    %70 = vector.extract_strided_slice %68 {offsets = [1, 0], sizes = [1, 128], strides = [1, 1]} : vector<9x128xf32> to vector<1x128xf32>
    %71 = vector.extract_strided_slice %68 {offsets = [2, 0], sizes = [1, 128], strides = [1, 1]} : vector<9x128xf32> to vector<1x128xf32>
    %72 = vector.extract_strided_slice %68 {offsets = [3, 0], sizes = [1, 128], strides = [1, 1]} : vector<9x128xf32> to vector<1x128xf32>
    %73 = vector.extract_strided_slice %68 {offsets = [4, 0], sizes = [1, 128], strides = [1, 1]} : vector<9x128xf32> to vector<1x128xf32>
    %74 = vector.extract_strided_slice %68 {offsets = [5, 0], sizes = [1, 128], strides = [1, 1]} : vector<9x128xf32> to vector<1x128xf32>
    %75 = vector.extract_strided_slice %68 {offsets = [6, 0], sizes = [1, 128], strides = [1, 1]} : vector<9x128xf32> to vector<1x128xf32>
    %76 = vector.extract_strided_slice %68 {offsets = [7, 0], sizes = [1, 128], strides = [1, 1]} : vector<9x128xf32> to vector<1x128xf32>
    %77 = vector.extract_strided_slice %68 {offsets = [8, 0], sizes = [1, 128], strides = [1, 1]} : vector<9x128xf32> to vector<1x128xf32>
    %78 = tpu.concatenate %69, %70, %71, %72, %73, %74, %75, %76, %77 in 1 : vector<1x128xf32>, vector<1x128xf32>, vector<1x128xf32>, vector<1x128xf32>, vector<1x128xf32>, vector<1x128xf32>, vector<1x128xf32>, vector<1x128xf32>, vector<1x128xf32> -> vector<1x1152xf32>
    %79 = arith.truncf %78 : vector<1x1152xf32> to vector<1x1152xbf16>
    %c0_39 = arith.constant 0 : index
    %c0_40 = arith.constant 0 : index
    %80 = vector.load %arg6[%c0_39, %c0_40] : memref<1152x256xbf16, #tpu.memory_space<vmem>>, vector<1152x256xbf16>
    %cst_41 = arith.constant dense<0.000000e+00> : vector<1x256xf32>
    %81 = tpu.matmul %79, %80, %cst_41 {dimension_numbers = #tpu.dot_dimension_numbers<[1], [0], [0], [1], [0, 0, 1, 1], [], []>} : vector<1x1152xbf16>, vector<1152x256xbf16>, vector<1x256xf32> -> vector<1x256xf32>
    %c0_42 = arith.constant 0 : index
    %c0_43 = arith.constant 0 : index
    %82 = vector.load %arg7[%c0_42, %c0_43] : memref<1x256xf32, #tpu.memory_space<vmem>>, vector<1x256xf32>
    %83 = arith.addf %81, %82 : vector<1x256xf32>
    %cst_44 = arith.constant 0.000000e+00 : f32
    %84 = vector.broadcast %cst_44 : f32 to vector<1x256xf32>
    %85 = arith.maximumf %83, %84 : vector<1x256xf32>
    %86 = arith.truncf %85 : vector<1x256xf32> to vector<1x256xbf16>
    %c0_45 = arith.constant 0 : index
    %c0_46 = arith.constant 0 : index
    %87 = vector.load %arg8[%c0_45, %c0_46] : memref<256x256xbf16, #tpu.memory_space<vmem>>, vector<256x256xbf16>
    %cst_47 = arith.constant dense<0.000000e+00> : vector<1x256xf32>
    %88 = tpu.matmul %86, %87, %cst_47 {dimension_numbers = #tpu.dot_dimension_numbers<[1], [0], [0], [1], [0, 0, 1, 1], [], []>} : vector<1x256xbf16>, vector<256x256xbf16>, vector<1x256xf32> -> vector<1x256xf32>
    %c0_48 = arith.constant 0 : index
    %c0_49 = arith.constant 0 : index
    %89 = vector.load %arg9[%c0_48, %c0_49] : memref<1x256xf32, #tpu.memory_space<vmem>>, vector<1x256xf32>
    %90 = arith.addf %88, %89 : vector<1x256xf32>
    %cst_50 = arith.constant 0.000000e+00 : f32
    %91 = vector.broadcast %cst_50 : f32 to vector<1x256xf32>
    %92 = arith.maximumf %90, %91 : vector<1x256xf32>
    %93 = arith.truncf %92 : vector<1x256xf32> to vector<1x256xbf16>
    %c0_51 = arith.constant 0 : index
    %c0_52 = arith.constant 0 : index
    %94 = vector.load %arg10[%c0_51, %c0_52] : memref<256x4xbf16, #tpu.memory_space<vmem>>, vector<256x4xbf16>
    %cst_53 = arith.constant dense<0.000000e+00> : vector<1x4xf32>
    %95 = tpu.matmul %93, %94, %cst_53 {dimension_numbers = #tpu.dot_dimension_numbers<[1], [0], [0], [1], [0, 0, 1, 1], [], []>} : vector<1x256xbf16>, vector<256x4xbf16>, vector<1x4xf32> -> vector<1x4xf32>
    %c0_54 = arith.constant 0 : index
    %c0_55 = arith.constant 0 : index
    %96 = vector.load %arg11[%c0_54, %c0_55] : memref<1x4xf32, #tpu.memory_space<vmem>>, vector<1x4xf32>
    %97 = arith.addf %95, %96 : vector<1x4xf32>
    %98 = vector.extract_strided_slice %97 {offsets = [0, 0], sizes = [1, 2], strides = [1, 1]} : vector<1x4xf32> to vector<1x2xf32>
    %99 = vector.extract_strided_slice %97 {offsets = [0, 2], sizes = [1, 2], strides = [1, 1]} : vector<1x4xf32> to vector<1x2xf32>
    %cst_56 = arith.constant 2.000000e+01 : f32
    %100 = vector.broadcast %cst_56 : f32 to vector<1x2xf32>
    %101 = arith.cmpf ogt, %99, %100 : vector<1x2xf32>
    %cst_57 = arith.constant 2.000000e+01 : f32
    %102 = vector.broadcast %cst_57 : f32 to vector<1x2xf32>
    %103 = arith.minimumf %99, %102 : vector<1x2xf32>
    %104 = math.exp %103 : vector<1x2xf32>
    %105 = math.log1p %104 : vector<1x2xf32>
    %106 = arith.select %101, %99, %105 : vector<1x2xi1>, vector<1x2xf32>
    %c0_58 = arith.constant 0 : index
    %c0_59 = arith.constant 0 : index
    %c0_60 = arith.constant 0 : index
    %107 = vector.load %arg12[%c0_58, %c0_59, %c0_60] : memref<1x1x2xf32, #tpu.memory_space<vmem>>, vector<1x1x2xf32>
    %108 = vector.shape_cast %107 : vector<1x1x2xf32> to vector<1x2xf32>
    %109 = arith.mulf %106, %108 : vector<1x2xf32>
    %110 = arith.addf %98, %109 : vector<1x2xf32>
    %cst_61 = arith.constant -5.000000e-01 : f32
    %111 = vector.broadcast %cst_61 : f32 to vector<1x2xf32>
    %112 = arith.mulf %111, %108 : vector<1x2xf32>
    %113 = arith.mulf %112, %108 : vector<1x2xf32>
    %114 = math.log %106 : vector<1x2xf32>
    %115 = arith.subf %113, %114 : vector<1x2xf32>
    %cst_62 = arith.constant 0.918938517 : f32
    %116 = vector.broadcast %cst_62 : f32 to vector<1x2xf32>
    %117 = arith.subf %115, %116 : vector<1x2xf32>
    %118 = math.tanh %110 : vector<1x2xf32>
    %119 = arith.mulf %118, %118 : vector<1x2xf32>
    %cst_63 = arith.constant 1.000000e+00 : f32
    %120 = vector.broadcast %cst_63 : f32 to vector<1x2xf32>
    %121 = arith.subf %120, %119 : vector<1x2xf32>
    %cst_64 = arith.constant 1.000000e-07 : f32
    %122 = vector.broadcast %cst_64 : f32 to vector<1x2xf32>
    %123 = arith.addf %121, %122 : vector<1x2xf32>
    %124 = math.log %123 : vector<1x2xf32>
    %125 = arith.subf %117, %124 : vector<1x2xf32>
    %c0_65 = arith.constant 0 : index
    %c0_66 = arith.constant 0 : index
    %c0_67 = arith.constant 0 : index
    %126 = vector.load %arg13[%c0_65, %c0_66, %c0_67] : memref<1x1x2xf32, #tpu.memory_space<vmem>>, vector<1x1x2xf32>
    %127 = vector.shape_cast %126 : vector<1x1x2xf32> to vector<1x2xf32>
    %128 = vector.shape_cast %118 : vector<1x2xf32> to vector<1x1x2xf32>
    tpu.vector_store %arg13[%c0_65, %c0_66, %c0_67], %128 {strides = array<i32>} : memref<1x1x2xf32, #tpu.memory_space<vmem>>, vector<1x1x2xf32>,
    %c0_68 = arith.constant 0 : index
    %c0_69 = arith.constant 0 : index
    %c0_70 = arith.constant 0 : index
    %129 = vector.load %arg14[%c0_68, %c0_69, %c0_70] : memref<1x1x2xf32, #tpu.memory_space<vmem>>, vector<1x1x2xf32>
    %130 = vector.shape_cast %129 : vector<1x1x2xf32> to vector<1x2xf32>
    %131 = vector.shape_cast %125 : vector<1x2xf32> to vector<1x1x2xf32>
    tpu.vector_store %arg14[%c0_68, %c0_69, %c0_70], %131 {strides = array<i32>} : memref<1x1x2xf32, #tpu.memory_space<vmem>>, vector<1x1x2xf32>,
    return
  }
  func.func @transform_0(%arg0: i32) -> (i32, i32, i32) {
    %c0_i32 = arith.constant 0 : i32
    %c0_i32_0 = arith.constant 0 : i32
    %c0_i32_1 = arith.constant 0 : i32
    return %arg0, %c0_i32, %c0_i32_0 : i32, i32, i32
  }
  func.func @transform_1(%arg0: i32) -> (i32, i32) {
    %c0_i32 = arith.constant 0 : i32
    %c0_i32_0 = arith.constant 0 : i32
    %c0_i32_1 = arith.constant 0 : i32
    return %c0_i32, %c0_i32_0 : i32, i32
  }
  func.func @transform_2(%arg0: i32) -> (i32, i32) {
    %c0_i32 = arith.constant 0 : i32
    %c0_i32_0 = arith.constant 0 : i32
    %c0_i32_1 = arith.constant 0 : i32
    return %c0_i32, %c0_i32_0 : i32, i32
  }
  func.func @transform_3(%arg0: i32) -> (i32, i32, i32) {
    %c0_i32 = arith.constant 0 : i32
    %c0_i32_0 = arith.constant 0 : i32
    %c0_i32_1 = arith.constant 0 : i32
    %c0_i32_2 = arith.constant 0 : i32
    return %c0_i32, %c0_i32_0, %c0_i32_1 : i32, i32, i32
  }
  func.func @transform_4(%arg0: i32) -> (i32, i32) {
    %c0_i32 = arith.constant 0 : i32
    %c0_i32_0 = arith.constant 0 : i32
    %c0_i32_1 = arith.constant 0 : i32
    return %c0_i32, %c0_i32_0 : i32, i32
  }
  func.func @transform_5(%arg0: i32) -> (i32, i32) {
    %c0_i32 = arith.constant 0 : i32
    %c0_i32_0 = arith.constant 0 : i32
    %c0_i32_1 = arith.constant 0 : i32
    return %c0_i32, %c0_i32_0 : i32, i32
  }
  func.func @transform_6(%arg0: i32) -> (i32, i32) {
    %c0_i32 = arith.constant 0 : i32
    %c0_i32_0 = arith.constant 0 : i32
    %c0_i32_1 = arith.constant 0 : i32
    return %c0_i32, %c0_i32_0 : i32, i32
  }
  func.func @transform_7(%arg0: i32) -> (i32, i32) {
    %c0_i32 = arith.constant 0 : i32
    %c0_i32_0 = arith.constant 0 : i32
    %c0_i32_1 = arith.constant 0 : i32
    return %c0_i32, %c0_i32_0 : i32, i32
  }
  func.func @transform_8(%arg0: i32) -> (i32, i32) {
    %c0_i32 = arith.constant 0 : i32
    %c0_i32_0 = arith.constant 0 : i32
    %c0_i32_1 = arith.constant 0 : i32
    return %c0_i32, %c0_i32_0 : i32, i32
  }
  func.func @transform_9(%arg0: i32) -> (i32, i32) {
    %c0_i32 = arith.constant 0 : i32
    %c0_i32_0 = arith.constant 0 : i32
    %c0_i32_1 = arith.constant 0 : i32
    return %c0_i32, %c0_i32_0 : i32, i32
  }
  func.func @transform_10(%arg0: i32) -> (i32, i32) {
    %c0_i32 = arith.constant 0 : i32
    %c0_i32_0 = arith.constant 0 : i32
    %c0_i32_1 = arith.constant 0 : i32
    return %c0_i32, %c0_i32_0 : i32, i32
  }
  func.func @transform_11(%arg0: i32) -> (i32, i32, i32) {
    %c0_i32 = arith.constant 0 : i32
    %c0_i32_0 = arith.constant 0 : i32
    %c0_i32_1 = arith.constant 0 : i32
    return %arg0, %c0_i32, %c0_i32_0 : i32, i32, i32
  }
  func.func @transform_12(%arg0: i32) -> (i32, i32, i32) {
    %c0_i32 = arith.constant 0 : i32
    %c0_i32_0 = arith.constant 0 : i32
    %c0_i32_1 = arith.constant 0 : i32
    return %arg0, %c0_i32, %c0_i32_0 : i32, i32, i32
  }
  func.func @transform_13(%arg0: i32) -> (i32, i32, i32) {
    %c0_i32 = arith.constant 0 : i32
    %c0_i32_0 = arith.constant 0 : i32
    %c0_i32_1 = arith.constant 0 : i32
    return %arg0, %c0_i32, %c0_i32_0 : i32, i32, i32
  }
}

</mosaic_0001>

<bundles_post_ra>
// kernel: actor_forward.2
= control target key start
LH: loop header
LB: loop body
LE: loop exit
PB: predicated region body
PF: predicated region fallthrough
CT: control target
= control target key end

     0   :  { %s8147_s15 = smov 0   ;;  %s10072_s0 = inlined_call_operand.vmem [shape: bf16[2,990,128], index: 0, kind: input, shape index: {}]   ;;  %s10073_s1 = inlined_call_operand.vmem [shape: bf16[2,990,128], index: 1, kind: input, shape index: {}]   ;;  %s10074_s2 = inlined_call_operand.vmem [shape: bf16[2,128,64], index: 2, kind: input, shape index: {}]   ;;  %s10075_s3 = inlined_call_operand.vmem [shape: f32[1,64], index: 3, kind: input, shape index: {}]   ;;  %s10076_s4 = inlined_call_operand.vmem [shape: bf16[2,968,128], index: 4, kind: output, shape index: {}]  }
   0x1 LB: > { %s5563_s16 = sadd.s32 4294967295, %s8117_s15   ;;  %p5567_p0 = scmp.ge.s32.totalorder %s8117_s15, 1  ;;  %s8117_s15 = sphi %s8147_s15, %s14_s15  }
   0x2   : > { %p172_p1 = scmp.lt.s32.totalorder %s8117_s15, 3 }
   0x4   : > { %p173_p2 = pnand %p5567_p0, %p172_p1 }
   0x6   : > { %176 = sbr.rel (%p173_p2) target bundleno = 1352 (0x548), region = 36 }
   0xd   : > { %v8158_v0 = vld [vmem:[%s10074_s2 + $0x40] sm:$0xff]   ;;  %v10077_v1 = vmov 0.0   ;;  %v8171_v3 = vld [vmem:[%s10074_s2 + $0x48] sm:$0xff]   ;;  %vm8120_vm0 = vmmov 0   ;;  %p203_p3 = scmp.lt.s32.totalorder %s5563_s16, 1  ;;  %v8189_v5 = vld [vmem:[%s10074_s2 + $0x50] sm:$0xff]  }
   0xe   : > { %6611 = vmatprep.subr.bf16.mxu0 %v10077_v1  ;;  %6871 = vmatprep.subr.bf16.mxu1 %v10077_v1  ;;  %v8165_v2 = vld [vmem:[%s10074_s2] sm:$0xff]   ;;  %v8180_v4 = vld [vmem:[%s10074_s2 + $0x8] sm:$0xff]   ;;  %v8196_v6 = vld [vmem:[%s10074_s2 + $0x10] sm:$0xff]   ;;  %vm683_vm1 = vcmask 1044480   ;;  %s8121_s8 = smov 64   ;;  %vm4768_vm2 = vcmask 523264  }
   0xf   : > { %6612 = vmatpush3.bf16.msra.mxu0 %v8158_v0  ;;  %6627 = vmatprep.mubr.msk.bf16.mxu0 %vm8120_vm0, %v10077_v1  ;;  %s10245_s16 = smov (!%p203_p3, %s5563_s16), 1  ;;  %v8205_v7 = vld [vmem:[%s10074_s2 + $0x58] sm:$0xff]   ;;  %v8220_v9 = vld [vmem:[%s10074_s2 + $0x60] sm:$0xff]   ;;  %v8240_v11 = vld [vmem:[%s10074_s2 + $0x68] sm:$0xff]  }
  0x10   : > { %6872 = vmatpush3.bf16.msra.mxu1 %v8165_v2  ;;  %6613 = vmatprep.subr.bf16.mxu0 %v10077_v1  ;;  %v8212_v8 = vld [vmem:[%s10074_s2 + $0x18] sm:$0xff]   ;;  %s7651_s7 = smul.u32 496, %s10245_s16  ;;  %v8227_v10 = vld [vmem:[%s10074_s2 + $0x20] sm:$0xff]   ;;  %v8246_v12 = vld [vmem:[%s10074_s2 + $0x28] sm:$0xff]  }
  0x11   : > { %6873 = vmatprep.subr.bf16.mxu1 %v10077_v1  ;;  %6887 = vmatprep.mubr.msk.bf16.mxu1 %vm8120_vm0, %v10077_v1  ;;  %v8256_v15 = vld [vmem:[%s10074_s2 + $0x70] sm:$0xff]   ;;  %v8271_v19 = vld [vmem:[%s10074_s2 + $0x78] sm:$0xff]   ;;  %s7652_s9 = smul.u32 484, %s10245_s16 }
  0x12   : > { %s8234_s14 = scalar_lea.vmem %s10072_s0, %s7651_s7  ;;  %v8265_v18 = vld [vmem:[%s10074_s2 + $0x30] sm:$0xff]   ;;  %v8279_v22 = vld [vmem:[%s10074_s2 + $0x38] sm:$0xff]   ;;  %s8665_s5 = scalar_lea.vmem %s10073_s1, %s7651_s7 }
  0x13   : > { %6614 = vmatpush3.bf16.msra.mxu0 %v8171_v3  ;;  %v256_v13 = vld [vmem:[%s8234_s14 + $0xc] sm:$0xf]  ;;  %v374_v14 = vld [vmem:[%s8234_s14 + $0x8] sm:$0x8]  ;;  %v7981_v17 = vld [vmem:[%s8234_s14 + $0x10] sm:$0xff]   ;;  %s9328_s11 = scalar_lea.vmem %s10076_s4, %s7652_s9 }
  0x14   : > { %6874 = vmatpush3.bf16.msra.mxu1 %v8180_v4  ;;  %6615 = vmatprep.subr.bf16.mxu0 %v10077_v1  ;;  %v5587_v16 = vcombine.low %v374_v14, %v256_v13  ;;  %v685_v21 = vrot.slane %v7981_v17, 3  ;;  %v7982_v23 = vld [vmem:[%s8234_s14] sm:$0xff]   ;;  %v7983_v25 = vld [vmem:[%s8234_s14 + $0x18] sm:$0xff]   ;;  %v255_v28 = vld [vmem:[%s8234_s14 + $0x8] sm:$0xf] }
  0x15   : > { %6875 = vmatprep.subr.bf16.mxu1 %v10077_v1  ;;  %v7985_v26 = vld [vmem:[%s8234_s14 + $0x20] sm:$0xff]   ;;  %v687_v27 = vrot.slane %v7983_v25, 3  ;;  %v5657_v31 = vcombine.low %v255_v28, %v256_v13  ;;  %v7986_v32 = vld [vmem:[%s8234_s14 + $0x28] sm:$0xff]   ;;  %v7987_v35 = vld [vmem:[%s8234_s14 + $0x30] sm:$0xff]  }
  0x16   : > { %v684_v20 = vrot.slane %v5587_v16, 3  ;;  %v689_v29 = vrot.slane %v7985_v26, 3  ;;  %v691_v33 = vrot.slane %v7986_v32, 3  ;;  %v693_v36 = vrot.slane %v7987_v35, 3  ;;  %v7988_v38 = vld [vmem:[%s8234_s14 + $0x38] sm:$0xff]   ;;  %v7989_v42 = vld [vmem:[%s8234_s14 + $0x40] sm:$0xff]  }
  0x17   : > { %6616 = vmatpush3.bf16.msra.mxu0 %v8189_v5  ;;  %v688_v30 = vsel %vm683_vm1, %v685_v21, %v687_v27  ;;  %v695_v40 = vrot.slane %v7988_v38, 3  ;;  %v697_v43 = vrot.slane %v7989_v42, 3  ;;  %v7990_v45 = vld [vmem:[%s8234_s14 + $0x48] sm:$0xff]   ;;  %v7991_v48 = vld [vmem:[%s8234_s14 + $0x50] sm:$0xff]   ;;  %v7992_v51 = vld [vmem:[%s8234_s14 + $0x58] sm:$0xff]  }
  0x18   : > { %6876 = vmatpush3.bf16.msra.mxu1 %v8196_v6  ;;  %6617 = vmatprep.subr.bf16.mxu0 %v10077_v1  ;;  %v686_v24 = vsel %vm683_vm1, %v684_v20, %v685_v21  ;;  %v690_v34 = vsel %vm683_vm1, %v687_v27, %v689_v29  ;;  %v692_v37 = vsel %vm683_vm1, %v689_v29, %v691_v33  ;;  %v699_v46 = vrot.slane %v7990_v45, 3  ;;  %v7993_v54 = vld [vmem:[%s8234_s14 + $0x60] sm:$0xff]   ;;  %v7994_v57 = vld [vmem:[%s8234_s14 + $0x68] sm:$0xff]   ;;  %v7995_v60 = vld [vmem:[%s8234_s14 + $0x70] sm:$0xff]  }
  0x19   : > { %6877 = vmatprep.subr.bf16.mxu1 %v10077_v1  ;;  %v694_v39 = vsel %vm683_vm1, %v691_v33, %v693_v36  ;;  %v696_v41 = vsel %vm683_vm1, %v693_v36, %v695_v40  ;;  %v698_v44 = vsel %vm683_vm1, %v695_v40, %v697_v43  ;;  %v701_v49 = vrot.slane %v7991_v48, 3  ;;  %v7996_v63 = vld [vmem:[%s8234_s14 + $0x78] sm:$0xff]   ;;  %v8003_v21 = vld [vmem:[%s8234_s14 + $0xb0] sm:$0xff]   ;;  %v8005_v27 = vld [vmem:[%s8234_s14 + $0xc0] sm:$0xff]  }
  0x1a   : > { %v700_v47 = vsel %vm683_vm1, %v697_v43, %v699_v46  ;;  %v703_v52 = vrot.slane %v7992_v51, 3  ;;  %v705_v55 = vrot.slane %v7993_v54, 3  ;;  %v707_v58 = vrot.slane %v7994_v57, 3  ;;  %v8007_v33 = vld [vmem:[%s8234_s14 + $0xd0] sm:$0xff]   ;;  %v8008_v36 = vld [vmem:[%s8234_s14 + $0xd8] sm:$0xff]  }
  0x1b   : > { %6618 = vmatpush3.bf16.msra.mxu0 %v8205_v7  ;;  %v702_v50 = vsel %vm683_vm1, %v699_v46, %v701_v49  ;;  %v709_v61 = vrot.slane %v7995_v60, 3  ;;  %v729_v28 = vrot.slane %v8005_v27, 3 }
  0x1c   : > { %6878 = vmatpush3.bf16.msra.mxu1 %v8212_v8  ;;  %6619 = vmatprep.subr.bf16.mxu0 %v10077_v1  ;;  %v704_v53 = vsel %vm683_vm1, %v701_v49, %v703_v52  ;;  %v706_v56 = vsel %vm683_vm1, %v703_v52, %v705_v55  ;;  %v708_v59 = vsel %vm683_vm1, %v705_v55, %v707_v58 }
  0x1d   : > { %6879 = vmatprep.subr.bf16.mxu1 %v10077_v1  ;;  %v710_v62 = vsel %vm683_vm1, %v707_v58, %v709_v61 }
  0x1f   : > { %6620 = vmatpush3.bf16.msra.mxu0 %v8220_v9 }
  0x20   : > { %6880 = vmatpush3.bf16.msra.mxu1 %v8227_v10  ;;  %6621 = vmatprep.subr.bf16.mxu0 %v10077_v1 }
  0x21   : > { %6881 = vmatprep.subr.bf16.mxu1 %v10077_v1 }
  0x23   : > { %6622 = vmatpush3.bf16.msra.mxu0 %v8240_v11 }
  0x24   : > { %6882 = vmatpush3.bf16.msra.mxu1 %v8246_v12  ;;  %6623 = vmatprep.subr.bf16.mxu0 %v10077_v1 }
  0x25   : > { %6883 = vmatprep.subr.bf16.mxu1 %v10077_v1 }
  0x27   : > { %6624 = vmatpush3.bf16.msra.mxu0 %v8256_v15 }
  0x28   : > { %6884 = vmatpush3.bf16.msra.mxu1 %v8265_v18  ;;  %6625 = vmatprep.subr.bf16.mxu0 %v10077_v1 }
  0x29   : > { %6885 = vmatprep.subr.bf16.mxu1 %v10077_v1 }
  0x2b   : > { %6626 = vmatpush3.bf16.msra.mxu0 %v8271_v19 }
  0x2c   : > { %6886 = vmatpush3.bf16.msra.mxu1 %v8279_v22  ;;  %7131 = vmatprep.subr.bf16.mxu0 %v10077_v1 }
  0x2d   : > { %7391 = vmatprep.subr.bf16.mxu1 %v10077_v1 }
  0x2e   : > { %6628 = vmatmul.mubr.bf16.vlgmr.msra.gmra.mrb[0].mxu0 %v686_v24  ;;  %v8004_v24 = vld [vmem:[%s8234_s14 + $0xb8] sm:$0xff]  }
  0x2f   : > { %6888 = vmatmul.mubr.bf16.vlgmr.msra.gmra.mrb[0].mxu1 %v7982_v23  ;;  %7132 = vmatpush3.bf16.msra.mxu0 %v8158_v0  ;;  %v711_v0 = vrot.slane %v7996_v63, 3 }
  0x30   : > { %7392 = vmatpush3.bf16.msra.mxu1 %v8165_v2  ;;  %6631 = vmatprep.mubr.msk.bf16.mxu0 %vm8120_vm0, %v10077_v1 }
  0x31   : > { %6891 = vmatprep.mubr.msk.bf16.mxu1 %vm8120_vm0, %v10077_v1  ;;  %7133 = vmatprep.subr.bf16.mxu0 %v10077_v1  ;;  %v712_v2 = vsel %vm683_vm1, %v709_v61, %v711_v0 }
  0x32   : > { %7393 = vmatprep.subr.bf16.mxu1 %v10077_v1 }
  0x33   : > { %7134 = vmatpush3.bf16.msra.mxu0 %v8171_v3  ;;  %v7997_v3 = vld [vmem:[%s8234_s14 + $0x80] sm:$0xff]  }
  0x34   : > { %7394 = vmatpush3.bf16.msra.mxu1 %v8180_v4  ;;  %7135 = vmatprep.subr.bf16.mxu0 %v10077_v1  ;;  %v713_v4 = vrot.slane %v7997_v3, 3 }
  0x35   : > { %7395 = vmatprep.subr.bf16.mxu1 %v10077_v1 }
  0x36   : > { %6632 = vmatmul.mubr.bf16.gmra.mrb[4].mxu0 %v688_v30  ;;  %v8006_v30 = vld [vmem:[%s8234_s14 + $0xc8] sm:$0xff]  }
  0x37   : > { %6892 = vmatmul.mubr.bf16.gmra.mrb[4].mxu1 %v5657_v31  ;;  %6635 = vmatprep.mubr.msk.bf16.mxu0 %vm8120_vm0, %v10077_v1  ;;  %v731_v31 = vrot.slane %v8006_v30, 3 }
  0x38   : > { %6895 = vmatprep.mubr.msk.bf16.mxu1 %vm8120_vm0, %v10077_v1  ;;  %7136 = vmatpush3.bf16.msra.mxu0 %v8189_v5  ;;  %v714_v5 = vsel %vm683_vm1, %v711_v0, %v713_v4  ;;  %v8012_v0 = vld [vmem:[%s8234_s14 + $0xf8] sm:$0xff]  }
  0x39   : > { %7396 = vmatpush3.bf16.msra.mxu1 %v8196_v6  ;;  %7137 = vmatprep.subr.bf16.mxu0 %v10077_v1  ;;  %v7998_v6 = vld [vmem:[%s8234_s14 + $0x88] sm:$0xff]  }
  0x3a   : > { %7397 = vmatprep.subr.bf16.mxu1 %v10077_v1 }
  0x3c   : > { %7138 = vmatpush3.bf16.msra.mxu0 %v8205_v7  ;;  %v715_v7 = vrot.slane %v7998_v6, 3 }
  0x3d   : > { %7398 = vmatpush3.bf16.msra.mxu1 %v8212_v8  ;;  %7139 = vmatprep.subr.bf16.mxu0 %v10077_v1 }
  0x3e   : > { %6636 = vmatmul.mubr.bf16.gmra.mrb[8].mxu0 %v690_v34  ;;  %7399 = vmatprep.subr.bf16.mxu1 %v10077_v1  ;;  %v716_v8 = vsel %vm683_vm1, %v713_v4, %v715_v7  ;;  %v733_v34 = vrot.slane %v8007_v33, 3 }
  0x3f   : > { %6896 = vmatmul.mubr.bf16.gmra.mrb[8].mxu1 %v7981_v17  ;;  %6639 = vmatprep.mubr.msk.bf16.mxu0 %vm8120_vm0, %v10077_v1 }
  0x40   : > { %6899 = vmatprep.mubr.msk.bf16.mxu1 %vm8120_vm0, %v10077_v1  ;;  %7140 = vmatpush3.bf16.msra.mxu0 %v8220_v9  ;;  %v7999_v9 = vld [vmem:[%s8234_s14 + $0x90] sm:$0xff]  }
  0x41   : > { %7400 = vmatpush3.bf16.msra.mxu1 %v8227_v10  ;;  %7141 = vmatprep.subr.bf16.mxu0 %v10077_v1  ;;  %v717_v10 = vrot.slane %v7999_v9, 3 }
  0x42   : > { %7401 = vmatprep.subr.bf16.mxu1 %v10077_v1 }
  0x44   : > { %7142 = vmatpush3.bf16.msra.mxu0 %v8240_v11  ;;  %v718_v11 = vsel %vm683_vm1, %v715_v7, %v717_v10 }
  0x45   : > { %7402 = vmatpush3.bf16.msra.mxu1 %v8246_v12  ;;  %7143 = vmatprep.subr.bf16.mxu0 %v10077_v1  ;;  %v8000_v12 = vld [vmem:[%s8234_s14 + $0x98] sm:$0xff]  }
  0x46   : > { %6640 = vmatmul.mubr.bf16.gmra.mrb[12].mxu0 %v692_v37  ;;  %7403 = vmatprep.subr.bf16.mxu1 %v10077_v1  ;;  %v719_v13 = vrot.slane %v8000_v12, 3  ;;  %v735_v37 = vrot.slane %v8008_v36, 3 }
  0x47   : > { %6900 = vmatmul.mubr.bf16.gmra.mrb[12].mxu1 %v7983_v25  ;;  %6643 = vmatprep.mubr.msk.bf16.mxu0 %vm8120_vm0, %v10077_v1  ;;  %v727_v25 = vrot.slane %v8004_v24, 3 }
  0x48   : > { %6903 = vmatprep.mubr.msk.bf16.mxu1 %vm8120_vm0, %v10077_v1  ;;  %7144 = vmatpush3.bf16.msra.mxu0 %v8256_v15  ;;  %v720_v14 = vsel %vm683_vm1, %v717_v10, %v719_v13  ;;  %v8001_v15 = vld [vmem:[%s8234_s14 + $0xa0] sm:$0xff]  }
  0x49   : > { %7404 = vmatpush3.bf16.msra.mxu1 %v8265_v18  ;;  %7145 = vmatprep.subr.bf16.mxu0 %v10077_v1  ;;  %v721_v16 = vrot.slane %v8001_v15, 3  ;;  %v8002_v18 = vld [vmem:[%s8234_s14 + $0xa8] sm:$0xff]   ;;  %v730_v29 = vsel %vm683_vm1, %v727_v25, %v729_v28 }
  0x4a   : > { %7405 = vmatprep.subr.bf16.mxu1 %v10077_v1 }
  0x4b   : > { %v722_v17 = vsel %vm683_vm1, %v719_v13, %v721_v16 }
  0x4c   : > { %7146 = vmatpush3.bf16.msra.mxu0 %v8271_v19  ;;  %v723_v19 = vrot.slane %v8002_v18, 3 }
  0x4d   : > { %7406 = vmatpush3.bf16.msra.mxu1 %v8279_v22  ;;  %v725_v22 = vrot.slane %v8003_v21, 3 }
  0x4e   : > { %6644 = vmatmul.mubr.bf16.gmra.mrb[16].mxu0 %v694_v39  ;;  %v724_v20 = vsel %vm683_vm1, %v721_v16, %v723_v19  ;;  %v8009_v39 = vld [vmem:[%s8234_s14 + $0xe0] sm:$0xff]  }
  0x4f   : > { %6904 = vmatmul.mubr.bf16.gmra.mrb[16].mxu1 %v7985_v26  ;;  %6647 = vmatprep.mubr.msk.bf16.mxu0 %vm8120_vm0, %v10077_v1  ;;  %v726_v23 = vsel %vm683_vm1, %v723_v19, %v725_v22  ;;  %v728_v26 = vsel %vm683_vm1, %v725_v22, %v727_v25  ;;  %v737_v40 = vrot.slane %v8009_v39, 3 }
  0x50   : > { %6907 = vmatprep.mubr.msk.bf16.mxu1 %vm8120_vm0, %v10077_v1 }
  0x56   : > { %6648 = vmatmul.mubr.bf16.gmra.mrb[20].mxu0 %v696_v41  ;;  %v738_v41 = vsel %vm683_vm1, %v735_v37, %v737_v40 }
  0x57   : > { %6908 = vmatmul.mubr.bf16.gmra.mrb[20].mxu1 %v7986_v32  ;;  %6651 = vmatprep.mubr.msk.bf16.mxu0 %vm8120_vm0, %v10077_v1  ;;  %v732_v32 = vsel %vm683_vm1, %v729_v28, %v731_v31 }
  0x58   : > { %6911 = vmatprep.mubr.msk.bf16.mxu1 %vm8120_vm0, %v10077_v1 }
  0x5e   : > { %6652 = vmatmul.mubr.bf16.gmra.mrb[24].mxu0 %v698_v44 }
  0x5f   : > { %6912 = vmatmul.mubr.bf16.gmra.mrb[24].mxu1 %v7987_v35  ;;  %6655 = vmatprep.mubr.msk.bf16.mxu0 %vm8120_vm0, %v10077_v1  ;;  %v734_v35 = vsel %vm683_vm1, %v731_v31, %v733_v34 }
  0x60   : > { %6915 = vmatprep.mubr.msk.bf16.mxu1 %vm8120_vm0, %v10077_v1 }
  0x66   : > { %6656 = vmatmul.mubr.bf16.gmra.mrb[28].mxu0 %v700_v47 }
  0x67   : > { %6916 = vmatmul.mubr.bf16.gmra.mrb[28].mxu1 %v7988_v38  ;;  %6659 = vmatprep.mubr.msk.bf16.mxu0 %vm8120_vm0, %v10077_v1  ;;  %v736_v38 = vsel %vm683_vm1, %v733_v34, %v735_v37 }
  0x68   : > { %6919 = vmatprep.mubr.msk.bf16.mxu1 %vm8120_vm0, %v10077_v1 }
  0x6e   : > { %6660 = vmatmul.mubr.bf16.gmra.mrb[32].mxu0 %v702_v50 }
  0x6f   : > { %6920 = vmatmul.mubr.bf16.gmra.mrb[32].mxu1 %v7989_v42  ;;  %6663 = vmatprep.mubr.msk.bf16.mxu0 %vm8120_vm0, %v10077_v1  ;;  %v8010_v42 = vld [vmem:[%s8234_s14 + $0xe8] sm:$0xff]  }
  0x70   : > { %6923 = vmatprep.mubr.msk.bf16.mxu1 %vm8120_vm0, %v10077_v1  ;;  %v739_v43 = vrot.slane %v8010_v42, 3 }
  0x72   : > { %v740_v50 = vsel %vm683_vm1, %v737_v40, %v739_v43  ;;  %v8015_v40 = vld [vmem:[%s8234_s14 + $0x110] sm:$0xff]  }
  0x76   : > { %6664 = vmatmul.mubr.bf16.gmra.mrb[36].mxu0 %v704_v53 }
  0x77   : > { %6924 = vmatmul.mubr.bf16.gmra.mrb[36].mxu1 %v7990_v45  ;;  %6667 = vmatprep.mubr.msk.bf16.mxu0 %vm8120_vm0, %v10077_v1 }
  0x78   : > { %6927 = vmatprep.mubr.msk.bf16.mxu1 %vm8120_vm0, %v10077_v1 }
  0x7e   : > { %6668 = vmatmul.mubr.bf16.gmra.mrb[40].mxu0 %v706_v56 }
  0x7f   : > { %6928 = vmatmul.mubr.bf16.gmra.mrb[40].mxu1 %v7991_v48  ;;  %6671 = vmatprep.mubr.msk.bf16.mxu0 %vm8120_vm0, %v10077_v1 }
  0x80   : > { %6931 = vmatprep.mubr.msk.bf16.mxu1 %vm8120_vm0, %v10077_v1 }
  0x86   : > { %6672 = vmatmul.mubr.bf16.gmra.mrb[44].mxu0 %v708_v59 }
  0x87   : > { %6932 = vmatmul.mubr.bf16.gmra.mrb[44].mxu1 %v7992_v51  ;;  %6675 = vmatprep.mubr.msk.bf16.mxu0 %vm8120_vm0, %v10077_v1  ;;  %v8011_v51 = vld [vmem:[%s8234_s14 + $0xf0] sm:$0xff]  }
  0x88   : > { %6935 = vmatprep.mubr.msk.bf16.mxu1 %vm8120_vm0, %v10077_v1  ;;  %v741_v56 = vrot.slane %v8011_v51, 3 }
  0x8e   : > { %6676 = vmatmul.mubr.bf16.gmra.mrb[48].mxu0 %v710_v62 }
  0x8f   : > { %6936 = vmatmul.mubr.bf16.gmra.mrb[48].mxu1 %v7993_v54  ;;  %6679 = vmatprep.mubr.msk.bf16.mxu0 %vm8120_vm0, %v10077_v1 }
  0x90   : > { %6939 = vmatprep.mubr.msk.bf16.mxu1 %vm8120_vm0, %v10077_v1 }
  0x96   : > { %6680 = vmatmul.mubr.bf16.gmra.mrb[52].mxu0 %v712_v2 }
  0x97   : > { %6940 = vmatmul.mubr.bf16.gmra.mrb[52].mxu1 %v7994_v57  ;;  %6683 = vmatprep.mubr.msk.bf16.mxu0 %vm8120_vm0, %v10077_v1 }
  0x98   : > { %6943 = vmatprep.mubr.msk.bf16.mxu1 %vm8120_vm0, %v10077_v1 }
  0x9e   : > { %6684 = vmatmul.mubr.bf16.gmra.mrb[56].mxu0 %v714_v5 }
  0x9f   : > { %6944 = vmatmul.mubr.bf16.gmra.mrb[56].mxu1 %v7995_v60  ;;  %6687 = vmatprep.mubr.msk.bf16.mxu0 %vm8120_vm0, %v10077_v1 }
  0xa0   : > { %6947 = vmatprep.mubr.msk.bf16.mxu1 %vm8120_vm0, %v10077_v1 }
  0xa6   : > { %6688 = vmatmul.mubr.bf16.gmra.mrb[60].mxu0 %v716_v8 }
  0xa7   : > { %6948 = vmatmul.mubr.bf16.gmra.mrb[60].mxu1 %v7996_v63  ;;  %6691 = vmatprep.mubr.msk.bf16.mxu0 %vm8120_vm0, %v10077_v1  ;;  %v742_v63 = vsel %vm683_vm1, %v739_v43, %v741_v56 }
  0xa8   : > { %6951 = vmatprep.mubr.msk.bf16.mxu1 %vm8120_vm0, %v10077_v1 }
  0xae   : > { %6692 = vmatmul.mubr.bf16.gmra.mrb[64].mxu0 %v718_v11 }
  0xaf   : > { %6952 = vmatmul.mubr.bf16.gmra.mrb[64].mxu1 %v7997_v3  ;;  %6695 = vmatprep.mubr.msk.bf16.mxu0 %vm8120_vm0, %v10077_v1 }
  0xb0   : > { %6955 = vmatprep.mubr.msk.bf16.mxu1 %vm8120_vm0, %v10077_v1 }
  0xb6   : > { %6696 = vmatmul.mubr.bf16.gmra.mrb[68].mxu0 %v720_v14  ;;  %v8013_v14 = vld [vmem:[%s8234_s14 + $0x100] sm:$0xff]  }
  0xb7   : > { %6956 = vmatmul.mubr.bf16.gmra.mrb[68].mxu1 %v7998_v6  ;;  %6699 = vmatprep.mubr.msk.bf16.mxu0 %vm8120_vm0, %v10077_v1  ;;  %v743_v6 = vrot.slane %v8012_v0, 3  ;;  %v745_v19 = vrot.slane %v8013_v14, 3 }
  0xb8   : > { %6959 = vmatprep.mubr.msk.bf16.mxu1 %vm8120_vm0, %v10077_v1 }
  0xb9   : > { %v744_v13 = vsel %vm683_vm1, %v741_v56, %v743_v6 }
  0xbe   : > { %6700 = vmatmul.mubr.bf16.gmra.mrb[72].mxu0 %v722_v17 }
  0xbf   : > { %6960 = vmatmul.mubr.bf16.gmra.mrb[72].mxu1 %v7999_v9  ;;  %6703 = vmatprep.mubr.msk.bf16.mxu0 %vm8120_vm0, %v10077_v1 }
  0xc0   : > { %6963 = vmatprep.mubr.msk.bf16.mxu1 %vm8120_vm0, %v10077_v1 }
  0xc6   : > { %6704 = vmatmul.mubr.bf16.gmra.mrb[76].mxu0 %v724_v20 }
  0xc7   : > { %6964 = vmatmul.mubr.bf16.gmra.mrb[76].mxu1 %v8000_v12  ;;  %6707 = vmatprep.mubr.msk.bf16.mxu0 %vm8120_vm0, %v10077_v1 }
  0xc8   : > { %6967 = vmatprep.mubr.msk.bf16.mxu1 %vm8120_vm0, %v10077_v1 }
  0xce   : > { %6708 = vmatmul.mubr.bf16.gmra.mrb[80].mxu0 %v726_v23 }
  0xcf   : > { %6968 = vmatmul.mubr.bf16.gmra.mrb[80].mxu1 %v8001_v15  ;;  %6711 = vmatprep.mubr.msk.bf16.mxu0 %vm8120_vm0, %v10077_v1 }
  0xd0   : > { %6971 = vmatprep.mubr.msk.bf16.mxu1 %vm8120_vm0, %v10077_v1 }
  0xd6   : > { %6712 = vmatmul.mubr.bf16.gmra.mrb[84].mxu0 %v728_v26  ;;  %v746_v26 = vsel %vm683_vm1, %v743_v6, %v745_v19 }
  0xd7   : > { %6972 = vmatmul.mubr.bf16.gmra.mrb[84].mxu1 %v8002_v18  ;;  %6715 = vmatprep.mubr.msk.bf16.mxu0 %vm8120_vm0, %v10077_v1 }
  0xd8   : > { %6975 = vmatprep.mubr.msk.bf16.mxu1 %vm8120_vm0, %v10077_v1 }
  0xde   : > { %6716 = vmatmul.mubr.bf16.gmra.mrb[88].mxu0 %v730_v29 }
  0xdf   : > { %6976 = vmatmul.mubr.bf16.gmra.mrb[88].mxu1 %v8003_v21  ;;  %6719 = vmatprep.mubr.msk.bf16.mxu0 %vm8120_vm0, %v10077_v1 }
  0xe0   : > { %6979 = vmatprep.mubr.msk.bf16.mxu1 %vm8120_vm0, %v10077_v1 }
  0xe6   : > { %6720 = vmatmul.mubr.bf16.gmra.mrb[92].mxu0 %v732_v32 }
  0xe7   : > { %6980 = vmatmul.mubr.bf16.gmra.mrb[92].mxu1 %v8004_v24  ;;  %6723 = vmatprep.mubr.msk.bf16.mxu0 %vm8120_vm0, %v10077_v1 }
  0xe8   : > { %6983 = vmatprep.mubr.msk.bf16.mxu1 %vm8120_vm0, %v10077_v1 }
  0xee   : > { %6724 = vmatmul.mubr.bf16.gmra.mrb[96].mxu0 %v734_v35 }
  0xef   : > { %6984 = vmatmul.mubr.bf16.gmra.mrb[96].mxu1 %v8005_v27  ;;  %6727 = vmatprep.mubr.msk.bf16.mxu0 %vm8120_vm0, %v10077_v1  ;;  %v8014_v27 = vld [vmem:[%s8234_s14 + $0x108] sm:$0xff]  }
  0xf0   : > { %6987 = vmatprep.mubr.msk.bf16.mxu1 %vm8120_vm0, %v10077_v1  ;;  %v747_v32 = vrot.slane %v8014_v27, 3 }
  0xf6   : > { %6728 = vmatmul.mubr.bf16.gmra.mrb[100].mxu0 %v736_v38 }
  0xf7   : > { %6988 = vmatmul.mubr.bf16.gmra.mrb[100].mxu1 %v8006_v30  ;;  %6731 = vmatprep.mubr.msk.bf16.mxu0 %vm8120_vm0, %v10077_v1 }
  0xf8   : > { %6991 = vmatprep.mubr.msk.bf16.mxu1 %vm8120_vm0, %v10077_v1 }
  0xfe   : > { %6732 = vmatmul.mubr.bf16.gmra.mrb[104].mxu0 %v738_v41 }
  0xff   : > { %6992 = vmatmul.mubr.bf16.gmra.mrb[104].mxu1 %v8007_v33  ;;  %6735 = vmatprep.mubr.msk.bf16.mxu0 %vm8120_vm0, %v10077_v1 }
 0x100   : > { %6995 = vmatprep.mubr.msk.bf16.mxu1 %vm8120_vm0, %v10077_v1 }
 0x101   : > { %v948_v44 = vpop.f32.mrb[0].mxu0 }
 0x102   : > { %v1586_v45 = vpop.f32.mrb[0].mxu1  ;;  %v6629_v46 = vpop.f32.mrb[1].mxu0 }
 0x103   : > { %v8480_v47 = vadd.f32 %v1586_v45, %v948_v44  ;;  %v6889_v48 = vpop.f32.mrb[1].mxu1  ;;  %v951_v49 = vpop.f32.mrb[2].mxu0  ;;  %v749_v45 = vrot.slane %v8015_v40, 3 }
 0x104   : > { %v1589_v52 = vpop.f32.mrb[2].mxu1  ;;  %v6630_v53 = vpop.f32.mrb[3].mxu0 }
 0x105   : > { %v8484_v54 = vadd.f32 %v1589_v52, %v951_v49  ;;  %v6890_v55 = vpop.f32.mrb[3].mxu1  ;;  %v750_v53 = vsel %vm683_vm1, %v747_v32, %v749_v45 }
 0x106   : > { %6736 = vmatmul.mubr.bf16.gmra.mrb[108].mxu0 %v740_v50  ;;  %v8016_v55 = vld [vmem:[%s8234_s14 + $0x118] sm:$0xff]  }
 0x107   : > { %6996 = vmatmul.mubr.bf16.gmra.mrb[108].mxu1 %v8008_v36  ;;  %6739 = vmatprep.mubr.msk.bf16.mxu0 %vm8120_vm0, %v10077_v1 }
 0x108   : > { %6999 = vmatprep.mubr.msk.bf16.mxu1 %vm8120_vm0, %v10077_v1 }
 0x109   : > { %v956_v57 = vpop.f32.mrb[4].mxu0 }
 0x10a   : > { %v1594_v58 = vpop.f32.mrb[4].mxu1  ;;  %v6633_v59 = vpop.f32.mrb[5].mxu0 }
 0x10b   : > { %v8490_v60 = vadd.f32 %v1594_v58, %v956_v57  ;;  %v6893_v61 = vpop.f32.mrb[5].mxu1  ;;  %v959_v62 = vpop.f32.mrb[6].mxu0 }
 0x10c   : > { %v1597_v2 = vpop.f32.mrb[6].mxu1  ;;  %v6634_v3 = vpop.f32.mrb[7].mxu0  ;;  %v751_v61 = vrot.slane %v8016_v55, 3 }
 0x10d   : > { %v8494_v4 = vadd.f32 %v1597_v2, %v959_v62  ;;  %v6894_v5 = vpop.f32.mrb[7].mxu1 }
 0x10e   : > { %6740 = vmatmul.mubr.bf16.gmra.mrb[112].mxu0 %v742_v63  ;;  %v752_v6 = vsel %vm683_vm1, %v749_v45, %v751_v61 }
 0x10f   : > { %7000 = vmatmul.mubr.bf16.gmra.mrb[112].mxu1 %v8009_v39  ;;  %6743 = vmatprep.mubr.msk.bf16.mxu0 %vm8120_vm0, %v10077_v1  ;;  %v748_v39 = vsel %vm683_vm1, %v745_v19, %v747_v32 }
 0x110   : > { %7003 = vmatprep.mubr.msk.bf16.mxu1 %vm8120_vm0, %v10077_v1 }
 0x111   : > { %v964_v7 = vpop.f32.mrb[8].mxu0 }
 0x112   : > { %v1602_v8 = vpop.f32.mrb[8].mxu1  ;;  %v6637_v9 = vpop.f32.mrb[9].mxu0 }
 0x113   : > { %v8500_v10 = vadd.f32 %v1602_v8, %v964_v7  ;;  %v6897_v11 = vpop.f32.mrb[9].mxu1  ;;  %v967_v12 = vpop.f32.mrb[10].mxu0  ;;  %v8017_v7 = vld [vmem:[%s8234_s14 + $0x120] sm:$0xff]  }
 0x114   : > { %v1605_v15 = vpop.f32.mrb[10].mxu1  ;;  %v6638_v16 = vpop.f32.mrb[11].mxu0 }
 0x115   : > { %v8504_v17 = vadd.f32 %v1605_v15, %v967_v12  ;;  %v6898_v18 = vpop.f32.mrb[11].mxu1 }
 0x116   : > { %6744 = vmatmul.mubr.bf16.gmra.mrb[116].mxu0 %v744_v13  ;;  %v753_v13 = vrot.slane %v8017_v7, 3 }
 0x117   : > { %7004 = vmatmul.mubr.bf16.gmra.mrb[116].mxu1 %v8010_v42  ;;  %6747 = vmatprep.mubr.msk.bf16.mxu0 %vm8120_vm0, %v10077_v1 }
 0x118   : > { %7007 = vmatprep.mubr.msk.bf16.mxu1 %vm8120_vm0, %v10077_v1 }
 0x119   : > { %v972_v20 = vpop.f32.mrb[12].mxu0 }
 0x11a   : > { %v1610_v21 = vpop.f32.mrb[12].mxu1  ;;  %v6641_v22 = vpop.f32.mrb[13].mxu0 }
 0x11b   : > { %v8510_v23 = vadd.f32 %v1610_v21, %v972_v20  ;;  %v6901_v24 = vpop.f32.mrb[13].mxu1  ;;  %v975_v25 = vpop.f32.mrb[14].mxu0  ;;  %v754_v21 = vsel %vm683_vm1, %v751_v61, %v753_v13  ;;  %v8018_v22 = vld [vmem:[%s8234_s14 + $0x128] sm:$0xff]  }
 0x11c   : > { %v1613_v28 = vpop.f32.mrb[14].mxu1  ;;  %v6642_v29 = vpop.f32.mrb[15].mxu0 }
 0x11d   : > { %v8514_v30 = vadd.f32 %v1613_v28, %v975_v25  ;;  %v6902_v31 = vpop.f32.mrb[15].mxu1  ;;  %v755_v28 = vrot.slane %v8018_v22, 3 }
 0x11e   : > { %6748 = vmatmul.mubr.bf16.gmra.mrb[120].mxu0 %v746_v26 }
 0x11f   : > { %7008 = vmatmul.mubr.bf16.gmra.mrb[120].mxu1 %v8011_v51  ;;  %6751 = vmatprep.mubr.msk.bf16.mxu0 %vm8120_vm0, %v10077_v1 }
 0x120   : > { %7011 = vmatprep.mubr.msk.bf16.mxu1 %vm8120_vm0, %v10077_v1 }
 0x121   : > { %v980_v33 = vpop.f32.mrb[16].mxu0 }
 0x122   : > { %v1618_v34 = vpop.f32.mrb[16].mxu1  ;;  %v6645_v35 = vpop.f32.mrb[17].mxu0 }
 0x123   : > { %v8520_v36 = vadd.f32 %v1618_v34, %v980_v33  ;;  %v6905_v37 = vpop.f32.mrb[17].mxu1  ;;  %v983_v38 = vpop.f32.mrb[18].mxu0 }
 0x124   : > { %v1621_v41 = vpop.f32.mrb[18].mxu1  ;;  %v6646_v42 = vpop.f32.mrb[19].mxu0  ;;  %v756_v37 = vsel %vm683_vm1, %v753_v13, %v755_v28 }
 0x125   : > { %v8524_v43 = vadd.f32 %v1621_v41, %v983_v38  ;;  %v6906_v44 = vpop.f32.mrb[19].mxu1  ;;  %v8019_v38 = vld [vmem:[%s8234_s14 + $0x130] sm:$0xff]  }
 0x126   : > { %6752 = vmatmul.mubr.bf16.gmra.mrb[124].mxu0 %v748_v39  ;;  %v757_v44 = vrot.slane %v8019_v38, 3 }
 0x127   : > { %7012 = vmatmul.mubr.bf16.gmra.mrb[124].mxu1 %v8012_v0  ;;  %6755 = vmatprep.mubr.msk.bf16.mxu0 %vm8120_vm0, %v10077_v1 }
 0x128   : > { %7015 = vmatprep.mubr.msk.bf16.mxu1 %vm8120_vm0, %v10077_v1 }
 0x129   : > { %v988_v46 = vpop.f32.mrb[20].mxu0 }
 0x12a   : > { %v1626_v48 = vpop.f32.mrb[20].mxu1  ;;  %v6649_v49 = vpop.f32.mrb[21].mxu0 }
 0x12b   : > { %v8530_v50 = vadd.f32 %v1626_v48, %v988_v46  ;;  %v6909_v51 = vpop.f32.mrb[21].mxu1  ;;  %v991_v52 = vpop.f32.mrb[22].mxu0 }
 0x12c   : > { %v1629_v56 = vpop.f32.mrb[22].mxu1  ;;  %v6650_v57 = vpop.f32.mrb[23].mxu0 }
 0x12d   : > { %v8534_v58 = vadd.f32 %v1629_v56, %v991_v52  ;;  %v6910_v59 = vpop.f32.mrb[23].mxu1  ;;  %v8020_v56 = vld [vmem:[%s8234_s14 + $0x138] sm:$0xff]  }
 0x12e   : > { %6756 = vmatmul.mubr.bf16.gmra.mrb[128].mxu0 %v750_v53  ;;  %v758_v53 = vsel %vm683_vm1, %v755_v28, %v757_v44 }
 0x12f   : > { %7016 = vmatmul.mubr.bf16.gmra.mrb[128].mxu1 %v8013_v14  ;;  %6759 = vmatprep.mubr.msk.bf16.mxu0 %vm8120_vm0, %v10077_v1 }
 0x130   : > { %7019 = vmatprep.mubr.msk.bf16.mxu1 %vm8120_vm0, %v10077_v1 }
 0x131   : > { %v996_v62 = vpop.f32.mrb[24].mxu0 }
 0x132   : > { %v1634_v63 = vpop.f32.mrb[24].mxu1  ;;  %v6653_v0 = vpop.f32.mrb[25].mxu0 }
 0x133   : > { %v8540_v2 = vadd.f32 %v1634_v63, %v996_v62  ;;  %v6913_v3 = vpop.f32.mrb[25].mxu1  ;;  %v999_v5 = vpop.f32.mrb[26].mxu0  ;;  %v759_v62 = vrot.slane %v8020_v56, 3 }
 0x134   : > { %v1637_v8 = vpop.f32.mrb[26].mxu1  ;;  %v6654_v9 = vpop.f32.mrb[27].mxu0 }
 0x135   : > { %v8544_v11 = vadd.f32 %v1637_v8, %v999_v5  ;;  %v6914_v12 = vpop.f32.mrb[27].mxu1  ;;  %v760_v9 = vsel %vm683_vm1, %v757_v44, %v759_v62 }
 0x136   : > { %6760 = vmatmul.mubr.bf16.gmra.mrb[132].mxu0 %v752_v6  ;;  %v8021_v12 = vld [vmem:[%s8234_s14 + $0x140] sm:$0xff]  }
 0x137   : > { %7020 = vmatmul.mubr.bf16.gmra.mrb[132].mxu1 %v8014_v27  ;;  %6763 = vmatprep.mubr.msk.bf16.mxu0 %vm8120_vm0, %v10077_v1 }
 0x138   : > { %7023 = vmatprep.mubr.msk.bf16.mxu1 %vm8120_vm0, %v10077_v1 }
 0x139   : > { %v1004_v14 = vpop.f32.mrb[28].mxu0 }
 0x13a   : > { %v1642_v15 = vpop.f32.mrb[28].mxu1  ;;  %v6657_v16 = vpop.f32.mrb[29].mxu0 }
 0x13b   : > { %v8550_v18 = vadd.f32 %v1642_v15, %v1004_v14  ;;  %v6917_v19 = vpop.f32.mrb[29].mxu1  ;;  %v1007_v20 = vpop.f32.mrb[30].mxu0  ;;  %v761_v16 = vrot.slane %v8021_v12, 3 }
 0x13c   : > { %v1645_v24 = vpop.f32.mrb[30].mxu1  ;;  %v6658_v25 = vpop.f32.mrb[31].mxu0 }
 0x13d   : > { %v8554_v26 = vadd.f32 %v1645_v24, %v1007_v20  ;;  %v6918_v27 = vpop.f32.mrb[31].mxu1  ;;  %v762_v28 = vsel %vm683_vm1, %v759_v62, %v761_v16 }
 0x13e   : > { %6764 = vmatmul.mubr.bf16.gmra.mrb[136].mxu0 %v754_v21 }
 0x13f   : > { %7024 = vmatmul.mubr.bf16.gmra.mrb[136].mxu1 %v8015_v40  ;;  %6767 = vmatprep.mubr.msk.bf16.mxu0 %vm8120_vm0, %v10077_v1 }
 0x140   : > { %7027 = vmatprep.mubr.msk.bf16.mxu1 %vm8120_vm0, %v10077_v1 }
 0x141   : > { %v1012_v29 = vpop.f32.mrb[32].mxu0 }
 0x142   : > { %v1650_v31 = vpop.f32.mrb[32].mxu1  ;;  %v6661_v32 = vpop.f32.mrb[33].mxu0 }
 0x143   : > { %v8560_v33 = vadd.f32 %v1650_v31, %v1012_v29  ;;  %v6921_v34 = vpop.f32.mrb[33].mxu1  ;;  %v1015_v35 = vpop.f32.mrb[34].mxu0  ;;  %v8022_v29 = vld [vmem:[%s8234_s14 + $0x148] sm:$0xff]  }
 0x144   : > { %v1653_v39 = vpop.f32.mrb[34].mxu1  ;;  %v6662_v40 = vpop.f32.mrb[35].mxu0 }
 0x145   : > { %v8564_v41 = vadd.f32 %v1653_v39, %v1015_v35  ;;  %v6922_v42 = vpop.f32.mrb[35].mxu1  ;;  %v763_v35 = vrot.slane %v8022_v29, 3 }
 0x146   : > { %6768 = vmatmul.mubr.bf16.gmra.mrb[140].mxu0 %v756_v37 }
 0x147   : > { %7028 = vmatmul.mubr.bf16.gmra.mrb[140].mxu1 %v8016_v55  ;;  %6771 = vmatprep.mubr.msk.bf16.mxu0 %vm8120_vm0, %v10077_v1 }
 0x148   : > { %7031 = vmatprep.mubr.msk.bf16.mxu1 %vm8120_vm0, %v10077_v1 }
 0x149   : > { %v1020_v45 = vpop.f32.mrb[36].mxu0 }
 0x14a   : > { %v1658_v46 = vpop.f32.mrb[36].mxu1  ;;  %v6665_v48 = vpop.f32.mrb[37].mxu0 }
 0x14b   : > { %v8570_v49 = vadd.f32 %v1658_v46, %v1020_v45  ;;  %v6925_v51 = vpop.f32.mrb[37].mxu1  ;;  %v1023_v52 = vpop.f32.mrb[38].mxu0  ;;  %v764_v46 = vsel %vm683_vm1, %v761_v16, %v763_v35  ;;  %v8023_v48 = vld [vmem:[%s8234_s14 + $0x150] sm:$0xff]  }
 0x14c   : > { %v1661_v57 = vpop.f32.mrb[38].mxu1  ;;  %v6666_v55 = vpop.f32.mrb[39].mxu0 }
 0x14d   : > { %v8574_v59 = vadd.f32 %v1661_v57, %v1023_v52  ;;  %v6926_v61 = vpop.f32.mrb[39].mxu1  ;;  %v765_v57 = vrot.slane %v8023_v48, 3 }
 0x14e   : > { %6772 = vmatmul.mubr.bf16.gmra.mrb[144].mxu0 %v758_v53 }
 0x14f   : > { %7032 = vmatmul.mubr.bf16.gmra.mrb[144].mxu1 %v8017_v7  ;;  %6775 = vmatprep.mubr.msk.bf16.mxu0 %vm8120_vm0, %v10077_v1 }
 0x150   : > { %7035 = vmatprep.mubr.msk.bf16.mxu1 %vm8120_vm0, %v10077_v1 }
 0x151   : > { %v1028_v63 = vpop.f32.mrb[40].mxu0 }
 0x152   : > { %v1666_v0 = vpop.f32.mrb[40].mxu1  ;;  %v6669_v3 = vpop.f32.mrb[41].mxu0 }
 0x153   : > { %v8580_v5 = vadd.f32 %v1666_v0, %v1028_v63  ;;  %v6929_v6 = vpop.f32.mrb[41].mxu1  ;;  %v1031_v8 = vpop.f32.mrb[42].mxu0 }
 0x154   : > { %v1669_v13 = vpop.f32.mrb[42].mxu1  ;;  %v6670_v7 = vpop.f32.mrb[43].mxu0  ;;  %v766_v6 = vsel %vm683_vm1, %v763_v35, %v765_v57 }
 0x155   : > { %v8584_v14 = vadd.f32 %v1669_v13, %v1031_v8  ;;  %v6930_v15 = vpop.f32.mrb[43].mxu1  ;;  %v8024_v8 = vld [vmem:[%s8234_s14 + $0x158] sm:$0xff]  }
 0x156   : > { %6776 = vmatmul.mubr.bf16.gmra.mrb[148].mxu0 %v760_v9  ;;  %v767_v15 = vrot.slane %v8024_v8, 3 }
 0x157   : > { %7036 = vmatmul.mubr.bf16.gmra.mrb[148].mxu1 %v8018_v22  ;;  %6779 = vmatprep.mubr.msk.bf16.mxu0 %vm8120_vm0, %v10077_v1 }
 0x158   : > { %7039 = vmatprep.mubr.msk.bf16.mxu1 %vm8120_vm0, %v10077_v1 }
 0x159   : > { %v1036_v19 = vpop.f32.mrb[44].mxu0 }
 0x15a   : > { %v1674_v20 = vpop.f32.mrb[44].mxu1  ;;  %v6673_v21 = vpop.f32.mrb[45].mxu0 }
 0x15b   : > { %v8590_v24 = vadd.f32 %v1674_v20, %v1036_v19  ;;  %v6933_v25 = vpop.f32.mrb[45].mxu1  ;;  %v1039_v27 = vpop.f32.mrb[46].mxu0 }
 0x15c   : > { %v1677_v31 = vpop.f32.mrb[46].mxu1  ;;  %v6674_v22 = vpop.f32.mrb[47].mxu0 }
 0x15d   : > { %v8594_v32 = vadd.f32 %v1677_v31, %v1039_v27  ;;  %v6934_v34 = vpop.f32.mrb[47].mxu1  ;;  %v8025_v31 = vld [vmem:[%s8234_s14 + $0x160] sm:$0xff]  }
 0x15e   : > { %6780 = vmatmul.mubr.bf16.gmra.mrb[152].mxu0 %v762_v28  ;;  %v768_v28 = vsel %vm683_vm1, %v765_v57, %v767_v15 }
 0x15f   : > { %7040 = vmatmul.mubr.bf16.gmra.mrb[152].mxu1 %v8019_v38  ;;  %6783 = vmatprep.mubr.msk.bf16.mxu0 %vm8120_vm0, %v10077_v1 }
 0x160   : > { %7043 = vmatprep.mubr.msk.bf16.mxu1 %vm8120_vm0, %v10077_v1 }
 0x161   : > { %v1044_v37 = vpop.f32.mrb[48].mxu0 }
 0x162   : > { %v1682_v39 = vpop.f32.mrb[48].mxu1  ;;  %v6677_v40 = vpop.f32.mrb[49].mxu0 }
 0x163   : > { %v8600_v42 = vadd.f32 %v1682_v39, %v1044_v37  ;;  %v6937_v44 = vpop.f32.mrb[49].mxu1  ;;  %v1047_v45 = vpop.f32.mrb[50].mxu0  ;;  %v769_v37 = vrot.slane %v8025_v31, 3 }
 0x164   : > { %v1685_v51 = vpop.f32.mrb[50].mxu1  ;;  %v6678_v38 = vpop.f32.mrb[51].mxu0 }
 0x165   : > { %v8604_v52 = vadd.f32 %v1685_v51, %v1047_v45  ;;  %v6938_v53 = vpop.f32.mrb[51].mxu1  ;;  %v770_v38 = vsel %vm683_vm1, %v767_v15, %v769_v37 }
 0x166   : > { %6784 = vmatmul.mubr.bf16.gmra.mrb[156].mxu0 %v764_v46  ;;  %v8026_v53 = vld [vmem:[%s8234_s14 + $0x168] sm:$0xff]  }
 0x167   : > { %7044 = vmatmul.mubr.bf16.gmra.mrb[156].mxu1 %v8020_v56  ;;  %6787 = vmatprep.mubr.msk.bf16.mxu0 %vm8120_vm0, %v10077_v1 }
 0x168   : > { %7047 = vmatprep.mubr.msk.bf16.mxu1 %vm8120_vm0, %v10077_v1 }
 0x169   : > { %v1052_v55 = vpop.f32.mrb[52].mxu0 }
 0x16a   : > { %v1690_v61 = vpop.f32.mrb[52].mxu1  ;;  %v6681_v62 = vpop.f32.mrb[53].mxu0 }
 0x16b   : > { %v8610_v63 = vadd.f32 %v1690_v61, %v1052_v55  ;;  %v6941_v0 = vpop.f32.mrb[53].mxu1  ;;  %v1055_v3 = vpop.f32.mrb[54].mxu0  ;;  %v771_v62 = vrot.slane %v8026_v53, 3 }
 0x16c   : > { %v1693_v9 = vpop.f32.mrb[54].mxu1  ;;  %v6682_v56 = vpop.f32.mrb[55].mxu0 }
 0x16d   : > { %v8614_v13 = vadd.f32 %v1693_v9, %v1055_v3  ;;  %v6942_v7 = vpop.f32.mrb[55].mxu1  ;;  %v772_v15 = vsel %vm683_vm1, %v769_v37, %v771_v62 }
 0x16e   : > { %6788 = vmatmul.mubr.bf16.gmra.mrb[160].mxu0 %v766_v6 }
 0x16f   : > { %7048 = vmatmul.mubr.bf16.gmra.mrb[160].mxu1 %v8021_v12  ;;  %6791 = vmatprep.mubr.msk.bf16.mxu0 %vm8120_vm0, %v10077_v1 }
 0x170   : > { %7051 = vmatprep.mubr.msk.bf16.mxu1 %vm8120_vm0, %v10077_v1 }
 0x171   : > { %v1060_v16 = vpop.f32.mrb[56].mxu0 }
 0x172   : > { %v1698_v19 = vpop.f32.mrb[56].mxu1  ;;  %v6685_v20 = vpop.f32.mrb[57].mxu0 }
 0x173   : > { %v8620_v21 = vadd.f32 %v1698_v19, %v1060_v16  ;;  %v6945_v25 = vpop.f32.mrb[57].mxu1  ;;  %v1063_v27 = vpop.f32.mrb[58].mxu0  ;;  %v8027_v16 = vld [vmem:[%s8234_s14 + $0x170] sm:$0xff]  }
 0x174   : > { %v1701_v22 = vpop.f32.mrb[58].mxu1  ;;  %v6686_v12 = vpop.f32.mrb[59].mxu0 }
 0x175   : > { %v8624_v34 = vadd.f32 %v1701_v22, %v1063_v27  ;;  %v6946_v35 = vpop.f32.mrb[59].mxu1  ;;  %v773_v27 = vrot.slane %v8027_v16, 3 }
 0x176   : > { %6792 = vmatmul.mubr.bf16.gmra.mrb[164].mxu0 %v768_v28 }
 0x177   : > { %7052 = vmatmul.mubr.bf16.gmra.mrb[164].mxu1 %v8022_v29  ;;  %6795 = vmatprep.mubr.msk.bf16.mxu0 %vm8120_vm0, %v10077_v1 }
 0x178   : > { %7055 = vmatprep.mubr.msk.bf16.mxu1 %vm8120_vm0, %v10077_v1 }
 0x179   : > { %v1068_v39 = vpop.f32.mrb[60].mxu0 }
 0x17a   : > { %v1706_v40 = vpop.f32.mrb[60].mxu1  ;;  %v6689_v44 = vpop.f32.mrb[61].mxu0 }
 0x17b   : > { %v8630_v45 = vadd.f32 %v1706_v40, %v1068_v39  ;;  %v6949_v46 = vpop.f32.mrb[61].mxu1  ;;  %v1071_v51 = vpop.f32.mrb[62].mxu0  ;;  %v774_v40 = vsel %vm683_vm1, %v771_v62, %v773_v27  ;;  %v8028_v44 = vld [vmem:[%s8234_s14 + $0x178] sm:$0xff]  }
 0x17c   : > { %v1709_v57 = vpop.f32.mrb[62].mxu1  ;;  %v6690_v29 = vpop.f32.mrb[63].mxu0 }
 0x17d   : > { %v8634_v55 = vadd.f32 %v1709_v57, %v1071_v51  ;;  %v6950_v61 = vpop.f32.mrb[63].mxu1  ;;  %v775_v57 = vrot.slane %v8028_v44, 3 }
 0x17e   : > { %6796 = vmatmul.mubr.bf16.gmra.mrb[168].mxu0 %v770_v38 }
 0x17f   : > { %7056 = vmatmul.mubr.bf16.gmra.mrb[168].mxu1 %v8023_v48  ;;  %6799 = vmatprep.mubr.msk.bf16.mxu0 %vm8120_vm0, %v10077_v1 }
 0x180   : > { %7059 = vmatprep.mubr.msk.bf16.mxu1 %vm8120_vm0, %v10077_v1 }
 0x181   : > { %v1076_v0 = vpop.f32.mrb[64].mxu0 }
 0x182   : > { %v1714_v3 = vpop.f32.mrb[64].mxu1  ;;  %v6693_v6 = vpop.f32.mrb[65].mxu0 }
 0x183   : > { %v8640_v9 = vadd.f32 %v1714_v3, %v1076_v0  ;;  %v6953_v56 = vpop.f32.mrb[65].mxu1  ;;  %v1079_v7 = vpop.f32.mrb[66].mxu0  ;;  %v776_v6 = vsel %vm683_vm1, %v773_v27, %v775_v57 }
 0x184   : > { %v1717_v19 = vpop.f32.mrb[66].mxu1  ;;  %v6694_v48 = vpop.f32.mrb[67].mxu0  ;;  %v8029_v56 = vld [vmem:[%s8234_s14 + $0x180] sm:$0xff]  }
 0x185   : > { %v8644_v20 = vadd.f32 %v1717_v19, %v1079_v7  ;;  %v6954_v25 = vpop.f32.mrb[67].mxu1 }
 0x186   : > { %6800 = vmatmul.mubr.bf16.gmra.mrb[172].mxu0 %v772_v15  ;;  %v777_v25 = vrot.slane %v8029_v56, 3 }
 0x187   : > { %7060 = vmatmul.mubr.bf16.gmra.mrb[172].mxu1 %v8024_v8  ;;  %6803 = vmatprep.mubr.msk.bf16.mxu0 %vm8120_vm0, %v10077_v1 }
 0x188   : > { %7063 = vmatprep.mubr.msk.bf16.mxu1 %vm8120_vm0, %v10077_v1 }
 0x189   : > { %v1084_v28 = vpop.f32.mrb[68].mxu0 }
 0x18a   : > { %v1722_v22 = vpop.f32.mrb[68].mxu1  ;;  %v6697_v12 = vpop.f32.mrb[69].mxu0 }
 0x18b   : > { %v8650_v35 = vadd.f32 %v1722_v22, %v1084_v28  ;;  %v6957_v37 = vpop.f32.mrb[69].mxu1  ;;  %v1087_v39 = vpop.f32.mrb[70].mxu0 }
 0x18c   : > { %v1725_v46 = vpop.f32.mrb[70].mxu1  ;;  %v6698_v8 = vpop.f32.mrb[71].mxu0  ;;  %v8030_v37 = vld [vmem:[%s8234_s14 + $0x188] sm:$0xff]  }
 0x18d   : > { %v8654_v51 = vadd.f32 %v1725_v46, %v1087_v39  ;;  %v6958_v38 = vpop.f32.mrb[71].mxu1  ;;  %v778_v46 = vsel %vm683_vm1, %v775_v57, %v777_v25 }
 0x18e   : > { %6804 = vmatmul.mubr.bf16.gmra.mrb[176].mxu0 %v774_v40 }
 0x18f   : > { %7064 = vmatmul.mubr.bf16.gmra.mrb[176].mxu1 %v8025_v31  ;;  %6807 = vmatprep.mubr.msk.bf16.mxu0 %vm8120_vm0, %v10077_v1 }
 0x190   : > { %7067 = vmatprep.mubr.msk.bf16.mxu1 %vm8120_vm0, %v10077_v1 }
 0x191   : > { %v1092_v29 = vpop.f32.mrb[72].mxu0 }
 0x192   : > { %v1730_v61 = vpop.f32.mrb[72].mxu1  ;;  %v6701_v62 = vpop.f32.mrb[73].mxu0 }
 0x193   : > { %v8667_v0 = vadd.f32 %v1730_v61, %v1092_v29  ;;  %v6961_v3 = vpop.f32.mrb[73].mxu1  ;;  %v1095_v31 = vpop.f32.mrb[74].mxu0  ;;  %v779_v61 = vrot.slane %v8030_v37, 3 }
 0x194   : > { %v1733_v7 = vpop.f32.mrb[74].mxu1  ;;  %v6702_v15 = vpop.f32.mrb[75].mxu0 }
 0x195   : > { %v8671_v19 = vadd.f32 %v1733_v7, %v1095_v31  ;;  %v6962_v48 = vpop.f32.mrb[75].mxu1 }
 0x196   : > { %6808 = vmatmul.mubr.bf16.gmra.mrb[180].mxu0 %v776_v6  ;;  %v8031_v6 = vld [vmem:[%s8234_s14 + $0x190] sm:$0xff]   ;;  %v780_v48 = vsel %vm683_vm1, %v777_v25, %v779_v61 }
 0x197   : > { %7068 = vmatmul.mubr.bf16.gmra.mrb[180].mxu1 %v8026_v53  ;;  %6811 = vmatprep.mubr.msk.bf16.mxu0 %vm8120_vm0, %v10077_v1 }
 0x198   : > { %7071 = vmatprep.mubr.msk.bf16.mxu1 %vm8120_vm0, %v10077_v1 }
 0x199   : > { %v1100_v28 = vpop.f32.mrb[76].mxu0 }
 0x19a   : > { %v1738_v22 = vpop.f32.mrb[76].mxu1  ;;  %v6705_v12 = vpop.f32.mrb[77].mxu0 }
 0x19b   : > { %v8678_v27 = vadd.f32 %v1738_v22, %v1100_v28  ;;  %v6965_v39 = vpop.f32.mrb[77].mxu1  ;;  %v1103_v40 = vpop.f32.mrb[78].mxu0 }
 0x19c   : > { %v1741_v8 = vpop.f32.mrb[78].mxu1  ;;  %v6706_v53 = vpop.f32.mrb[79].mxu0  ;;  %v781_v39 = vrot.slane %v8031_v6, 3 }
 0x19d   : > { %v8681_v38 = vadd.f32 %v1741_v8, %v1103_v40  ;;  %v6966_v29 = vpop.f32.mrb[79].mxu1 }
 0x19e   : > { %6812 = vmatmul.mubr.bf16.gmra.mrb[184].mxu0 %v778_v46 }
 0x19f   : > { %10079 = vst [vmem:[#allocation2_spill] sm:$0xff] %v8681_v38  ;;  %7072 = vmatmul.mubr.bf16.gmra.mrb[184].mxu1 %v8027_v16  ;;  %6815 = vmatprep.mubr.msk.bf16.mxu0 %vm8120_vm0, %v10077_v1 }
 0x1a0   : > { %7075 = vmatprep.mubr.msk.bf16.mxu1 %vm8120_vm0, %v10077_v1 }
 0x1a1   : > { %v1108_v62 = vpop.f32.mrb[80].mxu0 }
 0x1a2   : > { %v1746_v3 = vpop.f32.mrb[80].mxu1  ;;  %v6709_v31 = vpop.f32.mrb[81].mxu0 }
 0x1a3   : > { %v8688_v7 = vadd.f32 %v1746_v3, %v1108_v62  ;;  %v6969_v57 = vpop.f32.mrb[81].mxu1  ;;  %v1111_v15 = vpop.f32.mrb[82].mxu0  ;;  %v782_v62 = vsel %vm683_vm1, %v779_v61, %v781_v39  ;;  %v8032_v3 = vld [vmem:[%s8234_s14 + $0x198] sm:$0xff]  }
 0x1a4   : > { %v1749_v28 = vpop.f32.mrb[82].mxu1  ;;  %v6710_v16 = vpop.f32.mrb[83].mxu0 }
 0x1a5   : > { %10080 = vst [vmem:[#allocation3_spill] sm:$0xff] %v8688_v7  ;;  %v8691_v22 = vadd.f32 %v1749_v28, %v1111_v15  ;;  %v6970_v12 = vpop.f32.mrb[83].mxu1 }
 0x1a6   : > { %6816 = vmatmul.mubr.bf16.gmra.mrb[188].mxu0 %v780_v48  ;;  %v783_v48 = vrot.slane %v8032_v3, 3 }
 0x1a7   : > { %10081 = vst [vmem:[#allocation4_spill] sm:$0xff] %v8691_v22  ;;  %7076 = vmatmul.mubr.bf16.gmra.mrb[188].mxu1 %v8028_v44  ;;  %6819 = vmatprep.mubr.msk.bf16.mxu0 %vm8120_vm0, %v10077_v1 }
 0x1a8   : > { %7079 = vmatprep.mubr.msk.bf16.mxu1 %vm8120_vm0, %v10077_v1 }
 0x1a9   : > { %v1116_v40 = vpop.f32.mrb[84].mxu0 }
 0x1aa   : > { %v1754_v46 = vpop.f32.mrb[84].mxu1  ;;  %v6713_v8 = vpop.f32.mrb[85].mxu0 }
 0x1ab   : > { %v8697_v53 = vadd.f32 %v1754_v46, %v1116_v40  ;;  %v6973_v25 = vpop.f32.mrb[85].mxu1  ;;  %v1119_v29 = vpop.f32.mrb[86].mxu0  ;;  %v8033_v40 = vld [vmem:[%s8234_s14 + $0x1a0] sm:$0xff]  }
 0x1ac   : > { %v1757_v31 = vpop.f32.mrb[86].mxu1  ;;  %v6714_v44 = vpop.f32.mrb[87].mxu0  ;;  %v784_v25 = vsel %vm683_vm1, %v781_v39, %v783_v48 }
 0x1ad   : > { %10082 = vst [vmem:[#allocation5_spill] sm:$0xff] %v8697_v53  ;;  %v8701_v57 = vadd.f32 %v1757_v31, %v1119_v29  ;;  %v6974_v15 = vpop.f32.mrb[87].mxu1  ;;  %v785_v44 = vrot.slane %v8033_v40, 3 }
 0x1ae   : > { %6820 = vmatmul.mubr.bf16.gmra.mrb[192].mxu0 %v782_v62 }
 0x1af   : > { %10083 = vst [vmem:[#allocation6_spill] sm:$0xff] %v8701_v57  ;;  %7080 = vmatmul.mubr.bf16.gmra.mrb[192].mxu1 %v8029_v56  ;;  %6823 = vmatprep.mubr.msk.bf16.mxu0 %vm8120_vm0, %v10077_v1 }
 0x1b0   : > { %7083 = vmatprep.mubr.msk.bf16.mxu1 %vm8120_vm0, %v10077_v1 }
 0x1b1   : > { %v1124_v28 = vpop.f32.mrb[88].mxu0 }
 0x1b2   : > { %v1762_v16 = vpop.f32.mrb[88].mxu1  ;;  %v6717_v12 = vpop.f32.mrb[89].mxu0 }
 0x1b3   : > { %v8708_v61 = vadd.f32 %v1762_v16, %v1124_v28  ;;  %v6977_v46 = vpop.f32.mrb[89].mxu1  ;;  %v1127_v8 = vpop.f32.mrb[90].mxu0  ;;  %v8034_v12 = vld [vmem:[%s8234_s14 + $0x1a8] sm:$0xff]  }
 0x1b4   : > { %v1765_v29 = vpop.f32.mrb[90].mxu1  ;;  %v6718_v56 = vpop.f32.mrb[91].mxu0 }
 0x1b5   : > { %10084 = vst [vmem:[#allocation7_spill] sm:$0xff] %v8708_v61  ;;  %v8711_v62 = vadd.f32 %v1765_v29, %v1127_v8  ;;  %v6978_v31 = vpop.f32.mrb[91].mxu1  ;;  %v786_v29 = vsel %vm683_vm1, %v783_v48, %v785_v44  ;;  %v10102_v61 = vmov 0.0  }
 0x1b6   : > { %6824 = vmatmul.mubr.bf16.gmra.mrb[196].mxu0 %v784_v25 }
 0x1b7   : > { %10085 = vst [vmem:[#allocation8_spill] sm:$0xff] %v8711_v62  ;;  %7084 = vmatmul.mubr.bf16.gmra.mrb[196].mxu1 %v8030_v37  ;;  %6827 = vmatprep.mubr.msk.bf16.mxu0 %vm8120_vm0, %v10077_v1  ;;  %v787_v62 = vrot.slane %v8034_v12, 3 }
 0x1b8   : > { %7087 = vmatprep.mubr.msk.bf16.mxu1 %vm8120_vm0, %v10077_v1 }
 0x1b9   : > { %v1132_v15 = vpop.f32.mrb[92].mxu0 }
 0x1ba   : > { %v1770_v28 = vpop.f32.mrb[92].mxu1  ;;  %v6721_v16 = vpop.f32.mrb[93].mxu0 }
 0x1bb   : > { %v8718_v46 = vadd.f32 %v1770_v28, %v1132_v15  ;;  %v6981_v39 = vpop.f32.mrb[93].mxu1  ;;  %v1135_v8 = vpop.f32.mrb[94].mxu0 }
 0x1bc   : > { %v1773_v25 = vpop.f32.mrb[94].mxu1  ;;  %v6722_v37 = vpop.f32.mrb[95].mxu0  ;;  %v8035_v39 = vld [vmem:[%s8234_s14 + $0x1b0] sm:$0xff]  }
 0x1bd   : > { %10086 = vst [vmem:[#allocation9_spill] sm:$0xff] %v8718_v46  ;;  %v8721_v56 = vadd.f32 %v1773_v25, %v1135_v8  ;;  %v6982_v31 = vpop.f32.mrb[95].mxu1  ;;  %v788_v25 = vsel %vm683_vm1, %v785_v44, %v787_v62 }
 0x1be   : > { %6828 = vmatmul.mubr.bf16.gmra.mrb[200].mxu0 %v786_v29 }
 0x1bf   : > { %10087 = vst [vmem:[#allocation10_spill] sm:$0xff] %v8721_v56  ;;  %7088 = vmatmul.mubr.bf16.gmra.mrb[200].mxu1 %v8031_v6  ;;  %6831 = vmatprep.mubr.msk.bf16.mxu0 %vm8120_vm0, %v10077_v1  ;;  %v789_v56 = vrot.slane %v8035_v39, 3 }
 0x1c0   : > { %7091 = vmatprep.mubr.msk.bf16.mxu1 %vm8120_vm0, %v10077_v1 }
 0x1c1   : > { %v1140_v15 = vpop.f32.mrb[96].mxu0 }
 0x1c2   : > { %v1778_v28 = vpop.f32.mrb[96].mxu1  ;;  %v6725_v16 = vpop.f32.mrb[97].mxu0 }
 0x1c3   : > { %v8728_v46 = vadd.f32 %v1778_v28, %v1140_v15  ;;  %v6985_v48 = vpop.f32.mrb[97].mxu1  ;;  %v1143_v8 = vpop.f32.mrb[98].mxu0 }
 0x1c4   : > { %v1781_v29 = vpop.f32.mrb[98].mxu1  ;;  %v6726_v6 = vpop.f32.mrb[99].mxu0  ;;  %v8036_v48 = vld [vmem:[%s8234_s14 + $0x1b8] sm:$0xff]  }
 0x1c5   : > { %10088 = vst [vmem:[#allocation11_spill] sm:$0xff] %v8728_v46  ;;  %v8731_v37 = vadd.f32 %v1781_v29, %v1143_v8  ;;  %v6986_v31 = vpop.f32.mrb[99].mxu1  ;;  %v790_v8 = vsel %vm683_vm1, %v787_v62, %v789_v56 }
 0x1c6   : > { %6832 = vmatmul.mubr.bf16.gmra.mrb[204].mxu0 %v788_v25 }
 0x1c7   : > { %10089 = vst [vmem:[#allocation12_spill] sm:$0xff] %v8731_v37  ;;  %7092 = vmatmul.mubr.bf16.gmra.mrb[204].mxu1 %v8032_v3  ;;  %6835 = vmatprep.mubr.msk.bf16.mxu0 %vm8120_vm0, %v10077_v1  ;;  %v791_v37 = vrot.slane %v8036_v48, 3 }
 0x1c8   : > { %7095 = vmatprep.mubr.msk.bf16.mxu1 %vm8120_vm0, %v10077_v1 }
 0x1c9   : > { %v1148_v15 = vpop.f32.mrb[100].mxu0 }
 0x1ca   : > { %v1786_v28 = vpop.f32.mrb[100].mxu1  ;;  %v6729_v16 = vpop.f32.mrb[101].mxu0 }
 0x1cb   : > { %v8738_v46 = vadd.f32 %v1786_v28, %v1148_v15  ;;  %v6989_v44 = vpop.f32.mrb[101].mxu1  ;;  %v1151_v6 = vpop.f32.mrb[102].mxu0 }
 0x1cc   : > { %v1789_v29 = vpop.f32.mrb[102].mxu1  ;;  %v6730_v3 = vpop.f32.mrb[103].mxu0 }
 0x1cd   : > { %10090 = vst [vmem:[#allocation13_spill] sm:$0xff] %v8738_v46  ;;  %v8741_v25 = vadd.f32 %v1789_v29, %v1151_v6  ;;  %v6990_v31 = vpop.f32.mrb[103].mxu1  ;;  %v792_v6 = vsel %vm683_vm1, %v789_v56, %v791_v37  ;;  %v8037_v29 = vld [vmem:[%s8234_s14 + $0x1c0] sm:$0xff]  }
 0x1ce   : > { %6836 = vmatmul.mubr.bf16.gmra.mrb[208].mxu0 %v790_v8 }
 0x1cf   : > { %10091 = vst [vmem:[#allocation14_spill] sm:$0xff] %v8741_v25  ;;  %7096 = vmatmul.mubr.bf16.gmra.mrb[208].mxu1 %v8033_v40  ;;  %6839 = vmatprep.mubr.msk.bf16.mxu0 %vm8120_vm0, %v10077_v1  ;;  %v793_v25 = vrot.slane %v8037_v29, 3 }
 0x1d0   : > { %7099 = vmatprep.mubr.msk.bf16.mxu1 %vm8120_vm0, %v10077_v1 }
 0x1d1   : > { %v1156_v15 = vpop.f32.mrb[104].mxu0 }
 0x1d2   : > { %v1794_v28 = vpop.f32.mrb[104].mxu1  ;;  %v6733_v16 = vpop.f32.mrb[105].mxu0 }
 0x1d3   : > { %v8747_v44 = vadd.f32 %v1794_v28, %v1156_v15  ;;  %v6993_v62 = vpop.f32.mrb[105].mxu1  ;;  %v1159_v46 = vpop.f32.mrb[106].mxu0 }
 0x1d4   : > { %v1797_v3 = vpop.f32.mrb[106].mxu1  ;;  %v6734_v40 = vpop.f32.mrb[107].mxu0 }
 0x1d5   : > { %10092 = vst [vmem:[#allocation15_spill] sm:$0xff] %v8747_v44  ;;  %v8751_v8 = vadd.f32 %v1797_v3, %v1159_v46  ;;  %v6994_v31 = vpop.f32.mrb[107].mxu1  ;;  %v794_v46 = vsel %vm683_vm1, %v791_v37, %v793_v25  ;;  %v8038_v3 = vld [vmem:[%s8234_s14 + $0x1c8] sm:$0xff]  }
 0x1d6   : > { %6840 = vmatmul.mubr.bf16.gmra.mrb[212].mxu0 %v792_v6 }
 0x1d7   : > { %10093 = vst [vmem:[#allocation16_spill] sm:$0xff] %v8751_v8  ;;  %7100 = vmatmul.mubr.bf16.gmra.mrb[212].mxu1 %v8034_v12  ;;  %6843 = vmatprep.mubr.msk.bf16.mxu0 %vm8120_vm0, %v10077_v1  ;;  %v795_v8 = vrot.slane %v8038_v3, 3 }
 0x1d8   : > { %7103 = vmatprep.mubr.msk.bf16.mxu1 %vm8120_vm0, %v10077_v1 }
 0x1d9   : > { %v1164_v15 = vpop.f32.mrb[108].mxu0 }
 0x1da   : > { %v1802_v28 = vpop.f32.mrb[108].mxu1  ;;  %v6737_v16 = vpop.f32.mrb[109].mxu0 }
 0x1db   : > { %v8757_v56 = vadd.f32 %v1802_v28, %v1164_v15  ;;  %v6997_v62 = vpop.f32.mrb[109].mxu1  ;;  %v1167_v44 = vpop.f32.mrb[110].mxu0 }
 0x1dc   : > { %v1805_v40 = vpop.f32.mrb[110].mxu1  ;;  %v6738_v12 = vpop.f32.mrb[111].mxu0 }
 0x1dd   : > { %10094 = vst [vmem:[#allocation17_spill] sm:$0xff] %v8757_v56  ;;  %v8761_v6 = vadd.f32 %v1805_v40, %v1167_v44  ;;  %v6998_v31 = vpop.f32.mrb[111].mxu1  ;;  %v796_v44 = vsel %vm683_vm1, %v793_v25, %v795_v8  ;;  %v8039_v40 = vld [vmem:[%s8234_s14 + $0x1d0] sm:$0xff]  }
 0x1de   : > { %6844 = vmatmul.mubr.bf16.gmra.mrb[216].mxu0 %v794_v46 }
 0x1df   : > { %10095 = vst [vmem:[#allocation18_spill] sm:$0xff] %v8761_v6  ;;  %7104 = vmatmul.mubr.bf16.gmra.mrb[216].mxu1 %v8035_v39  ;;  %6847 = vmatprep.mubr.msk.bf16.mxu0 %vm8120_vm0, %v10077_v1  ;;  %v797_v6 = vrot.slane %v8039_v40, 3 }
 0x1e0   : > { %7107 = vmatprep.mubr.msk.bf16.mxu1 %vm8120_vm0, %v10077_v1 }
 0x1e1   : > { %v1172_v15 = vpop.f32.mrb[112].mxu0 }
 0x1e2   : > { %v1810_v28 = vpop.f32.mrb[112].mxu1  ;;  %v6741_v16 = vpop.f32.mrb[113].mxu0 }
 0x1e3   : > { %v8767_v37 = vadd.f32 %v1810_v28, %v1172_v15  ;;  %v7001_v62 = vpop.f32.mrb[113].mxu1  ;;  %v1175_v56 = vpop.f32.mrb[114].mxu0 }
 0x1e4   : > { %v1813_v12 = vpop.f32.mrb[114].mxu1  ;;  %v6742_v39 = vpop.f32.mrb[115].mxu0 }
 0x1e5   : > { %10096 = vst [vmem:[#allocation19_spill] sm:$0xff] %v8767_v37  ;;  %v8771_v46 = vadd.f32 %v1813_v12, %v1175_v56  ;;  %v7002_v31 = vpop.f32.mrb[115].mxu1  ;;  %v798_v12 = vsel %vm683_vm1, %v795_v8, %v797_v6 }
 0x1e6   : > { %6848 = vmatmul.mubr.bf16.gmra.mrb[220].mxu0 %v796_v44  ;;  %v8040_v44 = vld [vmem:[%s8234_s14 + $0x1d8] sm:$0xff]  }
 0x1e7   : > { %10097 = vst [vmem:[#allocation20_spill] sm:$0xff] %v8771_v46  ;;  %7108 = vmatmul.mubr.bf16.gmra.mrb[220].mxu1 %v8036_v48  ;;  %6851 = vmatprep.mubr.msk.bf16.mxu0 %vm8120_vm0, %v10077_v1  ;;  %v799_v37 = vrot.slane %v8040_v44, 3 }
 0x1e8   : > { %7111 = vmatprep.mubr.msk.bf16.mxu1 %vm8120_vm0, %v10077_v1 }
 0x1e9   : > { %v1180_v15 = vpop.f32.mrb[116].mxu0 }
 0x1ea   : > { %v1818_v28 = vpop.f32.mrb[116].mxu1  ;;  %v6745_v25 = vpop.f32.mrb[117].mxu0 }
 0x1eb   : > { %v8777_v16 = vadd.f32 %v1818_v28, %v1180_v15  ;;  %v7005_v62 = vpop.f32.mrb[117].mxu1  ;;  %v1183_v56 = vpop.f32.mrb[118].mxu0  ;;  %v8788_v15 = vld [vmem:[%s8234_s14 + $0x1e0] sm:$0xf]  ;;  %v375_v28 = vld [vmem:[%s8234_s14 + $0x1e4] sm:$0xf] }
 0x1ec   : > { %v1821_v48 = vpop.f32.mrb[118].mxu1  ;;  %v6746_v39 = vpop.f32.mrb[119].mxu0 }
 0x1ed   : > { %10098 = vst [vmem:[#allocation21_spill] sm:$0xff] %v8777_v16  ;;  %v8781_v31 = vadd.f32 %v1821_v48, %v1183_v56  ;;  %v7006_v46 = vpop.f32.mrb[119].mxu1 }
 0x1ee   : > { %6852 = vmatmul.mubr.bf16.gmra.mrb[224].mxu0 %v798_v12  ;;  %v800_v46 = vsel %vm683_vm1, %v797_v6, %v799_v37 }
 0x1ef   : > { %10099 = vst [vmem:[#allocation22_spill] sm:$0xff] %v8781_v31  ;;  %7112 = vmatmul.mubr.bf16.gmra.mrb[224].mxu1 %v8037_v29  ;;  %6855 = vmatprep.mubr.msk.bf16.mxu0 %vm8120_vm0, %v10077_v1  ;;  %v5646_v29 = vcombine.low %v8788_v15, %v375_v28 }
 0x1f0   : > { %7115 = vmatprep.mubr.msk.bf16.mxu1 %vm8120_vm0, %v10077_v1 }
 0x1f1   : > { %v1188_v25 = vpop.f32.mrb[120].mxu0 }
 0x1f2   : > { %v1826_v8 = vpop.f32.mrb[120].mxu1  ;;  %v6749_v62 = vpop.f32.mrb[121].mxu0 }
 0x1f3   : > { %v8791_v16 = vadd.f32 %v1826_v8, %v1188_v25  ;;  %v7009_v56 = vpop.f32.mrb[121].mxu1  ;;  %v1191_v48 = vpop.f32.mrb[122].mxu0  ;;  %v801_v62 = vrot.slane %v5646_v29, 3 }
 0x1f4   : > { %v1829_v12 = vpop.f32.mrb[122].mxu1  ;;  %v6750_v39 = vpop.f32.mrb[123].mxu0 }
 0x1f5   : > { %10100 = vst [vmem:[#allocation23_spill] sm:$0xff] %v8791_v16  ;;  %v8795_v31 = vadd.f32 %v1829_v12, %v1191_v48  ;;  %v7010_v1 = vpop.f32.mrb[123].mxu1  ;;  %v802_v48 = vsel %vm683_vm1, %v799_v37, %v801_v62  ;;  %v8042_v12 = vld [vmem:[%s8234_s14 + $0x1e8] sm:$0x7f]  }
 0x1f6   : > { %6856 = vmatmul.mubr.bf16.gmra.mrb[228].mxu0 %v800_v46  ;;  %v803_v29 = vrot.slane %v8042_v12, 3 }
 0x1f7   : > { %10101 = vst [vmem:[#allocation24_spill] sm:$0xff] %v8795_v31  ;;  %7116 = vmatmul.mubr.bf16.gmra.mrb[228].mxu1 %v8038_v3  ;;  %6859 = vmatprep.mubr.msk.bf16.mxu0 %vm8120_vm0, %v10102_v61 }
 0x1f8   : > { %7119 = vmatprep.mubr.msk.bf16.mxu1 %vm8120_vm0, %v10102_v61 }
 0x1f9   : > { %v1196_v25 = vpop.f32.mrb[124].mxu0 }
 0x1fa   : > { %v1834_v8 = vpop.f32.mrb[124].mxu1  ;;  %v6753_v6 = vpop.f32.mrb[125].mxu0 }
 0x1fb   : > { %v8801_v56 = vadd.f32 %v1834_v8, %v1196_v25  ;;  %v7013_v28 = vpop.f32.mrb[125].mxu1  ;;  %v1199_v16 = vpop.f32.mrb[126].mxu0 }
 0x1fc   : > { %v1837_v1 = vpop.f32.mrb[126].mxu1  ;;  %v6754_v46 = vpop.f32.mrb[127].mxu0 }
 0x1fd   : > { %10103 = vst [vmem:[#allocation25_spill] sm:$0xff] %v8801_v56  ;;  %v8805_v3 = vadd.f32 %v1837_v1, %v1199_v16  ;;  %v7014_v39 = vpop.f32.mrb[127].mxu1  ;;  %v804_v1 = vsel %vm683_vm1, %v801_v62, %v803_v29 }
 0x1fe   : > { %6860 = vmatmul.mubr.bf16.gmra.mrb[232].mxu0 %v802_v48  ;;  %v2075_v39 = vld [vmem:[%s8665_s5 + $0xc] sm:$0xf] }
 0x1ff   : > { %10104 = vst [vmem:[#allocation26_spill] sm:$0xff] %v8805_v3  ;;  %7120 = vmatmul.mubr.bf16.gmra.mrb[232].mxu1 %v8039_v40  ;;  %6863 = vmatprep.mubr.msk.bf16.mxu0 %vm8120_vm0, %v10102_v61 }
 0x200   : > { %7123 = vmatprep.mubr.msk.bf16.mxu1 %vm8120_vm0, %v10102_v61 }
 0x201   : > { %v1204_v25 = vpop.f32.mrb[128].mxu0 }
 0x202   : > { %v1842_v8 = vpop.f32.mrb[128].mxu1  ;;  %v6757_v37 = vpop.f32.mrb[129].mxu0 }
 0x203   : > { %v8811_v6 = vadd.f32 %v1842_v8, %v1204_v25  ;;  %v7017_v28 = vpop.f32.mrb[129].mxu1  ;;  %v1207_v16 = vpop.f32.mrb[130].mxu0  ;;  %v2193_v25 = vld [vmem:[%s8665_s5 + $0x8] sm:$0x8] }
 0x204   : > { %v1845_v48 = vpop.f32.mrb[130].mxu1  ;;  %v6758_v40 = vpop.f32.mrb[131].mxu0 }
 0x205   : > { %10105 = vst [vmem:[#allocation27_spill] sm:$0xff] %v8811_v6  ;;  %v8814_v46 = vadd.f32 %v1845_v48, %v1207_v16  ;;  %v7018_v12 = vpop.f32.mrb[131].mxu1  ;;  %v5658_v48 = vcombine.low %v8788_v15, %v8788_v15 }
 0x206   : > { %6864 = vmatmul.mubr.bf16.gmra.mrb[236].mxu0 %v804_v1  ;;  %v5667_v1 = vcombine.low %v2193_v25, %v2075_v39 }
 0x207   : > { %10106 = vst [vmem:[#allocation28_spill] sm:$0xff] %v8814_v46  ;;  %7124 = vmatmul.mubr.bf16.gmra.mrb[236].mxu1 %v8040_v44  ;;  %6867 = vmatprep.mubr.msk.bf16.mxu0 %vm8120_vm0, %v10102_v61  ;;  %v8045_v44 = vld [vmem:[%s8665_s5 + $0x10] sm:$0xff]  }
 0x208   : > { %7127 = vmatprep.mubr.msk.bf16.mxu1 %vm8120_vm0, %v10102_v61 }
 0x209   : > { %v1212_v8 = vpop.f32.mrb[132].mxu0 }
 0x20a   : > { %v1850_v37 = vpop.f32.mrb[132].mxu1  ;;  %v6761_v28 = vpop.f32.mrb[133].mxu0 }
 0x20b   : > { %v8822_v62 = vadd.f32 %v1850_v37, %v1212_v8  ;;  %v7021_v40 = vpop.f32.mrb[133].mxu1  ;;  %v1215_v16 = vpop.f32.mrb[134].mxu0  ;;  %v2502_v8 = vrot.slane %v5667_v1, 3  ;;  %v2503_v37 = vrot.slane %v8045_v44, 3 }
 0x20c   : > { %v1853_v12 = vpop.f32.mrb[134].mxu1  ;;  %v6762_v46 = vpop.f32.mrb[135].mxu0 }
 0x20d   : > { %10107 = vst [vmem:[#allocation29_spill] sm:$0xff] %v8822_v62  ;;  %v8827_v6 = vadd.f32 %v1853_v12, %v1215_v16  ;;  %v7022_v3 = vpop.f32.mrb[135].mxu1 }
 0x20e   : > { %6868 = vmatmul.mubr.bf16.gmra.mrb[240].mxu0 %v803_v29  ;;  %v2504_v3 = vsel %vm683_vm1, %v2502_v8, %v2503_v37  ;;  %v8046_v29 = vld [vmem:[%s8665_s5] sm:$0xff]  }
 0x20f   : > { %10108 = vst [vmem:[#allocation30_spill] sm:$0xff] %v8827_v6  ;;  %7128 = vmatmul.mubr.bf16.gmra.mrb[240].mxu1 %v5658_v48  ;;  %7147 = vmatprep.mubr.msk.bf16.mxu0 %vm8120_vm0, %v10102_v61  ;;  %v8047_v48 = vld [vmem:[%s8665_s5 + $0x18] sm:$0xff]  }
 0x210   : > { %7407 = vmatprep.mubr.msk.bf16.mxu1 %vm8120_vm0, %v10102_v61 }
 0x211   : > { %v1220_v15 = vpop.f32.mrb[136].mxu0 }
 0x212   : > { %v1858_v25 = vpop.f32.mrb[136].mxu1  ;;  %v6765_v28 = vpop.f32.mrb[137].mxu0 }
 0x213   : > { %v8833_v46 = vadd.f32 %v1858_v25, %v1220_v15  ;;  %v7025_v40 = vpop.f32.mrb[137].mxu1  ;;  %v1223_v16 = vpop.f32.mrb[138].mxu0  ;;  %v2505_v28 = vrot.slane %v8047_v48, 3  ;;  %v2074_v15 = vld [vmem:[%s8665_s5 + $0x8] sm:$0xf] }
 0x214   : > { %v1861_v12 = vpop.f32.mrb[138].mxu1  ;;  %v6766_v6 = vpop.f32.mrb[139].mxu0 }
 0x215   : > { %10109 = vst [vmem:[#allocation31_spill] sm:$0xff] %v8833_v46  ;;  %v8838_v62 = vadd.f32 %v1861_v12, %v1223_v16  ;;  %v7026_v1 = vpop.f32.mrb[139].mxu1  ;;  %v2506_v12 = vsel %vm683_vm1, %v2503_v37, %v2505_v28 }
 0x216   : > { %7148 = vmatmul.mubr.bf16.vlgmr.msra.gmra.mrb[244].mxu0 %v2504_v3  ;;  %v5729_v1 = vcombine.low %v2074_v15, %v2075_v39  ;;  %v8049_v3 = vld [vmem:[%s8665_s5 + $0x20] sm:$0xff]  }
 0x217   : > { %10110 = vst [vmem:[#allocation32_spill] sm:$0xff] %v8838_v62  ;;  %7408 = vmatmul.mubr.bf16.vlgmr.msra.gmra.mrb[244].mxu1 %v8046_v29  ;;  %7151 = vmatprep.mubr.msk.bf16.mxu0 %vm8120_vm0, %v10102_v61 }
 0x218   : > { %7411 = vmatprep.mubr.msk.bf16.mxu1 %vm8120_vm0, %v10102_v61 }
 0x219   : > { %v1228_v25 = vpop.f32.mrb[140].mxu0 }
 0x21a   : > { %v1866_v8 = vpop.f32.mrb[140].mxu1  ;;  %v6769_v40 = vpop.f32.mrb[141].mxu0 }
 0x21b   : > { %v8845_v46 = vadd.f32 %v1866_v8, %v1228_v25  ;;  %v7029_v6 = vpop.f32.mrb[141].mxu1  ;;  %v1231_v16 = vpop.f32.mrb[142].mxu0  ;;  %v2507_v40 = vrot.slane %v8049_v3, 3 }
 0x21c   : > { %v1869_v29 = vpop.f32.mrb[142].mxu1  ;;  %v6770_v62 = vpop.f32.mrb[143].mxu0 }
 0x21d   : > { %10111 = vst [vmem:[#allocation33_spill] sm:$0xff] %v8845_v46  ;;  %v8849_v56 = vadd.f32 %v1869_v29, %v1231_v16  ;;  %v7030_v31 = vpop.f32.mrb[143].mxu1  ;;  %v8050_v62 = vld [vmem:[%s8665_s5 + $0x28] sm:$0xff]   ;;  %v2508_v16 = vsel %vm683_vm1, %v2505_v28, %v2507_v40 }
 0x21e   : > { %7152 = vmatmul.mubr.bf16.gmra.mrb[248].mxu0 %v2506_v12 }
 0x21f   : > { %10112 = vst [vmem:[#allocation34_spill] sm:$0xff] %v8849_v56  ;;  %7412 = vmatmul.mubr.bf16.gmra.mrb[248].mxu1 %v5729_v1  ;;  %7155 = vmatprep.mubr.msk.bf16.mxu0 %vm8120_vm0, %v10102_v61  ;;  %v2509_v56 = vrot.slane %v8050_v62, 3 }
 0x220   : > { %7415 = vmatprep.mubr.msk.bf16.mxu1 %vm8120_vm0, %v10102_v61 }
 0x221   : > { %v1236_v25 = vpop.f32.mrb[144].mxu0  ;;  %v2510_v28 = vsel %vm683_vm1, %v2507_v40, %v2509_v56 }
 0x222   : > { %v1874_v8 = vpop.f32.mrb[144].mxu1  ;;  %v6773_v37 = vpop.f32.mrb[145].mxu0 }
 0x223   : > { %v8855_v39 = vadd.f32 %v1874_v8, %v1236_v25  ;;  %v7033_v15 = vpop.f32.mrb[145].mxu1  ;;  %v1239_v6 = vpop.f32.mrb[146].mxu0 }
 0x224   : > { %v1877_v31 = vpop.f32.mrb[146].mxu1  ;;  %v6774_v12 = vpop.f32.mrb[147].mxu0 }
 0x225   : > { %10113 = vst [vmem:[#allocation35_spill] sm:$0xff] %v8855_v39  ;;  %v8859_v1 = vadd.f32 %v1877_v31, %v1239_v6  ;;  %v7034_v29 = vpop.f32.mrb[147].mxu1  ;;  %v8051_v31 = vld [vmem:[%s8665_s5 + $0x30] sm:$0xff]  }
 0x226   : > { %7156 = vmatmul.mubr.bf16.gmra.mrb[252].mxu0 %v2508_v16  ;;  %v2511_v39 = vrot.slane %v8051_v31, 3 }
 0x227   : > { %10114 = vst [vmem:[#allocation36_spill] sm:$0xff] %v8859_v1  ;;  %7416 = vmatmul.mubr.bf16.gmra.mrb[252].mxu1 %v8045_v44  ;;  %7159 = vmatprep.mubr.msk.bf16.mxu0 %vm8120_vm0, %v10102_v61 }
 0x228   : > { %7419 = vmatprep.mubr.msk.bf16.mxu1 %vm8120_vm0, %v10102_v61 }
 0x229   : > { %v1244_v25 = vpop.f32.mrb[148].mxu0 }
 0x22a   : > { %v1882_v8 = vpop.f32.mrb[148].mxu1  ;;  %v6777_v37 = vpop.f32.mrb[149].mxu0 }
 0x22b   : > { %v8866_v15 = vadd.f32 %v1882_v8, %v1244_v25  ;;  %v7037_v12 = vpop.f32.mrb[149].mxu1  ;;  %v1247_v6 = vpop.f32.mrb[150].mxu0 }
 0x22c   : > { %v1885_v29 = vpop.f32.mrb[150].mxu1  ;;  %v6778_v16 = vpop.f32.mrb[151].mxu0 }
 0x22d   : > { %10115 = vst [vmem:[#allocation37_spill] sm:$0xff] %v8866_v15  ;;  %v8869_v44 = vadd.f32 %v1885_v29, %v1247_v6  ;;  %v7038_v1 = vpop.f32.mrb[151].mxu1  ;;  %v2512_v6 = vsel %vm683_vm1, %v2509_v56, %v2511_v39  ;;  %v8052_v29 = vld [vmem:[%s8665_s5 + $0x38] sm:$0xff]  }
 0x22e   : > { %7160 = vmatmul.mubr.bf16.gmra.mrb[0].mxu0 %v2510_v28 }
 0x22f   : > { %10116 = vst [vmem:[#allocation38_spill] sm:$0xff] %v8869_v44  ;;  %7420 = vmatmul.mubr.bf16.gmra.mrb[0].mxu1 %v8047_v48  ;;  %7163 = vmatprep.mubr.msk.bf16.mxu0 %vm8120_vm0, %v10102_v61  ;;  %v2513_v44 = vrot.slane %v8052_v29, 3 }
 0x230   : > { %7423 = vmatprep.mubr.msk.bf16.mxu1 %vm8120_vm0, %v10102_v61 }
 0x231   : > { %v1252_v40 = vpop.f32.mrb[152].mxu0 }
 0x232   : > { %v1890_v25 = vpop.f32.mrb[152].mxu1  ;;  %v6781_v8 = vpop.f32.mrb[153].mxu0 }
 0x233   : > { %v8875_v37 = vadd.f32 %v1890_v25, %v1252_v40  ;;  %v7041_v12 = vpop.f32.mrb[153].mxu1  ;;  %v1255_v15 = vpop.f32.mrb[154].mxu0 }
 0x234   : > { %v1893_v1 = vpop.f32.mrb[154].mxu1  ;;  %v6782_v48 = vpop.f32.mrb[155].mxu0 }
 0x235   : > { %10117 = vst [vmem:[#allocation39_spill] sm:$0xff] %v8875_v37  ;;  %v8879_v28 = vadd.f32 %v1893_v1, %v1255_v15  ;;  %v7042_v16 = vpop.f32.mrb[155].mxu1  ;;  %v2514_v15 = vsel %vm683_vm1, %v2511_v39, %v2513_v44  ;;  %v8053_v1 = vld [vmem:[%s8665_s5 + $0x40] sm:$0xff]  }
 0x236   : > { %7164 = vmatmul.mubr.bf16.gmra.mrb[4].mxu0 %v2512_v6 }
 0x237   : > { %10118 = vst [vmem:[#allocation40_spill] sm:$0xff] %v8879_v28  ;;  %7424 = vmatmul.mubr.bf16.gmra.mrb[4].mxu1 %v8049_v3  ;;  %7167 = vmatprep.mubr.msk.bf16.mxu0 %vm8120_vm0, %v10102_v61  ;;  %v2515_v28 = vrot.slane %v8053_v1, 3 }
 0x238   : > { %7427 = vmatprep.mubr.msk.bf16.mxu1 %vm8120_vm0, %v10102_v61 }
 0x239   : > { %v1260_v40 = vpop.f32.mrb[156].mxu0 }
 0x23a   : > { %v1898_v25 = vpop.f32.mrb[156].mxu1  ;;  %v6785_v8 = vpop.f32.mrb[157].mxu0 }
 0x23b   : > { %v8885_v56 = vadd.f32 %v1898_v25, %v1260_v40  ;;  %v7045_v12 = vpop.f32.mrb[157].mxu1  ;;  %v1263_v37 = vpop.f32.mrb[158].mxu0 }
 0x23c   : > { %v1901_v48 = vpop.f32.mrb[158].mxu1  ;;  %v6786_v3 = vpop.f32.mrb[159].mxu0 }
 0x23d   : > { %10119 = vst [vmem:[#allocation41_spill] sm:$0xff] %v8885_v56  ;;  %v8889_v6 = vadd.f32 %v1901_v48, %v1263_v37  ;;  %v7046_v16 = vpop.f32.mrb[159].mxu1  ;;  %v2516_v37 = vsel %vm683_vm1, %v2513_v44, %v2515_v28  ;;  %v8054_v48 = vld [vmem:[%s8665_s5 + $0x48] sm:$0xff]  }
 0x23e   : > { %7168 = vmatmul.mubr.bf16.gmra.mrb[8].mxu0 %v2514_v15 }
 0x23f   : > { %10120 = vst [vmem:[#allocation42_spill] sm:$0xff] %v8889_v6  ;;  %7428 = vmatmul.mubr.bf16.gmra.mrb[8].mxu1 %v8050_v62  ;;  %7171 = vmatprep.mubr.msk.bf16.mxu0 %vm8120_vm0, %v10102_v61  ;;  %v2517_v6 = vrot.slane %v8054_v48, 3 }
 0x240   : > { %7431 = vmatprep.mubr.msk.bf16.mxu1 %vm8120_vm0, %v10102_v61 }
 0x241   : > { %v1268_v40 = vpop.f32.mrb[160].mxu0 }
 0x242   : > { %v1906_v25 = vpop.f32.mrb[160].mxu1  ;;  %v6789_v8 = vpop.f32.mrb[161].mxu0 }
 0x243   : > { %v8895_v39 = vadd.f32 %v1906_v25, %v1268_v40  ;;  %v7049_v12 = vpop.f32.mrb[161].mxu1  ;;  %v1271_v56 = vpop.f32.mrb[162].mxu0 }
 0x244   : > { %v1909_v3 = vpop.f32.mrb[162].mxu1  ;;  %v6790_v62 = vpop.f32.mrb[163].mxu0 }
 0x245   : > { %10121 = vst [vmem:[#allocation43_spill] sm:$0xff] %v8895_v39  ;;  %v8899_v15 = vadd.f32 %v1909_v3, %v1271_v56  ;;  %v7050_v16 = vpop.f32.mrb[163].mxu1  ;;  %v2518_v56 = vsel %vm683_vm1, %v2515_v28, %v2517_v6  ;;  %v8055_v3 = vld [vmem:[%s8665_s5 + $0x50] sm:$0xff]  }
 0x246   : > { %7172 = vmatmul.mubr.bf16.gmra.mrb[12].mxu0 %v2516_v37 }
 0x247   : > { %10122 = vst [vmem:[#allocation44_spill] sm:$0xff] %v8899_v15  ;;  %7432 = vmatmul.mubr.bf16.gmra.mrb[12].mxu1 %v8051_v31  ;;  %7175 = vmatprep.mubr.msk.bf16.mxu0 %vm8120_vm0, %v10102_v61  ;;  %v2519_v15 = vrot.slane %v8055_v3, 3 }
 0x248   : > { %7435 = vmatprep.mubr.msk.bf16.mxu1 %vm8120_vm0, %v10102_v61 }
 0x249   : > { %v1276_v40 = vpop.f32.mrb[164].mxu0 }
 0x24a   : > { %v1914_v25 = vpop.f32.mrb[164].mxu1  ;;  %v6793_v8 = vpop.f32.mrb[165].mxu0 }
 0x24b   : > { %v8905_v44 = vadd.f32 %v1914_v25, %v1276_v40  ;;  %v7053_v12 = vpop.f32.mrb[165].mxu1  ;;  %v1279_v39 = vpop.f32.mrb[166].mxu0 }
 0x24c   : > { %v1917_v62 = vpop.f32.mrb[166].mxu1  ;;  %v6794_v31 = vpop.f32.mrb[167].mxu0 }
 0x24d   : > { %10123 = vst [vmem:[#allocation45_spill] sm:$0xff] %v8905_v44  ;;  %v8909_v37 = vadd.f32 %v1917_v62, %v1279_v39  ;;  %v7054_v16 = vpop.f32.mrb[167].mxu1  ;;  %v2520_v39 = vsel %vm683_vm1, %v2517_v6, %v2519_v15  ;;  %v8056_v62 = vld [vmem:[%s8665_s5 + $0x58] sm:$0xff]  }
 0x24e   : > { %7176 = vmatmul.mubr.bf16.gmra.mrb[16].mxu0 %v2518_v56 }
 0x24f   : > { %10124 = vst [vmem:[#allocation46_spill] sm:$0xff] %v8909_v37  ;;  %7436 = vmatmul.mubr.bf16.gmra.mrb[16].mxu1 %v8052_v29  ;;  %7179 = vmatprep.mubr.msk.bf16.mxu0 %vm8120_vm0, %v10102_v61  ;;  %v2521_v37 = vrot.slane %v8056_v62, 3 }
 0x250   : > { %7439 = vmatprep.mubr.msk.bf16.mxu1 %vm8120_vm0, %v10102_v61 }
 0x251   : > { %v1284_v40 = vpop.f32.mrb[168].mxu0 }
 0x252   : > { %v1922_v25 = vpop.f32.mrb[168].mxu1  ;;  %v6797_v8 = vpop.f32.mrb[169].mxu0 }
 0x253   : > { %v8915_v28 = vadd.f32 %v1922_v25, %v1284_v40  ;;  %v7057_v12 = vpop.f32.mrb[169].mxu1  ;;  %v1287_v44 = vpop.f32.mrb[170].mxu0 }
 0x254   : > { %v1925_v31 = vpop.f32.mrb[170].mxu1  ;;  %v6798_v29 = vpop.f32.mrb[171].mxu0 }
 0x255   : > { %10125 = vst [vmem:[#allocation47_spill] sm:$0xff] %v8915_v28  ;;  %v8919_v56 = vadd.f32 %v1925_v31, %v1287_v44  ;;  %v7058_v16 = vpop.f32.mrb[171].mxu1  ;;  %v2522_v44 = vsel %vm683_vm1, %v2519_v15, %v2521_v37  ;;  %v8057_v31 = vld [vmem:[%s8665_s5 + $0x60] sm:$0xff]  }
 0x256   : > { %7180 = vmatmul.mubr.bf16.gmra.mrb[20].mxu0 %v2520_v39 }
 0x257   : > { %10126 = vst [vmem:[#allocation48_spill] sm:$0xff] %v8919_v56  ;;  %7440 = vmatmul.mubr.bf16.gmra.mrb[20].mxu1 %v8053_v1  ;;  %7183 = vmatprep.mubr.msk.bf16.mxu0 %vm8120_vm0, %v10102_v61  ;;  %v2523_v56 = vrot.slane %v8057_v31, 3 }
 0x258   : > { %7443 = vmatprep.mubr.msk.bf16.mxu1 %vm8120_vm0, %v10102_v61 }
 0x259   : > { %v1292_v40 = vpop.f32.mrb[172].mxu0 }
 0x25a   : > { %v1930_v25 = vpop.f32.mrb[172].mxu1  ;;  %v6801_v8 = vpop.f32.mrb[173].mxu0 }
 0x25b   : > { %v8925_v6 = vadd.f32 %v1930_v25, %v1292_v40  ;;  %v7061_v12 = vpop.f32.mrb[173].mxu1  ;;  %v1295_v28 = vpop.f32.mrb[174].mxu0 }
 0x25c   : > { %v1933_v29 = vpop.f32.mrb[174].mxu1  ;;  %v6802_v1 = vpop.f32.mrb[175].mxu0 }
 0x25d   : > { %10127 = vst [vmem:[#allocation49_spill] sm:$0xff] %v8925_v6  ;;  %v8929_v39 = vadd.f32 %v1933_v29, %v1295_v28  ;;  %v7062_v16 = vpop.f32.mrb[175].mxu1  ;;  %v2524_v28 = vsel %vm683_vm1, %v2521_v37, %v2523_v56  ;;  %v8058_v29 = vld [vmem:[%s8665_s5 + $0x68] sm:$0xff]  }
 0x25e   : > { %7184 = vmatmul.mubr.bf16.gmra.mrb[24].mxu0 %v2522_v44 }
 0x25f   : > { %10128 = vst [vmem:[#allocation50_spill] sm:$0xff] %v8929_v39  ;;  %7444 = vmatmul.mubr.bf16.gmra.mrb[24].mxu1 %v8054_v48  ;;  %7187 = vmatprep.mubr.msk.bf16.mxu0 %vm8120_vm0, %v10102_v61  ;;  %v2525_v39 = vrot.slane %v8058_v29, 3 }
 0x260   : > { %7447 = vmatprep.mubr.msk.bf16.mxu1 %vm8120_vm0, %v10102_v61 }
 0x261   : > { %v1300_v40 = vpop.f32.mrb[176].mxu0 }
 0x262   : > { %v1938_v25 = vpop.f32.mrb[176].mxu1  ;;  %v6805_v8 = vpop.f32.mrb[177].mxu0 }
 0x263   : > { %v8935_v15 = vadd.f32 %v1938_v25, %v1300_v40  ;;  %v7065_v12 = vpop.f32.mrb[177].mxu1  ;;  %v1303_v6 = vpop.f32.mrb[178].mxu0 }
 0x264   : > { %v1941_v1 = vpop.f32.mrb[178].mxu1  ;;  %v6806_v48 = vpop.f32.mrb[179].mxu0 }
 0x265   : > { %10129 = vst [vmem:[#allocation51_spill] sm:$0xff] %v8935_v15  ;;  %v8939_v44 = vadd.f32 %v1941_v1, %v1303_v6  ;;  %v7066_v16 = vpop.f32.mrb[179].mxu1  ;;  %v2526_v6 = vsel %vm683_vm1, %v2523_v56, %v2525_v39  ;;  %v8059_v1 = vld [vmem:[%s8665_s5 + $0x70] sm:$0xff]  }
 0x266   : > { %7188 = vmatmul.mubr.bf16.gmra.mrb[28].mxu0 %v2524_v28 }
 0x267   : > { %10130 = vst [vmem:[#allocation52_spill] sm:$0xff] %v8939_v44  ;;  %7448 = vmatmul.mubr.bf16.gmra.mrb[28].mxu1 %v8055_v3  ;;  %7191 = vmatprep.mubr.msk.bf16.mxu0 %vm8120_vm0, %v10102_v61  ;;  %v2527_v44 = vrot.slane %v8059_v1, 3 }
 0x268   : > { %7451 = vmatprep.mubr.msk.bf16.mxu1 %vm8120_vm0, %v10102_v61 }
 0x269   : > { %v1308_v40 = vpop.f32.mrb[180].mxu0 }
 0x26a   : > { %v1946_v25 = vpop.f32.mrb[180].mxu1  ;;  %v6809_v8 = vpop.f32.mrb[181].mxu0 }
 0x26b   : > { %v8945_v37 = vadd.f32 %v1946_v25, %v1308_v40  ;;  %v7069_v12 = vpop.f32.mrb[181].mxu1  ;;  %v1311_v15 = vpop.f32.mrb[182].mxu0 }
 0x26c   : > { %v1949_v48 = vpop.f32.mrb[182].mxu1  ;;  %v6810_v3 = vpop.f32.mrb[183].mxu0 }
 0x26d   : > { %10131 = vst [vmem:[#allocation53_spill] sm:$0xff] %v8945_v37  ;;  %v8949_v28 = vadd.f32 %v1949_v48, %v1311_v15  ;;  %v7070_v16 = vpop.f32.mrb[183].mxu1  ;;  %v2528_v15 = vsel %vm683_vm1, %v2525_v39, %v2527_v44  ;;  %v8060_v48 = vld [vmem:[%s8665_s5 + $0x78] sm:$0xff]  }
 0x26e   : > { %7192 = vmatmul.mubr.bf16.gmra.mrb[32].mxu0 %v2526_v6 }
 0x26f   : > { %10132 = vst [vmem:[#allocation54_spill] sm:$0xff] %v8949_v28  ;;  %7452 = vmatmul.mubr.bf16.gmra.mrb[32].mxu1 %v8056_v62  ;;  %7195 = vmatprep.mubr.msk.bf16.mxu0 %vm8120_vm0, %v10102_v61  ;;  %v2529_v28 = vrot.slane %v8060_v48, 3 }
 0x270   : > { %7455 = vmatprep.mubr.msk.bf16.mxu1 %vm8120_vm0, %v10102_v61 }
 0x271   : > { %v1316_v40 = vpop.f32.mrb[184].mxu0 }
 0x272   : > { %v1954_v25 = vpop.f32.mrb[184].mxu1  ;;  %v6813_v8 = vpop.f32.mrb[185].mxu0 }
 0x273   : > { %v8955_v56 = vadd.f32 %v1954_v25, %v1316_v40  ;;  %v7073_v12 = vpop.f32.mrb[185].mxu1  ;;  %v1319_v37 = vpop.f32.mrb[186].mxu0 }
 0x274   : > { %v1957_v3 = vpop.f32.mrb[186].mxu1  ;;  %v6814_v62 = vpop.f32.mrb[187].mxu0 }
 0x275   : > { %10133 = vst [vmem:[#allocation55_spill] sm:$0xff] %v8955_v56  ;;  %v8959_v6 = vadd.f32 %v1957_v3, %v1319_v37  ;;  %v7074_v16 = vpop.f32.mrb[187].mxu1  ;;  %v2530_v37 = vsel %vm683_vm1, %v2527_v44, %v2529_v28  ;;  %v8061_v3 = vld [vmem:[%s8665_s5 + $0x80] sm:$0xff]  }
 0x276   : > { %7196 = vmatmul.mubr.bf16.gmra.mrb[36].mxu0 %v2528_v15 }
 0x277   : > { %10134 = vst [vmem:[#allocation56_spill] sm:$0xff] %v8959_v6  ;;  %7456 = vmatmul.mubr.bf16.gmra.mrb[36].mxu1 %v8057_v31  ;;  %7199 = vmatprep.mubr.msk.bf16.mxu0 %vm8120_vm0, %v10102_v61  ;;  %v2531_v6 = vrot.slane %v8061_v3, 3 }
 0x278   : > { %7459 = vmatprep.mubr.msk.bf16.mxu1 %vm8120_vm0, %v10102_v61 }
 0x279   : > { %v1324_v40 = vpop.f32.mrb[188].mxu0 }
 0x27a   : > { %v1962_v25 = vpop.f32.mrb[188].mxu1  ;;  %v6817_v8 = vpop.f32.mrb[189].mxu0 }
 0x27b   : > { %v8965_v39 = vadd.f32 %v1962_v25, %v1324_v40  ;;  %v7077_v12 = vpop.f32.mrb[189].mxu1  ;;  %v1327_v56 = vpop.f32.mrb[190].mxu0 }
 0x27c   : > { %v1965_v62 = vpop.f32.mrb[190].mxu1  ;;  %v6818_v31 = vpop.f32.mrb[191].mxu0 }
 0x27d   : > { %10135 = vst [vmem:[#allocation57_spill] sm:$0xff] %v8965_v39  ;;  %v8969_v15 = vadd.f32 %v1965_v62, %v1327_v56  ;;  %v7078_v16 = vpop.f32.mrb[191].mxu1  ;;  %v2532_v56 = vsel %vm683_vm1, %v2529_v28, %v2531_v6  ;;  %v8062_v62 = vld [vmem:[%s8665_s5 + $0x88] sm:$0xff]  }
 0x27e   : > { %7200 = vmatmul.mubr.bf16.gmra.mrb[40].mxu0 %v2530_v37 }
 0x27f   : > { %10136 = vst [vmem:[#allocation58_spill] sm:$0xff] %v8969_v15  ;;  %7460 = vmatmul.mubr.bf16.gmra.mrb[40].mxu1 %v8058_v29  ;;  %7203 = vmatprep.mubr.msk.bf16.mxu0 %vm8120_vm0, %v10102_v61  ;;  %v2533_v15 = vrot.slane %v8062_v62, 3 }
 0x280   : > { %7463 = vmatprep.mubr.msk.bf16.mxu1 %vm8120_vm0, %v10102_v61 }
 0x281   : > { %v1332_v40 = vpop.f32.mrb[192].mxu0 }
 0x282   : > { %v1970_v25 = vpop.f32.mrb[192].mxu1  ;;  %v6821_v8 = vpop.f32.mrb[193].mxu0 }
 0x283   : > { %v8975_v44 = vadd.f32 %v1970_v25, %v1332_v40  ;;  %v7081_v12 = vpop.f32.mrb[193].mxu1  ;;  %v1335_v39 = vpop.f32.mrb[194].mxu0 }
 0x284   : > { %v1973_v31 = vpop.f32.mrb[194].mxu1  ;;  %v6822_v29 = vpop.f32.mrb[195].mxu0 }
 0x285   : > { %10137 = vst [vmem:[#allocation59_spill] sm:$0xff] %v8975_v44  ;;  %v8979_v37 = vadd.f32 %v1973_v31, %v1335_v39  ;;  %v7082_v16 = vpop.f32.mrb[195].mxu1  ;;  %v2534_v39 = vsel %vm683_vm1, %v2531_v6, %v2533_v15  ;;  %v8063_v31 = vld [vmem:[%s8665_s5 + $0x90] sm:$0xff]  }
 0x286   : > { %7204 = vmatmul.mubr.bf16.gmra.mrb[44].mxu0 %v2532_v56 }
 0x287   : > { %10138 = vst [vmem:[#allocation60_spill] sm:$0xff] %v8979_v37  ;;  %7464 = vmatmul.mubr.bf16.gmra.mrb[44].mxu1 %v8059_v1  ;;  %7207 = vmatprep.mubr.msk.bf16.mxu0 %vm8120_vm0, %v10102_v61  ;;  %v2535_v37 = vrot.slane %v8063_v31, 3 }
 0x288   : > { %7467 = vmatprep.mubr.msk.bf16.mxu1 %vm8120_vm0, %v10102_v61 }
 0x289   : > { %v1340_v40 = vpop.f32.mrb[196].mxu0 }
 0x28a   : > { %v1978_v25 = vpop.f32.mrb[196].mxu1  ;;  %v6825_v8 = vpop.f32.mrb[197].mxu0 }
 0x28b   : > { %v8985_v28 = vadd.f32 %v1978_v25, %v1340_v40  ;;  %v7085_v12 = vpop.f32.mrb[197].mxu1  ;;  %v1343_v44 = vpop.f32.mrb[198].mxu0 }
 0x28c   : > { %v1981_v29 = vpop.f32.mrb[198].mxu1  ;;  %v6826_v1 = vpop.f32.mrb[199].mxu0 }
 0x28d   : > { %10139 = vst [vmem:[#allocation61_spill] sm:$0xff] %v8985_v28  ;;  %v8989_v56 = vadd.f32 %v1981_v29, %v1343_v44  ;;  %v7086_v16 = vpop.f32.mrb[199].mxu1  ;;  %v2536_v44 = vsel %vm683_vm1, %v2533_v15, %v2535_v37  ;;  %v8064_v29 = vld [vmem:[%s8665_s5 + $0x98] sm:$0xff]  }
 0x28e   : > { %7208 = vmatmul.mubr.bf16.gmra.mrb[48].mxu0 %v2534_v39 }
 0x28f   : > { %10140 = vst [vmem:[#allocation62_spill] sm:$0xff] %v8989_v56  ;;  %7468 = vmatmul.mubr.bf16.gmra.mrb[48].mxu1 %v8060_v48  ;;  %7211 = vmatprep.mubr.msk.bf16.mxu0 %vm8120_vm0, %v10102_v61  ;;  %v2537_v56 = vrot.slane %v8064_v29, 3 }
 0x290   : > { %7471 = vmatprep.mubr.msk.bf16.mxu1 %vm8120_vm0, %v10102_v61 }
 0x291   : > { %v1348_v40 = vpop.f32.mrb[200].mxu0 }
 0x292   : > { %v1986_v25 = vpop.f32.mrb[200].mxu1  ;;  %v6829_v8 = vpop.f32.mrb[201].mxu0 }
 0x293   : > { %v8995_v6 = vadd.f32 %v1986_v25, %v1348_v40  ;;  %v7089_v12 = vpop.f32.mrb[201].mxu1  ;;  %v1351_v28 = vpop.f32.mrb[202].mxu0 }
 0x294   : > { %v1989_v1 = vpop.f32.mrb[202].mxu1  ;;  %v6830_v48 = vpop.f32.mrb[203].mxu0 }
 0x295   : > { %10141 = vst [vmem:[#allocation63_spill] sm:$0xff] %v8995_v6  ;;  %v8999_v39 = vadd.f32 %v1989_v1, %v1351_v28  ;;  %v7090_v16 = vpop.f32.mrb[203].mxu1  ;;  %v2538_v28 = vsel %vm683_vm1, %v2535_v37, %v2537_v56  ;;  %v8065_v1 = vld [vmem:[%s8665_s5 + $0xa0] sm:$0xff]  }
 0x296   : > { %7212 = vmatmul.mubr.bf16.gmra.mrb[52].mxu0 %v2536_v44 }
 0x297   : > { %10142 = vst [vmem:[#allocation64_spill] sm:$0xff] %v8999_v39  ;;  %7472 = vmatmul.mubr.bf16.gmra.mrb[52].mxu1 %v8061_v3  ;;  %7215 = vmatprep.mubr.msk.bf16.mxu0 %vm8120_vm0, %v10102_v61  ;;  %v2539_v39 = vrot.slane %v8065_v1, 3 }
 0x298   : > { %7475 = vmatprep.mubr.msk.bf16.mxu1 %vm8120_vm0, %v10102_v61 }
 0x299   : > { %v1356_v40 = vpop.f32.mrb[204].mxu0 }
 0x29a   : > { %v1994_v25 = vpop.f32.mrb[204].mxu1  ;;  %v6833_v8 = vpop.f32.mrb[205].mxu0 }
 0x29b   : > { %v9005_v15 = vadd.f32 %v1994_v25, %v1356_v40  ;;  %v7093_v12 = vpop.f32.mrb[205].mxu1  ;;  %v1359_v6 = vpop.f32.mrb[206].mxu0 }
 0x29c   : > { %v1997_v48 = vpop.f32.mrb[206].mxu1  ;;  %v6834_v3 = vpop.f32.mrb[207].mxu0 }
 0x29d   : > { %10143 = vst [vmem:[#allocation65_spill] sm:$0xff] %v9005_v15  ;;  %v9009_v44 = vadd.f32 %v1997_v48, %v1359_v6  ;;  %v7094_v16 = vpop.f32.mrb[207].mxu1  ;;  %v2540_v6 = vsel %vm683_vm1, %v2537_v56, %v2539_v39  ;;  %v8066_v48 = vld [vmem:[%s8665_s5 + $0xa8] sm:$0xff]  }
 0x29e   : > { %7216 = vmatmul.mubr.bf16.gmra.mrb[56].mxu0 %v2538_v28 }
 0x29f   : > { %10144 = vst [vmem:[#allocation66_spill] sm:$0xff] %v9009_v44  ;;  %7476 = vmatmul.mubr.bf16.gmra.mrb[56].mxu1 %v8062_v62  ;;  %7219 = vmatprep.mubr.msk.bf16.mxu0 %vm8120_vm0, %v10102_v61  ;;  %v2541_v44 = vrot.slane %v8066_v48, 3 }
 0x2a0   : > { %7479 = vmatprep.mubr.msk.bf16.mxu1 %vm8120_vm0, %v10102_v61 }
 0x2a1   : > { %v1364_v40 = vpop.f32.mrb[208].mxu0 }
 0x2a2   : > { %v2002_v25 = vpop.f32.mrb[208].mxu1  ;;  %v6837_v8 = vpop.f32.mrb[209].mxu0 }
 0x2a3   : > { %v9015_v37 = vadd.f32 %v2002_v25, %v1364_v40  ;;  %v7097_v12 = vpop.f32.mrb[209].mxu1  ;;  %v1367_v15 = vpop.f32.mrb[210].mxu0 }
 0x2a4   : > { %v2005_v3 = vpop.f32.mrb[210].mxu1  ;;  %v6838_v62 = vpop.f32.mrb[211].mxu0 }
 0x2a5   : > { %10145 = vst [vmem:[#allocation67_spill] sm:$0xff] %v9015_v37  ;;  %v9019_v28 = vadd.f32 %v2005_v3, %v1367_v15  ;;  %v7098_v16 = vpop.f32.mrb[211].mxu1  ;;  %v2542_v15 = vsel %vm683_vm1, %v2539_v39, %v2541_v44  ;;  %v8067_v3 = vld [vmem:[%s8665_s5 + $0xb0] sm:$0xff]  }
 0x2a6   : > { %7220 = vmatmul.mubr.bf16.gmra.mrb[60].mxu0 %v2540_v6 }
 0x2a7   : > { %10146 = vst [vmem:[#allocation68_spill] sm:$0xff] %v9019_v28  ;;  %7480 = vmatmul.mubr.bf16.gmra.mrb[60].mxu1 %v8063_v31  ;;  %7223 = vmatprep.mubr.msk.bf16.mxu0 %vm8120_vm0, %v10102_v61  ;;  %v2543_v28 = vrot.slane %v8067_v3, 3 }
 0x2a8   : > { %7483 = vmatprep.mubr.msk.bf16.mxu1 %vm8120_vm0, %v10102_v61 }
 0x2a9   : > { %v1372_v40 = vpop.f32.mrb[212].mxu0 }
 0x2aa   : > { %v2010_v25 = vpop.f32.mrb[212].mxu1  ;;  %v6841_v8 = vpop.f32.mrb[213].mxu0 }
 0x2ab   : > { %v9025_v56 = vadd.f32 %v2010_v25, %v1372_v40  ;;  %v7101_v12 = vpop.f32.mrb[213].mxu1  ;;  %v1375_v37 = vpop.f32.mrb[214].mxu0 }
 0x2ac   : > { %v2013_v62 = vpop.f32.mrb[214].mxu1  ;;  %v6842_v31 = vpop.f32.mrb[215].mxu0 }
 0x2ad   : > { %10147 = vst [vmem:[#allocation69_spill] sm:$0xff] %v9025_v56  ;;  %v9029_v6 = vadd.f32 %v2013_v62, %v1375_v37  ;;  %v7102_v16 = vpop.f32.mrb[215].mxu1  ;;  %v2544_v37 = vsel %vm683_vm1, %v2541_v44, %v2543_v28  ;;  %v8068_v62 = vld [vmem:[%s8665_s5 + $0xb8] sm:$0xff]  }
 0x2ae   : > { %7224 = vmatmul.mubr.bf16.gmra.mrb[64].mxu0 %v2542_v15 }
 0x2af   : > { %10148 = vst [vmem:[#allocation70_spill] sm:$0xff] %v9029_v6  ;;  %7484 = vmatmul.mubr.bf16.gmra.mrb[64].mxu1 %v8064_v29  ;;  %7227 = vmatprep.mubr.msk.bf16.mxu0 %vm8120_vm0, %v10102_v61  ;;  %v2545_v6 = vrot.slane %v8068_v62, 3 }
 0x2b0   : > { %7487 = vmatprep.mubr.msk.bf16.mxu1 %vm8120_vm0, %v10102_v61 }
 0x2b1   : > { %v1380_v40 = vpop.f32.mrb[216].mxu0 }
 0x2b2   : > { %v2018_v25 = vpop.f32.mrb[216].mxu1  ;;  %v6845_v8 = vpop.f32.mrb[217].mxu0 }
 0x2b3   : > { %v9035_v39 = vadd.f32 %v2018_v25, %v1380_v40  ;;  %v7105_v12 = vpop.f32.mrb[217].mxu1  ;;  %v1383_v56 = vpop.f32.mrb[218].mxu0 }
 0x2b4   : > { %v2021_v31 = vpop.f32.mrb[218].mxu1  ;;  %v6846_v29 = vpop.f32.mrb[219].mxu0 }
 0x2b5   : > { %10149 = vst [vmem:[#allocation71_spill] sm:$0xff] %v9035_v39  ;;  %v9039_v15 = vadd.f32 %v2021_v31, %v1383_v56  ;;  %v7106_v16 = vpop.f32.mrb[219].mxu1  ;;  %v2546_v56 = vsel %vm683_vm1, %v2543_v28, %v2545_v6  ;;  %v8069_v31 = vld [vmem:[%s8665_s5 + $0xc0] sm:$0xff]  }
 0x2b6   : > { %7228 = vmatmul.mubr.bf16.gmra.mrb[68].mxu0 %v2544_v37 }
 0x2b7   : > { %10150 = vst [vmem:[#allocation72_spill] sm:$0xff] %v9039_v15  ;;  %7488 = vmatmul.mubr.bf16.gmra.mrb[68].mxu1 %v8065_v1  ;;  %7231 = vmatprep.mubr.msk.bf16.mxu0 %vm8120_vm0, %v10102_v61  ;;  %v2547_v15 = vrot.slane %v8069_v31, 3 }
 0x2b8   : > { %7491 = vmatprep.mubr.msk.bf16.mxu1 %vm8120_vm0, %v10102_v61 }
 0x2b9   : > { %v1388_v40 = vpop.f32.mrb[220].mxu0 }
 0x2ba   : > { %v2026_v25 = vpop.f32.mrb[220].mxu1  ;;  %v6849_v8 = vpop.f32.mrb[221].mxu0 }
 0x2bb   : > { %v9045_v44 = vadd.f32 %v2026_v25, %v1388_v40  ;;  %v7109_v12 = vpop.f32.mrb[221].mxu1  ;;  %v1391_v39 = vpop.f32.mrb[222].mxu0 }
 0x2bc   : > { %v2029_v29 = vpop.f32.mrb[222].mxu1  ;;  %v6850_v1 = vpop.f32.mrb[223].mxu0 }
 0x2bd   : > { %10151 = vst [vmem:[#allocation73_spill] sm:$0xff] %v9045_v44  ;;  %v9049_v37 = vadd.f32 %v2029_v29, %v1391_v39  ;;  %v7110_v16 = vpop.f32.mrb[223].mxu1  ;;  %v2548_v39 = vsel %vm683_vm1, %v2545_v6, %v2547_v15  ;;  %v8070_v29 = vld [vmem:[%s8665_s5 + $0xc8] sm:$0xff]  }
 0x2be   : > { %7232 = vmatmul.mubr.bf16.gmra.mrb[72].mxu0 %v2546_v56 }
 0x2bf   : > { %10152 = vst [vmem:[#allocation74_spill] sm:$0xff] %v9049_v37  ;;  %7492 = vmatmul.mubr.bf16.gmra.mrb[72].mxu1 %v8066_v48  ;;  %7235 = vmatprep.mubr.msk.bf16.mxu0 %vm8120_vm0, %v10102_v61  ;;  %v2549_v37 = vrot.slane %v8070_v29, 3 }
 0x2c0   : > { %7495 = vmatprep.mubr.msk.bf16.mxu1 %vm8120_vm0, %v10102_v61 }
 0x2c1   : > { %v1396_v40 = vpop.f32.mrb[224].mxu0 }
 0x2c2   : > { %v2034_v25 = vpop.f32.mrb[224].mxu1  ;;  %v6853_v8 = vpop.f32.mrb[225].mxu0 }
 0x2c3   : > { %v9055_v28 = vadd.f32 %v2034_v25, %v1396_v40  ;;  %v7113_v12 = vpop.f32.mrb[225].mxu1  ;;  %v1399_v44 = vpop.f32.mrb[226].mxu0 }
 0x2c4   : > { %v2037_v1 = vpop.f32.mrb[226].mxu1  ;;  %v6854_v48 = vpop.f32.mrb[227].mxu0 }
 0x2c5   : > { %10153 = vst [vmem:[#allocation75_spill] sm:$0xff] %v9055_v28  ;;  %v9059_v56 = vadd.f32 %v2037_v1, %v1399_v44  ;;  %v7114_v16 = vpop.f32.mrb[227].mxu1  ;;  %v2550_v44 = vsel %vm683_vm1, %v2547_v15, %v2549_v37  ;;  %v8071_v1 = vld [vmem:[%s8665_s5 + $0xd0] sm:$0xff]  }
 0x2c6   : > { %7236 = vmatmul.mubr.bf16.gmra.mrb[76].mxu0 %v2548_v39 }
 0x2c7   : > { %10154 = vst [vmem:[#allocation76_spill] sm:$0xff] %v9059_v56  ;;  %7496 = vmatmul.mubr.bf16.gmra.mrb[76].mxu1 %v8067_v3  ;;  %7239 = vmatprep.mubr.msk.bf16.mxu0 %vm8120_vm0, %v10102_v61  ;;  %v2551_v56 = vrot.slane %v8071_v1, 3 }
 0x2c8   : > { %7499 = vmatprep.mubr.msk.bf16.mxu1 %vm8120_vm0, %v10102_v61 }
 0x2c9   : > { %v1404_v40 = vpop.f32.mrb[228].mxu0 }
 0x2ca   : > { %v2042_v25 = vpop.f32.mrb[228].mxu1  ;;  %v6857_v8 = vpop.f32.mrb[229].mxu0 }
 0x2cb   : > { %v9065_v6 = vadd.f32 %v2042_v25, %v1404_v40  ;;  %v7117_v12 = vpop.f32.mrb[229].mxu1  ;;  %v1407_v28 = vpop.f32.mrb[230].mxu0 }
 0x2cc   : > { %v2045_v48 = vpop.f32.mrb[230].mxu1  ;;  %v6858_v3 = vpop.f32.mrb[231].mxu0 }
 0x2cd   : > { %10155 = vst [vmem:[#allocation77_spill] sm:$0xff] %v9065_v6  ;;  %v9069_v39 = vadd.f32 %v2045_v48, %v1407_v28  ;;  %v7118_v16 = vpop.f32.mrb[231].mxu1  ;;  %v2552_v28 = vsel %vm683_vm1, %v2549_v37, %v2551_v56  ;;  %v8072_v48 = vld [vmem:[%s8665_s5 + $0xd8] sm:$0xff]  }
 0x2ce   : > { %7240 = vmatmul.mubr.bf16.gmra.mrb[80].mxu0 %v2550_v44 }
 0x2cf   : > { %10156 = vst [vmem:[#allocation78_spill] sm:$0xff] %v9069_v39  ;;  %7500 = vmatmul.mubr.bf16.gmra.mrb[80].mxu1 %v8068_v62  ;;  %7243 = vmatprep.mubr.msk.bf16.mxu0 %vm8120_vm0, %v10102_v61  ;;  %v2553_v39 = vrot.slane %v8072_v48, 3 }
 0x2d0   : > { %7503 = vmatprep.mubr.msk.bf16.mxu1 %vm8120_vm0, %v10102_v61 }
 0x2d1   : > { %v1412_v40 = vpop.f32.mrb[232].mxu0 }
 0x2d2   : > { %v2050_v25 = vpop.f32.mrb[232].mxu1  ;;  %v6861_v8 = vpop.f32.mrb[233].mxu0 }
 0x2d3   : > { %v9075_v15 = vadd.f32 %v2050_v25, %v1412_v40  ;;  %v7121_v12 = vpop.f32.mrb[233].mxu1  ;;  %v1415_v6 = vpop.f32.mrb[234].mxu0 }
 0x2d4   : > { %v2053_v3 = vpop.f32.mrb[234].mxu1  ;;  %v6862_v62 = vpop.f32.mrb[235].mxu0 }
 0x2d5   : > { %10157 = vst [vmem:[#allocation79_spill] sm:$0xff] %v9075_v15  ;;  %v9079_v44 = vadd.f32 %v2053_v3, %v1415_v6  ;;  %v7122_v16 = vpop.f32.mrb[235].mxu1  ;;  %v2554_v6 = vsel %vm683_vm1, %v2551_v56, %v2553_v39  ;;  %v9089_v3 = vld [vmem:[%s8665_s5 + $0xe0] sm:$0xff]  }
 0x2d6   : > { %7244 = vmatmul.mubr.bf16.gmra.mrb[84].mxu0 %v2552_v28 }
 0x2d7   : > { %10158 = vst [vmem:[#allocation80_spill] sm:$0xff] %v9079_v44  ;;  %7504 = vmatmul.mubr.bf16.gmra.mrb[84].mxu1 %v8069_v31  ;;  %7247 = vmatprep.mubr.msk.bf16.mxu0 %vm8120_vm0, %v10102_v61 }
 0x2d8   : > { %7507 = vmatprep.mubr.msk.bf16.mxu1 %vm8120_vm0, %v10102_v61 }
 0x2d9   : > { %v1420_v40 = vpop.f32.mrb[236].mxu0 }
 0x2da   : > { %v2058_v25 = vpop.f32.mrb[236].mxu1  ;;  %v6865_v8 = vpop.f32.mrb[237].mxu0 }
 0x2db   : > { %v9085_v37 = vadd.f32 %v2058_v25, %v1420_v40  ;;  %v7125_v12 = vpop.f32.mrb[237].mxu1  ;;  %v1423_v15 = vpop.f32.mrb[238].mxu0  ;;  %v2555_v40 = vrot.slane %v9089_v3, 3 }
 0x2dc   : > { %v2061_v28 = vpop.f32.mrb[238].mxu1  ;;  %v6866_v31 = vpop.f32.mrb[239].mxu0 }
 0x2dd   : > { %10159 = vst [vmem:[#allocation81_spill] sm:$0xff] %v9085_v37  ;;  %v9091_v62 = vadd.f32 %v2061_v28, %v1423_v15  ;;  %v7126_v16 = vpop.f32.mrb[239].mxu1  ;;  %v2556_v15 = vsel %vm683_vm1, %v2553_v39, %v2555_v40  ;;  %v9102_v28 = vld [vmem:[%s8665_s5 + $0xe8] sm:$0xff]  }
 0x2de   : > { %7248 = vmatmul.mubr.bf16.gmra.mrb[88].mxu0 %v2554_v6 }
 0x2df   : > { %10160 = vst [vmem:[#allocation82_spill] sm:$0xff] %v9091_v62  ;;  %7508 = vmatmul.mubr.bf16.gmra.mrb[88].mxu1 %v8070_v29  ;;  %7251 = vmatprep.mubr.msk.bf16.mxu0 %vm8120_vm0, %v10102_v61  ;;  %v2557_v62 = vrot.slane %v9102_v28, 3 }
 0x2e0   : > { %7511 = vmatprep.mubr.msk.bf16.mxu1 %vm8120_vm0, %v10102_v61 }
 0x2e1   : > { %v1428_v25 = vpop.f32.mrb[240].mxu0 }
 0x2e2   : > { %v2066_v56 = vpop.f32.mrb[240].mxu1  ;;  %v6869_v8 = vpop.f32.mrb[241].mxu0 }
 0x2e3   : > { %v9098_v12 = vadd.f32 %v2066_v56, %v1428_v25  ;;  %v7129_v37 = vpop.f32.mrb[241].mxu1  ;;  %v1431_v31 = vpop.f32.mrb[242].mxu0 }
 0x2e4   : > { %v2069_v29 = vpop.f32.mrb[242].mxu1  ;;  %v6870_v6 = vpop.f32.mrb[243].mxu0 }
 0x2e5   : > { %10161 = vst [vmem:[#allocation83_spill] sm:$0xff] %v9098_v12  ;;  %v7130_v16 = vpop.f32.mrb[243].mxu1  ;;  %v2558_v29 = vsel %vm683_vm1, %v2555_v40, %v2557_v62  ;;  %v9111_v6 = vld [vmem:[%s8665_s5 + $0xf0] sm:$0xff]  }
 0x2e6   : > { %7252 = vmatmul.mubr.bf16.gmra.mrb[92].mxu0 %v2556_v15  ;;  %v2559_v40 = vrot.slane %v9111_v6, 3 }
 0x2e7   : > { %7512 = vmatmul.mubr.bf16.gmra.mrb[92].mxu1 %v8071_v1  ;;  %7255 = vmatprep.mubr.msk.bf16.mxu0 %vm8120_vm0, %v10102_v61  ;;  %v9116_v1 = vld [vmem:[%s10075_s3] ss:$0 sm:$0xff] }
 0x2e8   : > { %7515 = vmatprep.mubr.msk.bf16.mxu1 %vm8120_vm0, %v10102_v61  ;;  %v3803_v38 = vadd.f32 %v9116_v1, %v8494_v4 }
 0x2e9   : > { %v2718_v37 = vpop.f32.mrb[244].mxu0 }
 0x2ea   : > { %v3308_v25 = vpop.f32.mrb[244].mxu1  ;;  %v7149_v56 = vpop.f32.mrb[245].mxu0 }
 0x2eb   : > { %v3309_v39 = vadd.f32 %v3308_v25, %v2718_v37  ;;  %v7409_v8 = vpop.f32.mrb[245].mxu1  ;;  %v2721_v31 = vpop.f32.mrb[246].mxu0 }
 0x2ec   : > { %v3311_v15 = vpop.f32.mrb[246].mxu1  ;;  %v7150_v16 = vpop.f32.mrb[247].mxu0 }
 0x2ed   : > { %v4042_v12 = vadd.f32 %v9116_v1, %v3309_v39  ;;  %v3312_v44 = vadd.f32 %v3311_v15, %v2721_v31  ;;  %v7410_v46 = vpop.f32.mrb[247].mxu1 }
 0x2ee   : > { %7256 = vmatmul.mubr.bf16.gmra.mrb[96].mxu0 %v2558_v29 }
 0x2ef   : > { %v4043_v37 = vadd.f32 %v9116_v1, %v3312_v44  ;;  %7516 = vmatmul.mubr.bf16.gmra.mrb[96].mxu1 %v8072_v48  ;;  %7259 = vmatprep.mubr.msk.bf16.mxu0 %vm8120_vm0, %v10102_v61  ;;  %v4163_v25 = vmax.f32 %v4042_v12, 0.0  ;;  %v2560_v44 = vsel %vm683_vm1, %v2557_v62, %v2559_v40  ;;  %v9127_v48 = vld [vmem:[%s8665_s5 + $0xf8] sm:$0xff]  }
 0x2f0   : > { %7519 = vmatprep.mubr.msk.bf16.mxu1 %vm8120_vm0, %v10102_v61  ;;  %v2561_v62 = vrot.slane %v9127_v48, 3 }
 0x2f1   : > { %v4164_v56 = vmax.f32 %v4043_v37, 0.0  ;;  %v2726_v8 = vpop.f32.mrb[248].mxu0 }
 0x2f2   : > { %v3316_v16 = vpop.f32.mrb[248].mxu1  ;;  %v7153_v39 = vpop.f32.mrb[249].mxu0 }
 0x2f3   : > { %v3317_v31 = vadd.f32 %v3316_v16, %v2726_v8  ;;  %v7413_v46 = vpop.f32.mrb[249].mxu1  ;;  %v2729_v29 = vpop.f32.mrb[250].mxu0  ;;  %v7664_v15 = vpack.i.bf16 %v4164_v56, %v4163_v25 }
 0x2f4   : > { %v3319_v57 = vpop.f32.mrb[250].mxu1  ;;  %v7154_v53 = vpop.f32.mrb[251].mxu0 }
 0x2f5   : > { %v4044_v22 = vadd.f32 %v9116_v1, %v3317_v31  ;;  %v3320_v7 = vadd.f32 %v3319_v57, %v2729_v29  ;;  %7665 = vrot.lane.b32.xlu0 %v7664_v15, %s8121_s8  ;;  %v7414_v12 = vpop.f32.mrb[251].mxu1 }
 0x2f6   : > { %7260 = vmatmul.mubr.bf16.gmra.mrb[100].mxu0 %v2560_v44 }
 0x2f7   : > { %v4045_v37 = vadd.f32 %v9116_v1, %v3320_v7  ;;  %7520 = vmatmul.mubr.bf16.gmra.mrb[100].mxu1 %v9089_v3  ;;  %7263 = vmatprep.mubr.msk.bf16.mxu0 %vm8120_vm0, %v10102_v61  ;;  %v4165_v53 = vmax.f32 %v4044_v22, 0.0  ;;  %v2562_v7 = vsel %vm683_vm1, %v2559_v40, %v2561_v62  ;;  %v9140_v3 = vld [vmem:[%s8665_s5 + $0x100] sm:$0xff]  }
 0x2f8   : > { %7523 = vmatprep.mubr.msk.bf16.mxu1 %vm8120_vm0, %v10102_v61  ;;  %v2563_v40 = vrot.slane %v9140_v3, 3 }
 0x2f9   : > { %v4166_v57 = vmax.f32 %v4045_v37, 0.0  ;;  %v2734_v25 = vpop.f32.mrb[252].mxu0 }
 0x2fa   : > { %v3324_v56 = vpop.f32.mrb[252].mxu1  ;;  %v7157_v8 = vpop.f32.mrb[253].mxu0 }
 0x2fb   : > { %v3325_v16 = vadd.f32 %v3324_v56, %v2734_v25  ;;  %v7417_v39 = vpop.f32.mrb[253].mxu1  ;;  %v2737_v31 = vpop.f32.mrb[254].mxu0  ;;  %v7669_v46 = vpack.i.bf16 %v4166_v57, %v4165_v53 }
 0x2fc   : > { %v3327_v29 = vpop.f32.mrb[254].mxu1  ;;  %v7158_v15 = vpop.f32.mrb[255].mxu0 }
 0x2fd   : > { %v4046_v44 = vadd.f32 %v9116_v1, %v3325_v16  ;;  %v3328_v12 = vadd.f32 %v3327_v29, %v2737_v31  ;;  %7670 = vrot.lane.b32.xlu0 %v7669_v46, %s8121_s8  ;;  %v7418_v22 = vpop.f32.mrb[255].mxu1 }
 0x2fe   : > { %7264 = vmatmul.mubr.bf16.gmra.mrb[104].mxu0 %v2562_v7  ;;  %v2564_v7 = vsel %vm683_vm1, %v2561_v62, %v2563_v40 }
 0x2ff   : > { %v4047_v37 = vadd.f32 %v9116_v1, %v3328_v12  ;;  %7524 = vmatmul.mubr.bf16.gmra.mrb[104].mxu1 %v9102_v28  ;;  %7267 = vmatprep.mubr.msk.bf16.mxu0 %vm8120_vm0, %v10102_v61  ;;  %v4167_v53 = vmax.f32 %v4046_v44, 0.0  ;;  %v9153_v28 = vld [vmem:[%s8665_s5 + $0x108] sm:$0xff]  }
 0x300   : > { %7527 = vmatprep.mubr.msk.bf16.mxu1 %vm8120_vm0, %v10102_v61  ;;  %v2565_v62 = vrot.slane %v9153_v28, 3 }
 0x301   : > { %v4168_v57 = vmax.f32 %v4047_v37, 0.0  ;;  %v2742_v25 = vpop.f32.mrb[0].mxu0 }
 0x302   : > { %v3332_v56 = vpop.f32.mrb[0].mxu1  ;;  %v7161_v8 = vpop.f32.mrb[1].mxu0 }
 0x303   : > { %v3333_v16 = vadd.f32 %v3332_v56, %v2742_v25  ;;  %v7421_v39 = vpop.f32.mrb[1].mxu1  ;;  %v2745_v31 = vpop.f32.mrb[2].mxu0  ;;  %v7674_v46 = vpack.i.bf16 %v4168_v57, %v4167_v53 }
 0x304   : > { %v3335_v29 = vpop.f32.mrb[2].mxu1  ;;  %v7162_v15 = vpop.f32.mrb[3].mxu0 }
 0x305   : > { %v4048_v12 = vadd.f32 %v9116_v1, %v3333_v16  ;;  %v3336_v22 = vadd.f32 %v3335_v29, %v2745_v31  ;;  %7675 = vrot.lane.b32.xlu1 %v7674_v46, %s8121_s8  ;;  %v7422_v44 = vpop.f32.mrb[3].mxu1 }
 0x306   : > { %7268 = vmatmul.mubr.bf16.gmra.mrb[108].mxu0 %v2564_v7  ;;  %v2566_v7 = vsel %vm683_vm1, %v2563_v40, %v2565_v62 }
 0x307   : > { %v4049_v37 = vadd.f32 %v9116_v1, %v3336_v22  ;;  %7528 = vmatmul.mubr.bf16.gmra.mrb[108].mxu1 %v9111_v6  ;;  %7271 = vmatprep.mubr.msk.bf16.mxu0 %vm8120_vm0, %v10102_v61  ;;  %v4169_v53 = vmax.f32 %v4048_v12, 0.0  ;;  %v9166_v6 = vld [vmem:[%s8665_s5 + $0x110] sm:$0xff]  }
 0x308   : > { %7531 = vmatprep.mubr.msk.bf16.mxu1 %vm8120_vm0, %v10102_v61  ;;  %v2567_v40 = vrot.slane %v9166_v6, 3 }
 0x309   : > { %v4170_v57 = vmax.f32 %v4049_v37, 0.0  ;;  %v2750_v25 = vpop.f32.mrb[4].mxu0 }
 0x30a   : > { %v3340_v56 = vpop.f32.mrb[4].mxu1  ;;  %v7165_v8 = vpop.f32.mrb[5].mxu0 }
 0x30b   : > { %v3341_v16 = vadd.f32 %v3340_v56, %v2750_v25  ;;  %v7425_v39 = vpop.f32.mrb[5].mxu1  ;;  %v2753_v31 = vpop.f32.mrb[6].mxu0  ;;  %v7679_v46 = vpack.i.bf16 %v4170_v57, %v4169_v53 }
 0x30c   : > { %v3343_v29 = vpop.f32.mrb[6].mxu1  ;;  %v7166_v15 = vpop.f32.mrb[7].mxu0 }
 0x30d   : > { %v4050_v22 = vadd.f32 %v9116_v1, %v3341_v16  ;;  %v3344_v44 = vadd.f32 %v3343_v29, %v2753_v31  ;;  %7680 = vrot.lane.b32.xlu1 %v7679_v46, %s8121_s8  ;;  %v7426_v12 = vpop.f32.mrb[7].mxu1 }
 0x30e   : > { %7272 = vmatmul.mubr.bf16.gmra.mrb[112].mxu0 %v2566_v7  ;;  %v2568_v7 = vsel %vm683_vm1, %v2565_v62, %v2567_v40 }
 0x30f   : > { %v4051_v37 = vadd.f32 %v9116_v1, %v3344_v44  ;;  %7532 = vmatmul.mubr.bf16.gmra.mrb[112].mxu1 %v9127_v48  ;;  %7275 = vmatprep.mubr.msk.bf16.mxu0 %vm8120_vm0, %v10102_v61  ;;  %v4171_v53 = vmax.f32 %v4050_v22, 0.0  ;;  %v9179_v48 = vld [vmem:[%s8665_s5 + $0x118] sm:$0xff]  }
 0x310   : > { %7535 = vmatprep.mubr.msk.bf16.mxu1 %vm8120_vm0, %v10102_v61  ;;  %v2569_v62 = vrot.slane %v9179_v48, 3 }
 0x311   : > { %v4172_v57 = vmax.f32 %v4051_v37, 0.0  ;;  %v2758_v25 = vpop.f32.mrb[8].mxu0 }
 0x312   : > { %v3348_v56 = vpop.f32.mrb[8].mxu1  ;;  %v7169_v8 = vpop.f32.mrb[9].mxu0 }
 0x313   : > { %v3349_v16 = vadd.f32 %v3348_v56, %v2758_v25  ;;  %v7429_v39 = vpop.f32.mrb[9].mxu1  ;;  %v2761_v31 = vpop.f32.mrb[10].mxu0  ;;  %v7684_v46 = vpack.i.bf16 %v4172_v57, %v4171_v53 }
 0x314   : > { %v3351_v29 = vpop.f32.mrb[10].mxu1  ;;  %v7170_v15 = vpop.f32.mrb[11].mxu0 }
 0x315   : > { %v4052_v44 = vadd.f32 %v9116_v1, %v3349_v16  ;;  %v3352_v12 = vadd.f32 %v3351_v29, %v2761_v31  ;;  %7685 = vrot.lane.b32.xlu0 %v7684_v46, %s8121_s8  ;;  %v7430_v22 = vpop.f32.mrb[11].mxu1 }
 0x316   : > { %7276 = vmatmul.mubr.bf16.gmra.mrb[116].mxu0 %v2568_v7  ;;  %v2570_v7 = vsel %vm683_vm1, %v2567_v40, %v2569_v62 }
 0x317   : > { %v4053_v37 = vadd.f32 %v9116_v1, %v3352_v12  ;;  %7536 = vmatmul.mubr.bf16.gmra.mrb[116].mxu1 %v9140_v3  ;;  %7279 = vmatprep.mubr.msk.bf16.mxu0 %vm8120_vm0, %v10102_v61  ;;  %v4173_v53 = vmax.f32 %v4052_v44, 0.0  ;;  %v9192_v3 = vld [vmem:[%s8665_s5 + $0x120] sm:$0xff]  }
 0x318   : > { %7539 = vmatprep.mubr.msk.bf16.mxu1 %vm8120_vm0, %v10102_v61  ;;  %v2571_v40 = vrot.slane %v9192_v3, 3 }
 0x319   : > { %v4174_v57 = vmax.f32 %v4053_v37, 0.0  ;;  %v2766_v25 = vpop.f32.mrb[12].mxu0 }
 0x31a   : > { %v3356_v56 = vpop.f32.mrb[12].mxu1  ;;  %v7173_v8 = vpop.f32.mrb[13].mxu0 }
 0x31b   : > { %v3357_v16 = vadd.f32 %v3356_v56, %v2766_v25  ;;  %v7433_v39 = vpop.f32.mrb[13].mxu1  ;;  %v2769_v31 = vpop.f32.mrb[14].mxu0  ;;  %v7689_v46 = vpack.i.bf16 %v4174_v57, %v4173_v53 }
 0x31c   : > { %v3359_v29 = vpop.f32.mrb[14].mxu1  ;;  %v7174_v15 = vpop.f32.mrb[15].mxu0 }
 0x31d   : > { %v4054_v12 = vadd.f32 %v9116_v1, %v3357_v16  ;;  %v3360_v22 = vadd.f32 %v3359_v29, %v2769_v31  ;;  %7690 = vrot.lane.b32.xlu1 %v7689_v46, %s8121_s8  ;;  %v7434_v44 = vpop.f32.mrb[15].mxu1 }
 0x31e   : > { %7280 = vmatmul.mubr.bf16.gmra.mrb[120].mxu0 %v2570_v7  ;;  %v2572_v7 = vsel %vm683_vm1, %v2569_v62, %v2571_v40 }
 0x31f   : > { %v4055_v37 = vadd.f32 %v9116_v1, %v3360_v22  ;;  %7540 = vmatmul.mubr.bf16.gmra.mrb[120].mxu1 %v9153_v28  ;;  %7283 = vmatprep.mubr.msk.bf16.mxu0 %vm8120_vm0, %v10102_v61  ;;  %v4175_v53 = vmax.f32 %v4054_v12, 0.0  ;;  %v9205_v28 = vld [vmem:[%s8665_s5 + $0x128] sm:$0xff]  }
 0x320   : > { %7543 = vmatprep.mubr.msk.bf16.mxu1 %vm8120_vm0, %v10102_v61  ;;  %v2573_v62 = vrot.slane %v9205_v28, 3 }
 0x321   : > { %v4176_v57 = vmax.f32 %v4055_v37, 0.0  ;;  %v2774_v25 = vpop.f32.mrb[16].mxu0 }
 0x322   : > { %v3364_v56 = vpop.f32.mrb[16].mxu1  ;;  %v7177_v8 = vpop.f32.mrb[17].mxu0 }
 0x323   : > { %v3365_v16 = vadd.f32 %v3364_v56, %v2774_v25  ;;  %v7437_v39 = vpop.f32.mrb[17].mxu1  ;;  %v2777_v31 = vpop.f32.mrb[18].mxu0  ;;  %v7694_v46 = vpack.i.bf16 %v4176_v57, %v4175_v53 }
 0x324   : > { %v3367_v29 = vpop.f32.mrb[18].mxu1  ;;  %v7178_v15 = vpop.f32.mrb[19].mxu0 }
 0x325   : > { %v4056_v22 = vadd.f32 %v9116_v1, %v3365_v16  ;;  %v3368_v44 = vadd.f32 %v3367_v29, %v2777_v31  ;;  %7695 = vrot.lane.b32.xlu0 %v7694_v46, %s8121_s8  ;;  %v7438_v12 = vpop.f32.mrb[19].mxu1 }
 0x326   : > { %7284 = vmatmul.mubr.bf16.gmra.mrb[124].mxu0 %v2572_v7  ;;  %v2574_v7 = vsel %vm683_vm1, %v2571_v40, %v2573_v62 }
 0x327   : > { %v4057_v37 = vadd.f32 %v9116_v1, %v3368_v44  ;;  %7544 = vmatmul.mubr.bf16.gmra.mrb[124].mxu1 %v9166_v6  ;;  %7287 = vmatprep.mubr.msk.bf16.mxu0 %vm8120_vm0, %v10102_v61  ;;  %v4177_v53 = vmax.f32 %v4056_v22, 0.0  ;;  %v9218_v6 = vld [vmem:[%s8665_s5 + $0x130] sm:$0xff]  }
 0x328   : > { %7547 = vmatprep.mubr.msk.bf16.mxu1 %vm8120_vm0, %v10102_v61  ;;  %v2575_v40 = vrot.slane %v9218_v6, 3 }
 0x329   : > { %v4178_v57 = vmax.f32 %v4057_v37, 0.0  ;;  %v2782_v25 = vpop.f32.mrb[20].mxu0 }
 0x32a   : > { %v3372_v56 = vpop.f32.mrb[20].mxu1  ;;  %v7181_v8 = vpop.f32.mrb[21].mxu0 }
 0x32b   : > { %v3373_v16 = vadd.f32 %v3372_v56, %v2782_v25  ;;  %v7441_v39 = vpop.f32.mrb[21].mxu1  ;;  %v2785_v31 = vpop.f32.mrb[22].mxu0  ;;  %v7699_v46 = vpack.i.bf16 %v4178_v57, %v4177_v53 }
 0x32c   : > { %v3375_v29 = vpop.f32.mrb[22].mxu1  ;;  %v7182_v15 = vpop.f32.mrb[23].mxu0 }
 0x32d   : > { %v4058_v44 = vadd.f32 %v9116_v1, %v3373_v16  ;;  %v3376_v12 = vadd.f32 %v3375_v29, %v2785_v31  ;;  %7700 = vrot.lane.b32.xlu1 %v7699_v46, %s8121_s8  ;;  %v7442_v22 = vpop.f32.mrb[23].mxu1 }
 0x32e   : > { %7288 = vmatmul.mubr.bf16.gmra.mrb[128].mxu0 %v2574_v7  ;;  %v2576_v7 = vsel %vm683_vm1, %v2573_v62, %v2575_v40 }
 0x32f   : > { %v4059_v37 = vadd.f32 %v9116_v1, %v3376_v12  ;;  %7548 = vmatmul.mubr.bf16.gmra.mrb[128].mxu1 %v9179_v48  ;;  %7291 = vmatprep.mubr.msk.bf16.mxu0 %vm8120_vm0, %v10102_v61  ;;  %v4179_v53 = vmax.f32 %v4058_v44, 0.0  ;;  %v9231_v48 = vld [vmem:[%s8665_s5 + $0x138] sm:$0xff]  }
 0x330   : > { %7551 = vmatprep.mubr.msk.bf16.mxu1 %vm8120_vm0, %v10102_v61  ;;  %v2577_v62 = vrot.slane %v9231_v48, 3 }
 0x331   : > { %v4180_v57 = vmax.f32 %v4059_v37, 0.0  ;;  %v2790_v25 = vpop.f32.mrb[24].mxu0 }
 0x332   : > { %v3380_v56 = vpop.f32.mrb[24].mxu1  ;;  %v7185_v8 = vpop.f32.mrb[25].mxu0 }
 0x333   : > { %v3381_v16 = vadd.f32 %v3380_v56, %v2790_v25  ;;  %v7445_v39 = vpop.f32.mrb[25].mxu1  ;;  %v2793_v31 = vpop.f32.mrb[26].mxu0  ;;  %v7704_v46 = vpack.i.bf16 %v4180_v57, %v4179_v53 }
 0x334   : > { %v3383_v29 = vpop.f32.mrb[26].mxu1  ;;  %v7186_v15 = vpop.f32.mrb[27].mxu0 }
 0x335   : > { %v4060_v12 = vadd.f32 %v9116_v1, %v3381_v16  ;;  %v3384_v22 = vadd.f32 %v3383_v29, %v2793_v31  ;;  %7705 = vrot.lane.b32.xlu0 %v7704_v46, %s8121_s8  ;;  %v7446_v44 = vpop.f32.mrb[27].mxu1 }
 0x336   : > { %7292 = vmatmul.mubr.bf16.gmra.mrb[132].mxu0 %v2576_v7  ;;  %v2578_v7 = vsel %vm683_vm1, %v2575_v40, %v2577_v62 }
 0x337   : > { %v4061_v37 = vadd.f32 %v9116_v1, %v3384_v22  ;;  %7552 = vmatmul.mubr.bf16.gmra.mrb[132].mxu1 %v9192_v3  ;;  %7295 = vmatprep.mubr.msk.bf16.mxu0 %vm8120_vm0, %v10102_v61  ;;  %v4181_v53 = vmax.f32 %v4060_v12, 0.0  ;;  %v9244_v3 = vld [vmem:[%s8665_s5 + $0x140] sm:$0xff]  }
 0x338   : > { %7555 = vmatprep.mubr.msk.bf16.mxu1 %vm8120_vm0, %v10102_v61  ;;  %v2579_v40 = vrot.slane %v9244_v3, 3 }
 0x339   : > { %v4182_v57 = vmax.f32 %v4061_v37, 0.0  ;;  %v2798_v25 = vpop.f32.mrb[28].mxu0 }
 0x33a   : > { %v3388_v56 = vpop.f32.mrb[28].mxu1  ;;  %v7189_v8 = vpop.f32.mrb[29].mxu0 }
 0x33b   : > { %v3389_v16 = vadd.f32 %v3388_v56, %v2798_v25  ;;  %v7449_v39 = vpop.f32.mrb[29].mxu1  ;;  %v2801_v31 = vpop.f32.mrb[30].mxu0  ;;  %v7709_v46 = vpack.i.bf16 %v4182_v57, %v4181_v53 }
 0x33c   : > { %v3391_v29 = vpop.f32.mrb[30].mxu1  ;;  %v7190_v15 = vpop.f32.mrb[31].mxu0 }
 0x33d   : > { %v4062_v22 = vadd.f32 %v9116_v1, %v3389_v16  ;;  %v3392_v44 = vadd.f32 %v3391_v29, %v2801_v31  ;;  %7710 = vrot.lane.b32.xlu1 %v7709_v46, %s8121_s8  ;;  %v7450_v12 = vpop.f32.mrb[31].mxu1 }
 0x33e   : > { %7296 = vmatmul.mubr.bf16.gmra.mrb[136].mxu0 %v2578_v7  ;;  %v2580_v7 = vsel %vm683_vm1, %v2577_v62, %v2579_v40 }
 0x33f   : > { %v4063_v37 = vadd.f32 %v9116_v1, %v3392_v44  ;;  %7556 = vmatmul.mubr.bf16.gmra.mrb[136].mxu1 %v9205_v28  ;;  %7299 = vmatprep.mubr.msk.bf16.mxu0 %vm8120_vm0, %v10102_v61  ;;  %v4183_v53 = vmax.f32 %v4062_v22, 0.0  ;;  %v9257_v28 = vld [vmem:[%s8665_s5 + $0x148] sm:$0xff]  }
 0x340   : > { %7559 = vmatprep.mubr.msk.bf16.mxu1 %vm8120_vm0, %v10102_v61  ;;  %v2581_v62 = vrot.slane %v9257_v28, 3 }
 0x341   : > { %v4184_v57 = vmax.f32 %v4063_v37, 0.0  ;;  %v2806_v25 = vpop.f32.mrb[32].mxu0 }
 0x342   : > { %v3396_v56 = vpop.f32.mrb[32].mxu1  ;;  %v7193_v8 = vpop.f32.mrb[33].mxu0 }
 0x343   : > { %v3397_v16 = vadd.f32 %v3396_v56, %v2806_v25  ;;  %v7453_v39 = vpop.f32.mrb[33].mxu1  ;;  %v2809_v31 = vpop.f32.mrb[34].mxu0  ;;  %v7714_v46 = vpack.i.bf16 %v4184_v57, %v4183_v53 }
 0x344   : > { %v3399_v29 = vpop.f32.mrb[34].mxu1  ;;  %v7194_v15 = vpop.f32.mrb[35].mxu0 }
 0x345   : > { %v4064_v44 = vadd.f32 %v9116_v1, %v3397_v16  ;;  %v3400_v12 = vadd.f32 %v3399_v29, %v2809_v31  ;;  %7715 = vrot.lane.b32.xlu0 %v7714_v46, %s8121_s8  ;;  %v7454_v22 = vpop.f32.mrb[35].mxu1 }
 0x346   : > { %7300 = vmatmul.mubr.bf16.gmra.mrb[140].mxu0 %v2580_v7  ;;  %v2582_v7 = vsel %vm683_vm1, %v2579_v40, %v2581_v62 }
 0x347   : > { %v4065_v37 = vadd.f32 %v9116_v1, %v3400_v12  ;;  %7560 = vmatmul.mubr.bf16.gmra.mrb[140].mxu1 %v9218_v6  ;;  %7303 = vmatprep.mubr.msk.bf16.mxu0 %vm8120_vm0, %v10102_v61  ;;  %v4185_v53 = vmax.f32 %v4064_v44, 0.0  ;;  %v9270_v6 = vld [vmem:[%s8665_s5 + $0x150] sm:$0xff]  }
 0x348   : > { %7563 = vmatprep.mubr.msk.bf16.mxu1 %vm8120_vm0, %v10102_v61  ;;  %v2583_v40 = vrot.slane %v9270_v6, 3 }
 0x349   : > { %v4186_v57 = vmax.f32 %v4065_v37, 0.0  ;;  %v2814_v25 = vpop.f32.mrb[36].mxu0 }
 0x34a   : > { %v3404_v56 = vpop.f32.mrb[36].mxu1  ;;  %v7197_v8 = vpop.f32.mrb[37].mxu0 }
 0x34b   : > { %v3405_v16 = vadd.f32 %v3404_v56, %v2814_v25  ;;  %v7457_v39 = vpop.f32.mrb[37].mxu1  ;;  %v2817_v31 = vpop.f32.mrb[38].mxu0  ;;  %v7719_v46 = vpack.i.bf16 %v4186_v57, %v4185_v53 }
 0x34c   : > { %v3407_v29 = vpop.f32.mrb[38].mxu1  ;;  %v7198_v15 = vpop.f32.mrb[39].mxu0 }
 0x34d   : > { %v4066_v12 = vadd.f32 %v9116_v1, %v3405_v16  ;;  %v3408_v22 = vadd.f32 %v3407_v29, %v2817_v31  ;;  %7720 = vrot.lane.b32.xlu1 %v7719_v46, %s8121_s8  ;;  %v7458_v44 = vpop.f32.mrb[39].mxu1 }
 0x34e   : > { %7304 = vmatmul.mubr.bf16.gmra.mrb[144].mxu0 %v2582_v7  ;;  %v2584_v7 = vsel %vm683_vm1, %v2581_v62, %v2583_v40 }
 0x34f   : > { %v4067_v37 = vadd.f32 %v9116_v1, %v3408_v22  ;;  %7564 = vmatmul.mubr.bf16.gmra.mrb[144].mxu1 %v9231_v48  ;;  %7307 = vmatprep.mubr.msk.bf16.mxu0 %vm8120_vm0, %v10102_v61  ;;  %v4187_v53 = vmax.f32 %v4066_v12, 0.0  ;;  %v9283_v48 = vld [vmem:[%s8665_s5 + $0x158] sm:$0xff]  }
 0x350   : > { %7567 = vmatprep.mubr.msk.bf16.mxu1 %vm8120_vm0, %v10102_v61  ;;  %v2585_v62 = vrot.slane %v9283_v48, 3 }
 0x351   : > { %v4188_v57 = vmax.f32 %v4067_v37, 0.0  ;;  %v2822_v25 = vpop.f32.mrb[40].mxu0 }
 0x352   : > { %v3412_v56 = vpop.f32.mrb[40].mxu1  ;;  %v7201_v8 = vpop.f32.mrb[41].mxu0 }
 0x353   : > { %v3413_v16 = vadd.f32 %v3412_v56, %v2822_v25  ;;  %v7461_v39 = vpop.f32.mrb[41].mxu1  ;;  %v2825_v31 = vpop.f32.mrb[42].mxu0  ;;  %v7724_v46 = vpack.i.bf16 %v4188_v57, %v4187_v53 }
 0x354   : > { %v3415_v29 = vpop.f32.mrb[42].mxu1  ;;  %v7202_v15 = vpop.f32.mrb[43].mxu0 }
 0x355   : > { %v4068_v22 = vadd.f32 %v9116_v1, %v3413_v16  ;;  %v3416_v44 = vadd.f32 %v3415_v29, %v2825_v31  ;;  %7725 = vrot.lane.b32.xlu0 %v7724_v46, %s8121_s8  ;;  %v7462_v12 = vpop.f32.mrb[43].mxu1 }
 0x356   : > { %7308 = vmatmul.mubr.bf16.gmra.mrb[148].mxu0 %v2584_v7  ;;  %v2586_v7 = vsel %vm683_vm1, %v2583_v40, %v2585_v62 }
 0x357   : > { %v4069_v37 = vadd.f32 %v9116_v1, %v3416_v44  ;;  %7568 = vmatmul.mubr.bf16.gmra.mrb[148].mxu1 %v9244_v3  ;;  %7311 = vmatprep.mubr.msk.bf16.mxu0 %vm8120_vm0, %v10102_v61  ;;  %v4189_v53 = vmax.f32 %v4068_v22, 0.0  ;;  %v9296_v3 = vld [vmem:[%s8665_s5 + $0x160] sm:$0xff]  }
 0x358   : > { %7571 = vmatprep.mubr.msk.bf16.mxu1 %vm8120_vm0, %v10102_v61  ;;  %v2587_v40 = vrot.slane %v9296_v3, 3 }
 0x359   : > { %v4190_v57 = vmax.f32 %v4069_v37, 0.0  ;;  %v2830_v25 = vpop.f32.mrb[44].mxu0 }
 0x35a   : > { %v3420_v56 = vpop.f32.mrb[44].mxu1  ;;  %v7205_v8 = vpop.f32.mrb[45].mxu0 }
 0x35b   : > { %v3421_v16 = vadd.f32 %v3420_v56, %v2830_v25  ;;  %v7465_v39 = vpop.f32.mrb[45].mxu1  ;;  %v2833_v31 = vpop.f32.mrb[46].mxu0  ;;  %v7729_v46 = vpack.i.bf16 %v4190_v57, %v4189_v53 }
 0x35c   : > { %v3423_v29 = vpop.f32.mrb[46].mxu1  ;;  %v7206_v15 = vpop.f32.mrb[47].mxu0 }
 0x35d   : > { %v4070_v44 = vadd.f32 %v9116_v1, %v3421_v16  ;;  %v3424_v12 = vadd.f32 %v3423_v29, %v2833_v31  ;;  %7730 = vrot.lane.b32.xlu1 %v7729_v46, %s8121_s8  ;;  %v7466_v22 = vpop.f32.mrb[47].mxu1  ;;  %v3800_v29 = vadd.f32 %v9116_v1, %v8480_v47  ;;  %v3801_v15 = vadd.f32 %v9116_v1, %v8484_v54 }
 0x35e   : > { %7312 = vmatmul.mubr.bf16.gmra.mrb[152].mxu0 %v2586_v7  ;;  %v9309_v7 = vld [vmem:[%s8665_s5 + $0x168] sm:$0xff]  }
 0x35f   : > { %v4071_v37 = vadd.f32 %v9116_v1, %v3424_v12  ;;  %7572 = vmatmul.mubr.bf16.gmra.mrb[152].mxu1 %v9257_v28  ;;  %7315 = vmatprep.mubr.msk.bf16.mxu0 %vm8120_vm0, %v10102_v61  ;;  %v4191_v53 = vmax.f32 %v4070_v44, 0.0  ;;  %v2588_v28 = vsel %vm683_vm1, %v2585_v62, %v2587_v40  ;;  %v2589_v47 = vrot.slane %v9309_v7, 3 }
 0x360   : > { %7575 = vmatprep.mubr.msk.bf16.mxu1 %vm8120_vm0, %v10102_v61  ;;  %v3921_v54 = vmax.f32 %v3800_v29, 0.0 }
 0x361   : > { %v4192_v57 = vmax.f32 %v4071_v37, 0.0  ;;  %v2838_v25 = vpop.f32.mrb[48].mxu0 }
 0x362   : > { %v3428_v56 = vpop.f32.mrb[48].mxu1  ;;  %v7209_v8 = vpop.f32.mrb[49].mxu0 }
 0x363   : > { %v3429_v16 = vadd.f32 %v3428_v56, %v2838_v25  ;;  %v7469_v39 = vpop.f32.mrb[49].mxu1  ;;  %v2841_v31 = vpop.f32.mrb[50].mxu0  ;;  %v7734_v46 = vpack.i.bf16 %v4192_v57, %v4191_v53  ;;  %v3922_v57 = vmax.f32 %v3801_v15, 0.0 }
 0x364   : > { %v3431_v44 = vpop.f32.mrb[50].mxu1  ;;  %v7210_v12 = vpop.f32.mrb[51].mxu0 }
 0x365   : > { %v4072_v22 = vadd.f32 %v9116_v1, %v3429_v16  ;;  %v3432_v37 = vadd.f32 %v3431_v44, %v2841_v31  ;;  %7735 = vrot.lane.b32.xlu0 %v7734_v46, %s8121_s8  ;;  %v7470_v25 = vpop.f32.mrb[51].mxu1 }
 0x366   : > { %7316 = vmatmul.mubr.bf16.gmra.mrb[156].mxu0 %v2588_v28 }
 0x367   : > { %v4073_v62 = vadd.f32 %v9116_v1, %v3432_v37  ;;  %7576 = vmatmul.mubr.bf16.gmra.mrb[156].mxu1 %v9270_v6  ;;  %v7666_v53 = vpop.permute.xlu0 %7665  ;;  %7319 = vmatprep.mubr.msk.bf16.mxu0 %vm8120_vm0, %v10102_v61  ;;  %v4193_v16 = vmax.f32 %v4072_v22, 0.0  ;;  %v2590_v22 = vsel %vm683_vm1, %v2587_v40, %v2589_v47 }
 0x368   : > { %v7668_v56 = vunpack.i.h.bf16 %v7666_v53  ;;  %v7667_v8 = vunpack.i.l.bf16 %v7666_v53  ;;  %7579 = vmatprep.mubr.msk.bf16.mxu1 %vm8120_vm0, %v10102_v61  ;;  %v3802_v53 = vadd.f32 %v9116_v1, %v8490_v60 }
 0x369   : > { %v4194_v39 = vmax.f32 %v4073_v62, 0.0  ;;  %v2846_v31 = vpop.f32.mrb[52].mxu0  ;;  %v9334_v62 = vld [vmem:[%s8665_s5 + $0x170] sm:$0xff]  }
 0x36a   : > { %v4770_v6 = vsel %vm4768_vm2, %v3922_v57, %v7668_v56  ;;  %v4769_v46 = vsel %vm4768_vm2, %v3921_v54, %v7667_v8  ;;  %v3436_v28 = vpop.f32.mrb[52].mxu1  ;;  %v7213_v29 = vpop.f32.mrb[53].mxu0  ;;  %v2591_v60 = vrot.slane %v9334_v62, 3  ;;  %v3923_v4 = vmax.f32 %v3802_v53, 0.0 }
 0x36b   : > { %v5979_v15 = vpack.c.bf16 %v4770_v6, %v4769_v46  ;;  %v3437_v44 = vadd.f32 %v3436_v28, %v2846_v31  ;;  %v7473_v12 = vpop.f32.mrb[53].mxu1  ;;  %v2849_v37 = vpop.f32.mrb[54].mxu0  ;;  %v7739_v25 = vpack.i.bf16 %v4194_v39, %v4193_v16  ;;  %v3924_v39 = vmax.f32 %v3803_v38, 0.0 }
 0x36c   : > { %v3439_v57 = vpop.f32.mrb[54].mxu1  ;;  %v7214_v56 = vpop.f32.mrb[55].mxu0 }
 0x36d   : > { %5980 = vst [vmem:[%s9328_s11] sm:$0xff] %v5979_v15   ;;  %v4074_v54 = vadd.f32 %v9116_v1, %v3437_v44  ;;  %v3440_v8 = vadd.f32 %v3439_v57, %v2849_v37  ;;  %7740 = vrot.lane.b32.xlu1 %v7739_v25, %s8121_s8  ;;  %v7474_v31 = vpop.f32.mrb[55].mxu1  ;;  %v2592_v56 = vsel %vm683_vm1, %v2589_v47, %v2591_v60 }
 0x36e   : > { %7320 = vmatmul.mubr.bf16.gmra.mrb[160].mxu0 %v2590_v22  ;;  %v3805_v31 = vadd.f32 %v9116_v1, %v8504_v17 }
 0x36f   : > { %v4075_v40 = vadd.f32 %v9116_v1, %v3440_v8  ;;  %7580 = vmatmul.mubr.bf16.gmra.mrb[160].mxu1 %v9283_v48  ;;  %v7671_v16 = vpop.permute.xlu0 %7670  ;;  %7323 = vmatprep.mubr.msk.bf16.mxu0 %vm8120_vm0, %v10102_v61  ;;  %v4195_v28 = vmax.f32 %v4074_v54, 0.0  ;;  %v9354_v8 = vld [vmem:[%s8665_s5 + $0x178] sm:$0xff]   ;;  %v3804_v54 = vadd.f32 %v9116_v1, %v8500_v10 }
 0x370   : > { %v7673_v6 = vunpack.i.h.bf16 %v7671_v16  ;;  %v7672_v46 = vunpack.i.l.bf16 %v7671_v16  ;;  %7583 = vmatprep.mubr.msk.bf16.mxu1 %vm8120_vm0, %v10102_v61  ;;  %v2593_v10 = vrot.slane %v9354_v8, 3 }
 0x371   : > { %v4196_v29 = vmax.f32 %v4075_v40, 0.0  ;;  %v2854_v15 = vpop.f32.mrb[56].mxu0  ;;  %v3925_v17 = vmax.f32 %v3804_v54, 0.0 }
 0x372   : > { %v4772_v48 = vsel %vm4768_vm2, %v3924_v39, %v7673_v6  ;;  %v4771_v44 = vsel %vm4768_vm2, %v3923_v4, %v7672_v46  ;;  %v3444_v12 = vpop.f32.mrb[56].mxu1  ;;  %v7217_v37 = vpop.f32.mrb[57].mxu0 }
 0x373   : > { %v5984_v25 = vpack.c.bf16 %v4772_v48, %v4771_v44  ;;  %v3445_v22 = vadd.f32 %v3444_v12, %v2854_v15  ;;  %v7477_v53 = vpop.f32.mrb[57].mxu1  ;;  %v2857_v38 = vpop.f32.mrb[58].mxu0  ;;  %v7744_v57 = vpack.i.bf16 %v4196_v29, %v4195_v28  ;;  %v3926_v28 = vmax.f32 %v3805_v31, 0.0 }
 0x374   : > { %v3447_v40 = vpop.f32.mrb[58].mxu1  ;;  %v7218_v16 = vpop.f32.mrb[59].mxu0  ;;  %v2594_v31 = vsel %vm683_vm1, %v2591_v60, %v2593_v10 }
 0x375   : > { %6276 = vst [vmem:[%s9328_s11 + $0x8] sm:$0xff] %v5984_v25   ;;  %v4076_v4 = vadd.f32 %v9116_v1, %v3445_v22  ;;  %v3448_v39 = vadd.f32 %v3447_v40, %v2857_v38  ;;  %7745 = vrot.lane.b32.xlu0 %v7744_v57, %s8121_s8  ;;  %v7478_v6 = vpop.f32.mrb[59].mxu1  ;;  %v9374_v40 = vld [vmem:[%s8665_s5 + $0x180] sm:$0xff]   ;;  %v3806_v16 = vadd.f32 %v9116_v1, %v8510_v23 }
 0x376   : > { %7324 = vmatmul.mubr.bf16.gmra.mrb[164].mxu0 %v2592_v56  ;;  %v2595_v23 = vrot.slane %v9374_v40, 3 }
 0x377   : > { %v4077_v47 = vadd.f32 %v9116_v1, %v3448_v39  ;;  %7584 = vmatmul.mubr.bf16.gmra.mrb[164].mxu1 %v9296_v3  ;;  %v7676_v46 = vpop.permute.xlu1 %7675  ;;  %7327 = vmatprep.mubr.msk.bf16.mxu0 %vm8120_vm0, %v10102_v61  ;;  %v4197_v48 = vmax.f32 %v4076_v4, 0.0  ;;  %v3807_v4 = vadd.f32 %v9116_v1, %v8514_v30  ;;  %v3927_v30 = vmax.f32 %v3806_v16, 0.0  ;;  %v9394_v16 = vld [vmem:[%s8665_s5 + $0x188] sm:$0xff]  }
 0x378   : > { %v7678_v29 = vunpack.i.h.bf16 %v7676_v46  ;;  %v7677_v15 = vunpack.i.l.bf16 %v7676_v46  ;;  %7587 = vmatprep.mubr.msk.bf16.mxu1 %vm8120_vm0, %v10102_v61 }
 0x379   : > { %v4198_v44 = vmax.f32 %v4077_v47, 0.0  ;;  %v2862_v12 = vpop.f32.mrb[60].mxu0 }
 0x37a   : > { %v4774_v3 = vsel %vm4768_vm2, %v3926_v28, %v7678_v29  ;;  %v4773_v37 = vsel %vm4768_vm2, %v3925_v17, %v7677_v15  ;;  %v3452_v25 = vpop.f32.mrb[60].mxu1  ;;  %v7221_v22 = vpop.f32.mrb[61].mxu0  ;;  %v3928_v29 = vmax.f32 %v3807_v4, 0.0  ;;  %v3808_v4 = vadd.f32 %v9116_v1, %v8520_v36 }
 0x37b   : > { %v5989_v53 = vpack.c.bf16 %v4774_v3, %v4773_v37  ;;  %v3453_v38 = vadd.f32 %v3452_v25, %v2862_v12  ;;  %v7481_v57 = vpop.f32.mrb[61].mxu1  ;;  %v2865_v56 = vpop.f32.mrb[62].mxu0  ;;  %v7749_v54 = vpack.i.bf16 %v4198_v44, %v4197_v48  ;;  %v2597_v36 = vrot.slane %v9394_v16, 3 }
 0x37c   : > { %v3455_v39 = vpop.f32.mrb[62].mxu1  ;;  %v7222_v6 = vpop.f32.mrb[63].mxu0 }
 0x37d   : > { %6277 = vst [vmem:[%s9328_s11 + $0x10] sm:$0xff] %v5989_v53   ;;  %v4078_v47 = vadd.f32 %v9116_v1, %v3453_v38  ;;  %v3456_v46 = vadd.f32 %v3455_v39, %v2865_v56  ;;  %7750 = vrot.lane.b32.xlu1 %v7749_v54, %s8121_s8  ;;  %v7482_v17 = vpop.f32.mrb[63].mxu1  ;;  %v3809_v39 = vadd.f32 %v9116_v1, %v8524_v43  ;;  %v3929_v43 = vmax.f32 %v3808_v4, 0.0 }
 0x37e   : > { %7328 = vmatmul.mubr.bf16.gmra.mrb[168].mxu0 %v2594_v31  ;;  %v2596_v31 = vsel %vm683_vm1, %v2593_v10, %v2595_v23 }
 0x37f   : > { %v4079_v60 = vadd.f32 %v9116_v1, %v3456_v46  ;;  %7588 = vmatmul.mubr.bf16.gmra.mrb[168].mxu1 %v9309_v7  ;;  %v7681_v28 = vpop.permute.xlu1 %7680  ;;  %7331 = vmatprep.mubr.msk.bf16.mxu0 %vm8120_vm0, %v10102_v61  ;;  %v4199_v44 = vmax.f32 %v4078_v47, 0.0 }
 0x380   : > { %v7683_v15 = vunpack.i.h.bf16 %v7681_v28  ;;  %v7682_v48 = vunpack.i.l.bf16 %v7681_v28  ;;  %7591 = vmatprep.mubr.msk.bf16.mxu1 %vm8120_vm0, %v10102_v61 }
 0x381   : > { %v4200_v12 = vmax.f32 %v4079_v60, 0.0  ;;  %v2870_v3 = vpop.f32.mrb[64].mxu0 }
 0x382   : > { %v4776_v7 = vsel %vm4768_vm2, %v3928_v29, %v7683_v15  ;;  %v4775_v37 = vsel %vm4768_vm2, %v3927_v30, %v7682_v48  ;;  %v3460_v25 = vpop.f32.mrb[64].mxu1  ;;  %v7225_v22 = vpop.f32.mrb[65].mxu0  ;;  %v3930_v30 = vmax.f32 %v3809_v39, 0.0 }
 0x383   : > { %v5994_v53 = vpack.c.bf16 %v4776_v7, %v4775_v37  ;;  %v3461_v38 = vadd.f32 %v3460_v25, %v2870_v3  ;;  %v7485_v57 = vpop.f32.mrb[65].mxu1  ;;  %v2873_v56 = vpop.f32.mrb[66].mxu0  ;;  %v7754_v54 = vpack.i.bf16 %v4200_v12, %v4199_v44 }
 0x384   : > { %v3463_v6 = vpop.f32.mrb[66].mxu1  ;;  %v7226_v47 = vpop.f32.mrb[67].mxu0  ;;  %v2598_v57 = vsel %vm683_vm1, %v2595_v23, %v2597_v36 }
 0x385   : > { %6278 = vst [vmem:[%s9328_s11 + $0x18] sm:$0xff] %v5994_v53   ;;  %v4080_v46 = vadd.f32 %v9116_v1, %v3461_v38  ;;  %v3464_v17 = vadd.f32 %v3463_v6, %v2873_v56  ;;  %7755 = vrot.lane.b32.xlu0 %v7754_v54, %s8121_s8  ;;  %v7486_v60 = vpop.f32.mrb[67].mxu1  ;;  %v9414_v56 = vld [vmem:[%s8665_s5 + $0x190] sm:$0xff]   ;;  %v9419_v54 = vld [vmem:[%s10075_s3] ss:$0 sm:$0xff] }
 0x386   : > { %7332 = vmatmul.mubr.bf16.gmra.mrb[172].mxu0 %v2596_v31  ;;  %v3810_v31 = vadd.f32 %v9419_v54, %v8530_v50  ;;  %v3811_v4 = vadd.f32 %v9419_v54, %v8534_v58  ;;  %v2599_v50 = vrot.slane %v9414_v56, 3 }
 0x387   : > { %v4081_v10 = vadd.f32 %v9116_v1, %v3464_v17  ;;  %7592 = vmatmul.mubr.bf16.gmra.mrb[172].mxu1 %v9334_v62  ;;  %v7686_v28 = vpop.permute.xlu0 %7685  ;;  %7335 = vmatprep.mubr.msk.bf16.mxu0 %vm8120_vm0, %v10102_v61  ;;  %v4201_v48 = vmax.f32 %v4080_v46, 0.0 }
 0x388   : > { %v7688_v29 = vunpack.i.h.bf16 %v7686_v28  ;;  %v7687_v15 = vunpack.i.l.bf16 %v7686_v28  ;;  %7595 = vmatprep.mubr.msk.bf16.mxu1 %vm8120_vm0, %v10102_v61  ;;  %v3931_v58 = vmax.f32 %v3810_v31, 0.0 }
 0x389   : > { %v4202_v44 = vmax.f32 %v4081_v10, 0.0  ;;  %v2878_v12 = vpop.f32.mrb[68].mxu0  ;;  %v3932_v10 = vmax.f32 %v3811_v4, 0.0 }
 0x38a   : > { %v4778_v1 = vsel %vm4768_vm2, %v3930_v30, %v7688_v29  ;;  %v4777_v62 = vsel %vm4768_vm2, %v3929_v43, %v7687_v15  ;;  %v3468_v3 = vpop.f32.mrb[68].mxu1  ;;  %v7229_v7 = vpop.f32.mrb[69].mxu0 }
 0x38b   : > { %v5999_v37 = vpack.c.bf16 %v4778_v1, %v4777_v62  ;;  %v3469_v25 = vadd.f32 %v3468_v3, %v2878_v12  ;;  %v7489_v22 = vpop.f32.mrb[69].mxu1  ;;  %v2881_v53 = vpop.f32.mrb[70].mxu0  ;;  %v7759_v38 = vpack.i.bf16 %v4202_v44, %v4201_v48 }
 0x38c   : > { %v3471_v39 = vpop.f32.mrb[70].mxu1  ;;  %v7230_v6 = vpop.f32.mrb[71].mxu0  ;;  %v9439_v22 = vld [vmem:[%s8665_s5 + $0x198] sm:$0xff]  }
 0x38d   : > { %6279 = vst [vmem:[%s9328_s11 + $0x20] sm:$0xff] %v5999_v37   ;;  %v4082_v47 = vadd.f32 %v9419_v54, %v3469_v25  ;;  %v3472_v46 = vadd.f32 %v3471_v39, %v2881_v53  ;;  %7760 = vrot.lane.b32.xlu1 %v7759_v38, %s8121_s8  ;;  %v7490_v23 = vpop.f32.mrb[71].mxu1  ;;  %v2600_v25 = vsel %vm683_vm1, %v2597_v36, %v2599_v50 }
 0x38e   : > { %7336 = vmatmul.mubr.bf16.gmra.mrb[176].mxu0 %v2598_v57  ;;  %v3812_v53 = vadd.f32 %v9419_v54, %v8540_v2  ;;  %v3813_v38 = vadd.f32 %v9419_v54, %v8544_v11  ;;  %v2601_v2 = vrot.slane %v9439_v22, 3 }
 0x38f   : > { %v4083_v17 = vadd.f32 %v9419_v54, %v3472_v46  ;;  %7596 = vmatmul.mubr.bf16.gmra.mrb[176].mxu1 %v9354_v8  ;;  %v7691_v60 = vpop.permute.xlu1 %7690  ;;  %7339 = vmatprep.mubr.msk.bf16.mxu0 %vm8120_vm0, %v10102_v61  ;;  %v4203_v30 = vmax.f32 %v4082_v47, 0.0 }
 0x390   : > { %v7693_v28 = vunpack.i.h.bf16 %v7691_v60  ;;  %v7692_v43 = vunpack.i.l.bf16 %v7691_v60  ;;  %7599 = vmatprep.mubr.msk.bf16.mxu1 %vm8120_vm0, %v10102_v61  ;;  %v3933_v11 = vmax.f32 %v3812_v53, 0.0  ;;  %v3934_v46 = vmax.f32 %v3813_v38, 0.0 }
 0x391   : > { %v4204_v29 = vmax.f32 %v4083_v17, 0.0  ;;  %v2886_v15 = vpop.f32.mrb[72].mxu0 }
 0x392   : > { %v4780_v8 = vsel %vm4768_vm2, %v3932_v10, %v7693_v28  ;;  %v4779_v48 = vsel %vm4768_vm2, %v3931_v58, %v7692_v43  ;;  %v3476_v44 = vpop.f32.mrb[72].mxu1  ;;  %v7233_v12 = vpop.f32.mrb[73].mxu0 }
 0x393   : > { %v6004_v1 = vpack.c.bf16 %v4780_v8, %v4779_v48  ;;  %v3477_v62 = vadd.f32 %v3476_v44, %v2886_v15  ;;  %v7493_v3 = vpop.f32.mrb[73].mxu1  ;;  %v2889_v7 = vpop.f32.mrb[74].mxu0  ;;  %v7764_v37 = vpack.i.bf16 %v4204_v29, %v4203_v30  ;;  %v2602_v12 = vsel %vm683_vm1, %v2599_v50, %v2601_v2 }
 0x394   : > { %v3479_v57 = vpop.f32.mrb[74].mxu1  ;;  %v7234_v31 = vpop.f32.mrb[75].mxu0  ;;  %v3815_v3 = vadd.f32 %v9419_v54, %v8554_v26 }
 0x395   : > { %6280 = vst [vmem:[%s9328_s11 + $0x28] sm:$0xff] %v6004_v1   ;;  %v4084_v4 = vadd.f32 %v9419_v54, %v3477_v62  ;;  %v3480_v39 = vadd.f32 %v3479_v57, %v2889_v7  ;;  %7765 = vrot.lane.b32.xlu0 %v7764_v37, %s8121_s8  ;;  %v7494_v6 = vpop.f32.mrb[75].mxu1  ;;  %v9459_v1 = vld [vmem:[%s8665_s5 + $0x1a0] sm:$0xff]   ;;  %v3814_v62 = vadd.f32 %v9419_v54, %v8550_v18 }
 0x396   : > { %7340 = vmatmul.mubr.bf16.gmra.mrb[180].mxu0 %v2600_v25  ;;  %v2603_v18 = vrot.slane %v9459_v1, 3  ;;  %v3936_v31 = vmax.f32 %v3815_v3, 0.0 }
 0x397   : > { %v4085_v36 = vadd.f32 %v9419_v54, %v3480_v39  ;;  %7600 = vmatmul.mubr.bf16.gmra.mrb[180].mxu1 %v9374_v40  ;;  %v7696_v47 = vpop.permute.xlu0 %7695  ;;  %7343 = vmatprep.mubr.msk.bf16.mxu0 %vm8120_vm0, %v10102_v61  ;;  %v4205_v60 = vmax.f32 %v4084_v4, 0.0  ;;  %v3935_v26 = vmax.f32 %v3814_v62, 0.0 }
 0x398   : > { %v7698_v23 = vunpack.i.h.bf16 %v7696_v47  ;;  %v7697_v17 = vunpack.i.l.bf16 %v7696_v47  ;;  %7603 = vmatprep.mubr.msk.bf16.mxu1 %vm8120_vm0, %v10102_v61 }
 0x399   : > { %v4206_v58 = vmax.f32 %v4085_v36, 0.0  ;;  %v2894_v10 = vpop.f32.mrb[76].mxu0 }
 0x39a   : > { %v4782_v40 = vsel %vm4768_vm2, %v3934_v46, %v7698_v23  ;;  %v4781_v28 = vsel %vm4768_vm2, %v3933_v11, %v7697_v17  ;;  %v3484_v43 = vpop.f32.mrb[76].mxu1  ;;  %v7237_v30 = vpop.f32.mrb[77].mxu0 }
 0x39b   : > { %v6009_v29 = vpack.c.bf16 %v4782_v40, %v4781_v28  ;;  %v3485_v15 = vadd.f32 %v3484_v43, %v2894_v10  ;;  %v7497_v8 = vpop.f32.mrb[77].mxu1  ;;  %v2897_v48 = vpop.f32.mrb[78].mxu0  ;;  %v7769_v44 = vpack.i.bf16 %v4206_v58, %v4205_v60  ;;  %v2604_v28 = vsel %vm683_vm1, %v2601_v2, %v2603_v18  ;;  %v9479_v43 = vld [vmem:[%s8665_s5 + $0x1a8] sm:$0xff]  }
 0x39c   : > { %v3487_v7 = vpop.f32.mrb[78].mxu1  ;;  %v7238_v37 = vpop.f32.mrb[79].mxu0  ;;  %v3816_v30 = vadd.f32 %v9419_v54, %v8560_v33  ;;  %v2605_v33 = vrot.slane %v9479_v43, 3 }
 0x39d   : > { %6281 = vst [vmem:[%s9328_s11 + $0x30] sm:$0xff] %v6009_v29   ;;  %v4086_v25 = vadd.f32 %v9419_v54, %v3485_v15  ;;  %v3488_v53 = vadd.f32 %v3487_v7, %v2897_v48  ;;  %7770 = vrot.lane.b32.xlu1 %v7769_v44, %s8121_s8  ;;  %v7498_v38 = vpop.f32.mrb[79].mxu1  ;;  %v3817_v29 = vadd.f32 %v9419_v54, %v8564_v41 }
 0x39e   : > { %7344 = vmatmul.mubr.bf16.gmra.mrb[184].mxu0 %v2602_v12  ;;  %v3937_v41 = vmax.f32 %v3816_v30, 0.0 }
 0x39f   : > { %v4087_v50 = vadd.f32 %v9419_v54, %v3488_v53  ;;  %7604 = vmatmul.mubr.bf16.gmra.mrb[184].mxu1 %v9394_v16  ;;  %v7701_v57 = vpop.permute.xlu1 %7700  ;;  %7347 = vmatprep.mubr.msk.bf16.mxu0 %vm8120_vm0, %v10102_v61  ;;  %v4207_v6 = vmax.f32 %v4086_v25, 0.0  ;;  %v3938_v3 = vmax.f32 %v3817_v29, 0.0 }
 0x3a0   : > { %v7703_v4 = vunpack.i.h.bf16 %v7701_v57  ;;  %v7702_v39 = vunpack.i.l.bf16 %v7701_v57  ;;  %7607 = vmatprep.mubr.msk.bf16.mxu1 %vm8120_vm0, %v10102_v61 }
 0x3a1   : > { %v4208_v36 = vmax.f32 %v4087_v50, 0.0  ;;  %v2902_v47 = vpop.f32.mrb[80].mxu0 }
 0x3a2   : > { %v4784_v16 = vsel %vm4768_vm2, %v3936_v31, %v7703_v4  ;;  %v4783_v11 = vsel %vm4768_vm2, %v3935_v26, %v7702_v39  ;;  %v3492_v46 = vpop.f32.mrb[80].mxu1  ;;  %v7241_v23 = vpop.f32.mrb[81].mxu0 }
 0x3a3   : > { %v6014_v17 = vpack.c.bf16 %v4784_v16, %v4783_v11  ;;  %v3493_v60 = vadd.f32 %v3492_v46, %v2902_v47  ;;  %v7501_v58 = vpop.f32.mrb[81].mxu1  ;;  %v2905_v10 = vpop.f32.mrb[82].mxu0  ;;  %v7774_v40 = vpack.i.bf16 %v4208_v36, %v4207_v6  ;;  %v2606_v47 = vsel %vm683_vm1, %v2603_v18, %v2605_v33  ;;  %v9499_v16 = vld [vmem:[%s8665_s5 + $0x1b0] sm:$0xff]  }
 0x3a4   : > { %v3495_v15 = vpop.f32.mrb[82].mxu1  ;;  %v7242_v8 = vpop.f32.mrb[83].mxu0  ;;  %v3818_v11 = vadd.f32 %v9419_v54, %v8570_v49  ;;  %v3819_v46 = vadd.f32 %v9419_v54, %v8574_v59  ;;  %v2607_v49 = vrot.slane %v9499_v16, 3 }
 0x3a5   : > { %6282 = vst [vmem:[%s9328_s11 + $0x38] sm:$0xff] %v6014_v17   ;;  %v4088_v48 = vadd.f32 %v9419_v54, %v3493_v60  ;;  %v3496_v44 = vadd.f32 %v3495_v15, %v2905_v10  ;;  %7775 = vrot.lane.b32.xlu0 %v7774_v40, %s8121_s8  ;;  %v7502_v12 = vpop.f32.mrb[83].mxu1 }
 0x3a6   : > { %7348 = vmatmul.mubr.bf16.gmra.mrb[188].mxu0 %v2604_v28  ;;  %v3939_v59 = vmax.f32 %v3818_v11, 0.0  ;;  %v3940_v28 = vmax.f32 %v3819_v46, 0.0 }
 0x3a7   : > { %v4089_v2 = vadd.f32 %v9419_v54, %v3496_v44  ;;  %7608 = vmatmul.mubr.bf16.gmra.mrb[188].mxu1 %v9414_v56  ;;  %v7706_v62 = vpop.permute.xlu0 %7705  ;;  %7351 = vmatprep.mubr.msk.bf16.mxu0 %vm8120_vm0, %v10102_v61  ;;  %v4209_v25 = vmax.f32 %v4088_v48, 0.0 }
 0x3a8   : > { %v7708_v7 = vunpack.i.h.bf16 %v7706_v62  ;;  %v7707_v37 = vunpack.i.l.bf16 %v7706_v62  ;;  %7611 = vmatprep.mubr.msk.bf16.mxu1 %vm8120_vm0, %v10102_v61 }
 0x3a9   : > { %v4210_v53 = vmax.f32 %v4089_v2, 0.0  ;;  %v2910_v38 = vpop.f32.mrb[84].mxu0 }
 0x3aa   : > { %v4786_v56 = vsel %vm4768_vm2, %v3938_v3, %v7708_v7  ;;  %v4785_v50 = vsel %vm4768_vm2, %v3937_v41, %v7707_v37  ;;  %v3500_v57 = vpop.f32.mrb[84].mxu1  ;;  %v7245_v26 = vpop.f32.mrb[85].mxu0 }
 0x3ab   : > { %v6019_v31 = vpack.c.bf16 %v4786_v56, %v4785_v50  ;;  %v3501_v4 = vadd.f32 %v3500_v57, %v2910_v38  ;;  %v7505_v39 = vpop.f32.mrb[85].mxu1  ;;  %v2913_v6 = vpop.f32.mrb[86].mxu0  ;;  %v7779_v36 = vpack.i.bf16 %v4210_v53, %v4209_v25  ;;  %v2608_v25 = vsel %vm683_vm1, %v2605_v33, %v2607_v49  ;;  %v9519_v53 = vld [vmem:[%s8665_s5 + $0x1b8] sm:$0xff]  }
 0x3ac   : > { %v3503_v23 = vpop.f32.mrb[86].mxu1  ;;  %v7246_v17 = vpop.f32.mrb[87].mxu0  ;;  %v3820_v38 = vadd.f32 %v9419_v54, %v8580_v5  ;;  %v3821_v56 = vadd.f32 %v9419_v54, %v8584_v14  ;;  %v2609_v5 = vrot.slane %v9519_v53, 3 }
 0x3ad   : > { %6283 = vst [vmem:[%s9328_s11 + $0x40] sm:$0xff] %v6019_v31   ;;  %v4090_v60 = vadd.f32 %v9419_v54, %v3501_v4  ;;  %v3504_v58 = vadd.f32 %v3503_v23, %v2913_v6  ;;  %7780 = vrot.lane.b32.xlu1 %v7779_v36, %s8121_s8  ;;  %v7506_v10 = vpop.f32.mrb[87].mxu1 }
 0x3ae   : > { %7352 = vmatmul.mubr.bf16.gmra.mrb[192].mxu0 %v2606_v47  ;;  %v3941_v14 = vmax.f32 %v3820_v38, 0.0  ;;  %v3942_v6 = vmax.f32 %v3821_v56, 0.0 }
 0x3af   : > { %v4091_v18 = vadd.f32 %v9419_v54, %v3504_v58  ;;  %7612 = vmatmul.mubr.bf16.gmra.mrb[192].mxu1 %v9439_v22  ;;  %v7711_v40 = vpop.permute.xlu1 %7710  ;;  %7355 = vmatprep.mubr.msk.bf16.mxu0 %vm8120_vm0, %v10102_v61  ;;  %v4211_v15 = vmax.f32 %v4090_v60, 0.0 }
 0x3b0   : > { %v7713_v30 = vunpack.i.h.bf16 %v7711_v40  ;;  %v7712_v29 = vunpack.i.l.bf16 %v7711_v40  ;;  %7615 = vmatprep.mubr.msk.bf16.mxu1 %vm8120_vm0, %v10102_v61 }
 0x3b1   : > { %v4212_v8 = vmax.f32 %v4091_v18, 0.0  ;;  %v2918_v48 = vpop.f32.mrb[88].mxu0 }
 0x3b2   : > { %v4788_v22 = vsel %vm4768_vm2, %v3940_v28, %v7713_v30  ;;  %v4787_v44 = vsel %vm4768_vm2, %v3939_v59, %v7712_v29  ;;  %v3508_v12 = vpop.f32.mrb[88].mxu1  ;;  %v7249_v2 = vpop.f32.mrb[89].mxu0  ;;  %v2610_v30 = vsel %vm683_vm1, %v2607_v49, %v2609_v5  ;;  %v9539_v29 = vld [vmem:[%s8665_s5 + $0x1c0] sm:$0xff]  }
 0x3b3   : > { %v6024_v62 = vpack.c.bf16 %v4788_v22, %v4787_v44  ;;  %v3509_v41 = vadd.f32 %v3508_v12, %v2918_v48  ;;  %v7509_v3 = vpop.f32.mrb[89].mxu1  ;;  %v2921_v7 = vpop.f32.mrb[90].mxu0  ;;  %v7784_v37 = vpack.i.bf16 %v4212_v8, %v4211_v15  ;;  %v3822_v15 = vadd.f32 %v9419_v54, %v8590_v24 }
 0x3b4   : > { %v3511_v50 = vpop.f32.mrb[90].mxu1  ;;  %v7250_v57 = vpop.f32.mrb[91].mxu0  ;;  %v3823_v8 = vadd.f32 %v9419_v54, %v8594_v32  ;;  %v2611_v24 = vrot.slane %v9539_v29, 3 }
 0x3b5   : > { %6284 = vst [vmem:[%s9328_s11 + $0x48] sm:$0xff] %v6024_v62   ;;  %v4092_v26 = vadd.f32 %v9419_v54, %v3509_v41  ;;  %v3512_v31 = vadd.f32 %v3511_v50, %v2921_v7  ;;  %7785 = vrot.lane.b32.xlu0 %v7784_v37, %s8121_s8  ;;  %v7510_v4 = vpop.f32.mrb[91].mxu1  ;;  %v3943_v32 = vmax.f32 %v3822_v15, 0.0 }
 0x3b6   : > { %7356 = vmatmul.mubr.bf16.gmra.mrb[196].mxu0 %v2608_v25  ;;  %v3944_v41 = vmax.f32 %v3823_v8, 0.0 }
 0x3b7   : > { %v4093_v33 = vadd.f32 %v9419_v54, %v3512_v31  ;;  %7616 = vmatmul.mubr.bf16.gmra.mrb[196].mxu1 %v9459_v1  ;;  %v7716_v39 = vpop.permute.xlu0 %7715  ;;  %7359 = vmatprep.mubr.msk.bf16.mxu0 %vm8120_vm0, %v10102_v61  ;;  %v4213_v11 = vmax.f32 %v4092_v26, 0.0 }
 0x3b8   : > { %v7718_v36 = vunpack.i.h.bf16 %v7716_v39  ;;  %v7717_v47 = vunpack.i.l.bf16 %v7716_v39  ;;  %7619 = vmatprep.mubr.msk.bf16.mxu1 %vm8120_vm0, %v10102_v61 }
 0x3b9   : > { %v4214_v46 = vmax.f32 %v4093_v33, 0.0  ;;  %v2926_v23 = vpop.f32.mrb[92].mxu0 }
 0x3ba   : > { %v4790_v1 = vsel %vm4768_vm2, %v3942_v6, %v7718_v36  ;;  %v4789_v17 = vsel %vm4768_vm2, %v3941_v14, %v7717_v47  ;;  %v3516_v60 = vpop.f32.mrb[92].mxu1  ;;  %v7253_v58 = vpop.f32.mrb[93].mxu0  ;;  %v2612_v14 = vsel %vm683_vm1, %v2609_v5, %v2611_v24  ;;  %v9559_v6 = vld [vmem:[%s8665_s5 + $0x1c8] sm:$0xff]   ;;  %v3824_v36 = vadd.f32 %v9419_v54, %v8600_v42 }
 0x3bb   : > { %v6029_v10 = vpack.c.bf16 %v4790_v1, %v4789_v17  ;;  %v3517_v18 = vadd.f32 %v3516_v60, %v2926_v23  ;;  %v7513_v40 = vpop.f32.mrb[93].mxu1  ;;  %v2929_v59 = vpop.f32.mrb[94].mxu0  ;;  %v7789_v28 = vpack.i.bf16 %v4214_v46, %v4213_v11  ;;  %v3825_v47 = vadd.f32 %v9419_v54, %v8604_v52 }
 0x3bc   : > { %v3519_v48 = vpop.f32.mrb[94].mxu1  ;;  %v7254_v22 = vpop.f32.mrb[95].mxu0  ;;  %v2613_v42 = vrot.slane %v9559_v6, 3  ;;  %v3945_v52 = vmax.f32 %v3824_v36, 0.0  ;;  %v9598_v36 = vld [vmem:[%s8665_s5 + $0x1d8] sm:$0xff]  }
 0x3bd   : > { %6285 = vst [vmem:[%s9328_s11 + $0x50] sm:$0xff] %v6029_v10   ;;  %v4094_v44 = vadd.f32 %v9419_v54, %v3517_v18  ;;  %v3520_v12 = vadd.f32 %v3519_v48, %v2929_v59  ;;  %7790 = vrot.lane.b32.xlu1 %v7789_v28, %s8121_s8  ;;  %v7514_v2 = vpop.f32.mrb[95].mxu1  ;;  %v3946_v58 = vmax.f32 %v3825_v47, 0.0 }
 0x3be   : > { %7360 = vmatmul.mubr.bf16.gmra.mrb[200].mxu0 %v2610_v30 }
 0x3bf   : > { %v4095_v49 = vadd.f32 %v9419_v54, %v3520_v12  ;;  %7620 = vmatmul.mubr.bf16.gmra.mrb[200].mxu1 %v9479_v43  ;;  %v7721_v62 = vpop.permute.xlu1 %7720  ;;  %7363 = vmatprep.mubr.msk.bf16.mxu0 %vm8120_vm0, %v10102_v61  ;;  %v4215_v37 = vmax.f32 %v4094_v44, 0.0 }
 0x3c0   : > { %v7723_v3 = vunpack.i.h.bf16 %v7721_v62  ;;  %v7722_v7 = vunpack.i.l.bf16 %v7721_v62  ;;  %7623 = vmatprep.mubr.msk.bf16.mxu1 %vm8120_vm0, %v10102_v61  ;;  %v9579_v62 = vld [vmem:[%s8665_s5 + $0x1d0] sm:$0xff]  }
 0x3c1   : > { %v4216_v25 = vmax.f32 %v4095_v49, 0.0  ;;  %v2934_v38 = vpop.f32.mrb[96].mxu0  ;;  %v2614_v49 = vsel %vm683_vm1, %v2611_v24, %v2613_v42 }
 0x3c2   : > { %v4792_v43 = vsel %vm4768_vm2, %v3944_v41, %v7723_v3  ;;  %v4791_v56 = vsel %vm4768_vm2, %v3943_v32, %v7722_v7  ;;  %v3524_v50 = vpop.f32.mrb[96].mxu1  ;;  %v7257_v57 = vpop.f32.mrb[97].mxu0  ;;  %v3826_v32 = vadd.f32 %v9419_v54, %v8610_v63  ;;  %v3827_v41 = vadd.f32 %v9419_v54, %v8614_v13 }
 0x3c3   : > { %v6034_v26 = vpack.c.bf16 %v4792_v43, %v4791_v56  ;;  %v3525_v31 = vadd.f32 %v3524_v50, %v2934_v38  ;;  %v7517_v4 = vpop.f32.mrb[97].mxu1  ;;  %v2937_v33 = vpop.f32.mrb[98].mxu0  ;;  %v7794_v39 = vpack.i.bf16 %v4216_v25, %v4215_v37  ;;  %v2615_v63 = vrot.slane %v9579_v62, 3 }
 0x3c4   : > { %v3527_v11 = vpop.f32.mrb[98].mxu1  ;;  %v7258_v46 = vpop.f32.mrb[99].mxu0  ;;  %v3947_v13 = vmax.f32 %v3826_v32, 0.0  ;;  %v3948_v56 = vmax.f32 %v3827_v41, 0.0 }
 0x3c5   : > { %6286 = vst [vmem:[%s9328_s11 + $0x58] sm:$0xff] %v6034_v26   ;;  %v4096_v23 = vadd.f32 %v9419_v54, %v3525_v31  ;;  %v3528_v1 = vadd.f32 %v3527_v11, %v2937_v33  ;;  %7795 = vrot.lane.b32.xlu0 %v7794_v39, %s8121_s8  ;;  %v7518_v17 = vpop.f32.mrb[99].mxu1 }
 0x3c6   : > { %7364 = vmatmul.mubr.bf16.gmra.mrb[204].mxu0 %v2612_v14  ;;  %v2616_v17 = vsel %vm683_vm1, %v2613_v42, %v2615_v63  ;;  %v2617_v42 = vrot.slane %v9598_v36, 3 }
 0x3c7   : > { %v4097_v5 = vadd.f32 %v9419_v54, %v3528_v1  ;;  %7624 = vmatmul.mubr.bf16.gmra.mrb[204].mxu1 %v9499_v16  ;;  %v7726_v60 = vpop.permute.xlu0 %7725  ;;  %7367 = vmatprep.mubr.msk.bf16.mxu0 %vm8120_vm0, %v10102_v61  ;;  %v4217_v40 = vmax.f32 %v4096_v23, 0.0 }
 0x3c8   : > { %v7728_v10 = vunpack.i.h.bf16 %v7726_v60  ;;  %v7727_v18 = vunpack.i.l.bf16 %v7726_v60  ;;  %7627 = vmatprep.mubr.msk.bf16.mxu1 %vm8120_vm0, %v10102_v61  ;;  %v3829_v60 = vadd.f32 %v9419_v54, %v8624_v34  ;;  %v2618_v32 = vsel %vm683_vm1, %v2615_v63, %v2617_v42 }
 0x3c9   : > { %v4218_v59 = vmax.f32 %v4097_v5, 0.0  ;;  %v2942_v28 = vpop.f32.mrb[100].mxu0  ;;  %v3828_v5 = vadd.f32 %v9419_v54, %v8620_v21 }
 0x3ca   : > { %v4794_v16 = vsel %vm4768_vm2, %v3946_v58, %v7728_v10  ;;  %v4793_v30 = vsel %vm4768_vm2, %v3945_v52, %v7727_v18  ;;  %v3532_v15 = vpop.f32.mrb[100].mxu1  ;;  %v7261_v8 = vpop.f32.mrb[101].mxu0 }
 0x3cb   : > { %v6039_v48 = vpack.c.bf16 %v4794_v16, %v4793_v30  ;;  %v3533_v22 = vadd.f32 %v3532_v15, %v2942_v28  ;;  %v7521_v44 = vpop.f32.mrb[101].mxu1  ;;  %v2945_v12 = vpop.f32.mrb[102].mxu0  ;;  %v7799_v2 = vpack.i.bf16 %v4218_v59, %v4217_v40  ;;  %v3949_v34 = vmax.f32 %v3828_v5, 0.0  ;;  %v9616_v15 = vld [vmem:[%s8665_s5 + $0x1e0] sm:$0xf] }
 0x3cc   : > { %v3535_v3 = vpop.f32.mrb[102].mxu1  ;;  %v7262_v7 = vpop.f32.mrb[103].mxu0  ;;  %v3950_v28 = vmax.f32 %v3829_v60, 0.0  ;;  %v2194_v8 = vld [vmem:[%s8665_s5 + $0x1e4] sm:$0xf] }
 0x3cd   : > { %6287 = vst [vmem:[%s9328_s11 + $0x60] sm:$0xff] %v6039_v48   ;;  %v4098_v37 = vadd.f32 %v9419_v54, %v3533_v22  ;;  %v3536_v25 = vadd.f32 %v3535_v3, %v2945_v12  ;;  %7800 = vrot.lane.b32.xlu1 %v7799_v2, %s8121_s8  ;;  %v7522_v38 = vpop.f32.mrb[103].mxu1 }
 0x3ce   : > { %7368 = vmatmul.mubr.bf16.gmra.mrb[208].mxu0 %v2614_v49  ;;  %v5726_v38 = vcombine.low %v9616_v15, %v2194_v8 }
 0x3cf   : > { %v4099_v24 = vadd.f32 %v9419_v54, %v3536_v25  ;;  %7628 = vmatmul.mubr.bf16.gmra.mrb[208].mxu1 %v9519_v53  ;;  %v7731_v43 = vpop.permute.xlu1 %7730  ;;  %7371 = vmatprep.mubr.msk.bf16.mxu0 %vm8120_vm0, %v10102_v61  ;;  %v4219_v26 = vmax.f32 %v4098_v37, 0.0 }
 0x3d0   : > { %v7733_v50 = vunpack.i.h.bf16 %v7731_v43  ;;  %v7732_v57 = vunpack.i.l.bf16 %v7731_v43  ;;  %7631 = vmatprep.mubr.msk.bf16.mxu1 %vm8120_vm0, %v10102_v61  ;;  %v3831_v43 = vadd.f32 %v9419_v54, %v8634_v55 }
 0x3d1   : > { %v4220_v31 = vmax.f32 %v4099_v24, 0.0  ;;  %v2950_v4 = vpop.f32.mrb[104].mxu0  ;;  %v3830_v24 = vadd.f32 %v9419_v54, %v8630_v45  ;;  %v2619_v45 = vrot.slane %v5726_v38, 3 }
 0x3d2   : > { %v4796_v53 = vsel %vm4768_vm2, %v3948_v56, %v7733_v50  ;;  %v4795_v33 = vsel %vm4768_vm2, %v3947_v13, %v7732_v57  ;;  %v3540_v39 = vpop.f32.mrb[104].mxu1  ;;  %v7265_v14 = vpop.f32.mrb[105].mxu0 }
 0x3d3   : > { %v6044_v47 = vpack.c.bf16 %v4796_v53, %v4795_v33  ;;  %v3541_v11 = vadd.f32 %v3540_v39, %v2950_v4  ;;  %v7525_v46 = vpop.f32.mrb[105].mxu1  ;;  %v2953_v23 = vpop.f32.mrb[106].mxu0  ;;  %v7804_v1 = vpack.i.bf16 %v4220_v31, %v4219_v26  ;;  %v3951_v55 = vmax.f32 %v3830_v24, 0.0 }
 0x3d4   : > { %v3543_v52 = vpop.f32.mrb[106].mxu1  ;;  %v7266_v58 = vpop.f32.mrb[107].mxu0  ;;  %v3952_v4 = vmax.f32 %v3831_v43, 0.0  ;;  %v3834_v24 = vadd.f32 %v9419_v54, %v8650_v35  ;;  %v3835_v43 = vadd.f32 %v9419_v54, %v8654_v51 }
 0x3d5   : > { %6288 = vst [vmem:[%s9328_s11 + $0x68] sm:$0xff] %v6044_v47   ;;  %v4100_v10 = vadd.f32 %v9419_v54, %v3541_v11  ;;  %v3544_v18 = vadd.f32 %v3543_v52, %v2953_v23  ;;  %7805 = vrot.lane.b32.xlu0 %v7804_v1, %s8121_s8  ;;  %v7526_v40 = vpop.f32.mrb[107].mxu1  ;;  %v2620_v58 = vsel %vm683_vm1, %v2617_v42, %v2619_v45 }
 0x3d6   : > { %7372 = vmatmul.mubr.bf16.gmra.mrb[212].mxu0 %v2616_v17  ;;  %v3833_v40 = vadd.f32 %v9419_v54, %v8644_v20  ;;  %v3955_v35 = vmax.f32 %v3834_v24, 0.0  ;;  %v3956_v51 = vmax.f32 %v3835_v43, 0.0 }
 0x3d7   : > { %v4101_v59 = vadd.f32 %v9419_v54, %v3544_v18  ;;  %7632 = vmatmul.mubr.bf16.gmra.mrb[212].mxu1 %v9539_v29  ;;  %v7736_v21 = vpop.permute.xlu0 %7735  ;;  %7375 = vmatprep.mubr.msk.bf16.mxu0 %vm8120_vm0, %v10102_v61  ;;  %v4221_v48 = vmax.f32 %v4100_v10, 0.0  ;;  %v9640_v10 = vld [vmem:[%s8665_s5 + $0x1e8] sm:$0x7f]   ;;  %v3832_v18 = vadd.f32 %v9419_v54, %v8640_v9 }
 0x3d8   : > { %v7738_v16 = vunpack.i.h.bf16 %v7736_v21  ;;  %v7737_v30 = vunpack.i.l.bf16 %v7736_v21  ;;  %7635 = vmatprep.mubr.msk.bf16.mxu1 %vm8120_vm0, %v10102_v61  ;;  %v2621_v9 = vrot.slane %v9640_v10, 3  ;;  %v3954_v8 = vmax.f32 %v3833_v40, 0.0 }
 0x3d9   : > { %v4222_v22 = vmax.f32 %v4101_v59, 0.0  ;;  %v2958_v44 = vpop.f32.mrb[108].mxu0  ;;  %v3953_v20 = vmax.f32 %v3832_v18, 0.0 }
 0x3da   : > { %v4798_v29 = vsel %vm4768_vm2, %v3950_v28, %v7738_v16  ;;  %v4797_v12 = vsel %vm4768_vm2, %v3949_v34, %v7737_v30  ;;  %v3548_v2 = vpop.f32.mrb[108].mxu1  ;;  %v7269_v49 = vpop.f32.mrb[109].mxu0  ;;  %v2622_v38 = vsel %vm683_vm1, %v2619_v45, %v2621_v9 }
 0x3db   : > { %v6049_v41 = vpack.c.bf16 %v4798_v29, %v4797_v12  ;;  %v3549_v3 = vadd.f32 %v3548_v2, %v2958_v44  ;;  %v7529_v7 = vpop.f32.mrb[109].mxu1  ;;  %v2961_v37 = vpop.f32.mrb[110].mxu0  ;;  %v7809_v25 = vpack.i.bf16 %v4222_v22, %v4221_v48 }
 0x3dc   : > { %v3551_v13 = vpop.f32.mrb[110].mxu1  ;;  %v7270_v56 = vpop.f32.mrb[111].mxu0 }
 0x3dd   : > { %6289 = vst [vmem:[%s9328_s11 + $0x70] sm:$0xff] %v6049_v41   ;;  %v4102_v50 = vadd.f32 %v9419_v54, %v3549_v3  ;;  %v3552_v57 = vadd.f32 %v3551_v13, %v2961_v37  ;;  %7810 = vrot.lane.b32.xlu1 %v7809_v25, %s8121_s8  ;;  %v7530_v63 = vpop.f32.mrb[111].mxu1 }
 0x3de   : > { %7376 = vmatmul.mubr.bf16.gmra.mrb[216].mxu0 %v2618_v32 }
 0x3df   : > { %v4103_v26 = vadd.f32 %v9419_v54, %v3552_v57  ;;  %7636 = vmatmul.mubr.bf16.gmra.mrb[216].mxu1 %v9559_v6  ;;  %v7741_v31 = vpop.permute.xlu1 %7740  ;;  %7379 = vmatprep.mubr.msk.bf16.mxu0 %vm8120_vm0, %v10102_v61  ;;  %v4223_v39 = vmax.f32 %v4102_v50, 0.0 }
 0x3e0   : > { %v7743_v53 = vunpack.i.h.bf16 %v7741_v31  ;;  %v7742_v33 = vunpack.i.l.bf16 %v7741_v31  ;;  %7639 = vmatprep.mubr.msk.bf16.mxu1 %vm8120_vm0, %v10102_v61 }
 0x3e1   : > { %v4224_v14 = vmax.f32 %v4103_v26, 0.0  ;;  %v2966_v47 = vpop.f32.mrb[112].mxu0 }
 0x3e2   : > { %v4800_v11 = vsel %vm4768_vm2, %v3952_v4, %v7743_v53  ;;  %v4799_v6 = vsel %vm4768_vm2, %v3951_v55, %v7742_v33  ;;  %v3556_v46 = vpop.f32.mrb[112].mxu1  ;;  %v7273_v23 = vpop.f32.mrb[113].mxu0 }
 0x3e3   : > { %v6054_v1 = vpack.c.bf16 %v4800_v11, %v4799_v6  ;;  %v3557_v17 = vadd.f32 %v3556_v46, %v2966_v47  ;;  %v7533_v5 = vpop.f32.mrb[113].mxu1  ;;  %v2969_v60 = vpop.f32.mrb[114].mxu0  ;;  %v7814_v52 = vpack.i.bf16 %v4224_v14, %v4223_v39  ;;  %v5730_v11 = vcombine.low %v9616_v15, %v9616_v15 }
 0x3e4   : > { %v3559_v59 = vpop.f32.mrb[114].mxu1  ;;  %v7274_v21 = vpop.f32.mrb[115].mxu0  ;;  %v3837_v5 = vadd.f32 %v9419_v54, %v8671_v19 }
 0x3e5   : > { %6290 = vst [vmem:[%s9328_s11 + $0x78] sm:$0xff] %v6054_v1   ;;  %v4104_v34 = vadd.f32 %v9419_v54, %v3557_v17  ;;  %v3560_v28 = vadd.f32 %v3559_v59, %v2969_v60  ;;  %7815 = vrot.lane.b32.xlu0 %v7814_v52, %s8121_s8  ;;  %v7534_v16 = vpop.f32.mrb[115].mxu1 }
 0x3e6   : > { %7380 = vmatmul.mubr.bf16.gmra.mrb[220].mxu0 %v2620_v58  ;;  %v3958_v21 = vmax.f32 %v3837_v5, 0.0 }
 0x3e7   : > { %v4105_v42 = vadd.f32 %v9419_v54, %v3560_v28  ;;  %7640 = vmatmul.mubr.bf16.gmra.mrb[220].mxu1 %v9579_v62  ;;  %v7746_v30 = vpop.permute.xlu0 %7745  ;;  %7383 = vmatprep.mubr.msk.bf16.mxu0 %vm8120_vm0, %v10102_v61  ;;  %v4225_v44 = vmax.f32 %v4104_v34, 0.0 }
 0x3e8   : > { %v7748_v48 = vunpack.i.h.bf16 %v7746_v30  ;;  %v7747_v22 = vunpack.i.l.bf16 %v7746_v30  ;;  %7643 = vmatprep.mubr.msk.bf16.mxu1 %vm8120_vm0, %v10102_v61 }
 0x3e9   : > { %v4226_v29 = vmax.f32 %v4105_v42, 0.0  ;;  %v2974_v12 = vpop.f32.mrb[116].mxu0 }
 0x3ea   : > { %v4802_v2 = vsel %vm4768_vm2, %v3954_v8, %v7748_v48  ;;  %v4801_v62 = vsel %vm4768_vm2, %v3953_v20, %v7747_v22  ;;  %v3564_v49 = vpop.f32.mrb[116].mxu1  ;;  %v7277_v32 = vpop.f32.mrb[117].mxu0 }
 0x3eb   : > { %v6059_v41 = vpack.c.bf16 %v4802_v2, %v4801_v62  ;;  %v3565_v3 = vadd.f32 %v3564_v49, %v2974_v12  ;;  %v7537_v7 = vpop.f32.mrb[117].mxu1  ;;  %v2977_v37 = vpop.f32.mrb[118].mxu0  ;;  %v7819_v25 = vpack.i.bf16 %v4226_v29, %v4225_v44  ;;  %v3838_v12 = vadd.f32 %v9419_v54, %v8678_v27  ;;  %v10162_v2 = vld [vmem:[#allocation2_spill] sm:$0xff] }
 0x3ec   : > { %v3567_v13 = vpop.f32.mrb[118].mxu1  ;;  %v7278_v56 = vpop.f32.mrb[119].mxu0  ;;  %v3839_v62 = vadd.f32 %v9419_v54, %v10162_v2 }
 0x3ed   : > { %6291 = vst [vmem:[%s9328_s11 + $0x80] sm:$0xff] %v6059_v41   ;;  %v4106_v50 = vadd.f32 %v9419_v54, %v3565_v3  ;;  %v3568_v57 = vadd.f32 %v3567_v13, %v2977_v37  ;;  %7820 = vrot.lane.b32.xlu1 %v7819_v25, %s8121_s8  ;;  %v7538_v63 = vpop.f32.mrb[119].mxu1 }
 0x3ee   : > { %7384 = vmatmul.mubr.bf16.gmra.mrb[224].mxu0 %v2622_v38  ;;  %v3959_v38 = vmax.f32 %v3838_v12, 0.0  ;;  %v3960_v24 = vmax.f32 %v3839_v62, 0.0 }
 0x3ef   : > { %v4107_v26 = vadd.f32 %v9419_v54, %v3568_v57  ;;  %7644 = vmatmul.mubr.bf16.gmra.mrb[224].mxu1 %v9598_v36  ;;  %v7751_v31 = vpop.permute.xlu1 %7750  ;;  %7387 = vmatprep.mubr.msk.bf16.mxu0 %vm8120_vm0, %v10102_v61  ;;  %v4227_v4 = vmax.f32 %v4106_v50, 0.0 }
 0x3f0   : > { %v7753_v45 = vunpack.i.h.bf16 %v7751_v31  ;;  %v7752_v55 = vunpack.i.l.bf16 %v7751_v31  ;;  %7647 = vmatprep.mubr.msk.bf16.mxu1 %vm8120_vm0, %v10102_v61  ;;  %v3836_v61 = vadd.f32 %v9419_v54, %v8667_v0 }
 0x3f1   : > { %v4228_v53 = vmax.f32 %v4107_v26, 0.0  ;;  %v2982_v33 = vpop.f32.mrb[120].mxu0 }
 0x3f2   : > { %v4804_v39 = vsel %vm4768_vm2, %v3956_v51, %v7753_v45  ;;  %v4803_v14 = vsel %vm4768_vm2, %v3955_v35, %v7752_v55  ;;  %v3572_v36 = vpop.f32.mrb[120].mxu1  ;;  %v7281_v47 = vpop.f32.mrb[121].mxu0  ;;  %v3957_v59 = vmax.f32 %v3836_v61, 0.0 }
 0x3f3   : > { %v6064_v6 = vpack.c.bf16 %v4804_v39, %v4803_v14  ;;  %v3573_v46 = vadd.f32 %v3572_v36, %v2982_v33  ;;  %v7541_v23 = vpop.f32.mrb[121].mxu1  ;;  %v2985_v1 = vpop.f32.mrb[122].mxu0  ;;  %v7824_v17 = vpack.i.bf16 %v4228_v53, %v4227_v4  ;;  %v10163_v53 = vld [vmem:[#allocation3_spill] sm:$0xff]  ;;  %v10164_v39 = vld [vmem:[#allocation4_spill] sm:$0xff] }
 0x3f4   : > { %v3575_v60 = vpop.f32.mrb[122].mxu1  ;;  %v7282_v52 = vpop.f32.mrb[123].mxu0  ;;  %v3840_v33 = vadd.f32 %v9419_v54, %v10163_v53  ;;  %v3841_v14 = vadd.f32 %v9419_v54, %v10164_v39 }
 0x3f5   : > { %6292 = vst [vmem:[%s9328_s11 + $0x88] sm:$0xff] %v6064_v6   ;;  %v4108_v58 = vadd.f32 %v9419_v54, %v3573_v46  ;;  %v3576_v10 = vadd.f32 %v3575_v60, %v2985_v1  ;;  %7825 = vrot.lane.b32.xlu0 %v7824_v17, %s8121_s8  ;;  %v7542_v15 = vpop.f32.mrb[123].mxu1 }
 0x3f6   : > { %7388 = vmatmul.mubr.bf16.gmra.mrb[228].mxu0 %v2621_v9  ;;  %v3961_v17 = vmax.f32 %v3840_v33, 0.0  ;;  %v3962_v61 = vmax.f32 %v3841_v14, 0.0 }
 0x3f7   : > { %v4109_v18 = vadd.f32 %v9419_v54, %v3576_v10  ;;  %7648 = vmatmul.mubr.bf16.gmra.mrb[228].mxu1 %v5730_v11  ;;  %v7756_v40 = vpop.permute.xlu0 %7755  ;;  %v4229_v28 = vmax.f32 %v4108_v58, 0.0 }
 0x3f8   : > { %v7758_v0 = vunpack.i.h.bf16 %v7756_v40  ;;  %v7757_v34 = vunpack.i.l.bf16 %v7756_v40 }
 0x3f9   : > { %v4230_v19 = vmax.f32 %v4109_v18, 0.0  ;;  %v2990_v16 = vpop.f32.mrb[124].mxu0 }
 0x3fa   : > { %v4806_v42 = vsel %vm4768_vm2, %v3958_v21, %v7758_v0  ;;  %v4805_v30 = vsel %vm4768_vm2, %v3957_v59, %v7757_v34  ;;  %v3580_v20 = vpop.f32.mrb[124].mxu1  ;;  %v7285_v8 = vpop.f32.mrb[125].mxu0 }
 0x3fb   : > { %v6069_v48 = vpack.c.bf16 %v4806_v42, %v4805_v30  ;;  %v3581_v9 = vadd.f32 %v3580_v20, %v2990_v16  ;;  %v7545_v22 = vpop.f32.mrb[125].mxu1  ;;  %v2993_v44 = vpop.f32.mrb[126].mxu0  ;;  %v7829_v29 = vpack.i.bf16 %v4230_v19, %v4229_v28  ;;  %v9709_v19 = vld [vmem:[%s10075_s3] ss:$0 sm:$0xff]  ;;  %v10165_v16 = vld [vmem:[#allocation5_spill] sm:$0xff] }
 0x3fc   : > { %v3583_v49 = vpop.f32.mrb[126].mxu1  ;;  %v7286_v32 = vpop.f32.mrb[127].mxu0  ;;  %v3842_v42 = vadd.f32 %v9709_v19, %v10165_v16  ;;  %v10166_v30 = vld [vmem:[#allocation6_spill] sm:$0xff] }
 0x3fd   : > { %6293 = vst [vmem:[%s9328_s11 + $0x90] sm:$0xff] %v6069_v48   ;;  %v4110_v41 = vadd.f32 %v9419_v54, %v3581_v9  ;;  %v3584_v3 = vadd.f32 %v3583_v49, %v2993_v44  ;;  %7830 = vrot.lane.b32.xlu1 %v7829_v29, %s8121_s8  ;;  %v7546_v7 = vpop.f32.mrb[127].mxu1  ;;  %v3843_v20 = vadd.f32 %v9709_v19, %v10166_v30 }
 0x3fe   : > { %v3963_v2 = vmax.f32 %v3842_v42, 0.0 }
 0x3ff   : > { %v4111_v37 = vadd.f32 %v9419_v54, %v3584_v3  ;;  %v7761_v25 = vpop.permute.xlu1 %7760  ;;  %v4231_v27 = vmax.f32 %v4110_v41, 0.0  ;;  %v3964_v62 = vmax.f32 %v3843_v20, 0.0 }
 0x400   : > { %v7763_v43 = vunpack.i.h.bf16 %v7761_v25  ;;  %v7762_v13 = vunpack.i.l.bf16 %v7761_v25 }
 0x401   : > { %v4232_v56 = vmax.f32 %v4111_v37, 0.0  ;;  %v2998_v50 = vpop.f32.mrb[128].mxu0 }
 0x402   : > { %v4808_v57 = vsel %vm4768_vm2, %v3960_v24, %v7763_v43  ;;  %v4807_v63 = vsel %vm4768_vm2, %v3959_v38, %v7762_v13  ;;  %v3588_v26 = vpop.f32.mrb[128].mxu1  ;;  %v7289_v31 = vpop.f32.mrb[129].mxu0 }
 0x403   : > { %v6074_v35 = vpack.c.bf16 %v4808_v57, %v4807_v63  ;;  %v3589_v51 = vadd.f32 %v3588_v26, %v2998_v50  ;;  %v7549_v45 = vpop.f32.mrb[129].mxu1  ;;  %v3001_v55 = vpop.f32.mrb[130].mxu0  ;;  %v7834_v4 = vpack.i.bf16 %v4232_v56, %v4231_v27  ;;  %v10167_v57 = vld [vmem:[#allocation7_spill] sm:$0xff]  ;;  %v10168_v26 = vld [vmem:[#allocation8_spill] sm:$0xff] }
 0x404   : > { %v3591_v36 = vpop.f32.mrb[130].mxu1  ;;  %v7290_v47 = vpop.f32.mrb[131].mxu0  ;;  %v3844_v63 = vadd.f32 %v9709_v19, %v10167_v57  ;;  %v3845_v31 = vadd.f32 %v9709_v19, %v10168_v26 }
 0x405   : > { %6294 = vst [vmem:[%s9328_s11 + $0x98] sm:$0xff] %v6074_v35   ;;  %v4112_v11 = vadd.f32 %v9419_v54, %v3589_v51  ;;  %v3592_v6 = vadd.f32 %v3591_v36, %v3001_v55  ;;  %7835 = vrot.lane.b32.xlu0 %v7834_v4, %s8121_s8  ;;  %v7550_v46 = vpop.f32.mrb[131].mxu1 }
 0x406   : > { %v3965_v39 = vmax.f32 %v3844_v63, 0.0  ;;  %v3966_v14 = vmax.f32 %v3845_v31, 0.0 }
 0x407   : > { %v4113_v23 = vadd.f32 %v9419_v54, %v3592_v6  ;;  %v7766_v1 = vpop.permute.xlu0 %7765  ;;  %v4233_v52 = vmax.f32 %v4112_v11, 0.0 }
 0x408   : > { %v7768_v5 = vunpack.i.h.bf16 %v7766_v1  ;;  %v7767_v60 = vunpack.i.l.bf16 %v7766_v1 }
 0x409   : > { %v4234_v58 = vmax.f32 %v4113_v23, 0.0  ;;  %v3006_v10 = vpop.f32.mrb[132].mxu0 }
 0x40a   : > { %v4810_v15 = vsel %vm4768_vm2, %v3962_v61, %v7768_v5  ;;  %v4809_v18 = vsel %vm4768_vm2, %v3961_v17, %v7767_v60  ;;  %v3596_v40 = vpop.f32.mrb[132].mxu1  ;;  %v7293_v59 = vpop.f32.mrb[133].mxu0 }
 0x40b   : > { %v6079_v21 = vpack.c.bf16 %v4810_v15, %v4809_v18  ;;  %v3597_v0 = vadd.f32 %v3596_v40, %v3006_v10  ;;  %v7553_v34 = vpop.f32.mrb[133].mxu1  ;;  %v3009_v28 = vpop.f32.mrb[134].mxu0  ;;  %v7839_v54 = vpack.i.bf16 %v4234_v58, %v4233_v52  ;;  %v10169_v15 = vld [vmem:[#allocation9_spill] sm:$0xff]  ;;  %v10170_v40 = vld [vmem:[#allocation10_spill] sm:$0xff] }
 0x40c   : > { %v3599_v8 = vpop.f32.mrb[134].mxu1  ;;  %v7294_v48 = vpop.f32.mrb[135].mxu0  ;;  %v3846_v18 = vadd.f32 %v9709_v19, %v10169_v15  ;;  %v3847_v59 = vadd.f32 %v9709_v19, %v10170_v40 }
 0x40d   : > { %6295 = vst [vmem:[%s9328_s11 + $0xa0] sm:$0xff] %v6079_v21   ;;  %v4114_v9 = vadd.f32 %v9709_v19, %v3597_v0  ;;  %v3600_v22 = vadd.f32 %v3599_v8, %v3009_v28  ;;  %7840 = vrot.lane.b32.xlu1 %v7839_v54, %s8121_s8  ;;  %v7554_v44 = vpop.f32.mrb[135].mxu1 }
 0x40e   : > { %v3967_v30 = vmax.f32 %v3846_v18, 0.0  ;;  %v3968_v20 = vmax.f32 %v3847_v59, 0.0 }
 0x40f   : > { %v4115_v29 = vadd.f32 %v9709_v19, %v3600_v22  ;;  %v7771_v12 = vpop.permute.xlu1 %7770  ;;  %v4235_v41 = vmax.f32 %v4114_v9, 0.0 }
 0x410   : > { %v7773_v49 = vunpack.i.h.bf16 %v7771_v12  ;;  %v7772_v32 = vunpack.i.l.bf16 %v7771_v12 }
 0x411   : > { %v4236_v3 = vmax.f32 %v4115_v29, 0.0  ;;  %v3014_v7 = vpop.f32.mrb[136].mxu0 }
 0x412   : > { %v4812_v37 = vsel %vm4768_vm2, %v3964_v62, %v7773_v49  ;;  %v4811_v25 = vsel %vm4768_vm2, %v3963_v2, %v7772_v32  ;;  %v3604_v38 = vpop.f32.mrb[136].mxu1  ;;  %v7297_v24 = vpop.f32.mrb[137].mxu0 }
 0x413   : > { %v6084_v43 = vpack.c.bf16 %v4812_v37, %v4811_v25  ;;  %v3605_v13 = vadd.f32 %v3604_v38, %v3014_v7  ;;  %v7557_v27 = vpop.f32.mrb[137].mxu1  ;;  %v3017_v56 = vpop.f32.mrb[138].mxu0  ;;  %v7844_v50 = vpack.i.bf16 %v4236_v3, %v4235_v41  ;;  %v10171_v37 = vld [vmem:[#allocation11_spill] sm:$0xff]  ;;  %v10172_v38 = vld [vmem:[#allocation12_spill] sm:$0xff] }
 0x414   : > { %v3607_v35 = vpop.f32.mrb[138].mxu1  ;;  %v7298_v51 = vpop.f32.mrb[139].mxu0  ;;  %v3848_v25 = vadd.f32 %v9709_v19, %v10171_v37  ;;  %v3849_v24 = vadd.f32 %v9709_v19, %v10172_v38 }
 0x415   : > { %6296 = vst [vmem:[%s9328_s11 + $0xa8] sm:$0xff] %v6084_v43   ;;  %v4116_v45 = vadd.f32 %v9709_v19, %v3605_v13  ;;  %v3608_v55 = vadd.f32 %v3607_v35, %v3017_v56  ;;  %7845 = vrot.lane.b32.xlu0 %v7844_v50, %s8121_s8  ;;  %v7558_v4 = vpop.f32.mrb[139].mxu1 }
 0x416   : > { %v3969_v26 = vmax.f32 %v3848_v25, 0.0  ;;  %v3970_v31 = vmax.f32 %v3849_v24, 0.0 }
 0x417   : > { %v4117_v53 = vadd.f32 %v9709_v19, %v3608_v55  ;;  %v7776_v33 = vpop.permute.xlu0 %7775  ;;  %v4237_v11 = vmax.f32 %v4116_v45, 0.0 }
 0x418   : > { %v7778_v36 = vunpack.i.h.bf16 %v7776_v33  ;;  %v7777_v47 = vunpack.i.l.bf16 %v7776_v33 }
 0x419   : > { %v4238_v6 = vmax.f32 %v4117_v53, 0.0  ;;  %v3022_v46 = vpop.f32.mrb[140].mxu0 }
 0x41a   : > { %v4814_v23 = vsel %vm4768_vm2, %v3966_v14, %v7778_v36  ;;  %v4813_v1 = vsel %vm4768_vm2, %v3965_v39, %v7777_v47  ;;  %v3612_v17 = vpop.f32.mrb[140].mxu1  ;;  %v7301_v61 = vpop.f32.mrb[141].mxu0 }
 0x41b   : > { %v6089_v5 = vpack.c.bf16 %v4814_v23, %v4813_v1  ;;  %v3613_v60 = vadd.f32 %v3612_v17, %v3022_v46  ;;  %v7561_v52 = vpop.f32.mrb[141].mxu1  ;;  %v3025_v58 = vpop.f32.mrb[142].mxu0  ;;  %v7849_v10 = vpack.i.bf16 %v4238_v6, %v4237_v11  ;;  %v10173_v23 = vld [vmem:[#allocation13_spill] sm:$0xff]  ;;  %v10174_v17 = vld [vmem:[#allocation14_spill] sm:$0xff] }
 0x41c   : > { %v3615_v21 = vpop.f32.mrb[142].mxu1  ;;  %v7302_v0 = vpop.f32.mrb[143].mxu0  ;;  %v3850_v1 = vadd.f32 %v9709_v19, %v10173_v23  ;;  %v3851_v61 = vadd.f32 %v9709_v19, %v10174_v17 }
 0x41d   : > { %6297 = vst [vmem:[%s9328_s11 + $0xb0] sm:$0xff] %v6089_v5   ;;  %v4118_v34 = vadd.f32 %v9709_v19, %v3613_v60  ;;  %v3616_v28 = vadd.f32 %v3615_v21, %v3025_v58  ;;  %7850 = vrot.lane.b32.xlu1 %v7849_v10, %s8121_s8  ;;  %v7562_v54 = vpop.f32.mrb[143].mxu1 }
 0x41e   : > { %v3971_v40 = vmax.f32 %v3850_v1, 0.0  ;;  %v3972_v59 = vmax.f32 %v3851_v61, 0.0 }
 0x41f   : > { %v4119_v16 = vadd.f32 %v9709_v19, %v3616_v28  ;;  %v7781_v42 = vpop.permute.xlu1 %7780  ;;  %v4239_v9 = vmax.f32 %v4118_v34, 0.0 }
 0x420   : > { %v7783_v8 = vunpack.i.h.bf16 %v7781_v42  ;;  %v7782_v48 = vunpack.i.l.bf16 %v7781_v42 }
 0x421   : > { %v4240_v22 = vmax.f32 %v4119_v16, 0.0  ;;  %v3030_v44 = vpop.f32.mrb[144].mxu0 }
 0x422   : > { %v4816_v29 = vsel %vm4768_vm2, %v3968_v20, %v7783_v8  ;;  %v4815_v12 = vsel %vm4768_vm2, %v3967_v30, %v7782_v48  ;;  %v3620_v2 = vpop.f32.mrb[144].mxu1  ;;  %v7305_v62 = vpop.f32.mrb[145].mxu0 }
 0x423   : > { %v6094_v49 = vpack.c.bf16 %v4816_v29, %v4815_v12  ;;  %v3621_v32 = vadd.f32 %v3620_v2, %v3030_v44  ;;  %v7565_v41 = vpop.f32.mrb[145].mxu1  ;;  %v3033_v3 = vpop.f32.mrb[146].mxu0  ;;  %v7854_v7 = vpack.i.bf16 %v4240_v22, %v4239_v9  ;;  %v10175_v29 = vld [vmem:[#allocation15_spill] sm:$0xff]  ;;  %v10176_v2 = vld [vmem:[#allocation16_spill] sm:$0xff] }
 0x424   : > { %v3623_v43 = vpop.f32.mrb[146].mxu1  ;;  %v7306_v13 = vpop.f32.mrb[147].mxu0  ;;  %v3852_v12 = vadd.f32 %v9709_v19, %v10175_v29  ;;  %v3853_v62 = vadd.f32 %v9709_v19, %v10176_v2 }
 0x425   : > { %6298 = vst [vmem:[%s9328_s11 + $0xb8] sm:$0xff] %v6094_v49   ;;  %v4120_v27 = vadd.f32 %v9709_v19, %v3621_v32  ;;  %v3624_v56 = vadd.f32 %v3623_v43, %v3033_v3  ;;  %7855 = vrot.lane.b32.xlu0 %v7854_v7, %s8121_s8  ;;  %v7566_v50 = vpop.f32.mrb[147].mxu1 }
 0x426   : > { %v3973_v38 = vmax.f32 %v3852_v12, 0.0  ;;  %v3974_v24 = vmax.f32 %v3853_v62, 0.0 }
 0x427   : > { %v4121_v57 = vadd.f32 %v9709_v19, %v3624_v56  ;;  %v7786_v63 = vpop.permute.xlu0 %7785  ;;  %v4241_v45 = vmax.f32 %v4120_v27, 0.0 }
 0x428   : > { %v7788_v35 = vunpack.i.h.bf16 %v7786_v63  ;;  %v7787_v51 = vunpack.i.l.bf16 %v7786_v63 }
 0x429   : > { %v4242_v55 = vmax.f32 %v4121_v57, 0.0  ;;  %v3038_v4 = vpop.f32.mrb[148].mxu0 }
 0x42a   : > { %v4818_v53 = vsel %vm4768_vm2, %v3970_v31, %v7788_v35  ;;  %v4817_v33 = vsel %vm4768_vm2, %v3969_v26, %v7787_v51  ;;  %v3628_v39 = vpop.f32.mrb[148].mxu1  ;;  %v7309_v14 = vpop.f32.mrb[149].mxu0 }
 0x42b   : > { %v6099_v36 = vpack.c.bf16 %v4818_v53, %v4817_v33  ;;  %v3629_v47 = vadd.f32 %v3628_v39, %v3038_v4  ;;  %v7569_v11 = vpop.f32.mrb[149].mxu1  ;;  %v3041_v6 = vpop.f32.mrb[150].mxu0  ;;  %v7859_v46 = vpack.i.bf16 %v4242_v55, %v4241_v45  ;;  %v10177_v53 = vld [vmem:[#allocation17_spill] sm:$0xff]  ;;  %v10178_v39 = vld [vmem:[#allocation18_spill] sm:$0xff] }
 0x42c   : > { %v3631_v5 = vpop.f32.mrb[150].mxu1  ;;  %v7310_v60 = vpop.f32.mrb[151].mxu0  ;;  %v3854_v33 = vadd.f32 %v9709_v19, %v10177_v53  ;;  %v3855_v14 = vadd.f32 %v9709_v19, %v10178_v39 }
 0x42d   : > { %6299 = vst [vmem:[%s9328_s11 + $0xc0] sm:$0xff] %v6099_v36   ;;  %v4122_v52 = vadd.f32 %v9709_v19, %v3629_v47  ;;  %v3632_v58 = vadd.f32 %v3631_v5, %v3041_v6  ;;  %7860 = vrot.lane.b32.xlu1 %v7859_v46, %s8121_s8  ;;  %v7570_v10 = vpop.f32.mrb[151].mxu1 }
 0x42e   : > { %v3975_v17 = vmax.f32 %v3854_v33, 0.0  ;;  %v3976_v61 = vmax.f32 %v3855_v14, 0.0 }
 0x42f   : > { %v4123_v15 = vadd.f32 %v9709_v19, %v3632_v58  ;;  %v7791_v18 = vpop.permute.xlu1 %7790  ;;  %v4243_v34 = vmax.f32 %v4122_v52, 0.0 }
 0x430   : > { %v7793_v21 = vunpack.i.h.bf16 %v7791_v18  ;;  %v7792_v0 = vunpack.i.l.bf16 %v7791_v18 }
 0x431   : > { %v4244_v28 = vmax.f32 %v4123_v15, 0.0  ;;  %v3046_v54 = vpop.f32.mrb[152].mxu0 }
 0x432   : > { %v4820_v16 = vsel %vm4768_vm2, %v3972_v59, %v7793_v21  ;;  %v4819_v42 = vsel %vm4768_vm2, %v3971_v40, %v7792_v0  ;;  %v3636_v30 = vpop.f32.mrb[152].mxu1  ;;  %v7313_v20 = vpop.f32.mrb[153].mxu0 }
 0x433   : > { %v6104_v8 = vpack.c.bf16 %v4820_v16, %v4819_v42  ;;  %v3637_v48 = vadd.f32 %v3636_v30, %v3046_v54  ;;  %v7573_v9 = vpop.f32.mrb[153].mxu1  ;;  %v3049_v22 = vpop.f32.mrb[154].mxu0  ;;  %v7864_v44 = vpack.i.bf16 %v4244_v28, %v4243_v34  ;;  %v10179_v16 = vld [vmem:[#allocation19_spill] sm:$0xff]  ;;  %v10180_v30 = vld [vmem:[#allocation20_spill] sm:$0xff] }
 0x434   : > { %v3639_v49 = vpop.f32.mrb[154].mxu1  ;;  %v7314_v32 = vpop.f32.mrb[155].mxu0  ;;  %v3856_v42 = vadd.f32 %v9709_v19, %v10179_v16  ;;  %v3857_v20 = vadd.f32 %v9709_v19, %v10180_v30 }
 0x435   : > { %6300 = vst [vmem:[%s9328_s11 + $0xc8] sm:$0xff] %v6104_v8   ;;  %v4124_v41 = vadd.f32 %v9709_v19, %v3637_v48  ;;  %v3640_v3 = vadd.f32 %v3639_v49, %v3049_v22  ;;  %7865 = vrot.lane.b32.xlu0 %v7864_v44, %s8121_s8  ;;  %v7574_v7 = vpop.f32.mrb[155].mxu1 }
 0x436   : > { %v3977_v2 = vmax.f32 %v3856_v42, 0.0  ;;  %v3978_v62 = vmax.f32 %v3857_v20, 0.0 }
 0x437   : > { %v4125_v37 = vadd.f32 %v9709_v19, %v3640_v3  ;;  %v7796_v25 = vpop.permute.xlu0 %7795  ;;  %v4245_v27 = vmax.f32 %v4124_v41, 0.0 }
 0x438   : > { %v7798_v43 = vunpack.i.h.bf16 %v7796_v25  ;;  %v7797_v13 = vunpack.i.l.bf16 %v7796_v25 }
 0x439   : > { %v4246_v56 = vmax.f32 %v4125_v37, 0.0  ;;  %v3054_v50 = vpop.f32.mrb[156].mxu0 }
 0x43a   : > { %v4822_v57 = vsel %vm4768_vm2, %v3974_v24, %v7798_v43  ;;  %v4821_v63 = vsel %vm4768_vm2, %v3973_v38, %v7797_v13  ;;  %v3644_v26 = vpop.f32.mrb[156].mxu1  ;;  %v7317_v31 = vpop.f32.mrb[157].mxu0 }
 0x43b   : > { %v6109_v35 = vpack.c.bf16 %v4822_v57, %v4821_v63  ;;  %v3645_v51 = vadd.f32 %v3644_v26, %v3054_v50  ;;  %v7577_v45 = vpop.f32.mrb[157].mxu1  ;;  %v3057_v55 = vpop.f32.mrb[158].mxu0  ;;  %v7869_v4 = vpack.i.bf16 %v4246_v56, %v4245_v27  ;;  %v10181_v57 = vld [vmem:[#allocation21_spill] sm:$0xff]  ;;  %v10182_v26 = vld [vmem:[#allocation22_spill] sm:$0xff] }
 0x43c   : > { %v3647_v36 = vpop.f32.mrb[158].mxu1  ;;  %v7318_v47 = vpop.f32.mrb[159].mxu0  ;;  %v3858_v63 = vadd.f32 %v9709_v19, %v10181_v57  ;;  %v3859_v31 = vadd.f32 %v9709_v19, %v10182_v26 }
 0x43d   : > { %6301 = vst [vmem:[%s9328_s11 + $0xd0] sm:$0xff] %v6109_v35   ;;  %v4126_v11 = vadd.f32 %v9709_v19, %v3645_v51  ;;  %v3648_v6 = vadd.f32 %v3647_v36, %v3057_v55  ;;  %7870 = vrot.lane.b32.xlu1 %v7869_v4, %s8121_s8  ;;  %v7578_v46 = vpop.f32.mrb[159].mxu1 }
 0x43e   : > { %v3979_v39 = vmax.f32 %v3858_v63, 0.0  ;;  %v3980_v14 = vmax.f32 %v3859_v31, 0.0 }
 0x43f   : > { %v4127_v23 = vadd.f32 %v9709_v19, %v3648_v6  ;;  %v7801_v1 = vpop.permute.xlu1 %7800  ;;  %v4247_v52 = vmax.f32 %v4126_v11, 0.0 }
 0x440   : > { %v7803_v5 = vunpack.i.h.bf16 %v7801_v1  ;;  %v7802_v60 = vunpack.i.l.bf16 %v7801_v1 }
 0x441   : > { %v4248_v58 = vmax.f32 %v4127_v23, 0.0  ;;  %v3062_v10 = vpop.f32.mrb[160].mxu0 }
 0x442   : > { %v4824_v15 = vsel %vm4768_vm2, %v3976_v61, %v7803_v5  ;;  %v4823_v18 = vsel %vm4768_vm2, %v3975_v17, %v7802_v60  ;;  %v3652_v40 = vpop.f32.mrb[160].mxu1  ;;  %v7321_v59 = vpop.f32.mrb[161].mxu0 }
 0x443   : > { %v6114_v21 = vpack.c.bf16 %v4824_v15, %v4823_v18  ;;  %v3653_v0 = vadd.f32 %v3652_v40, %v3062_v10  ;;  %v7581_v34 = vpop.f32.mrb[161].mxu1  ;;  %v3065_v28 = vpop.f32.mrb[162].mxu0  ;;  %v7874_v54 = vpack.i.bf16 %v4248_v58, %v4247_v52  ;;  %v10183_v15 = vld [vmem:[#allocation23_spill] sm:$0xff]  ;;  %v10184_v40 = vld [vmem:[#allocation24_spill] sm:$0xff] }
 0x444   : > { %v3655_v8 = vpop.f32.mrb[162].mxu1  ;;  %v7322_v48 = vpop.f32.mrb[163].mxu0  ;;  %v3860_v18 = vadd.f32 %v9709_v19, %v10183_v15  ;;  %v3861_v59 = vadd.f32 %v9709_v19, %v10184_v40 }
 0x445   : > { %6302 = vst [vmem:[%s9328_s11 + $0xd8] sm:$0xff] %v6114_v21   ;;  %v4128_v9 = vadd.f32 %v9709_v19, %v3653_v0  ;;  %v3656_v22 = vadd.f32 %v3655_v8, %v3065_v28  ;;  %7875 = vrot.lane.b32.xlu0 %v7874_v54, %s8121_s8  ;;  %v7582_v44 = vpop.f32.mrb[163].mxu1 }
 0x446   : > { %v3981_v30 = vmax.f32 %v3860_v18, 0.0  ;;  %v3982_v20 = vmax.f32 %v3861_v59, 0.0 }
 0x447   : > { %v4129_v29 = vadd.f32 %v9709_v19, %v3656_v22  ;;  %v7806_v12 = vpop.permute.xlu0 %7805  ;;  %v4249_v41 = vmax.f32 %v4128_v9, 0.0 }
 0x448   : > { %v7808_v49 = vunpack.i.h.bf16 %v7806_v12  ;;  %v7807_v32 = vunpack.i.l.bf16 %v7806_v12 }
 0x449   : > { %v4250_v3 = vmax.f32 %v4129_v29, 0.0  ;;  %v3070_v7 = vpop.f32.mrb[164].mxu0 }
 0x44a   : > { %v4826_v37 = vsel %vm4768_vm2, %v3978_v62, %v7808_v49  ;;  %v4825_v25 = vsel %vm4768_vm2, %v3977_v2, %v7807_v32  ;;  %v3660_v38 = vpop.f32.mrb[164].mxu1  ;;  %v7325_v24 = vpop.f32.mrb[165].mxu0 }
 0x44b   : > { %v6119_v43 = vpack.c.bf16 %v4826_v37, %v4825_v25  ;;  %v3661_v13 = vadd.f32 %v3660_v38, %v3070_v7  ;;  %v7585_v27 = vpop.f32.mrb[165].mxu1  ;;  %v3073_v56 = vpop.f32.mrb[166].mxu0  ;;  %v7879_v50 = vpack.i.bf16 %v4250_v3, %v4249_v41  ;;  %v10185_v37 = vld [vmem:[#allocation25_spill] sm:$0xff]  ;;  %v10186_v38 = vld [vmem:[#allocation26_spill] sm:$0xff] }
 0x44c   : > { %v3663_v35 = vpop.f32.mrb[166].mxu1  ;;  %v7326_v51 = vpop.f32.mrb[167].mxu0  ;;  %v3862_v25 = vadd.f32 %v9709_v19, %v10185_v37  ;;  %v3863_v24 = vadd.f32 %v9709_v19, %v10186_v38 }
 0x44d   : > { %6303 = vst [vmem:[%s9328_s11 + $0xe0] sm:$0xff] %v6119_v43   ;;  %v4130_v45 = vadd.f32 %v9709_v19, %v3661_v13  ;;  %v3664_v55 = vadd.f32 %v3663_v35, %v3073_v56  ;;  %7880 = vrot.lane.b32.xlu1 %v7879_v50, %s8121_s8  ;;  %v7586_v4 = vpop.f32.mrb[167].mxu1 }
 0x44e   : > { %v3983_v26 = vmax.f32 %v3862_v25, 0.0  ;;  %v3984_v31 = vmax.f32 %v3863_v24, 0.0 }
 0x44f   : > { %v4131_v53 = vadd.f32 %v9709_v19, %v3664_v55  ;;  %v7811_v33 = vpop.permute.xlu1 %7810  ;;  %v4251_v11 = vmax.f32 %v4130_v45, 0.0 }
 0x450   : > { %v7813_v36 = vunpack.i.h.bf16 %v7811_v33  ;;  %v7812_v47 = vunpack.i.l.bf16 %v7811_v33 }
 0x451   : > { %v4252_v6 = vmax.f32 %v4131_v53, 0.0  ;;  %v3078_v46 = vpop.f32.mrb[168].mxu0 }
 0x452   : > { %v4828_v23 = vsel %vm4768_vm2, %v3980_v14, %v7813_v36  ;;  %v4827_v1 = vsel %vm4768_vm2, %v3979_v39, %v7812_v47  ;;  %v3668_v17 = vpop.f32.mrb[168].mxu1  ;;  %v7329_v61 = vpop.f32.mrb[169].mxu0 }
 0x453   : > { %v6124_v5 = vpack.c.bf16 %v4828_v23, %v4827_v1  ;;  %v3669_v60 = vadd.f32 %v3668_v17, %v3078_v46  ;;  %v7589_v52 = vpop.f32.mrb[169].mxu1  ;;  %v3081_v58 = vpop.f32.mrb[170].mxu0  ;;  %v7884_v10 = vpack.i.bf16 %v4252_v6, %v4251_v11  ;;  %v10187_v23 = vld [vmem:[#allocation27_spill] sm:$0xff]  ;;  %v10188_v17 = vld [vmem:[#allocation28_spill] sm:$0xff] }
 0x454   : > { %v3671_v21 = vpop.f32.mrb[170].mxu1  ;;  %v7330_v0 = vpop.f32.mrb[171].mxu0  ;;  %v3864_v1 = vadd.f32 %v9709_v19, %v10187_v23  ;;  %v3865_v61 = vadd.f32 %v9709_v19, %v10188_v17 }
 0x455   : > { %6304 = vst [vmem:[%s9328_s11 + $0xe8] sm:$0xff] %v6124_v5   ;;  %v4132_v34 = vadd.f32 %v9709_v19, %v3669_v60  ;;  %v3672_v28 = vadd.f32 %v3671_v21, %v3081_v58  ;;  %7885 = vrot.lane.b32.xlu0 %v7884_v10, %s8121_s8  ;;  %v7590_v54 = vpop.f32.mrb[171].mxu1 }
 0x456   : > { %v3985_v40 = vmax.f32 %v3864_v1, 0.0  ;;  %v3986_v59 = vmax.f32 %v3865_v61, 0.0 }
 0x457   : > { %v4133_v16 = vadd.f32 %v9709_v19, %v3672_v28  ;;  %v7816_v42 = vpop.permute.xlu0 %7815  ;;  %v4253_v9 = vmax.f32 %v4132_v34, 0.0 }
 0x458   : > { %v7818_v8 = vunpack.i.h.bf16 %v7816_v42  ;;  %v7817_v48 = vunpack.i.l.bf16 %v7816_v42 }
 0x459   : > { %v4254_v22 = vmax.f32 %v4133_v16, 0.0  ;;  %v3086_v44 = vpop.f32.mrb[172].mxu0 }
 0x45a   : > { %v4830_v29 = vsel %vm4768_vm2, %v3982_v20, %v7818_v8  ;;  %v4829_v12 = vsel %vm4768_vm2, %v3981_v30, %v7817_v48  ;;  %v3676_v2 = vpop.f32.mrb[172].mxu1  ;;  %v7333_v62 = vpop.f32.mrb[173].mxu0 }
 0x45b   : > { %v6129_v49 = vpack.c.bf16 %v4830_v29, %v4829_v12  ;;  %v3677_v32 = vadd.f32 %v3676_v2, %v3086_v44  ;;  %v7593_v41 = vpop.f32.mrb[173].mxu1  ;;  %v3089_v3 = vpop.f32.mrb[174].mxu0  ;;  %v7889_v7 = vpack.i.bf16 %v4254_v22, %v4253_v9  ;;  %v10189_v29 = vld [vmem:[#allocation29_spill] sm:$0xff]  ;;  %v10190_v2 = vld [vmem:[#allocation30_spill] sm:$0xff] }
 0x45c   : > { %v3679_v43 = vpop.f32.mrb[174].mxu1  ;;  %v7334_v13 = vpop.f32.mrb[175].mxu0  ;;  %v3866_v12 = vadd.f32 %v9709_v19, %v10189_v29  ;;  %v3867_v62 = vadd.f32 %v9709_v19, %v10190_v2 }
 0x45d   : > { %6305 = vst [vmem:[%s9328_s11 + $0xf0] sm:$0xff] %v6129_v49   ;;  %v4134_v27 = vadd.f32 %v9709_v19, %v3677_v32  ;;  %v3680_v56 = vadd.f32 %v3679_v43, %v3089_v3  ;;  %7890 = vrot.lane.b32.xlu1 %v7889_v7, %s8121_s8  ;;  %v7594_v50 = vpop.f32.mrb[175].mxu1 }
 0x45e   : > { %v3987_v38 = vmax.f32 %v3866_v12, 0.0  ;;  %v3988_v24 = vmax.f32 %v3867_v62, 0.0 }
 0x45f   : > { %v4135_v57 = vadd.f32 %v9709_v19, %v3680_v56  ;;  %v7821_v63 = vpop.permute.xlu1 %7820  ;;  %v4255_v45 = vmax.f32 %v4134_v27, 0.0 }
 0x460   : > { %v7823_v35 = vunpack.i.h.bf16 %v7821_v63  ;;  %v7822_v51 = vunpack.i.l.bf16 %v7821_v63 }
 0x461   : > { %v4256_v55 = vmax.f32 %v4135_v57, 0.0  ;;  %v3094_v4 = vpop.f32.mrb[176].mxu0 }
 0x462   : > { %v4832_v53 = vsel %vm4768_vm2, %v3984_v31, %v7823_v35  ;;  %v4831_v33 = vsel %vm4768_vm2, %v3983_v26, %v7822_v51  ;;  %v3684_v39 = vpop.f32.mrb[176].mxu1  ;;  %v7337_v14 = vpop.f32.mrb[177].mxu0 }
 0x463   : > { %v6134_v36 = vpack.c.bf16 %v4832_v53, %v4831_v33  ;;  %v3685_v47 = vadd.f32 %v3684_v39, %v3094_v4  ;;  %v7597_v11 = vpop.f32.mrb[177].mxu1  ;;  %v3097_v6 = vpop.f32.mrb[178].mxu0  ;;  %v7894_v46 = vpack.i.bf16 %v4256_v55, %v4255_v45  ;;  %v10191_v53 = vld [vmem:[#allocation31_spill] sm:$0xff]  ;;  %v10192_v39 = vld [vmem:[#allocation32_spill] sm:$0xff] }
 0x464   : > { %v3687_v5 = vpop.f32.mrb[178].mxu1  ;;  %v7338_v60 = vpop.f32.mrb[179].mxu0  ;;  %v3868_v33 = vadd.f32 %v9709_v19, %v10191_v53  ;;  %v3869_v14 = vadd.f32 %v9709_v19, %v10192_v39 }
 0x465   : > { %6306 = vst [vmem:[%s9328_s11 + $0xf8] sm:$0xff] %v6134_v36   ;;  %v4136_v52 = vadd.f32 %v9709_v19, %v3685_v47  ;;  %v3688_v58 = vadd.f32 %v3687_v5, %v3097_v6  ;;  %7895 = vrot.lane.b32.xlu0 %v7894_v46, %s8121_s8  ;;  %v7598_v10 = vpop.f32.mrb[179].mxu1 }
 0x466   : > { %v3989_v17 = vmax.f32 %v3868_v33, 0.0  ;;  %v3990_v61 = vmax.f32 %v3869_v14, 0.0 }
 0x467   : > { %v4137_v15 = vadd.f32 %v9709_v19, %v3688_v58  ;;  %v7826_v18 = vpop.permute.xlu0 %7825  ;;  %v4257_v34 = vmax.f32 %v4136_v52, 0.0 }
 0x468   : > { %v7828_v21 = vunpack.i.h.bf16 %v7826_v18  ;;  %v7827_v0 = vunpack.i.l.bf16 %v7826_v18 }
 0x469   : > { %v4258_v28 = vmax.f32 %v4137_v15, 0.0  ;;  %v3102_v54 = vpop.f32.mrb[180].mxu0 }
 0x46a   : > { %v4834_v16 = vsel %vm4768_vm2, %v3986_v59, %v7828_v21  ;;  %v4833_v42 = vsel %vm4768_vm2, %v3985_v40, %v7827_v0  ;;  %v3692_v30 = vpop.f32.mrb[180].mxu1  ;;  %v7341_v20 = vpop.f32.mrb[181].mxu0 }
 0x46b   : > { %v6139_v8 = vpack.c.bf16 %v4834_v16, %v4833_v42  ;;  %v3693_v48 = vadd.f32 %v3692_v30, %v3102_v54  ;;  %v7601_v9 = vpop.f32.mrb[181].mxu1  ;;  %v3105_v22 = vpop.f32.mrb[182].mxu0  ;;  %v7899_v44 = vpack.i.bf16 %v4258_v28, %v4257_v34  ;;  %v10193_v16 = vld [vmem:[#allocation33_spill] sm:$0xff]  ;;  %v10194_v30 = vld [vmem:[#allocation34_spill] sm:$0xff] }
 0x46c   : > { %v3695_v49 = vpop.f32.mrb[182].mxu1  ;;  %v7342_v32 = vpop.f32.mrb[183].mxu0  ;;  %v3870_v42 = vadd.f32 %v9709_v19, %v10193_v16  ;;  %v3871_v20 = vadd.f32 %v9709_v19, %v10194_v30 }
 0x46d   : > { %6307 = vst [vmem:[%s9328_s11 + $0x100] sm:$0xff] %v6139_v8   ;;  %v4138_v41 = vadd.f32 %v9709_v19, %v3693_v48  ;;  %v3696_v3 = vadd.f32 %v3695_v49, %v3105_v22  ;;  %7900 = vrot.lane.b32.xlu1 %v7899_v44, %s8121_s8  ;;  %v7602_v7 = vpop.f32.mrb[183].mxu1 }
 0x46e   : > { %v3991_v2 = vmax.f32 %v3870_v42, 0.0  ;;  %v3992_v62 = vmax.f32 %v3871_v20, 0.0 }
 0x46f   : > { %v4139_v37 = vadd.f32 %v9709_v19, %v3696_v3  ;;  %v7831_v25 = vpop.permute.xlu1 %7830  ;;  %v4259_v27 = vmax.f32 %v4138_v41, 0.0 }
 0x470   : > { %v7833_v43 = vunpack.i.h.bf16 %v7831_v25  ;;  %v7832_v13 = vunpack.i.l.bf16 %v7831_v25 }
 0x471   : > { %v4260_v56 = vmax.f32 %v4139_v37, 0.0  ;;  %v3110_v50 = vpop.f32.mrb[184].mxu0 }
 0x472   : > { %v4836_v57 = vsel %vm4768_vm2, %v3988_v24, %v7833_v43  ;;  %v4835_v63 = vsel %vm4768_vm2, %v3987_v38, %v7832_v13  ;;  %v3700_v26 = vpop.f32.mrb[184].mxu1  ;;  %v7345_v31 = vpop.f32.mrb[185].mxu0 }
 0x473   : > { %v6144_v35 = vpack.c.bf16 %v4836_v57, %v4835_v63  ;;  %v3701_v51 = vadd.f32 %v3700_v26, %v3110_v50  ;;  %v7605_v45 = vpop.f32.mrb[185].mxu1  ;;  %v3113_v55 = vpop.f32.mrb[186].mxu0  ;;  %v7904_v4 = vpack.i.bf16 %v4260_v56, %v4259_v27  ;;  %v10195_v57 = vld [vmem:[#allocation35_spill] sm:$0xff]  ;;  %v10196_v26 = vld [vmem:[#allocation36_spill] sm:$0xff] }
 0x474   : > { %v3703_v36 = vpop.f32.mrb[186].mxu1  ;;  %v7346_v47 = vpop.f32.mrb[187].mxu0  ;;  %v3872_v63 = vadd.f32 %v9709_v19, %v10195_v57  ;;  %v3873_v31 = vadd.f32 %v9709_v19, %v10196_v26 }
 0x475   : > { %6308 = vst [vmem:[%s9328_s11 + $0x108] sm:$0xff] %v6144_v35   ;;  %v4140_v11 = vadd.f32 %v9709_v19, %v3701_v51  ;;  %v3704_v6 = vadd.f32 %v3703_v36, %v3113_v55  ;;  %7905 = vrot.lane.b32.xlu0 %v7904_v4, %s8121_s8  ;;  %v7606_v46 = vpop.f32.mrb[187].mxu1 }
 0x476   : > { %v3993_v39 = vmax.f32 %v3872_v63, 0.0  ;;  %v3994_v14 = vmax.f32 %v3873_v31, 0.0 }
 0x477   : > { %v4141_v23 = vadd.f32 %v9709_v19, %v3704_v6  ;;  %v7836_v1 = vpop.permute.xlu0 %7835  ;;  %v4261_v52 = vmax.f32 %v4140_v11, 0.0 }
 0x478   : > { %v7838_v5 = vunpack.i.h.bf16 %v7836_v1  ;;  %v7837_v60 = vunpack.i.l.bf16 %v7836_v1 }
 0x479   : > { %v4262_v58 = vmax.f32 %v4141_v23, 0.0  ;;  %v3118_v10 = vpop.f32.mrb[188].mxu0 }
 0x47a   : > { %v4838_v15 = vsel %vm4768_vm2, %v3990_v61, %v7838_v5  ;;  %v4837_v18 = vsel %vm4768_vm2, %v3989_v17, %v7837_v60  ;;  %v3708_v40 = vpop.f32.mrb[188].mxu1  ;;  %v7349_v59 = vpop.f32.mrb[189].mxu0 }
 0x47b   : > { %v6149_v21 = vpack.c.bf16 %v4838_v15, %v4837_v18  ;;  %v3709_v0 = vadd.f32 %v3708_v40, %v3118_v10  ;;  %v7609_v34 = vpop.f32.mrb[189].mxu1  ;;  %v3121_v28 = vpop.f32.mrb[190].mxu0  ;;  %v7909_v54 = vpack.i.bf16 %v4262_v58, %v4261_v52  ;;  %v10197_v15 = vld [vmem:[#allocation37_spill] sm:$0xff]  ;;  %v10198_v40 = vld [vmem:[#allocation38_spill] sm:$0xff] }
 0x47c   : > { %v3711_v8 = vpop.f32.mrb[190].mxu1  ;;  %v7350_v48 = vpop.f32.mrb[191].mxu0  ;;  %v3874_v18 = vadd.f32 %v9709_v19, %v10197_v15  ;;  %v3875_v59 = vadd.f32 %v9709_v19, %v10198_v40 }
 0x47d   : > { %6309 = vst [vmem:[%s9328_s11 + $0x110] sm:$0xff] %v6149_v21   ;;  %v4142_v9 = vadd.f32 %v9709_v19, %v3709_v0  ;;  %v3712_v22 = vadd.f32 %v3711_v8, %v3121_v28  ;;  %7910 = vrot.lane.b32.xlu1 %v7909_v54, %s8121_s8  ;;  %v7610_v44 = vpop.f32.mrb[191].mxu1 }
 0x47e   : > { %v3995_v30 = vmax.f32 %v3874_v18, 0.0  ;;  %v3996_v20 = vmax.f32 %v3875_v59, 0.0 }
 0x47f   : > { %v4143_v29 = vadd.f32 %v9709_v19, %v3712_v22  ;;  %v7841_v12 = vpop.permute.xlu1 %7840  ;;  %v4263_v41 = vmax.f32 %v4142_v9, 0.0 }
 0x480   : > { %v7843_v49 = vunpack.i.h.bf16 %v7841_v12  ;;  %v7842_v32 = vunpack.i.l.bf16 %v7841_v12 }
 0x481   : > { %v4264_v3 = vmax.f32 %v4143_v29, 0.0  ;;  %v3126_v7 = vpop.f32.mrb[192].mxu0 }
 0x482   : > { %v4840_v37 = vsel %vm4768_vm2, %v3992_v62, %v7843_v49  ;;  %v4839_v25 = vsel %vm4768_vm2, %v3991_v2, %v7842_v32  ;;  %v3716_v38 = vpop.f32.mrb[192].mxu1  ;;  %v7353_v24 = vpop.f32.mrb[193].mxu0 }
 0x483   : > { %v6154_v43 = vpack.c.bf16 %v4840_v37, %v4839_v25  ;;  %v3717_v13 = vadd.f32 %v3716_v38, %v3126_v7  ;;  %v7613_v27 = vpop.f32.mrb[193].mxu1  ;;  %v3129_v56 = vpop.f32.mrb[194].mxu0  ;;  %v7914_v50 = vpack.i.bf16 %v4264_v3, %v4263_v41  ;;  %v10199_v37 = vld [vmem:[#allocation39_spill] sm:$0xff]  ;;  %v10200_v38 = vld [vmem:[#allocation40_spill] sm:$0xff] }
 0x484   : > { %v3719_v35 = vpop.f32.mrb[194].mxu1  ;;  %v7354_v51 = vpop.f32.mrb[195].mxu0  ;;  %v3876_v25 = vadd.f32 %v9709_v19, %v10199_v37  ;;  %v3877_v24 = vadd.f32 %v9709_v19, %v10200_v38 }
 0x485   : > { %6310 = vst [vmem:[%s9328_s11 + $0x118] sm:$0xff] %v6154_v43   ;;  %v4144_v45 = vadd.f32 %v9709_v19, %v3717_v13  ;;  %v3720_v55 = vadd.f32 %v3719_v35, %v3129_v56  ;;  %7915 = vrot.lane.b32.xlu0 %v7914_v50, %s8121_s8  ;;  %v7614_v4 = vpop.f32.mrb[195].mxu1 }
 0x486   : > { %v3997_v26 = vmax.f32 %v3876_v25, 0.0  ;;  %v3998_v31 = vmax.f32 %v3877_v24, 0.0 }
 0x487   : > { %v4145_v53 = vadd.f32 %v9709_v19, %v3720_v55  ;;  %v7846_v33 = vpop.permute.xlu0 %7845  ;;  %v4265_v11 = vmax.f32 %v4144_v45, 0.0 }
 0x488   : > { %v7848_v36 = vunpack.i.h.bf16 %v7846_v33  ;;  %v7847_v47 = vunpack.i.l.bf16 %v7846_v33 }
 0x489   : > { %v4266_v6 = vmax.f32 %v4145_v53, 0.0  ;;  %v3134_v46 = vpop.f32.mrb[196].mxu0 }
 0x48a   : > { %v4842_v23 = vsel %vm4768_vm2, %v3994_v14, %v7848_v36  ;;  %v4841_v1 = vsel %vm4768_vm2, %v3993_v39, %v7847_v47  ;;  %v3724_v17 = vpop.f32.mrb[196].mxu1  ;;  %v7357_v61 = vpop.f32.mrb[197].mxu0 }
 0x48b   : > { %v6159_v5 = vpack.c.bf16 %v4842_v23, %v4841_v1  ;;  %v3725_v60 = vadd.f32 %v3724_v17, %v3134_v46  ;;  %v7617_v52 = vpop.f32.mrb[197].mxu1  ;;  %v3137_v58 = vpop.f32.mrb[198].mxu0  ;;  %v7919_v10 = vpack.i.bf16 %v4266_v6, %v4265_v11  ;;  %v10201_v23 = vld [vmem:[#allocation41_spill] sm:$0xff]  ;;  %v10202_v17 = vld [vmem:[#allocation42_spill] sm:$0xff] }
 0x48c   : > { %v3727_v21 = vpop.f32.mrb[198].mxu1  ;;  %v7358_v0 = vpop.f32.mrb[199].mxu0  ;;  %v3878_v1 = vadd.f32 %v9709_v19, %v10201_v23  ;;  %v3879_v61 = vadd.f32 %v9709_v19, %v10202_v17 }
 0x48d   : > { %6311 = vst [vmem:[%s9328_s11 + $0x120] sm:$0xff] %v6159_v5   ;;  %v4146_v34 = vadd.f32 %v9709_v19, %v3725_v60  ;;  %v3728_v28 = vadd.f32 %v3727_v21, %v3137_v58  ;;  %7920 = vrot.lane.b32.xlu1 %v7919_v10, %s8121_s8  ;;  %v7618_v54 = vpop.f32.mrb[199].mxu1 }
 0x48e   : > { %v3999_v40 = vmax.f32 %v3878_v1, 0.0  ;;  %v4000_v59 = vmax.f32 %v3879_v61, 0.0 }
 0x48f   : > { %v4147_v16 = vadd.f32 %v9709_v19, %v3728_v28  ;;  %v7851_v42 = vpop.permute.xlu1 %7850  ;;  %v4267_v9 = vmax.f32 %v4146_v34, 0.0 }
 0x490   : > { %v7853_v8 = vunpack.i.h.bf16 %v7851_v42  ;;  %v7852_v48 = vunpack.i.l.bf16 %v7851_v42 }
 0x491   : > { %v4268_v22 = vmax.f32 %v4147_v16, 0.0  ;;  %v3142_v44 = vpop.f32.mrb[200].mxu0 }
 0x492   : > { %v4844_v29 = vsel %vm4768_vm2, %v3996_v20, %v7853_v8  ;;  %v4843_v12 = vsel %vm4768_vm2, %v3995_v30, %v7852_v48  ;;  %v3732_v2 = vpop.f32.mrb[200].mxu1  ;;  %v7361_v62 = vpop.f32.mrb[201].mxu0 }
 0x493   : > { %v6164_v49 = vpack.c.bf16 %v4844_v29, %v4843_v12  ;;  %v3733_v32 = vadd.f32 %v3732_v2, %v3142_v44  ;;  %v7621_v41 = vpop.f32.mrb[201].mxu1  ;;  %v3145_v3 = vpop.f32.mrb[202].mxu0  ;;  %v7924_v7 = vpack.i.bf16 %v4268_v22, %v4267_v9  ;;  %v9904_v44 = vld [vmem:[%s10075_s3] ss:$0 sm:$0xff]  ;;  %v10203_v29 = vld [vmem:[#allocation43_spill] sm:$0xff]  ;;  %v10204_v2 = vld [vmem:[#allocation44_spill] sm:$0xff] }
 0x494   : > { %v3735_v43 = vpop.f32.mrb[202].mxu1  ;;  %v7362_v13 = vpop.f32.mrb[203].mxu0  ;;  %v3880_v12 = vadd.f32 %v9904_v44, %v10203_v29  ;;  %v3881_v62 = vadd.f32 %v9904_v44, %v10204_v2 }
 0x495   : > { %6312 = vst [vmem:[%s9328_s11 + $0x128] sm:$0xff] %v6164_v49   ;;  %v4148_v27 = vadd.f32 %v9709_v19, %v3733_v32  ;;  %v3736_v56 = vadd.f32 %v3735_v43, %v3145_v3  ;;  %7925 = vrot.lane.b32.xlu0 %v7924_v7, %s8121_s8  ;;  %v7622_v50 = vpop.f32.mrb[203].mxu1 }
 0x496   : > { %v4001_v38 = vmax.f32 %v3880_v12, 0.0  ;;  %v4002_v24 = vmax.f32 %v3881_v62, 0.0 }
 0x497   : > { %v4149_v57 = vadd.f32 %v9709_v19, %v3736_v56  ;;  %v7856_v63 = vpop.permute.xlu0 %7855  ;;  %v4269_v45 = vmax.f32 %v4148_v27, 0.0 }
 0x498   : > { %v7858_v35 = vunpack.i.h.bf16 %v7856_v63  ;;  %v7857_v51 = vunpack.i.l.bf16 %v7856_v63 }
 0x499   : > { %v4270_v55 = vmax.f32 %v4149_v57, 0.0  ;;  %v3150_v4 = vpop.f32.mrb[204].mxu0 }
 0x49a   : > { %v4846_v53 = vsel %vm4768_vm2, %v3998_v31, %v7858_v35  ;;  %v4845_v33 = vsel %vm4768_vm2, %v3997_v26, %v7857_v51  ;;  %v3740_v39 = vpop.f32.mrb[204].mxu1  ;;  %v7365_v14 = vpop.f32.mrb[205].mxu0 }
 0x49b   : > { %v6169_v36 = vpack.c.bf16 %v4846_v53, %v4845_v33  ;;  %v3741_v47 = vadd.f32 %v3740_v39, %v3150_v4  ;;  %v7625_v11 = vpop.f32.mrb[205].mxu1  ;;  %v3153_v6 = vpop.f32.mrb[206].mxu0  ;;  %v7929_v46 = vpack.i.bf16 %v4270_v55, %v4269_v45  ;;  %v10205_v53 = vld [vmem:[#allocation45_spill] sm:$0xff]  ;;  %v10206_v39 = vld [vmem:[#allocation46_spill] sm:$0xff] }
 0x49c   : > { %v3743_v5 = vpop.f32.mrb[206].mxu1  ;;  %v7366_v60 = vpop.f32.mrb[207].mxu0  ;;  %v3882_v33 = vadd.f32 %v9904_v44, %v10205_v53  ;;  %v3883_v14 = vadd.f32 %v9904_v44, %v10206_v39 }
 0x49d   : > { %6313 = vst [vmem:[%s9328_s11 + $0x130] sm:$0xff] %v6169_v36   ;;  %v4150_v52 = vadd.f32 %v9709_v19, %v3741_v47  ;;  %v3744_v58 = vadd.f32 %v3743_v5, %v3153_v6  ;;  %7930 = vrot.lane.b32.xlu1 %v7929_v46, %s8121_s8  ;;  %v7626_v10 = vpop.f32.mrb[207].mxu1 }
 0x49e   : > { %v4003_v17 = vmax.f32 %v3882_v33, 0.0  ;;  %v4004_v61 = vmax.f32 %v3883_v14, 0.0 }
 0x49f   : > { %v4151_v15 = vadd.f32 %v9709_v19, %v3744_v58  ;;  %v7861_v18 = vpop.permute.xlu1 %7860  ;;  %v4271_v34 = vmax.f32 %v4150_v52, 0.0 }
 0x4a0   : > { %v7863_v21 = vunpack.i.h.bf16 %v7861_v18  ;;  %v7862_v0 = vunpack.i.l.bf16 %v7861_v18 }
 0x4a1   : > { %v4272_v28 = vmax.f32 %v4151_v15, 0.0  ;;  %v3158_v54 = vpop.f32.mrb[208].mxu0 }
 0x4a2   : > { %v4848_v16 = vsel %vm4768_vm2, %v4000_v59, %v7863_v21  ;;  %v4847_v42 = vsel %vm4768_vm2, %v3999_v40, %v7862_v0  ;;  %v3748_v30 = vpop.f32.mrb[208].mxu1  ;;  %v7369_v20 = vpop.f32.mrb[209].mxu0 }
 0x4a3   : > { %v6174_v8 = vpack.c.bf16 %v4848_v16, %v4847_v42  ;;  %v3749_v48 = vadd.f32 %v3748_v30, %v3158_v54  ;;  %v7629_v9 = vpop.f32.mrb[209].mxu1  ;;  %v3161_v22 = vpop.f32.mrb[210].mxu0  ;;  %v7934_v19 = vpack.i.bf16 %v4272_v28, %v4271_v34  ;;  %v10207_v16 = vld [vmem:[#allocation47_spill] sm:$0xff]  ;;  %v10208_v30 = vld [vmem:[#allocation48_spill] sm:$0xff] }
 0x4a4   : > { %v3751_v49 = vpop.f32.mrb[210].mxu1  ;;  %v7370_v32 = vpop.f32.mrb[211].mxu0  ;;  %v3884_v42 = vadd.f32 %v9904_v44, %v10207_v16  ;;  %v3885_v20 = vadd.f32 %v9904_v44, %v10208_v30 }
 0x4a5   : > { %6314 = vst [vmem:[%s9328_s11 + $0x138] sm:$0xff] %v6174_v8   ;;  %v4152_v41 = vadd.f32 %v9904_v44, %v3749_v48  ;;  %v3752_v3 = vadd.f32 %v3751_v49, %v3161_v22  ;;  %7935 = vrot.lane.b32.xlu0 %v7934_v19, %s8121_s8  ;;  %v7630_v7 = vpop.f32.mrb[211].mxu1 }
 0x4a6   : > { %v4005_v2 = vmax.f32 %v3884_v42, 0.0  ;;  %v4006_v62 = vmax.f32 %v3885_v20, 0.0 }
 0x4a7   : > { %v4153_v37 = vadd.f32 %v9904_v44, %v3752_v3  ;;  %v7866_v25 = vpop.permute.xlu0 %7865  ;;  %v4273_v27 = vmax.f32 %v4152_v41, 0.0 }
 0x4a8   : > { %v7868_v43 = vunpack.i.h.bf16 %v7866_v25  ;;  %v7867_v13 = vunpack.i.l.bf16 %v7866_v25 }
 0x4a9   : > { %v4274_v56 = vmax.f32 %v4153_v37, 0.0  ;;  %v3166_v50 = vpop.f32.mrb[212].mxu0 }
 0x4aa   : > { %v4850_v57 = vsel %vm4768_vm2, %v4002_v24, %v7868_v43  ;;  %v4849_v63 = vsel %vm4768_vm2, %v4001_v38, %v7867_v13  ;;  %v3756_v26 = vpop.f32.mrb[212].mxu1  ;;  %v7373_v31 = vpop.f32.mrb[213].mxu0 }
 0x4ab   : > { %v6179_v35 = vpack.c.bf16 %v4850_v57, %v4849_v63  ;;  %v3757_v51 = vadd.f32 %v3756_v26, %v3166_v50  ;;  %v7633_v45 = vpop.f32.mrb[213].mxu1  ;;  %v3169_v55 = vpop.f32.mrb[214].mxu0  ;;  %v7939_v4 = vpack.i.bf16 %v4274_v56, %v4273_v27  ;;  %v10209_v57 = vld [vmem:[#allocation49_spill] sm:$0xff]  ;;  %v10210_v26 = vld [vmem:[#allocation50_spill] sm:$0xff] }
 0x4ac   : > { %v3759_v36 = vpop.f32.mrb[214].mxu1  ;;  %v7374_v47 = vpop.f32.mrb[215].mxu0  ;;  %v3886_v63 = vadd.f32 %v9904_v44, %v10209_v57  ;;  %v3887_v31 = vadd.f32 %v9904_v44, %v10210_v26 }
 0x4ad   : > { %6315 = vst [vmem:[%s9328_s11 + $0x140] sm:$0xff] %v6179_v35   ;;  %v4154_v11 = vadd.f32 %v9904_v44, %v3757_v51  ;;  %v3760_v6 = vadd.f32 %v3759_v36, %v3169_v55  ;;  %7940 = vrot.lane.b32.xlu1 %v7939_v4, %s8121_s8  ;;  %v7634_v46 = vpop.f32.mrb[215].mxu1 }
 0x4ae   : > { %v4007_v39 = vmax.f32 %v3886_v63, 0.0  ;;  %v4008_v14 = vmax.f32 %v3887_v31, 0.0 }
 0x4af   : > { %v4155_v23 = vadd.f32 %v9904_v44, %v3760_v6  ;;  %v7871_v1 = vpop.permute.xlu1 %7870  ;;  %v4275_v52 = vmax.f32 %v4154_v11, 0.0 }
 0x4b0   : > { %v7873_v5 = vunpack.i.h.bf16 %v7871_v1  ;;  %v7872_v60 = vunpack.i.l.bf16 %v7871_v1 }
 0x4b1   : > { %v4276_v58 = vmax.f32 %v4155_v23, 0.0  ;;  %v3174_v10 = vpop.f32.mrb[216].mxu0 }
 0x4b2   : > { %v4852_v15 = vsel %vm4768_vm2, %v4004_v61, %v7873_v5  ;;  %v4851_v18 = vsel %vm4768_vm2, %v4003_v17, %v7872_v60  ;;  %v3764_v40 = vpop.f32.mrb[216].mxu1  ;;  %v7377_v59 = vpop.f32.mrb[217].mxu0 }
 0x4b3   : > { %v6184_v21 = vpack.c.bf16 %v4852_v15, %v4851_v18  ;;  %v3765_v0 = vadd.f32 %v3764_v40, %v3174_v10  ;;  %v7637_v34 = vpop.f32.mrb[217].mxu1  ;;  %v3177_v28 = vpop.f32.mrb[218].mxu0  ;;  %v7944_v54 = vpack.i.bf16 %v4276_v58, %v4275_v52  ;;  %v10211_v15 = vld [vmem:[#allocation51_spill] sm:$0xff]  ;;  %v10212_v40 = vld [vmem:[#allocation52_spill] sm:$0xff] }
 0x4b4   : > { %v3767_v8 = vpop.f32.mrb[218].mxu1  ;;  %v7378_v48 = vpop.f32.mrb[219].mxu0  ;;  %v3888_v18 = vadd.f32 %v9904_v44, %v10211_v15  ;;  %v3889_v59 = vadd.f32 %v9904_v44, %v10212_v40 }
 0x4b5   : > { %6316 = vst [vmem:[%s9328_s11 + $0x148] sm:$0xff] %v6184_v21   ;;  %v4156_v9 = vadd.f32 %v9904_v44, %v3765_v0  ;;  %v3768_v22 = vadd.f32 %v3767_v8, %v3177_v28  ;;  %7945 = vrot.lane.b32.xlu0 %v7944_v54, %s8121_s8  ;;  %v7638_v19 = vpop.f32.mrb[219].mxu1 }
 0x4b6   : > { %v4009_v30 = vmax.f32 %v3888_v18, 0.0  ;;  %v4010_v20 = vmax.f32 %v3889_v59, 0.0 }
 0x4b7   : > { %v4157_v29 = vadd.f32 %v9904_v44, %v3768_v22  ;;  %v7876_v12 = vpop.permute.xlu0 %7875  ;;  %v4277_v41 = vmax.f32 %v4156_v9, 0.0 }
 0x4b8   : > { %v7878_v49 = vunpack.i.h.bf16 %v7876_v12  ;;  %v7877_v32 = vunpack.i.l.bf16 %v7876_v12 }
 0x4b9   : > { %v4278_v3 = vmax.f32 %v4157_v29, 0.0  ;;  %v3182_v7 = vpop.f32.mrb[220].mxu0 }
 0x4ba   : > { %v4854_v37 = vsel %vm4768_vm2, %v4006_v62, %v7878_v49  ;;  %v4853_v25 = vsel %vm4768_vm2, %v4005_v2, %v7877_v32  ;;  %v3772_v38 = vpop.f32.mrb[220].mxu1  ;;  %v7381_v24 = vpop.f32.mrb[221].mxu0 }
 0x4bb   : > { %v6189_v43 = vpack.c.bf16 %v4854_v37, %v4853_v25  ;;  %v3773_v13 = vadd.f32 %v3772_v38, %v3182_v7  ;;  %v7641_v27 = vpop.f32.mrb[221].mxu1  ;;  %v3185_v56 = vpop.f32.mrb[222].mxu0  ;;  %v7949_v50 = vpack.i.bf16 %v4278_v3, %v4277_v41  ;;  %v10213_v37 = vld [vmem:[#allocation53_spill] sm:$0xff]  ;;  %v10214_v38 = vld [vmem:[#allocation54_spill] sm:$0xff] }
 0x4bc   : > { %v3775_v35 = vpop.f32.mrb[222].mxu1  ;;  %v7382_v51 = vpop.f32.mrb[223].mxu0  ;;  %v3890_v25 = vadd.f32 %v9904_v44, %v10213_v37  ;;  %v3891_v24 = vadd.f32 %v9904_v44, %v10214_v38  ;;  %v10223_v38 = vld [vmem:[#allocation63_spill] sm:$0xff] }
 0x4bd   : > { %6317 = vst [vmem:[%s9328_s11 + $0x150] sm:$0xff] %v6189_v43   ;;  %v4158_v45 = vadd.f32 %v9904_v44, %v3773_v13  ;;  %v3776_v55 = vadd.f32 %v3775_v35, %v3185_v56  ;;  %7950 = vrot.lane.b32.xlu1 %v7949_v50, %s8121_s8  ;;  %v7642_v4 = vpop.f32.mrb[223].mxu1 }
 0x4be   : > { %v4011_v63 = vmax.f32 %v3890_v25, 0.0  ;;  %v4012_v26 = vmax.f32 %v3891_v24, 0.0  ;;  %v10215_v4 = vld [vmem:[#allocation55_spill] sm:$0xff]  ;;  %v3900_v24 = vadd.f32 %v9904_v44, %v10223_v38 }
 0x4bf   : > { %v4159_v53 = vadd.f32 %v9904_v44, %v3776_v55  ;;  %v7881_v33 = vpop.permute.xlu1 %7880  ;;  %v4279_v11 = vmax.f32 %v4158_v45, 0.0 }
 0x4c0   : > { %v7883_v36 = vunpack.i.h.bf16 %v7881_v33  ;;  %v7882_v47 = vunpack.i.l.bf16 %v7881_v33  ;;  %v10216_v33 = vld [vmem:[#allocation56_spill] sm:$0xff] }
 0x4c1   : > { %v4280_v6 = vmax.f32 %v4159_v53, 0.0  ;;  %v3190_v46 = vpop.f32.mrb[224].mxu0  ;;  %v3892_v53 = vadd.f32 %v9904_v44, %v10215_v4 }
 0x4c2   : > { %v4856_v23 = vsel %vm4768_vm2, %v4008_v14, %v7883_v36  ;;  %v4855_v1 = vsel %vm4768_vm2, %v4007_v39, %v7882_v47  ;;  %v3780_v17 = vpop.f32.mrb[224].mxu1  ;;  %v7385_v61 = vpop.f32.mrb[225].mxu0  ;;  %v3893_v39 = vadd.f32 %v9904_v44, %v10216_v33 }
 0x4c3   : > { %v6194_v5 = vpack.c.bf16 %v4856_v23, %v4855_v1  ;;  %v3781_v60 = vadd.f32 %v3780_v17, %v3190_v46  ;;  %v7645_v52 = vpop.f32.mrb[225].mxu1  ;;  %v3193_v58 = vpop.f32.mrb[226].mxu0  ;;  %v7954_v10 = vpack.i.bf16 %v4280_v6, %v4279_v11  ;;  %v4013_v36 = vmax.f32 %v3892_v53, 0.0  ;;  %v10217_v17 = vld [vmem:[#allocation57_spill] sm:$0xff] }
 0x4c4   : > { %v3783_v21 = vpop.f32.mrb[226].mxu1  ;;  %v7386_v0 = vpop.f32.mrb[227].mxu0  ;;  %v4014_v47 = vmax.f32 %v3893_v39, 0.0  ;;  %v3894_v61 = vadd.f32 %v9904_v44, %v10217_v17 }
 0x4c5   : > { %6318 = vst [vmem:[%s9328_s11 + $0x158] sm:$0xff] %v6194_v5   ;;  %v4160_v34 = vadd.f32 %v9904_v44, %v3781_v60  ;;  %v3784_v28 = vadd.f32 %v3783_v21, %v3193_v58  ;;  %7955 = vrot.lane.b32.xlu0 %v7954_v10, %s8121_s8  ;;  %v7646_v54 = vpop.f32.mrb[227].mxu1  ;;  %v10218_v5 = vld [vmem:[#allocation58_spill] sm:$0xff]  ;;  %v10219_v0 = vld [vmem:[#allocation59_spill] sm:$0xff] }
 0x4c6   : > { %v3895_v60 = vadd.f32 %v9904_v44, %v10218_v5  ;;  %v4015_v58 = vmax.f32 %v3894_v61, 0.0 }
 0x4c7   : > { %v4161_v16 = vadd.f32 %v9904_v44, %v3784_v28  ;;  %v7886_v42 = vpop.permute.xlu0 %7885  ;;  %v4281_v9 = vmax.f32 %v4160_v34, 0.0  ;;  %v3896_v34 = vadd.f32 %v9904_v44, %v10219_v0  ;;  %v10220_v28 = vld [vmem:[#allocation60_spill] sm:$0xff] }
 0x4c8   : > { %v7888_v8 = vunpack.i.h.bf16 %v7886_v42  ;;  %v7887_v48 = vunpack.i.l.bf16 %v7886_v42  ;;  %v4016_v10 = vmax.f32 %v3895_v60, 0.0  ;;  %v3897_v54 = vadd.f32 %v9904_v44, %v10220_v28 }
 0x4c9   : > { %v4282_v22 = vmax.f32 %v4161_v16, 0.0  ;;  %v3198_v19 = vpop.f32.mrb[228].mxu0  ;;  %v4017_v42 = vmax.f32 %v3896_v34, 0.0 }
 0x4ca   : > { %v4858_v29 = vsel %vm4768_vm2, %v4010_v20, %v7888_v8  ;;  %v4857_v12 = vsel %vm4768_vm2, %v4009_v30, %v7887_v48  ;;  %v3788_v2 = vpop.f32.mrb[228].mxu1  ;;  %v7389_v62 = vpop.f32.mrb[229].mxu0  ;;  %v4018_v30 = vmax.f32 %v3897_v54, 0.0 }
 0x4cb   : > { %v6199_v49 = vpack.c.bf16 %v4858_v29, %v4857_v12  ;;  %v3789_v32 = vadd.f32 %v3788_v2, %v3198_v19  ;;  %v7649_v41 = vpop.f32.mrb[229].mxu1  ;;  %v3201_v3 = vpop.f32.mrb[230].mxu0  ;;  %v7959_v7 = vpack.i.bf16 %v4282_v22, %v4281_v9  ;;  %v10221_v19 = vld [vmem:[#allocation61_spill] sm:$0xff]  ;;  %v10222_v12 = vld [vmem:[#allocation62_spill] sm:$0xff] }
 0x4cc   : > { %v3791_v43 = vpop.f32.mrb[230].mxu1  ;;  %v7390_v13 = vpop.f32.mrb[231].mxu0  ;;  %v3898_v29 = vadd.f32 %v9904_v44, %v10221_v19  ;;  %v3899_v2 = vadd.f32 %v9904_v44, %v10222_v12 }
 0x4cd   : > { %6319 = vst [vmem:[%s9328_s11 + $0x160] sm:$0xff] %v6199_v49   ;;  %v4162_v27 = vadd.f32 %v9904_v44, %v3789_v32  ;;  %7960 = vrot.lane.b32.xlu1 %v7959_v7, %s8121_s8  ;;  %v7650_v56 = vpop.f32.mrb[231].mxu1  ;;  %v10224_v43 = vld [vmem:[#allocation64_spill] sm:$0xff] }
 0x4ce   : > { %v4019_v49 = vmax.f32 %v3898_v29, 0.0  ;;  %v4020_v32 = vmax.f32 %v3899_v2, 0.0  ;;  %v3901_v13 = vadd.f32 %v9904_v44, %v10224_v43  ;;  %v4021_v56 = vmax.f32 %v3900_v24, 0.0 }
 0x4cf   : > { %v4283_v50 = vmax.f32 %v4162_v27, 0.0  ;;  %v7891_v57 = vpop.permute.xlu1 %7890 }
 0x4d0   : > { %v7893_v31 = vunpack.i.h.bf16 %v7891_v57  ;;  %v7892_v35 = vunpack.i.l.bf16 %v7891_v57 }
 0x4d1   : > { %4645 = vrot.lane.b32.xlu0 %v4283_v50, %s8121_s8  ;;  %v4022_v50 = vmax.f32 %v3901_v13, 0.0 }
 0x4d2   : > { %v4860_v51 = vsel %vm4768_vm2, %v4012_v26, %v7893_v31  ;;  %v4859_v45 = vsel %vm4768_vm2, %v4011_v63, %v7892_v35 }
 0x4d3   : > { %v6204_v55 = vpack.c.bf16 %v4860_v51, %v4859_v45  ;;  %v10225_v51 = vld [vmem:[#allocation65_spill] sm:$0xff] }
 0x4d4   : > { %v3902_v45 = vadd.f32 %v9904_v44, %v10225_v51 }
 0x4d5   : > { %6320 = vst [vmem:[%s9328_s11 + $0x168] sm:$0xff] %v6204_v55   ;;  %v10226_v55 = vld [vmem:[#allocation66_spill] sm:$0xff] }
 0x4d6   : > { %v3903_v4 = vadd.f32 %v9904_v44, %v10226_v55  ;;  %v4023_v33 = vmax.f32 %v3902_v45, 0.0 }
 0x4d7   : > { %v7896_v14 = vpop.permute.xlu0 %7895 }
 0x4d8   : > { %v7898_v11 = vunpack.i.h.bf16 %v7896_v14  ;;  %v7897_v6 = vunpack.i.l.bf16 %v7896_v14  ;;  %v4024_v39 = vmax.f32 %v3903_v4, 0.0 }
 0x4da   : > { %v4862_v46 = vsel %vm4768_vm2, %v4014_v47, %v7898_v11  ;;  %v4861_v23 = vsel %vm4768_vm2, %v4013_v36, %v7897_v6 }
 0x4db   : > { %v6209_v1 = vpack.c.bf16 %v4862_v46, %v4861_v23  ;;  %v10227_v46 = vld [vmem:[#allocation67_spill] sm:$0xff] }
 0x4dc   : > { %v3904_v23 = vadd.f32 %v9904_v44, %v10227_v46 }
 0x4dd   : > { %6321 = vst [vmem:[%s9328_s11 + $0x170] sm:$0xff] %v6209_v1   ;;  %v10228_v1 = vld [vmem:[#allocation68_spill] sm:$0xff] }
 0x4de   : > { %v3905_v17 = vadd.f32 %v9904_v44, %v10228_v1  ;;  %v4025_v5 = vmax.f32 %v3904_v23, 0.0 }
 0x4df   : > { %v7901_v52 = vpop.permute.xlu1 %7900 }
 0x4e0   : > { %v7903_v15 = vunpack.i.h.bf16 %v7901_v52  ;;  %v7902_v18 = vunpack.i.l.bf16 %v7901_v52  ;;  %v4026_v60 = vmax.f32 %v3905_v17, 0.0 }
 0x4e2   : > { %v4864_v40 = vsel %vm4768_vm2, %v4016_v10, %v7903_v15  ;;  %v4863_v59 = vsel %vm4768_vm2, %v4015_v58, %v7902_v18 }
 0x4e3   : > { %v6214_v21 = vpack.c.bf16 %v4864_v40, %v4863_v59  ;;  %v10229_v40 = vld [vmem:[#allocation69_spill] sm:$0xff] }
 0x4e4   : > { %v3906_v59 = vadd.f32 %v9904_v44, %v10229_v40 }
 0x4e5   : > { %6322 = vst [vmem:[%s9328_s11 + $0x178] sm:$0xff] %v6214_v21   ;;  %v10230_v21 = vld [vmem:[#allocation70_spill] sm:$0xff] }
 0x4e6   : > { %v3907_v0 = vadd.f32 %v9904_v44, %v10230_v21  ;;  %v4027_v28 = vmax.f32 %v3906_v59, 0.0 }
 0x4e7   : > { %v7906_v16 = vpop.permute.xlu0 %7905 }
 0x4e8   : > { %v7908_v20 = vunpack.i.h.bf16 %v7906_v16  ;;  %v7907_v8 = vunpack.i.l.bf16 %v7906_v16  ;;  %v4028_v54 = vmax.f32 %v3907_v0, 0.0 }
 0x4ea   : > { %v4866_v48 = vsel %vm4768_vm2, %v4018_v30, %v7908_v20  ;;  %v4865_v9 = vsel %vm4768_vm2, %v4017_v42, %v7907_v8 }
 0x4eb   : > { %v6219_v22 = vpack.c.bf16 %v4866_v48, %v4865_v9  ;;  %v10231_v48 = vld [vmem:[#allocation71_spill] sm:$0xff] }
 0x4ec   : > { %v3908_v9 = vadd.f32 %v9904_v44, %v10231_v48 }
 0x4ed   : > { %6323 = vst [vmem:[%s9328_s11 + $0x180] sm:$0xff] %v6219_v22   ;;  %v10232_v22 = vld [vmem:[#allocation72_spill] sm:$0xff] }
 0x4ee   : > { %v3909_v19 = vadd.f32 %v9904_v44, %v10232_v22  ;;  %v4029_v12 = vmax.f32 %v3908_v9, 0.0  ;;  %v10243_v9 = vld [vmem:[#allocation83_spill] sm:$0xff] }
 0x4ef   : > { %v7911_v62 = vpop.permute.xlu1 %7910  ;;  %v3920_v22 = vadd.f32 %v9904_v44, %v10243_v9 }
 0x4f0   : > { %v7913_v41 = vunpack.i.h.bf16 %v7911_v62  ;;  %v7912_v3 = vunpack.i.l.bf16 %v7911_v62  ;;  %v4030_v2 = vmax.f32 %v3909_v19, 0.0 }
 0x4f2   : > { %v4868_v7 = vsel %vm4768_vm2, %v4020_v32, %v7913_v41  ;;  %v4867_v37 = vsel %vm4768_vm2, %v4019_v49, %v7912_v3 }
 0x4f3   : > { %v6224_v25 = vpack.c.bf16 %v4868_v7, %v4867_v37  ;;  %v10233_v7 = vld [vmem:[#allocation73_spill] sm:$0xff] }
 0x4f4   : > { %v3910_v37 = vadd.f32 %v9904_v44, %v10233_v7 }
 0x4f5   : > { %6324 = vst [vmem:[%s9328_s11 + $0x188] sm:$0xff] %v6224_v25   ;;  %v10234_v25 = vld [vmem:[#allocation74_spill] sm:$0xff] }
 0x4f6   : > { %v3911_v38 = vadd.f32 %v9904_v44, %v10234_v25  ;;  %v4031_v43 = vmax.f32 %v3910_v37, 0.0 }
 0x4f7   : > { %v7916_v27 = vpop.permute.xlu0 %7915 }
 0x4f8   : > { %v7918_v57 = vunpack.i.h.bf16 %v7916_v27  ;;  %v7917_v63 = vunpack.i.l.bf16 %v7916_v27  ;;  %v4032_v13 = vmax.f32 %v3911_v38, 0.0 }
 0x4fa   : > { %v4870_v26 = vsel %vm4768_vm2, %v4022_v50, %v7918_v57  ;;  %v4869_v31 = vsel %vm4768_vm2, %v4021_v56, %v7917_v63 }
 0x4fb   : > { %v6229_v35 = vpack.c.bf16 %v4870_v26, %v4869_v31  ;;  %v10235_v26 = vld [vmem:[#allocation75_spill] sm:$0xff] }
 0x4fc   : > { %v3912_v31 = vadd.f32 %v9904_v44, %v10235_v26 }
 0x4fd   : > { %6325 = vst [vmem:[%s9328_s11 + $0x190] sm:$0xff] %v6229_v35   ;;  %v10236_v35 = vld [vmem:[#allocation76_spill] sm:$0xff] }
 0x4fe   : > { %v3913_v51 = vadd.f32 %v9904_v44, %v10236_v35  ;;  %v4033_v55 = vmax.f32 %v3912_v31, 0.0 }
 0x4ff   : > { %v7921_v53 = vpop.permute.xlu1 %7920 }
 0x500   : > { %v7923_v14 = vunpack.i.h.bf16 %v7921_v53  ;;  %v7922_v36 = vunpack.i.l.bf16 %v7921_v53  ;;  %v4034_v4 = vmax.f32 %v3913_v51, 0.0 }
 0x502   : > { %v4872_v47 = vsel %vm4768_vm2, %v4024_v39, %v7923_v14  ;;  %v4871_v11 = vsel %vm4768_vm2, %v4023_v33, %v7922_v36 }
 0x503   : > { %v6234_v6 = vpack.c.bf16 %v4872_v47, %v4871_v11  ;;  %v10237_v47 = vld [vmem:[#allocation77_spill] sm:$0xff] }
 0x504   : > { %v3914_v11 = vadd.f32 %v9904_v44, %v10237_v47 }
 0x505   : > { %6326 = vst [vmem:[%s9328_s11 + $0x198] sm:$0xff] %v6234_v6   ;;  %v10238_v6 = vld [vmem:[#allocation78_spill] sm:$0xff] }
 0x506   : > { %v3915_v46 = vadd.f32 %v9904_v44, %v10238_v6  ;;  %v4035_v1 = vmax.f32 %v3914_v11, 0.0 }
 0x507   : > { %v7926_v61 = vpop.permute.xlu0 %7925 }
 0x508   : > { %v7928_v52 = vunpack.i.h.bf16 %v7926_v61  ;;  %v7927_v58 = vunpack.i.l.bf16 %v7926_v61  ;;  %v4036_v17 = vmax.f32 %v3915_v46, 0.0 }
 0x50a   : > { %v4874_v10 = vsel %vm4768_vm2, %v4026_v60, %v7928_v52  ;;  %v4873_v15 = vsel %vm4768_vm2, %v4025_v5, %v7927_v58 }
 0x50b   : > { %v6239_v18 = vpack.c.bf16 %v4874_v10, %v4873_v15  ;;  %v10239_v10 = vld [vmem:[#allocation79_spill] sm:$0xff] }
 0x50c   : > { %v3916_v15 = vadd.f32 %v9904_v44, %v10239_v10 }
 0x50d   : > { %6327 = vst [vmem:[%s9328_s11 + $0x1a0] sm:$0xff] %v6239_v18   ;;  %v10240_v18 = vld [vmem:[#allocation80_spill] sm:$0xff] }
 0x50e   : > { %v3917_v40 = vadd.f32 %v9904_v44, %v10240_v18  ;;  %v4037_v21 = vmax.f32 %v3916_v15, 0.0 }
 0x50f   : > { %v7931_v34 = vpop.permute.xlu1 %7930 }
 0x510   : > { %v7933_v16 = vunpack.i.h.bf16 %v7931_v34  ;;  %v7932_v42 = vunpack.i.l.bf16 %v7931_v34  ;;  %v4038_v0 = vmax.f32 %v3917_v40, 0.0 }
 0x512   : > { %v4876_v30 = vsel %vm4768_vm2, %v4028_v54, %v7933_v16  ;;  %v4875_v20 = vsel %vm4768_vm2, %v4027_v28, %v7932_v42 }
 0x513   : > { %v6244_v8 = vpack.c.bf16 %v4876_v30, %v4875_v20  ;;  %v10241_v30 = vld [vmem:[#allocation81_spill] sm:$0xff] }
 0x514   : > { %v3918_v20 = vadd.f32 %v9904_v44, %v10241_v30 }
 0x515   : > { %6328 = vst [vmem:[%s9328_s11 + $0x1a8] sm:$0xff] %v6244_v8   ;;  %v10242_v8 = vld [vmem:[#allocation82_spill] sm:$0xff] }
 0x516   : > { %v3919_v48 = vadd.f32 %v9904_v44, %v10242_v8 }
 0x517   : > { %v7936_v29 = vpop.permute.xlu0 %7935 }
 0x518   : > { %v7938_v62 = vunpack.i.h.bf16 %v7936_v29  ;;  %v7937_v49 = vunpack.i.l.bf16 %v7936_v29  ;;  %v4039_v29 = vmax.f32 %v3918_v20, 0.0 }
 0x51a   : > { %v4878_v32 = vsel %vm4768_vm2, %v4030_v2, %v7938_v62  ;;  %v4877_v41 = vsel %vm4768_vm2, %v4029_v12, %v7937_v49  ;;  %v4040_v12 = vmax.f32 %v3919_v48, 0.0  ;;  %v4041_v49 = vmax.f32 %v3920_v22, 0.0 }
 0x51b   : > { %v6249_v3 = vpack.c.bf16 %v4878_v32, %v4877_v41 }
 0x51d   : > { %6329 = vst [vmem:[%s9328_s11 + $0x1b0] sm:$0xff] %v6249_v3  }
 0x51f   : > { %v7941_v24 = vpop.permute.xlu1 %7940 }
 0x520   : > { %v7943_v27 = vunpack.i.h.bf16 %v7941_v24  ;;  %v7942_v56 = vunpack.i.l.bf16 %v7941_v24 }
 0x522   : > { %v4880_v50 = vsel %vm4768_vm2, %v4032_v13, %v7943_v27  ;;  %v4879_v57 = vsel %vm4768_vm2, %v4031_v43, %v7942_v56 }
 0x523   : > { %v6254_v63 = vpack.c.bf16 %v4880_v50, %v4879_v57 }
 0x525   : > { %6330 = vst [vmem:[%s9328_s11 + $0x1b8] sm:$0xff] %v6254_v63  }
 0x527   : > { %v7946_v45 = vpop.permute.xlu0 %7945 }
 0x528   : > { %v7948_v53 = vunpack.i.h.bf16 %v7946_v45  ;;  %v7947_v33 = vunpack.i.l.bf16 %v7946_v45 }
 0x52a   : > { %v4882_v39 = vsel %vm4768_vm2, %v4034_v4, %v7948_v53  ;;  %v4881_v14 = vsel %vm4768_vm2, %v4033_v55, %v7947_v33 }
 0x52b   : > { %v6259_v36 = vpack.c.bf16 %v4882_v39, %v4881_v14 }
 0x52d   : > { %6331 = vst [vmem:[%s9328_s11 + $0x1c0] sm:$0xff] %v6259_v36  }
 0x52f   : > { %v7951_v23 = vpop.permute.xlu1 %7950 }
 0x530   : > { %v7953_v61 = vunpack.i.h.bf16 %v7951_v23  ;;  %v7952_v5 = vunpack.i.l.bf16 %v7951_v23 }
 0x532   : > { %v4884_v60 = vsel %vm4768_vm2, %v4036_v17, %v7953_v61  ;;  %v4883_v52 = vsel %vm4768_vm2, %v4035_v1, %v7952_v5 }
 0x533   : > { %v6264_v58 = vpack.c.bf16 %v4884_v60, %v4883_v52 }
 0x535   : > { %6332 = vst [vmem:[%s9328_s11 + $0x1c8] sm:$0xff] %v6264_v58  }
 0x537   : > { %v7956_v59 = vpop.permute.xlu0 %7955 }
 0x538   : > { %v7958_v34 = vunpack.i.h.bf16 %v7956_v59  ;;  %v7957_v28 = vunpack.i.l.bf16 %v7956_v59 }
 0x53a   : > { %v4886_v54 = vsel %vm4768_vm2, %v4038_v0, %v7958_v34  ;;  %v4885_v16 = vsel %vm4768_vm2, %v4037_v21, %v7957_v28 }
 0x53b   : > { %v6269_v42 = vpack.c.bf16 %v4886_v54, %v4885_v16 }
 0x53d   : > { %6333 = vst [vmem:[%s9328_s11 + $0x1d0] sm:$0xff] %v6269_v42  }
 0x53f   : > { %v7961_v19 = vpop.permute.xlu1 %7960 }
 0x540   : > { %v7963_v2 = vunpack.i.h.bf16 %v7961_v19  ;;  %v7962_v62 = vunpack.i.l.bf16 %v7961_v19 }
 0x542   : > { %v4888_v32 = vsel %vm4768_vm2, %v4040_v12, %v7963_v2  ;;  %v4887_v41 = vsel %vm4768_vm2, %v4039_v29, %v7962_v62 }
 0x543   : > { %v6274_v3 = vpack.c.bf16 %v4888_v32, %v4887_v41  ;;  %v4646_v7 = vpop.permute.xlu0 %4645 }
 0x544   : > { %v4889_v37 = vsel %vm4768_vm2, %v4041_v49, %v4646_v7 }
 0x545   : > { %6334 = vst [vmem:[%s9328_s11 + $0x1d8] sm:$0xff] %v6274_v3   ;;  %v5975_v25 = vpack.c.bf16 %v4889_v37, %v4889_v37 }
 0x547   : > { %5495 = vst [vmem:[%s9328_s11 + $0x1e0] sm:$0xf] %v5975_v25 }
 0x548 PF: > { %s14_s15 = sadd.s32 1, %s8117_s15  }
 0x549   : > { %p11_p4 = scmp.ge.s32.totalorder %s14_s15, 4  }
 0x54b   :  { %13 = sbr.rel (!%p11_p4) target bundleno = 1 (0x1), region = 70 }

// kernel: actor_forward.3
= control target key start
LH: loop header
LB: loop body
LE: loop exit
PB: predicated region body
PF: predicated region fallthrough
CT: control target
= control target key end

     0   :  { %19 = vsyncpa [#allocation3], 0  ;;  %s6807_s0 = inlined_call_operand.vmem [shape: bf16[2,81,1024], index: 0, kind: input, shape index: {}]   ;;  %s6808_s1 = inlined_call_operand.vmem [shape: bf16[1024,64], index: 1, kind: input, shape index: {}]   ;;  %s6809_s2 = inlined_call_operand.vmem [shape: f32[1,64], index: 2, kind: input, shape index: {}]   ;;  %s6810_s3 = inlined_call_operand.vmem [shape: bf16[9,64,128], index: 3, kind: input, shape index: {}]   ;;  %s6811_s4 = inlined_call_operand.vmem [shape: f32[1,128], index: 4, kind: input, shape index: {}]   ;;  %s6812_s5 = inlined_call_operand.vmem [shape: bf16[1152,256], index: 5, kind: input, shape index: {}]   ;;  %s6813_s6 = inlined_call_operand.vmem [shape: f32[1,256], index: 6, kind: input, shape index: {}]   ;;  %s6814_s7 = inlined_call_operand.vmem [shape: bf16[256,256], index: 7, kind: input, shape index: {}]   ;;  %s6815_s8 = inlined_call_operand.vmem [shape: f32[1,256], index: 8, kind: input, shape index: {}]   ;;  %s6816_s9 = inlined_call_operand.vmem [shape: bf16[256,4], index: 9, kind: input, shape index: {}]   ;;  %s6817_s10 = inlined_call_operand.vmem [shape: f32[1,4], index: 10, kind: input, shape index: {}]   ;;  %s6818_s11 = inlined_call_operand.vmem [shape: f32[2,1,2], index: 11, kind: input, shape index: {}]   ;;  %s6819_s12 = inlined_call_operand.hbm [shape: f32[2,1,2], index: 12, kind: output, shape index: {0}]   ;;  %s6820_s13 = inlined_call_operand.hbm [shape: f32[2,1,2], index: 13, kind: output, shape index: {1}]  }
   0x1   :  { %21 = vsyncpa [#allocation3 + $0x1], 0 }
   0x2   :  { %22 = vsyncpa [#allocation5], 0 }
   0x3   :  { %24 = vsyncpa [#allocation5 + $0x1], 0  ;;  %s5524_s25 = smov 0   ;;  %s5526_s26 = smov 0  }
   0x4   :  { %s5528_s27 = smov 0   ;;  %s5530_s28 = smov 0  }
   0x5 LB: > { %6826 = sst [smem:[#allocation8_spill]] %s5440_s27  ;;  %s5545_s29 = sadd.s32 4294967295, %s5444_s28   ;;  %s5444_s28 = sphi %s5530_s28, %s6834_s28   ;;  %s5440_s27 = sphi %s5528_s27, %s6836_s27   ;;  %s5436_s26 = sphi %s5526_s26, %s6838_s26   ;;  %s5432_s25 = sphi %s5524_s25, %s6837_s25  }
   0x6   : > { %s4061_s30 = sadd.s32 4294967294, %s5444_s28   ;;  %s5549_s14 = sadd.s32 1, %s5444_s28  }
   0x7   : > { %6827 = sst [smem:[#allocation9_spill]] %s5549_s14  ;;  %s299_s15 = sadd.s32 1, %s5440_s27 }
   0x8   : > { %s296_s16 = ssub.s32 %s5444_s28, %s5549_s14  ;;  %p309_p0 = scmp.ne.s32.totalorder %s5440_s27, %s5436_s26 }
   0x9   : > { %p297_p1 = scmp.eq.s32.totalorder %s296_s16, 0  ;;  %p310_p2 = scmp.eq.s32.totalorder %s5545_s29, 1 }
   0xa   : > { %p315_p3 = scmp.ne.s32.totalorder %s5436_s26, %s5432_s25  ;;  %p316_p4 = scmp.eq.s32.totalorder %s4061_s30, 1 }
   0xb   : > { %s5560_s17 = scalar_select %p297_p1, %s5440_s27, %s299_s15  }
   0xc   : > { %p5562_p5 = por %p310_p2, %p309_p0  ;;  %p5566_p6 = por %p316_p4, %p315_p3 }
   0xd   : > { %6828 = sst [smem:[#allocation10_spill]] %s5560_s17  ;;  %p4064_p7 = scmp.ge.s32.totalorder %s5444_s28, 1 }
   0xe   : > { %s6830_s19 = scalar_select %p5566_p6, 1, 0 }
   0xf   : > { %p404_p8 = scmp.lt.s32.totalorder %s5444_s28, 3 }
  0x10   : > { %6831 = sst [smem:[#allocation11_spill]] %s6830_s19 }
  0x11   : > { %p405_p9 = pnand %p4064_p7, %p404_p8 }
  0x12   : > { %v4952_v0 = vld [vmem:[%s6808_s1 + $0x40] sm:$0xff] (!%p405_p9)   ;;  %v4956_v4 = vld [vmem:[%s6808_s1 + $0x48] sm:$0xff] (!%p405_p9)   ;;  %v4960_v8 = vld [vmem:[%s6808_s1 + $0x50] sm:$0xff] (!%p405_p9)   ;;  %p454_p10 = scmp.lt.s32.totalorder (!%p405_p9), %s5545_s29, 1  ;;  %vm5447_vm0 = vmmov (!%p405_p9), 0   ;;  %vm1635_vm1 = vcmask (!%p405_p9), 523264  }
  0x13   : > { %408 = sbr.rel (%p405_p9) target bundleno = 1694 (0x69e), region = 68  ;;  %v4953_v1 = vld [vmem:[%s6808_s1] sm:$0xff] (!%p405_p9)   ;;  %4486 = vmatprep.subr.bf16.mxu0 (!%p405_p9), %v4952_v0  ;;  %v4957_v5 = vld [vmem:[%s6808_s1 + $0x8] sm:$0xff] (!%p405_p9)   ;;  %v4961_v9 = vld [vmem:[%s6808_s1 + $0x10] sm:$0xff] (!%p405_p9)   ;;  %s5449_s30 = smov (!%p405_p9), 2   ;;  %vm3936_vm4 = vcmask (!%p405_p9), 8192  }
  0x14   : > { %v4954_v2 = vld [vmem:[%s6808_s1 + $0xc0] sm:$0xff] (!%p405_p9)   ;;  %4487 = vmatpush3.bf16.msra.mxu0 (!%p405_p9), %v4953_v1  ;;  %v4958_v6 = vld [vmem:[%s6808_s1 + $0xc8] sm:$0xff] (!%p405_p9)   ;;  %v4962_v10 = vld [vmem:[%s6808_s1 + $0xd0] sm:$0xff] (!%p405_p9)   ;;  %s5451_s16 = smov (!%p405_p9), 126   ;;  %s6719_s27 = sand.u32 (!%p405_p9), 1, %s5436_s26  }
  0x15   : > { %v4955_v3 = vld [vmem:[%s6808_s1 + $0x80] sm:$0xff] (!%p405_p9)   ;;  %4538 = vmatprep.subr.bf16.mxu1 (!%p405_p9), %v4954_v2  ;;  %4488 = vmatprep.subr.bf16.mxu0 (!%p405_p9), %v4956_v4  ;;  %v4959_v7 = vld [vmem:[%s6808_s1 + $0x88] sm:$0xff] (!%p405_p9)   ;;  %v4963_v11 = vld [vmem:[%s6808_s1 + $0x90] sm:$0xff] (!%p405_p9)   ;;  %s6825_s17 = sshll.u32 (!%p405_p9), %s5545_s29, 4  ;;  %s447_s20 = scalar_lea.vmem (!%p405_p9), [#allocation2], %s6719_s27 }
  0x16   : > { %4539 = vmatpush3.bf16.msra.mxu1 (!%p405_p9), %v4955_v3  ;;  %v4964_v12 = vld [vmem:[%s6808_s1 + $0x58] sm:$0xff] (!%p405_p9)   ;;  %v4968_v16 = vld [vmem:[%s6808_s1 + $0x60] sm:$0xff] (!%p405_p9)   ;;  %v4972_v20 = vld [vmem:[%s6808_s1 + $0x68] sm:$0xff] (!%p405_p9)   ;;  %s3956_s23 = sshll.u32 (!%p405_p9), %s447_s20, 4  ;;  %s3940_s15 = scalar_lea.sflag (!%p405_p9), [#allocation3], %s6719_s27  ;;  %s6730_s23 = int_to_ptr.vmem [resolvable:$true] %s3956_s23 }
  0x17   : > { %4540 = vmatprep.subr.bf16.mxu1 (!%p405_p9), %v4958_v6  ;;  %v4965_v13 = vld [vmem:[%s6808_s1 + $0x18] sm:$0xff] (!%p405_p9)   ;;  %v4969_v17 = vld [vmem:[%s6808_s1 + $0x20] sm:$0xff] (!%p405_p9)   ;;  %v4973_v21 = vld [vmem:[%s6808_s1 + $0x28] sm:$0xff] (!%p405_p9)   ;;  %s5350_s19 = scalar_lea.vmem (!%p405_p9), %s6730_s23, 16 }
  0x18   : > { %4489 = vmatpush3.bf16.msra.mxu0 (!%p405_p9), %v4957_v5  ;;  %v4966_v14 = vld [vmem:[%s6808_s1 + $0xd8] sm:$0xff] (!%p405_p9)   ;;  %v4970_v18 = vld [vmem:[%s6808_s1 + $0xe0] sm:$0xff] (!%p405_p9)   ;;  %v4974_v22 = vld [vmem:[%s6808_s1 + $0xe8] sm:$0xff] (!%p405_p9)   ;;  %p5351_p11 = scmp.ne.s32.totalorder (!%p405_p9), %s6730_s23, %s5350_s19 }
  0x19   : > { %4490 = vmatprep.subr.bf16.mxu0 (!%p405_p9), %v4960_v8  ;;  %v4967_v15 = vld [vmem:[%s6808_s1 + $0x98] sm:$0xff] (!%p405_p9)   ;;  %v4971_v19 = vld [vmem:[%s6808_s1 + $0xa0] sm:$0xff] (!%p405_p9)   ;;  %v4975_v23 = vld [vmem:[%s6808_s1 + $0xa8] sm:$0xff] (!%p405_p9)  }
  0x1a   : > { %4541 = vmatpush3.bf16.msra.mxu1 %v4959_v7  ;;  %s5637_s22 = scalar_select %p454_p10, %s5545_s29, 1  ;;  %v4976_v24 = vld [vmem:[%s6808_s1 + $0x70] sm:$0xff]   ;;  %v4980_v28 = vld [vmem:[%s6808_s1 + $0x78] sm:$0xff]   ;;  %v4984_v36 = vld [vmem:[%s6808_s1 + $0x140] sm:$0xff]  }
  0x1b   : > { %4542 = vmatprep.subr.bf16.mxu1 %v4962_v10  ;;  %v4977_v25 = vld [vmem:[%s6808_s1 + $0x30] sm:$0xff]   ;;  %v4981_v29 = vld [vmem:[%s6808_s1 + $0x38] sm:$0xff]   ;;  %v4985_v41 = vld [vmem:[%s6808_s1 + $0x100] sm:$0xff]   ;;  %p5352_p12 = pnand %p5351_p11, %p5562_p5 }
  0x1c   : > { %4491 = vmatpush3.bf16.msra.mxu0 %v4961_v9  ;;  %s4901_s21 = smul.u32 352, %s5637_s22  ;;  %v4978_v26 = vld [vmem:[%s6808_s1 + $0xf0] sm:$0xff]   ;;  %v4982_v30 = vld [vmem:[%s6808_s1 + $0xf8] sm:$0xff]   ;;  %v4986_v42 = vld [vmem:[%s6808_s1 + $0x148] sm:$0xff]  }
  0x1d   : > { %4492 = vmatprep.subr.bf16.mxu0 %v4964_v12  ;;  %v4979_v27 = vld [vmem:[%s6808_s1 + $0xb0] sm:$0xff]   ;;  %v4983_v35 = vld [vmem:[%s6808_s1 + $0xb8] sm:$0xff]   ;;  %v4987_v46 = vld [vmem:[%s6808_s1 + $0x108] sm:$0xff]   ;;  %p5353_p13 = pneg %p5352_p12 }
  0x1e   : > { %4543 = vmatpush3.bf16.msra.mxu1 %v4963_v11  ;;  %s5667_s14 = scalar_lea.vmem %s6807_s0, %s4901_s21  ;;  %v4988_v51 = vld [vmem:[%s6808_s1 + $0x150] sm:$0xff]   ;;  %v4990_v59 = vld [vmem:[%s6808_s1 + $0x158] sm:$0xff]   ;;  %v4992_v0 = vld [vmem:[%s6808_s1 + $0x160] sm:$0xff]  }
  0x1f   : > { %4544 = vmatprep.subr.bf16.mxu1 %v4966_v14  ;;  %v463_v31 = vld [vmem:[%s5667_s14] sm:$0xff]  ;;  %v464_v37 = vld [vmem:[%s5667_s14 + $0x8] sm:$0xff]  ;;  %v4989_v52 = vld [vmem:[%s6808_s1 + $0x110] sm:$0xff]  }
  0x20   : > { %4493 = vmatpush3.bf16.msra.mxu0 %v4965_v13  ;;  %v467_v32 = vld [vmem:[%s5667_s14 + $0x20] sm:$0xff]  ;;  %v468_v38 = vld [vmem:[%s5667_s14 + $0x28] sm:$0xff]  ;;  %v4991_v61 = vld [vmem:[%s6808_s1 + $0x118] sm:$0xff]  }
  0x21   : > { %4494 = vmatprep.subr.bf16.mxu0 %v4968_v16  ;;  %v4067_v33 = vcombine.low %v463_v31, %v467_v32  ;;  %v4068_v34 = vcombine.high %v463_v31, %v467_v32  ;;  %v4069_v39 = vcombine.low %v464_v37, %v468_v38  ;;  %v4070_v40 = vcombine.high %v464_v37, %v468_v38  ;;  %v471_v43 = vld [vmem:[%s5667_s14 + $0x40] sm:$0xff]  ;;  %v472_v47 = vld [vmem:[%s5667_s14 + $0x48] sm:$0xff]  ;;  %v4996_v14 = vld [vmem:[%s6808_s1 + $0x170] sm:$0xff]  }
  0x22   : > { %4545 = vmatpush3.bf16.msra.mxu1 %v4967_v15  ;;  %v475_v44 = vld [vmem:[%s5667_s14 + $0x60] sm:$0xff]  ;;  %v476_v48 = vld [vmem:[%s5667_s14 + $0x68] sm:$0xff]  ;;  %v5783_v32 = vld [vmem:[%s6808_s1 + $0x1d8] sm:$0xff]  }
  0x23   : > { %4546 = vmatprep.subr.bf16.mxu1 %v4970_v18  ;;  %1286 = vmatprep.mubr.bf16.mxu0 %v4068_v34  ;;  %v4076_v45 = vcombine.high %v471_v43, %v475_v44  ;;  %v4075_v49 = vcombine.low %v471_v43, %v475_v44  ;;  %v4078_v50 = vcombine.high %v472_v47, %v476_v48  ;;  %v479_v53 = vld [vmem:[%s5667_s14 + $0x80] sm:$0xff]  ;;  %v480_v55 = vld [vmem:[%s5667_s14 + $0x88] sm:$0xff]  ;;  %v4997_v18 = vld [vmem:[%s6808_s1 + $0x130] sm:$0xff]  }
  0x24   : > { %4495 = vmatpush3.bf16.msra.mxu0 %v4969_v17  ;;  %1366 = vmatprep.mubr.bf16.mxu1 %v4070_v40  ;;  %v483_v54 = vld [vmem:[%s5667_s14 + $0xa0] sm:$0xff]  ;;  %v484_v56 = vld [vmem:[%s5667_s14 + $0xa8] sm:$0xff]  ;;  %v4077_v57 = vcombine.low %v472_v47, %v476_v48  ;;  %v469_v38 = vld [vmem:[%s5667_s14 + $0x30] sm:$0xff] }
  0x25   : > { %4496 = vmatprep.subr.bf16.mxu0 %v4972_v20  ;;  %v4084_v58 = vcombine.high %v479_v53, %v483_v54  ;;  %v4086_v60 = vcombine.high %v480_v55, %v484_v56  ;;  %v487_v62 = vld [vmem:[%s5667_s14 + $0xc0] sm:$0xff]  ;;  %v4083_v1 = vcombine.low %v479_v53, %v483_v54  ;;  %v488_v3 = vld [vmem:[%s5667_s14 + $0xc8] sm:$0xff]  ;;  %v4085_v6 = vcombine.low %v480_v55, %v484_v56  ;;  %v490_v44 = vld [vmem:[%s5667_s14 + $0xd8] sm:$0xff] }
  0x26   : > { %4547 = vmatpush3.bf16.msra.mxu1 %v4971_v19  ;;  %v491_v63 = vld [vmem:[%s5667_s14 + $0xe0] sm:$0xff]  ;;  %v492_v4 = vld [vmem:[%s5667_s14 + $0xe8] sm:$0xff]  ;;  %v5016_v48 = vld [vmem:[%s6808_s1 + $0x1f0] sm:$0xff]  }
  0x27   : > { %4548 = vmatprep.subr.bf16.mxu1 %v4974_v22  ;;  %v4092_v2 = vcombine.high %v487_v62, %v491_v63  ;;  %v4993_v5 = vld [vmem:[%s6808_s1 + $0x120] sm:$0xff]   ;;  %v4994_v7 = vld [vmem:[%s6808_s1 + $0x168] sm:$0xff]   ;;  %v4094_v8 = vcombine.high %v488_v3, %v492_v4  ;;  %v4091_v15 = vcombine.low %v487_v62, %v491_v63  ;;  %v4093_v20 = vcombine.low %v488_v3, %v492_v4  ;;  %v5018_v53 = vld [vmem:[%s6808_s1 + $0x1f8] sm:$0xff]  }
  0x28   : > { %4497 = vmatpush3.bf16.msra.mxu0 %v4973_v21  ;;  %v495_v9 = vld [vmem:[%s5667_s14 + $0x100] sm:$0xff]  ;;  %v4995_v11 = vld [vmem:[%s6808_s1 + $0x128] sm:$0xff]   ;;  %v5002_v21 = vld [vmem:[%s6808_s1 + $0x178] sm:$0xff]  }
  0x29   : > { %4498 = vmatprep.subr.bf16.mxu0 %v4976_v24  ;;  %v499_v10 = vld [vmem:[%s5667_s14 + $0x120] sm:$0xff]  ;;  %v496_v12 = vld [vmem:[%s5667_s14 + $0x108] sm:$0xff]  ;;  %v5019_v55 = vld [vmem:[%s6808_s1 + $0x1b8] sm:$0xff]  }
  0x2a   : > { %4549 = vmatpush3.bf16.msra.mxu1 %v4975_v23  ;;  %v500_v13 = vld [vmem:[%s5667_s14 + $0x128] sm:$0xff]  ;;  %v5003_v16 = vld [vmem:[%s6808_s1 + $0x1c0] sm:$0xff]   ;;  %v4100_v17 = vcombine.high %v495_v9, %v499_v10  ;;  %v498_v56 = vld [vmem:[%s5667_s14 + $0x118] sm:$0xff] }
  0x2b   : > { %4550 = vmatprep.subr.bf16.mxu1 %v4978_v26  ;;  %v5746_v19 = vld [vmem:[%s6808_s1 + $0x180] sm:$0xff]   ;;  %v5754_v22 = vld [vmem:[%s6808_s1 + $0x1c8] sm:$0xff]   ;;  %v4102_v23 = vcombine.high %v496_v12, %v500_v13  ;;  %v5767_v26 = vld [vmem:[%s6808_s1 + $0x1d0] sm:$0xff]  }
  0x2c   : > { %4499 = vmatpush3.bf16.msra.mxu0 %v4977_v25  ;;  %v503_v24 = vld [vmem:[%s5667_s14 + $0x140] sm:$0x11]  ;;  %v5761_v25 = vld [vmem:[%s6808_s1 + $0x188] sm:$0xff]  }
  0x2d   : > { %4500 = vmatprep.subr.bf16.mxu0 %v4980_v28  ;;  %v4099_v28 = vcombine.low %v495_v9, %v499_v10  ;;  %v4108_v31 = vcombine.high %v503_v24, %v503_v24  ;;  %v5012_v37 = vld [vmem:[%s6808_s1 + $0x1e0] sm:$0xff]  }
  0x2e   : > { %4551 = vmatpush3.bf16.msra.mxu1 %v4979_v27  ;;  %v5004_v27 = vld [vmem:[%s6808_s1 + $0x138] sm:$0xff]   ;;  %v5013_v40 = vld [vmem:[%s6808_s1 + $0x1a0] sm:$0xff]  }
  0x2f   : > { %4552 = vmatprep.subr.bf16.mxu1 %v4982_v30  ;;  %v5777_v30 = vld [vmem:[%s6808_s1 + $0x190] sm:$0xff]  }
  0x30   : > { %4501 = vmatpush3.bf16.msra.mxu0 %v4981_v29  ;;  %v504_v29 = vld [vmem:[%s5667_s14 + $0x148] sm:$0x11] }
  0x31   : > { %4590 = vmatprep.subr.bf16.mxu0 %v4984_v36  ;;  %v4110_v34 = vcombine.high %v504_v29, %v504_v29  ;;  %v5790_v36 = vld [vmem:[%s6808_s1 + $0x198] sm:$0xff]   ;;  %v4109_v43 = vcombine.low %v504_v29, %v504_v29  ;;  %v5446_v29 = vmov 0.0  }
  0x32   : > { %4553 = vmatpush3.bf16.msra.mxu1 %v4983_v35  ;;  %v465_v35 = vld [vmem:[%s5667_s14 + $0x10] sm:$0xff] }
  0x33   : > { %1287 = vmatmul.mubr.bf16.vlgmr.msra.gmra.mrb[0].mxu0 %v4067_v33  ;;  %4869 = vmatprep.subr.bf16.mxu1 %v5003_v16  ;;  %v4101_v33 = vcombine.low %v496_v12, %v500_v13  ;;  %v505_v12 = vld [vmem:[%s5667_s14 + $0x150] sm:$0x11] }
  0x34   : > { %4591 = vmatpush3.bf16.msra.mxu0 %v4985_v41  ;;  %1294 = vmatprep.mubr.bf16.mxu0 %v4076_v45  ;;  %v4072_v41 = vcombine.high %v465_v35, %v469_v38  ;;  %v494_v45 = vld [vmem:[%s5667_s14 + $0xf8] sm:$0xff] }
  0x35   : > { %1367 = vmatmul.mubr.bf16.vlgmr.msra.gmra.mrb[0].mxu1 %v4069_v39  ;;  %4592 = vmatprep.subr.bf16.mxu0 %v4986_v42  ;;  %v4107_v39 = vcombine.low %v503_v24, %v503_v24  ;;  %v5014_v42 = vld [vmem:[%s6808_s1 + $0x1e8] sm:$0xff]   ;;  %v4098_v47 = vcombine.high %v490_v44, %v494_v45  ;;  %v486_v24 = vld [vmem:[%s5667_s14 + $0xb8] sm:$0xff] }
  0x36   : > { %1374 = vmatprep.mubr.bf16.mxu1 %v4078_v50  ;;  %4877 = vmatpush3.bf16.msra.mxu1 %v5746_v19  ;;  %v477_v50 = vld [vmem:[%s5667_s14 + $0x70] sm:$0xff] }
  0x37   : > { %4870 = vmatprep.subr.bf16.mxu1 %v5754_v22 }
  0x38   : > { %4593 = vmatpush3.bf16.msra.mxu0 %v4987_v46  ;;  %v5015_v46 = vld [vmem:[%s6808_s1 + $0x1a8] sm:$0xff]  }
  0x39   : > { %4594 = vmatprep.subr.bf16.mxu0 %v4988_v51  ;;  %v5017_v51 = vld [vmem:[%s6808_s1 + $0x1b0] sm:$0xff]  }
  0x3a   : > { %4878 = vmatpush3.bf16.msra.mxu1 %v5761_v25 }
  0x3b   : > { %1295 = vmatmul.mubr.bf16.gmra.mrb[4].mxu0 %v4075_v49  ;;  %4871 = vmatprep.subr.bf16.mxu1 %v5767_v26  ;;  %v473_v49 = vld [vmem:[%s5667_s14 + $0x50] sm:$0xff] }
  0x3c   : > { %1302 = vmatprep.mubr.bf16.mxu0 %v4084_v58  ;;  %4595 = vmatpush3.bf16.msra.mxu0 %v4989_v52  ;;  %v4071_v52 = vcombine.low %v465_v35, %v469_v38  ;;  %v4080_v54 = vcombine.high %v473_v49, %v477_v50  ;;  %v481_v58 = vld [vmem:[%s5667_s14 + $0x90] sm:$0xff]  ;;  %v5887_v38 = vld [vmem:[%s6809_s2] ss:$0 sm:$0xff] }
  0x3d   : > { %1375 = vmatmul.mubr.bf16.gmra.mrb[4].mxu1 %v4077_v57  ;;  %4596 = vmatprep.subr.bf16.mxu0 %v4990_v59  ;;  %v502_v57 = vld [vmem:[%s5667_s14 + $0x138] sm:$0xff]  ;;  %v485_v59 = vld [vmem:[%s5667_s14 + $0xb0] sm:$0xff] }
  0x3e   : > { %1382 = vmatprep.mubr.bf16.mxu1 %v4086_v60  ;;  %4879 = vmatpush3.bf16.msra.mxu1 %v5777_v30  ;;  %v4097_v60 = vcombine.low %v490_v44, %v494_v45  ;;  %v4106_v62 = vcombine.high %v498_v56, %v502_v57  ;;  %v4088_v63 = vcombine.high %v481_v58, %v485_v59  ;;  %v5030_v35 = vld [vmem:[%s6810_s3 + $0x30] sm:$0xff]  }
  0x3f   : > { %4872 = vmatprep.subr.bf16.mxu1 %v5783_v32  ;;  %v4105_v3 = vcombine.low %v498_v56, %v502_v57  ;;  %v4087_v4 = vcombine.low %v481_v58, %v485_v59 }
  0x40   : > { %4597 = vmatpush3.bf16.msra.mxu0 %v4991_v61  ;;  %v4079_v61 = vcombine.low %v473_v49, %v477_v50 }
  0x41   : > { %4598 = vmatprep.subr.bf16.mxu0 %v4992_v0  ;;  %v506_v0 = vld [vmem:[%s5667_s14 + $0x158] sm:$0x11] }
  0x42   : > { %4880 = vmatpush3.bf16.msra.mxu1 %v5790_v36  ;;  %v4113_v9 = vcombine.low %v506_v0, %v506_v0 }
  0x43   : > { %1303 = vmatmul.mubr.bf16.gmra.mrb[8].mxu0 %v4083_v1  ;;  %4873 = vmatprep.subr.bf16.mxu1 %v5012_v37  ;;  %v489_v1 = vld [vmem:[%s5667_s14 + $0xd0] sm:$0xff] }
  0x44   : > { %1310 = vmatprep.mubr.bf16.mxu0 %v4092_v2  ;;  %4599 = vmatpush3.bf16.msra.mxu0 %v4993_v5  ;;  %v493_v2 = vld [vmem:[%s5667_s14 + $0xf0] sm:$0xff]  ;;  %v4114_v5 = vcombine.high %v506_v0, %v506_v0 }
  0x45   : > { %1383 = vmatmul.mubr.bf16.gmra.mrb[8].mxu1 %v4085_v6  ;;  %4600 = vmatprep.subr.bf16.mxu0 %v4994_v7  ;;  %v4096_v6 = vcombine.high %v489_v1, %v493_v2  ;;  %v497_v7 = vld [vmem:[%s5667_s14 + $0x110] sm:$0xff]  ;;  %v4095_v10 = vcombine.low %v489_v1, %v493_v2 }
  0x46   : > { %1390 = vmatprep.mubr.bf16.mxu1 %v4094_v8  ;;  %4881 = vmatpush3.bf16.msra.mxu1 %v5013_v40  ;;  %v501_v8 = vld [vmem:[%s5667_s14 + $0x130] sm:$0xff] }
  0x47   : > { %4874 = vmatprep.subr.bf16.mxu1 %v5014_v42  ;;  %v4103_v13 = vcombine.low %v497_v7, %v501_v8 }
  0x48   : > { %4601 = vmatpush3.bf16.msra.mxu0 %v4995_v11  ;;  %v4104_v11 = vcombine.high %v497_v7, %v501_v8 }
  0x49   : > { %4602 = vmatprep.subr.bf16.mxu0 %v4996_v14  ;;  %v4112_v14 = vcombine.high %v505_v12, %v505_v12 }
  0x4a   : > { %4882 = vmatpush3.bf16.msra.mxu1 %v5015_v46 }
  0x4b   : > { %1311 = vmatmul.mubr.bf16.gmra.mrb[12].mxu0 %v4091_v15  ;;  %4875 = vmatprep.subr.bf16.mxu1 %v5016_v48  ;;  %v466_v15 = vld [vmem:[%s5667_s14 + $0x18] sm:$0xff] }
  0x4c   : > { %1318 = vmatprep.mubr.bf16.mxu0 %v4100_v17  ;;  %4603 = vmatpush3.bf16.msra.mxu0 %v4997_v18  ;;  %v4111_v17 = vcombine.low %v505_v12, %v505_v12 }
  0x4d   : > { %1391 = vmatmul.mubr.bf16.gmra.mrb[12].mxu1 %v4093_v20  ;;  %4604 = vmatprep.subr.bf16.mxu0 %v5002_v21  ;;  %v478_v20 = vld [vmem:[%s5667_s14 + $0x78] sm:$0xff] }
  0x4e   : > { %1398 = vmatprep.mubr.bf16.mxu1 %v4102_v23  ;;  %4883 = vmatpush3.bf16.msra.mxu1 %v5017_v51  ;;  %v482_v23 = vld [vmem:[%s5667_s14 + $0x98] sm:$0xff] }
  0x4f   : > { %4876 = vmatprep.subr.bf16.mxu1 %v5018_v53 }
  0x50   : > { %4605 = vmatpush3.bf16.msra.mxu0 %v5004_v27  ;;  %v4089_v27 = vcombine.low %v482_v23, %v486_v24 }
  0x51   : > { %4642 = vmatprep.subr.bf16.mxu0 %v5003_v16  ;;  %v470_v16 = vld [vmem:[%s5667_s14 + $0x38] sm:$0xff] }
  0x52   : > { %4884 = vmatpush3.bf16.msra.mxu1 %v5019_v55  ;;  %v4074_v18 = vcombine.high %v466_v15, %v470_v16  ;;  %v4073_v21 = vcombine.low %v466_v15, %v470_v16 }
  0x53   : > { %1319 = vmatmul.mubr.bf16.gmra.mrb[16].mxu0 %v4099_v28  ;;  %v5024_v28 = vld [vmem:[%s6810_s3] sm:$0xff]   ;;  %4773 = vmatprep.subr.bf16.mxu1 %v5446_v29 }
  0x54   : > { %1326 = vmatprep.mubr.bf16.mxu0 %v4108_v31  ;;  %v5027_v31 = vld [vmem:[%s6810_s3 + $0x10] sm:$0xff]  }
  0x55   : > { %1399 = vmatmul.mubr.bf16.gmra.mrb[16].mxu1 %v4101_v33  ;;  %v5029_v33 = vld [vmem:[%s6810_s3 + $0x18] sm:$0xff]  }
  0x56   : > { %1406 = vmatprep.mubr.bf16.mxu1 %v4110_v34  ;;  %v5028_v34 = vld [vmem:[%s6810_s3 + $0x28] sm:$0xff]  }
  0x5b   : > { %1327 = vmatmul.mubr.bf16.gmra.mrb[20].mxu0 %v4107_v39 }
  0x5c   : > { %1446 = vmatprep.mubr.bf16.mxu0 %v4072_v41 }
  0x5d   : > { %1407 = vmatmul.mubr.bf16.gmra.mrb[20].mxu1 %v4109_v43 }
  0x5e   : > { %1550 = vmatprep.mubr.bf16.mxu1 %v4098_v47 }
  0x63   : > { %1447 = vmatmul.mubr.bf16.vlgmr.msra.gmra.mrb[24].mxu0 %v4071_v52 }
  0x64   : > { %4643 = vmatpush3.bf16.msra.mxu0 %v5746_v19  ;;  %1454 = vmatprep.mubr.bf16.mxu0 %v4080_v54  ;;  %v474_v19 = vld [vmem:[%s5667_s14 + $0x58] sm:$0xff]  ;;  %s461_s14 = scalar_lea.vmem %s6818_s11, %s5637_s22  ;;  %s5452_s22 = smov [#allocation2]  }
  0x65   : > { %4644 = vmatprep.subr.bf16.mxu0 %v5754_v22  ;;  %1551 = vmatmul.mubr.bf16.vlgmr.msra.gmra.mrb[24].mxu1 %v4097_v60  ;;  %v4082_v22 = vcombine.high %v474_v19, %v478_v20  ;;  %s5354_s21 = sshll.u32 %s5452_s22, 4  ;;  %s5355_s21 = int_to_ptr.vmem [resolvable:$false] %s5354_s21 }
  0x66   : > { %1558 = vmatprep.mubr.bf16.mxu1 %v4106_v62  ;;  %4774 = vmatpush3.bf16.msra.mxu1 %v5024_v28  ;;  %p5357_p0 = scmp.lt.s32.totalorder %s6730_s23, %s5355_s21 }
  0x67   : > { %4775 = vmatprep.subr.bf16.mxu1 %v5446_v29 }
  0x68   : > { %4645 = vmatpush3.bf16.msra.mxu0 %v5761_v25  ;;  %v4081_v25 = vcombine.low %v474_v19, %v478_v20 }
  0x69   : > { %4646 = vmatprep.subr.bf16.mxu0 %v5767_v26  ;;  %v4090_v26 = vcombine.high %v482_v23, %v486_v24 }
  0x6b   : > { %1455 = vmatmul.mubr.bf16.gmra.mrb[28].mxu0 %v4079_v61 }
  0x6c   : > { %4647 = vmatpush3.bf16.msra.mxu0 %v5777_v30  ;;  %1462 = vmatprep.mubr.bf16.mxu0 %v4088_v63  ;;  %v5026_v30 = vld [vmem:[%s6810_s3 + $0x8] sm:$0xff]  }
  0x6d   : > { %4648 = vmatprep.subr.bf16.mxu0 %v5783_v32  ;;  %1559 = vmatmul.mubr.bf16.gmra.mrb[28].mxu1 %v4105_v3  ;;  %v5025_v32 = vld [vmem:[%s6810_s3 + $0x20] sm:$0xff]  }
  0x6e   : > { %1566 = vmatprep.mubr.bf16.mxu1 %v4114_v5  ;;  %4776 = vmatpush3.bf16.msra.mxu1 %v5026_v30 }
  0x6f   : > { %4777 = vmatprep.subr.bf16.mxu1 %v5446_v29 }
  0x70   : > { %4649 = vmatpush3.bf16.msra.mxu0 %v5790_v36  ;;  %v5032_v36 = vld [vmem:[%s6810_s3 + $0x38] sm:$0xff]  }
  0x71   : > { %4650 = vmatprep.subr.bf16.mxu0 %v5012_v37 }
  0x72   : > { %4778 = vmatpush3.bf16.msra.mxu1 %v5027_v31 }
  0x73   : > { %1463 = vmatmul.mubr.bf16.gmra.mrb[32].mxu0 %v4087_v4  ;;  %4779 = vmatprep.subr.bf16.mxu1 %v5446_v29 }
  0x74   : > { %1470 = vmatprep.mubr.bf16.mxu0 %v4096_v6  ;;  %4651 = vmatpush3.bf16.msra.mxu0 %v5013_v40 }
  0x75   : > { %4652 = vmatprep.subr.bf16.mxu0 %v5014_v42  ;;  %1567 = vmatmul.mubr.bf16.gmra.mrb[32].mxu1 %v4113_v9 }
  0x76   : > { %4780 = vmatpush3.bf16.msra.mxu1 %v5029_v33  ;;  %4781 = vmatprep.mubr.msk.bf16.mxu1 %vm5447_vm0, %v5446_v29 }
  0x77   : > { %4797 = vmatprep.subr.bf16.mxu1 %v5446_v29 }
  0x78   : > { %4653 = vmatpush3.bf16.msra.mxu0 %v5015_v46 }
  0x79   : > { %4654 = vmatprep.subr.bf16.mxu0 %v5016_v48 }
  0x7b   : > { %1471 = vmatmul.mubr.bf16.gmra.mrb[36].mxu0 %v4095_v10 }
  0x7c   : > { %1478 = vmatprep.mubr.bf16.mxu0 %v4104_v11  ;;  %4655 = vmatpush3.bf16.msra.mxu0 %v5017_v51 }
  0x7d   : > { %4656 = vmatprep.subr.bf16.mxu0 %v5018_v53 }
  0x80   : > { %4657 = vmatpush3.bf16.msra.mxu0 %v5019_v55 }
  0x81   : > { %4761 = vmatprep.subr.bf16.mxu0 %v5446_v29 }
  0x83   : > { %1479 = vmatmul.mubr.bf16.gmra.mrb[40].mxu0 %v4103_v13 }
  0x84   : > { %1486 = vmatprep.mubr.bf16.mxu0 %v4112_v14 }
  0x8b   : > { %1487 = vmatmul.mubr.bf16.gmra.mrb[44].mxu0 %v4111_v17 }
  0x8c   : > { %1526 = vmatprep.mubr.bf16.mxu0 %v4074_v18 }
  0x93   : > { %1527 = vmatmul.mubr.bf16.vlgmr.msra.gmra.mrb[48].mxu0 %v4073_v21 }
  0x94   : > { %1534 = vmatprep.mubr.bf16.mxu0 %v4082_v22  ;;  %4762 = vmatpush3.bf16.msra.mxu0 %v5025_v32 }
  0x95   : > { %4763 = vmatprep.subr.bf16.mxu0 %v5446_v29 }
  0x98   : > { %4764 = vmatpush3.bf16.msra.mxu0 %v5028_v34 }
  0x99   : > { %4765 = vmatprep.subr.bf16.mxu0 %v5446_v29 }
  0x9b   : > { %1535 = vmatmul.mubr.bf16.gmra.mrb[52].mxu0 %v4081_v25 }
  0x9c   : > { %1542 = vmatprep.mubr.bf16.mxu0 %v4090_v26  ;;  %4766 = vmatpush3.bf16.msra.mxu0 %v5030_v35 }
  0x9d   : > { %4767 = vmatprep.subr.bf16.mxu0 %v5446_v29 }
  0xa0   : > { %4768 = vmatpush3.bf16.msra.mxu0 %v5032_v36 }
  0xa1   : > { %4785 = vmatprep.subr.bf16.mxu0 %v5446_v29 }
  0xa3   : > { %1543 = vmatmul.mubr.bf16.gmra.mrb[56].mxu0 %v4089_v27 }
  0xa4   : > { %4769 = vmatprep.mubr.msk.bf16.mxu0 %vm5447_vm0, %v5446_v29 }
 0x106   : > { %v4502_v37 = vpop.f32.mrb[0].mxu0 }
 0x107   : > { %v4503_v39 = vpop.f32.mrb[1].mxu0 }
 0x108   : > { %v4504_v40 = vadd.f32 %v4503_v39, %v4502_v37  ;;  %v4505_v41 = vpop.f32.mrb[2].mxu0  ;;  %v4554_v42 = vpop.f32.mrb[0].mxu1 }
 0x109   : > { %v4506_v43 = vpop.f32.mrb[3].mxu0  ;;  %v4555_v46 = vpop.f32.mrb[1].mxu1 }
 0x10a   : > { %v1289_v44 = vadd.f32 %v4504_v40, %v5887_v38  ;;  %v4507_v45 = vadd.f32 %v4506_v43, %v4505_v41  ;;  %v4556_v47 = vadd.f32 %v4555_v46, %v4554_v42  ;;  %v4557_v48 = vpop.f32.mrb[2].mxu1 }
 0x10b   : > { %v4558_v50 = vpop.f32.mrb[3].mxu1 }
 0x10c   : > { %v1292_v49 = vadd.f32 %v4507_v45, %v5887_v38  ;;  %v5891_v51 = vadd.f32 %v4556_v47, %v1289_v44  ;;  %v4559_v52 = vadd.f32 %v4558_v50, %v4557_v48 }
 0x10e   : > { %v4508_v53 = vpop.f32.mrb[4].mxu0  ;;  %v5893_v54 = vadd.f32 %v4559_v52, %v1292_v49 }
 0x10f   : > { %v4509_v55 = vpop.f32.mrb[5].mxu0 }
 0x110   : > { %v4510_v56 = vadd.f32 %v4509_v55, %v4508_v53  ;;  %v4511_v57 = vpop.f32.mrb[6].mxu0  ;;  %v4560_v58 = vpop.f32.mrb[4].mxu1 }
 0x111   : > { %v4512_v59 = vpop.f32.mrb[7].mxu0  ;;  %v4561_v62 = vpop.f32.mrb[5].mxu1 }
 0x112   : > { %v1297_v60 = vadd.f32 %v4510_v56, %v5887_v38  ;;  %v4513_v61 = vadd.f32 %v4512_v59, %v4511_v57  ;;  %v4562_v63 = vadd.f32 %v4561_v62, %v4560_v58  ;;  %v4563_v0 = vpop.f32.mrb[6].mxu1 }
 0x113   : > { %v4564_v2 = vpop.f32.mrb[7].mxu1 }
 0x114   : > { %v1300_v1 = vadd.f32 %v4513_v61, %v5887_v38  ;;  %v5897_v3 = vadd.f32 %v4562_v63, %v1297_v60  ;;  %v4565_v4 = vadd.f32 %v4564_v2, %v4563_v0 }
 0x116   : > { %v4514_v5 = vpop.f32.mrb[8].mxu0  ;;  %v5899_v6 = vadd.f32 %v4565_v4, %v1300_v1 }
 0x117   : > { %v4515_v7 = vpop.f32.mrb[9].mxu0 }
 0x118   : > { %v4516_v8 = vadd.f32 %v4515_v7, %v4514_v5  ;;  %v4517_v9 = vpop.f32.mrb[10].mxu0  ;;  %v4566_v10 = vpop.f32.mrb[8].mxu1 }
 0x119   : > { %v4518_v11 = vpop.f32.mrb[11].mxu0  ;;  %v4567_v14 = vpop.f32.mrb[9].mxu1 }
 0x11a   : > { %v1305_v12 = vadd.f32 %v4516_v8, %v5887_v38  ;;  %v4519_v13 = vadd.f32 %v4518_v11, %v4517_v9  ;;  %v4568_v15 = vadd.f32 %v4567_v14, %v4566_v10  ;;  %v4569_v16 = vpop.f32.mrb[10].mxu1 }
 0x11b   : > { %v4570_v18 = vpop.f32.mrb[11].mxu1 }
 0x11c   : > { %v1308_v17 = vadd.f32 %v4519_v13, %v5887_v38  ;;  %v5903_v19 = vadd.f32 %v4568_v15, %v1305_v12  ;;  %v4571_v20 = vadd.f32 %v4570_v18, %v4569_v16 }
 0x11e   : > { %v4520_v21 = vpop.f32.mrb[12].mxu0  ;;  %v5905_v22 = vadd.f32 %v4571_v20, %v1308_v17 }
 0x11f   : > { %v4521_v23 = vpop.f32.mrb[13].mxu0 }
 0x120   : > { %v4522_v24 = vadd.f32 %v4521_v23, %v4520_v21  ;;  %v4523_v25 = vpop.f32.mrb[14].mxu0  ;;  %v4572_v26 = vpop.f32.mrb[12].mxu1 }
 0x121   : > { %v4524_v27 = vpop.f32.mrb[15].mxu0  ;;  %v4573_v31 = vpop.f32.mrb[13].mxu1 }
 0x122   : > { %v1313_v28 = vadd.f32 %v4522_v24, %v5887_v38  ;;  %v4525_v30 = vadd.f32 %v4524_v27, %v4523_v25  ;;  %v4574_v32 = vadd.f32 %v4573_v31, %v4572_v26  ;;  %v4575_v33 = vpop.f32.mrb[14].mxu1 }
 0x123   : > { %v4576_v35 = vpop.f32.mrb[15].mxu1 }
 0x124   : > { %v1316_v34 = vadd.f32 %v4525_v30, %v5887_v38  ;;  %v5909_v36 = vadd.f32 %v4574_v32, %v1313_v28  ;;  %v4577_v37 = vadd.f32 %v4576_v35, %v4575_v33 }
 0x126   : > { %v4526_v39 = vpop.f32.mrb[16].mxu0  ;;  %v5911_v40 = vadd.f32 %v4577_v37, %v1316_v34 }
 0x127   : > { %v4527_v41 = vpop.f32.mrb[17].mxu0 }
 0x128   : > { %v4528_v42 = vadd.f32 %v4527_v41, %v4526_v39  ;;  %v4529_v43 = vpop.f32.mrb[18].mxu0  ;;  %v4578_v44 = vpop.f32.mrb[16].mxu1 }
 0x129   : > { %v4530_v45 = vpop.f32.mrb[19].mxu0  ;;  %v4579_v48 = vpop.f32.mrb[17].mxu1 }
 0x12a   : > { %v1321_v46 = vadd.f32 %v4528_v42, %v5887_v38  ;;  %v4531_v47 = vadd.f32 %v4530_v45, %v4529_v43  ;;  %v4580_v49 = vadd.f32 %v4579_v48, %v4578_v44  ;;  %v4581_v50 = vpop.f32.mrb[18].mxu1 }
 0x12b   : > { %v4582_v53 = vpop.f32.mrb[19].mxu1 }
 0x12c   : > { %v1324_v52 = vadd.f32 %v4531_v47, %v5887_v38  ;;  %v5915_v55 = vadd.f32 %v4580_v49, %v1321_v46  ;;  %v4583_v56 = vadd.f32 %v4582_v53, %v4581_v50 }
 0x12e   : > { %v4532_v57 = vpop.f32.mrb[20].mxu0  ;;  %v5917_v58 = vadd.f32 %v4583_v56, %v1324_v52 }
 0x12f   : > { %v4533_v59 = vpop.f32.mrb[21].mxu0 }
 0x130   : > { %v4534_v60 = vadd.f32 %v4533_v59, %v4532_v57  ;;  %v4535_v61 = vpop.f32.mrb[22].mxu0  ;;  %v4584_v62 = vpop.f32.mrb[20].mxu1 }
 0x131   : > { %v4536_v63 = vpop.f32.mrb[23].mxu0  ;;  %v4585_v1 = vpop.f32.mrb[21].mxu1 }
 0x132   : > { %v1329_v0 = vadd.f32 %v4534_v60, %v5887_v38  ;;  %v4586_v2 = vadd.f32 %v4585_v1, %v4584_v62  ;;  %v4587_v4 = vpop.f32.mrb[22].mxu1 }
 0x133   : > { %v4588_v5 = vpop.f32.mrb[23].mxu1 }
 0x134   : > { %v5920_v7 = vadd.f32 %v4586_v2, %v1329_v0 }
 0x136   : > { %v4606_v8 = vpop.f32.mrb[24].mxu0 }
 0x137   : > { %v4607_v9 = vpop.f32.mrb[25].mxu0 }
 0x138   : > { %v4608_v10 = vadd.f32 %v4607_v9, %v4606_v8  ;;  %v4609_v11 = vpop.f32.mrb[26].mxu0  ;;  %v4676_v16 = vpop.f32.mrb[24].mxu1 }
 0x139   : > { %v4610_v12 = vpop.f32.mrb[27].mxu0  ;;  %v4677_v17 = vpop.f32.mrb[25].mxu1 }
 0x13a   : > { %v5923_v13 = vadd.f32 %v4608_v10, %v5891_v51  ;;  %v4611_v14 = vadd.f32 %v4610_v12, %v4609_v11  ;;  %v4678_v20 = vadd.f32 %v4677_v17, %v4676_v16  ;;  %v4679_v21 = vpop.f32.mrb[26].mxu1 }
 0x13b   : > { %v4680_v25 = vpop.f32.mrb[27].mxu1 }
 0x13c   : > { %v5926_v15 = vadd.f32 %v4611_v14, %v5893_v54  ;;  %v4681_v27 = vadd.f32 %v4680_v25, %v4679_v21 }
 0x13e   : > { %v4612_v38 = vpop.f32.mrb[28].mxu0 }
 0x13f   : > { %v4613_v18 = vpop.f32.mrb[29].mxu0 }
 0x140   : > { %v4614_v23 = vadd.f32 %v4613_v18, %v4612_v38  ;;  %v4615_v24 = vpop.f32.mrb[30].mxu0  ;;  %v4682_v54 = vpop.f32.mrb[28].mxu1 }
 0x141   : > { %v4616_v26 = vpop.f32.mrb[31].mxu0  ;;  %v4683_v32 = vpop.f32.mrb[29].mxu1 }
 0x142   : > { %v5929_v28 = vadd.f32 %v4614_v23, %v5897_v3  ;;  %v4617_v51 = vadd.f32 %v4616_v26, %v4615_v24  ;;  %v4684_v34 = vadd.f32 %v4683_v32, %v4682_v54  ;;  %v4685_v35 = vpop.f32.mrb[30].mxu1 }
 0x143   : > { %v4686_v41 = vpop.f32.mrb[31].mxu1 }
 0x144   : > { %v5932_v30 = vadd.f32 %v4617_v51, %v5899_v6  ;;  %v4687_v43 = vadd.f32 %v4686_v41, %v4685_v35 }
 0x146   : > { %v4618_v31 = vpop.f32.mrb[32].mxu0 }
 0x147   : > { %v4619_v33 = vpop.f32.mrb[33].mxu0 }
 0x148   : > { %v4620_v37 = vadd.f32 %v4619_v33, %v4618_v31  ;;  %v4621_v39 = vpop.f32.mrb[34].mxu0  ;;  %v4688_v6 = vpop.f32.mrb[32].mxu1 }
 0x149   : > { %v4622_v42 = vpop.f32.mrb[35].mxu0  ;;  %v4689_v47 = vpop.f32.mrb[33].mxu1 }
 0x14a   : > { %v5935_v44 = vadd.f32 %v4620_v37, %v5903_v19  ;;  %v4623_v3 = vadd.f32 %v4622_v42, %v4621_v39  ;;  %v4690_v49 = vadd.f32 %v4689_v47, %v4688_v6  ;;  %v4691_v50 = vpop.f32.mrb[34].mxu1 }
 0x14b   : > { %v4692_v56 = vpop.f32.mrb[35].mxu1 }
 0x14c   : > { %v5938_v45 = vadd.f32 %v4623_v3, %v5905_v22 }
 0x14e   : > { %v4624_v46 = vpop.f32.mrb[36].mxu0 }
 0x14f   : > { %v4625_v48 = vpop.f32.mrb[37].mxu0 }
 0x150   : > { %v4626_v52 = vadd.f32 %v4625_v48, %v4624_v46  ;;  %v4627_v53 = vpop.f32.mrb[38].mxu0 }
 0x151   : > { %v4628_v57 = vpop.f32.mrb[39].mxu0 }
 0x152   : > { %v1473_v59 = vadd.f32 %v4626_v52, %v5909_v36  ;;  %v4629_v60 = vadd.f32 %v4628_v57, %v4627_v53  ;;  %v5035_v52 = vld [vmem:[%s6810_s3 + $0x70] sm:$0xff]  }
 0x154   : > { %v1476_v19 = vadd.f32 %v4629_v60, %v5911_v40  ;;  %v5942_v61 = vadd.f32 %v4678_v20, %v1473_v59 }
 0x156   : > { %v1556_v62 = vadd.f32 %v4681_v27, %v1476_v19  ;;  %v4630_v22 = vpop.f32.mrb[40].mxu0  ;;  %v1580_v0 = vmax.f32 %v5942_v61, 0.0 }
 0x157   : > { %v4631_v63 = vpop.f32.mrb[41].mxu0 }
 0x158   : > { %v1581_v1 = vmax.f32 %v1556_v62, 0.0  ;;  %v4632_v2 = vadd.f32 %v4631_v63, %v4630_v22  ;;  %v4633_v4 = vpop.f32.mrb[42].mxu0  ;;  %v5034_v63 = vld [vmem:[%s6810_s3 + $0x40] sm:$0xff]  }
 0x159   : > { %v4634_v5 = vpop.f32.mrb[43].mxu0 }
 0x15a   : > { %v5947_v8 = vpack.c.bf16 %v1581_v1, %v1580_v0  ;;  %v1481_v36 = vadd.f32 %v4632_v2, %v5915_v55  ;;  %v4635_v9 = vadd.f32 %v4634_v5, %v4633_v4 }
 0x15c   : > { %v1484_v40 = vadd.f32 %v4635_v9, %v5917_v58  ;;  %v1561_v10 = vadd.f32 %v4684_v34, %v1481_v36 }
 0x15e   : > { %v1582_v11 = vmax.f32 %v1561_v10, 0.0  ;;  %v1564_v12 = vadd.f32 %v4687_v43, %v1484_v40  ;;  %v4636_v14 = vpop.f32.mrb[44].mxu0 }
 0x15f   : > { %v4637_v16 = vpop.f32.mrb[45].mxu0 }
 0x160   : > { %v5951_v38 = vpack.c.bf16 %v1582_v11, %v1581_v1  ;;  %v4638_v17 = vadd.f32 %v4637_v16, %v4636_v14  ;;  %v4639_v18 = vpop.f32.mrb[46].mxu0  ;;  %v1583_v24 = vmax.f32 %v1564_v12, 0.0  ;;  %v5037_v1 = vld [vmem:[%s6810_s3 + $0x78] sm:$0xff]   ;;  %v5038_v16 = vld [vmem:[%s6810_s3 + $0x50] sm:$0xff]  }
 0x161   : > { %v4640_v20 = vpop.f32.mrb[47].mxu0  ;;  %v5041_v18 = vld [vmem:[%s6810_s3 + $0xa8] sm:$0xff]  }
 0x162   : > { %v1489_v21 = vadd.f32 %v4638_v17, %v5920_v7  ;;  %v5031_v7 = vld [vmem:[%s6810_s3 + $0x60] sm:$0xff]  }
 0x163   : > { %v5039_v17 = vld [vmem:[%s6810_s3 + $0xa0] sm:$0xff]  }
 0x164   : > { %v1569_v23 = vadd.f32 %v4690_v49, %v1489_v21  ;;  %v5042_v20 = vld [vmem:[%s6810_s3 + $0x80] sm:$0xff]   ;;  %v5043_v21 = vld [vmem:[%s6810_s3 + $0xb0] sm:$0xff]  }
 0x166   : > { %v1584_v25 = vmax.f32 %v1569_v23, 0.0  ;;  %v4658_v26 = vpop.f32.mrb[48].mxu0 }
 0x167   : > { %v4659_v55 = vpop.f32.mrb[49].mxu0 }
 0x168   : > { %v5954_v27 = vpack.c.bf16 %v1584_v25, %v1583_v24  ;;  %v4660_v58 = vadd.f32 %v4659_v55, %v4658_v26  ;;  %v4661_v51 = vpop.f32.mrb[50].mxu0  ;;  %v5044_v26 = vld [vmem:[%s6810_s3 + $0x88] sm:$0xff]   ;;  %v5045_v55 = vld [vmem:[%s6810_s3 + $0xb8] sm:$0xff]  }
 0x169   : > { %v4662_v54 = vpop.f32.mrb[51].mxu0 }
 0x16a   : > { %v1529_v31 = vadd.f32 %v4660_v58, %v5923_v13  ;;  %v4663_v32 = vadd.f32 %v4662_v54, %v4661_v51  ;;  %v5033_v13 = vld [vmem:[%s6810_s3 + $0x68] sm:$0xff]   ;;  %v5046_v54 = vld [vmem:[%s6810_s3 + $0x90] sm:$0xff]  }
 0x16c   : > { %v1532_v33 = vadd.f32 %v4663_v32, %v5926_v15  ;;  %v1574_v34 = vmax.f32 %v1529_v31, 0.0  ;;  %v5047_v31 = vld [vmem:[%s6810_s3 + $0xe0] sm:$0xff]  }
 0x16e   : > { %v1575_v35 = vmax.f32 %v1532_v33, 0.0  ;;  %v4664_v37 = vpop.f32.mrb[52].mxu0  ;;  %v5048_v33 = vld [vmem:[%s6810_s3 + $0x98] sm:$0xff]  }
 0x16f   : > { %v4665_v39 = vpop.f32.mrb[53].mxu0 }
 0x170   : > { %v1585_v41 = vpack.c.bf16 %v1575_v35, %v1574_v34  ;;  %v4666_v42 = vadd.f32 %v4665_v39, %v4664_v37  ;;  %v4667_v43 = vpop.f32.mrb[54].mxu0  ;;  %v5049_v34 = vld [vmem:[%s6810_s3 + $0xe8] sm:$0xff]   ;;  %v5051_v37 = vld [vmem:[%s6810_s3 + $0xf0] sm:$0xff]   ;;  %v2181_v39 = vshrl.u32 %v5951_v38, 16 }
 0x171   : > { %v4668_v3 = vpop.f32.mrb[55].mxu0 }
 0x172   : > { %v1537_v6 = vadd.f32 %v4666_v42, %v5929_v28  ;;  %v4669_v46 = vadd.f32 %v4668_v3, %v4667_v43  ;;  %4782 = vmatmul.mubr.msk.bf16.vlgmr.msra.gmra.mrb[36].mxu1 %vm1635_vm1, %v1585_v41  ;;  %v5052_v42 = vld [vmem:[%s6810_s3 + $0xc8] sm:$0xff]   ;;  %v5053_v43 = vld [vmem:[%s6810_s3 + $0xf8] sm:$0xff]   ;;  %v2183_v3 = vrot.slane %v2181_v39, 3 }
 0x173   : > { %4798 = vmatpush3.bf16.msra.mxu1 %v5031_v7  ;;  %4805 = vmatprep.mubr.msk.bf16.mxu1 %vm5447_vm0, %v5446_v29  ;;  %v2184_v7 = vshll.u32 %v5951_v38, 16  ;;  %v5137_v39 = vld [vmem:[%s6812_s5 + $0xc4] ss:$8 sps:$4 sm:$0xff]  }
 0x174   : > { %v1576_v15 = vmax.f32 %v1537_v6, 0.0  ;;  %v1540_v47 = vadd.f32 %v4669_v46, %v5932_v30  ;;  %4799 = vmatprep.subr.bf16.mxu1 %v5446_v29  ;;  %v5054_v6 = vld [vmem:[%s6810_s3 + $0xd0] sm:$0xff]  }
 0x175   : > { %v2186_v38 = vrot.slane %v2184_v7, 4  ;;  %v5132_v7 = vld [vmem:[%s6812_s5 + $0x1c0] ss:$8 sps:$4 sm:$0xff]  }
 0x176   : > { %v1594_v48 = vpack.c.bf16 %v1576_v15, %v1575_v35  ;;  %v1577_v49 = vmax.f32 %v1540_v47, 0.0  ;;  %v4670_v50 = vpop.f32.mrb[56].mxu0  ;;  %v5050_v35 = vld [vmem:[%s6810_s3 + $0xc0] sm:$0xff]   ;;  %v2099_v47 = vrot.slane %v5947_v8, 3  ;;  %v5059_v8 = vld [vmem:[%s6810_s3 + $0x118] sm:$0xff]  }
 0x177   : > { %v4671_v28 = vpop.f32.mrb[57].mxu0  ;;  %4800 = vmatpush3.bf16.msra.mxu1 %v5033_v13  ;;  %v2187_v46 = vor.u32 %v2186_v38, %v2183_v3  ;;  %v5055_v13 = vld [vmem:[%s6810_s3 + $0xd8] sm:$0xff]  }
 0x178   : > { %v1607_v53 = vshll.u32 %v1594_v48, 16  ;;  %v1748_v56 = vpack.c.bf16 %v1577_v49, %v1576_v15  ;;  %v4672_v57 = vadd.f32 %v4671_v28, %v4670_v50  ;;  %v4673_v59 = vpop.f32.mrb[58].mxu0  ;;  %4801 = vmatprep.subr.bf16.mxu1 %v5446_v29  ;;  %v1605_v19 = vshrl.u32 %v1594_v48, 16  ;;  %v5056_v15 = vld [vmem:[%s6810_s3 + $0x100] sm:$0xff]   ;;  %v5057_v48 = vld [vmem:[%s6810_s3 + $0x108] sm:$0xff]  }
 0x179   : > { %v4674_v60 = vpop.f32.mrb[59].mxu0  ;;  %v5062_v50 = vld [vmem:[%s6812_s5 + $0x104] ss:$8 sps:$4 sm:$0xff]   ;;  %v5060_v28 = vld [vmem:[%s6812_s5 + $0x100] ss:$8 sps:$4 sm:$0xff]  }
 0x17a   : > { %v1609_v30 = vrot.slane %v1607_v53, 1  ;;  %v1545_v62 = vadd.f32 %v4672_v57, %v5935_v44  ;;  %v4675_v22 = vadd.f32 %v4674_v60, %v4673_v59  ;;  %v5036_v44 = vld [vmem:[%s6810_s3 + $0x48] sm:$0xff]   ;;  %v1759_v23 = vrot.slane %v1748_v56, 1  ;;  %v5066_v53 = vld [vmem:[%s6812_s5 + $0x110] ss:$8 sps:$4 sm:$0xff]  }
 0x17b   : > { %4802 = vmatpush3.bf16.msra.mxu1 %v5035_v52  ;;  %v5065_v52 = vld [vmem:[%s6812_s5 + $0x4] ss:$8 sps:$4 sm:$0xff]   ;;  %v5071_v56 = vld [vmem:[%s6812_s5 + $0x14] ss:$8 sps:$4 sm:$0xff]   ;;  %v5069_v57 = vld [vmem:[%s6812_s5 + $0x10] ss:$8 sps:$4 sm:$0xff]  }
 0x17c   : > { %v1610_v2 = vor.u32 %v1609_v30, %v1605_v19  ;;  %v1578_v4 = vmax.f32 %v1545_v62, 0.0  ;;  %v1548_v5 = vadd.f32 %v4675_v22, %v5938_v45  ;;  %4803 = vmatprep.subr.bf16.mxu1 %v5446_v29  ;;  %v5074_v59 = vld [vmem:[%s6812_s5 + $0x124] ss:$8 sps:$4 sm:$0xff]   ;;  %v5072_v60 = vld [vmem:[%s6812_s5 + $0x120] ss:$8 sps:$4 sm:$0xff]  }
 0x17d   : > { %v5077_v19 = vld [vmem:[%s6812_s5 + $0x24] ss:$8 sps:$4 sm:$0xff]   ;;  %v5075_v30 = vld [vmem:[%s6812_s5 + $0x20] ss:$8 sps:$4 sm:$0xff]   ;;  %v5080_v62 = vld [vmem:[%s6812_s5 + $0x134] ss:$8 sps:$4 sm:$0xff]  }
 0x17e   : > { %v1830_v36 = vpack.c.bf16 %v1578_v4, %v1577_v49  ;;  %v1579_v9 = vmax.f32 %v1548_v5, 0.0  ;;  %4770 = vmatmul.mubr.msk.bf16.vlgmr.msra.gmra.mrb[60].mxu0 %vm1635_vm1, %v1610_v2  ;;  %v5058_v49 = vld [vmem:[%s6810_s3 + $0x110] sm:$0xff]   ;;  %v5086_v2 = vld [vmem:[%s6812_s5 + $0x144] ss:$8 sps:$4 sm:$0xff]  }
 0x17f   : > { %4786 = vmatpush3.bf16.msra.mxu0 %v5034_v63  ;;  %4804 = vmatpush3.bf16.msra.mxu1 %v5037_v1  ;;  %v5078_v22 = vld [vmem:[%s6812_s5 + $0x130] ss:$8 sps:$4 sm:$0xff]   ;;  %v5083_v63 = vld [vmem:[%s6812_s5 + $0x34] ss:$8 sps:$4 sm:$0xff]   ;;  %v5089_v5 = vld [vmem:[%s6812_s5 + $0x44] ss:$8 sps:$4 sm:$0xff]  }
 0x180   : > { %v1841_v40 = vshrl.u32 %v1830_v36, 16  ;;  %v1844_v10 = vshll.u32 %v1830_v36, 16  ;;  %v5987_v11 = vpack.c.bf16 %v1579_v9, %v1578_v4  ;;  %v2000_v12 = vpack.c.bf16 %v1580_v0, %v1579_v9  ;;  %4787 = vmatprep.subr.bf16.mxu0 %v5446_v29  ;;  %4821 = vmatprep.subr.bf16.mxu1 %v5446_v29  ;;  %v5040_v0 = vld [vmem:[%s6810_s3 + $0x58] sm:$0xff]   ;;  %v5084_v4 = vld [vmem:[%s6812_s5 + $0x140] ss:$8 sps:$4 sm:$0xff]  }
 0x181   : > { %4793 = vmatprep.mubr.msk.bf16.mxu0 %vm5447_vm0, %v5446_v29  ;;  %v5081_v1 = vld [vmem:[%s6812_s5 + $0x30] ss:$8 sps:$4 sm:$0xff]   ;;  %v5087_v36 = vld [vmem:[%s6812_s5 + $0x40] ss:$8 sps:$4 sm:$0xff]   ;;  %v5092_v9 = vld [vmem:[%s6812_s5 + $0x154] ss:$8 sps:$4 sm:$0xff]  }
 0x182   : > { %v1843_v45 = vrot.slane %v1841_v40, 1  ;;  %v1846_v14 = vrot.slane %v1844_v10, 2  ;;  %v2011_v24 = vshrl.u32 %v2000_v12, 16  ;;  %v2014_v25 = vshll.u32 %v2000_v12, 16  ;;  %v5095_v40 = vld [vmem:[%s6812_s5 + $0x54] ss:$8 sps:$4 sm:$0xff]  }
 0x183   : > { %4788 = vmatpush3.bf16.msra.mxu0 %v5036_v44  ;;  %v1929_v41 = vrot.slane %v5987_v11, 2  ;;  %v5090_v44 = vld [vmem:[%s6812_s5 + $0x150] ss:$8 sps:$4 sm:$0xff]   ;;  %v5098_v11 = vld [vmem:[%s6812_s5 + $0x164] ss:$8 sps:$4 sm:$0xff]  }
 0x184   : > { %v1847_v61 = vor.u32 %v1846_v14, %v1843_v45  ;;  %4789 = vmatprep.subr.bf16.mxu0 %v5446_v29  ;;  %v2013_v58 = vrot.slane %v2011_v24, 2  ;;  %v2016_v51 = vrot.slane %v2014_v25, 3  ;;  %v5093_v10 = vld [vmem:[%s6812_s5 + $0x50] ss:$8 sps:$4 sm:$0xff]   ;;  %v5096_v12 = vld [vmem:[%s6812_s5 + $0x160] ss:$8 sps:$4 sm:$0xff]  }
 0x185   : > { %v5101_v45 = vld [vmem:[%s6812_s5 + $0x64] ss:$8 sps:$4 sm:$0xff]   ;;  %v5099_v14 = vld [vmem:[%s6812_s5 + $0x60] ss:$8 sps:$4 sm:$0xff]   ;;  %v5116_v24 = vld [vmem:[%s6812_s5 + $0x194] ss:$8 sps:$4 sm:$0xff]  }
 0x186   : > { %4806 = vmatmul.mubr.msk.bf16.vlgmr.msra.gmra.mrb[40].mxu1 %vm1635_vm1, %v1847_v61  ;;  %v2017_v32 = vor.u32 %v2016_v51, %v2013_v58  ;;  %v5107_v61 = vld [vmem:[%s6812_s5 + $0x74] ss:$8 sps:$4 sm:$0xff]   ;;  %v5114_v25 = vld [vmem:[%s6812_s5 + $0x190] ss:$8 sps:$4 sm:$0xff]   ;;  %v5122_v58 = vld [vmem:[%s6812_s5 + $0x1a4] ss:$8 sps:$4 sm:$0xff]  }
 0x187   : > { %4790 = vmatpush3.bf16.msra.mxu0 %v5038_v16  ;;  %4822 = vmatpush3.bf16.msra.mxu1 %v5039_v17  ;;  %v5104_v16 = vld [vmem:[%s6812_s5 + $0x174] ss:$8 sps:$4 sm:$0xff]   ;;  %v5102_v17 = vld [vmem:[%s6812_s5 + $0x170] ss:$8 sps:$4 sm:$0xff]   ;;  %v5120_v51 = vld [vmem:[%s6812_s5 + $0x1a0] ss:$8 sps:$4 sm:$0xff]  }
 0x188   : > { %4791 = vmatprep.subr.bf16.mxu0 %v5446_v29  ;;  %4823 = vmatprep.subr.bf16.mxu1 %v5446_v29  ;;  %v5143_v3 = vld [vmem:[%s6812_s5 + $0xd4] ss:$8 sps:$4 sm:$0xff]   ;;  %v5141_v38 = vld [vmem:[%s6812_s5 + $0xd0] ss:$8 sps:$4 sm:$0xff]  }
 0x189   : > { %4829 = vmatprep.mubr.msk.bf16.mxu1 %vm5447_vm0, %v5446_v29 }
 0x18b   : > { %4792 = vmatpush3.bf16.msra.mxu0 %v5040_v0  ;;  %4824 = vmatpush3.bf16.msra.mxu1 %v5041_v18  ;;  %v5105_v0 = vld [vmem:[%s6812_s5 + $0x70] ss:$8 sps:$4 sm:$0xff]   ;;  %v5110_v18 = vld [vmem:[%s6812_s5 + $0x184] ss:$8 sps:$4 sm:$0xff]  }
 0x18c   : > { %4809 = vmatprep.subr.bf16.mxu0 %v5446_v29  ;;  %4825 = vmatprep.subr.bf16.mxu1 %v5446_v29 }
 0x18e   : > { %4794 = vmatmul.mubr.msk.bf16.vlgmr.msra.gmra.mrb[64].mxu0 %vm1635_vm1, %v1759_v23  ;;  %v5111_v23 = vld [vmem:[%s6812_s5 + $0x80] ss:$8 sps:$4 sm:$0xff]  }
 0x18f   : > { %4810 = vmatpush3.bf16.msra.mxu0 %v5042_v20  ;;  %4826 = vmatpush3.bf16.msra.mxu1 %v5043_v21  ;;  %v5108_v20 = vld [vmem:[%s6812_s5 + $0x180] ss:$8 sps:$4 sm:$0xff]   ;;  %v5113_v21 = vld [vmem:[%s6812_s5 + $0x84] ss:$8 sps:$4 sm:$0xff]  }
 0x190   : > { %4811 = vmatprep.subr.bf16.mxu0 %v5446_v29  ;;  %4827 = vmatprep.subr.bf16.mxu1 %v5446_v29 }
 0x191   : > { %4817 = vmatprep.mubr.msk.bf16.mxu0 %vm5447_vm0, %v5446_v29 }
 0x193   : > { %4812 = vmatpush3.bf16.msra.mxu0 %v5044_v26  ;;  %4828 = vmatpush3.bf16.msra.mxu1 %v5045_v55  ;;  %v5119_v26 = vld [vmem:[%s6812_s5 + $0x94] ss:$8 sps:$4 sm:$0xff]   ;;  %v5117_v55 = vld [vmem:[%s6812_s5 + $0x90] ss:$8 sps:$4 sm:$0xff]  }
 0x194   : > { %4813 = vmatprep.subr.bf16.mxu0 %v5446_v29  ;;  %4845 = vmatprep.subr.bf16.mxu1 %v5446_v29 }
 0x196   : > { %4830 = vmatmul.mubr.msk.bf16.vlgmr.msra.gmra.mrb[44].mxu1 %vm1635_vm1, %v2017_v32  ;;  %v5128_v32 = vld [vmem:[%s6812_s5 + $0x1b4] ss:$8 sps:$4 sm:$0xff]  }
 0x197   : > { %4814 = vmatpush3.bf16.msra.mxu0 %v5046_v54  ;;  %4846 = vmatpush3.bf16.msra.mxu1 %v5047_v31  ;;  %v5125_v54 = vld [vmem:[%s6812_s5 + $0xa4] ss:$8 sps:$4 sm:$0xff]   ;;  %v5123_v31 = vld [vmem:[%s6812_s5 + $0xa0] ss:$8 sps:$4 sm:$0xff]  }
 0x198   : > { %4815 = vmatprep.subr.bf16.mxu0 %v5446_v29  ;;  %4847 = vmatprep.subr.bf16.mxu1 %v5446_v29 }
 0x199   : > { %4853 = vmatprep.mubr.msk.bf16.mxu1 %vm5447_vm0, %v5446_v29 }
 0x19b   : > { %4816 = vmatpush3.bf16.msra.mxu0 %v5048_v33  ;;  %4848 = vmatpush3.bf16.msra.mxu1 %v5049_v34  ;;  %v5126_v33 = vld [vmem:[%s6812_s5 + $0x1b0] ss:$8 sps:$4 sm:$0xff]   ;;  %v5131_v34 = vld [vmem:[%s6812_s5 + $0xb4] ss:$8 sps:$4 sm:$0xff]  }
 0x19c   : > { %4833 = vmatprep.subr.bf16.mxu0 %v5446_v29  ;;  %4849 = vmatprep.subr.bf16.mxu1 %v5446_v29 }
 0x19e   : > { %4818 = vmatmul.mubr.msk.bf16.vlgmr.msra.gmra.mrb[68].mxu0 %vm1635_vm1, %v1929_v41  ;;  %v5135_v41 = vld [vmem:[%s6812_s5 + $0xc0] ss:$8 sps:$4 sm:$0xff]  }
 0x19f   : > { %4834 = vmatpush3.bf16.msra.mxu0 %v5050_v35  ;;  %4850 = vmatpush3.bf16.msra.mxu1 %v5051_v37  ;;  %v5129_v35 = vld [vmem:[%s6812_s5 + $0xb0] ss:$8 sps:$4 sm:$0xff]   ;;  %v5134_v37 = vld [vmem:[%s6812_s5 + $0x1c4] ss:$8 sps:$4 sm:$0xff]  }
 0x1a0   : > { %4835 = vmatprep.subr.bf16.mxu0 %v5446_v29  ;;  %4851 = vmatprep.subr.bf16.mxu1 %v5446_v29 }
 0x1a1   : > { %4841 = vmatprep.mubr.msk.bf16.mxu0 %vm5447_vm0, %v5446_v29 }
 0x1a3   : > { %4836 = vmatpush3.bf16.msra.mxu0 %v5052_v42  ;;  %4852 = vmatpush3.bf16.msra.mxu1 %v5053_v43  ;;  %v5140_v42 = vld [vmem:[%s6812_s5 + $0x1d4] ss:$8 sps:$4 sm:$0xff]   ;;  %v5138_v43 = vld [vmem:[%s6812_s5 + $0x1d0] ss:$8 sps:$4 sm:$0xff]  }
 0x1a4   : > { %4837 = vmatprep.subr.bf16.mxu0 %v5446_v29  ;;  %3290 = vmatprep.subr.bf16.mxu1 %v5062_v50  ;;  %v5158_v50 = vld [vmem:[%s6812_s5 + $0x204] ss:$8 sps:$4 sm:$0xff]  }
 0x1a6   : > { %4854 = vmatmul.mubr.msk.bf16.vlgmr.msra.gmra.mrb[48].mxu1 %vm1635_vm1, %v2187_v46  ;;  %v5144_v46 = vld [vmem:[%s6812_s5 + $0x1e0] ss:$8 sps:$4 sm:$0xff]  }
 0x1a7   : > { %4838 = vmatpush3.bf16.msra.mxu0 %v5054_v6  ;;  %3291 = vmatpush1.bf16.msra.mxu1 %v5060_v28  ;;  %v5146_v6 = vld [vmem:[%s6812_s5 + $0x1e4] ss:$8 sps:$4 sm:$0xff]  }
 0x1a8   : > { %4839 = vmatprep.subr.bf16.mxu0 %v5446_v29 }
 0x1ab   : > { %4840 = vmatpush3.bf16.msra.mxu0 %v5055_v13  ;;  %v5149_v13 = vld [vmem:[%s6812_s5 + $0xe4] ss:$8 sps:$4 sm:$0xff]  }
 0x1ac   : > { %4857 = vmatprep.subr.bf16.mxu0 %v5446_v29 }
 0x1ae   : > { %4842 = vmatmul.mubr.msk.bf16.vlgmr.msra.gmra.mrb[72].mxu0 %vm1635_vm1, %v2099_v47  ;;  %v5152_v47 = vld [vmem:[%s6812_s5 + $0x1f4] ss:$8 sps:$4 sm:$0xff]  }
 0x1af   : > { %4858 = vmatpush3.bf16.msra.mxu0 %v5056_v15  ;;  %4865 = vmatprep.mubr.msk.bf16.mxu0 %vm5447_vm0, %v5446_v29  ;;  %v5147_v15 = vld [vmem:[%s6812_s5 + $0xe0] ss:$8 sps:$4 sm:$0xff]  }
 0x1b0   : > { %4859 = vmatprep.subr.bf16.mxu0 %v5446_v29 }
 0x1b3   : > { %4860 = vmatpush3.bf16.msra.mxu0 %v5057_v48  ;;  %v5150_v48 = vld [vmem:[%s6812_s5 + $0x1f0] ss:$8 sps:$4 sm:$0xff]  }
 0x1b4   : > { %4861 = vmatprep.subr.bf16.mxu0 %v5446_v29 }
 0x1b7   : > { %4862 = vmatpush3.bf16.msra.mxu0 %v5058_v49  ;;  %v5155_v49 = vld [vmem:[%s6812_s5 + $0xf4] ss:$8 sps:$4 sm:$0xff]  }
 0x1b8   : > { %4863 = vmatprep.subr.bf16.mxu0 %v5446_v29  ;;  %v5063_v29 = vld [vmem:[%s6812_s5] ss:$8 sps:$4 sm:$0xff]  }
 0x1bb   : > { %4864 = vmatpush3.bf16.msra.mxu0 %v5059_v8  ;;  %v5153_v8 = vld [vmem:[%s6812_s5 + $0xf0] ss:$8 sps:$4 sm:$0xff]  }
 0x1bc   : > { %3249 = vmatprep.subr.bf16.mxu0 %v5065_v52 }
 0x1be   : > { %4866 = vmatmul.mubr.msk.bf16.vlgmr.msra.gmra.mrb[76].mxu0 %vm1635_vm1, %v5954_v27  ;;  %v5068_v27 = vld [vmem:[%s6812_s5 + $0x114] ss:$8 sps:$4 sm:$0xff]  }
 0x1bf   : > { %3250 = vmatpush1.bf16.msra.mxu0 %v5063_v29  ;;  %3292 = vmatprep.subr.bf16.mxu1 %v5068_v27 }
 0x1c0   : > { %3251 = vmatprep.subr.bf16.mxu0 %v5071_v56  ;;  %3293 = vmatpush1.bf16.msra.mxu1 %v5066_v53 }
 0x1c1   : > { %3294 = vmatprep.subr.bf16.mxu1 %v5074_v59 }
 0x1c3   : > { %3252 = vmatpush1.bf16.msra.mxu0 %v5069_v57 }
 0x1c4   : > { %3253 = vmatprep.subr.bf16.mxu0 %v5077_v19  ;;  %3295 = vmatpush1.bf16.msra.mxu1 %v5072_v60 }
 0x1c5   : > { %3296 = vmatprep.subr.bf16.mxu1 %v5080_v62 }
 0x1c7   : > { %3254 = vmatpush1.bf16.msra.mxu0 %v5075_v30 }
 0x1c8   : > { %3255 = vmatprep.subr.bf16.mxu0 %v5083_v63  ;;  %3297 = vmatpush1.bf16.msra.mxu1 %v5078_v22 }
 0x1c9   : > { %3298 = vmatprep.subr.bf16.mxu1 %v5086_v2 }
 0x1cb   : > { %3256 = vmatpush1.bf16.msra.mxu0 %v5081_v1 }
 0x1cc   : > { %3257 = vmatprep.subr.bf16.mxu0 %v5089_v5  ;;  %3299 = vmatpush1.bf16.msra.mxu1 %v5084_v4 }
 0x1cd   : > { %3300 = vmatprep.subr.bf16.mxu1 %v5092_v9 }
 0x1cf   : > { %3258 = vmatpush1.bf16.msra.mxu0 %v5087_v36 }
 0x1d0   : > { %3259 = vmatprep.subr.bf16.mxu0 %v5095_v40  ;;  %3301 = vmatpush1.bf16.msra.mxu1 %v5090_v44 }
 0x1d1   : > { %3302 = vmatprep.subr.bf16.mxu1 %v5098_v11 }
 0x1d3   : > { %3260 = vmatpush1.bf16.msra.mxu0 %v5093_v10 }
 0x1d4   : > { %3261 = vmatprep.subr.bf16.mxu0 %v5101_v45  ;;  %3303 = vmatpush1.bf16.msra.mxu1 %v5096_v12 }
 0x1d5   : > { %3304 = vmatprep.subr.bf16.mxu1 %v5104_v16 }
 0x1d7   : > { %3262 = vmatpush1.bf16.msra.mxu0 %v5099_v14 }
 0x1d8   : > { %3263 = vmatprep.subr.bf16.mxu0 %v5107_v61  ;;  %3305 = vmatpush1.bf16.msra.mxu1 %v5102_v17 }
 0x1d9   : > { %3306 = vmatprep.subr.bf16.mxu1 %v5110_v18 }
 0x1db   : > { %3264 = vmatpush1.bf16.msra.mxu0 %v5105_v0 }
 0x1dc   : > { %3265 = vmatprep.subr.bf16.mxu0 %v5113_v21  ;;  %3307 = vmatpush1.bf16.msra.mxu1 %v5108_v20 }
 0x1dd   : > { %3308 = vmatprep.subr.bf16.mxu1 %v5116_v24 }
 0x1df   : > { %3266 = vmatpush1.bf16.msra.mxu0 %v5111_v23 }
 0x1e0   : > { %3267 = vmatprep.subr.bf16.mxu0 %v5119_v26  ;;  %3309 = vmatpush1.bf16.msra.mxu1 %v5114_v25 }
 0x1e1   : > { %3310 = vmatprep.subr.bf16.mxu1 %v5122_v58 }
 0x1e3   : > { %3268 = vmatpush1.bf16.msra.mxu0 %v5117_v55 }
 0x1e4   : > { %3269 = vmatprep.subr.bf16.mxu0 %v5125_v54  ;;  %3311 = vmatpush1.bf16.msra.mxu1 %v5120_v51 }
 0x1e5   : > { %3312 = vmatprep.subr.bf16.mxu1 %v5128_v32 }
 0x1e7   : > { %3270 = vmatpush1.bf16.msra.mxu0 %v5123_v31 }
 0x1e8   : > { %3271 = vmatprep.subr.bf16.mxu0 %v5131_v34  ;;  %3313 = vmatpush1.bf16.msra.mxu1 %v5126_v33 }
 0x1e9   : > { %3314 = vmatprep.subr.bf16.mxu1 %v5134_v37  ;;  %v4288_v37 = vld [vmem:[%s6811_s4] ss:$0 sm:$0xff] }
 0x1eb   : > { %3272 = vmatpush1.bf16.msra.mxu0 %v5129_v35 }
 0x1ec   : > { %3273 = vmatprep.subr.bf16.mxu0 %v5137_v39  ;;  %3315 = vmatpush1.bf16.msra.mxu1 %v5132_v7 }
 0x1ed   : > { %3316 = vmatprep.subr.bf16.mxu1 %v5140_v42 }
 0x1ef   : > { %3274 = vmatpush1.bf16.msra.mxu0 %v5135_v41 }
 0x1f0   : > { %3275 = vmatprep.subr.bf16.mxu0 %v5143_v3  ;;  %3317 = vmatpush1.bf16.msra.mxu1 %v5138_v43 }
 0x1f1   : > { %3318 = vmatprep.subr.bf16.mxu1 %v5146_v6 }
 0x1f3   : > { %3276 = vmatpush1.bf16.msra.mxu0 %v5141_v38 }
 0x1f4   : > { %3277 = vmatprep.subr.bf16.mxu0 %v5149_v13  ;;  %3319 = vmatpush1.bf16.msra.mxu1 %v5144_v46 }
 0x1f5   : > { %3320 = vmatprep.subr.bf16.mxu1 %v5152_v47 }
 0x1f7   : > { %3278 = vmatpush1.bf16.msra.mxu0 %v5147_v15 }
 0x1f8   : > { %3279 = vmatprep.subr.bf16.mxu0 %v5155_v49  ;;  %3321 = vmatpush1.bf16.msra.mxu1 %v5150_v48 }
 0x1f9   : > { %3331 = vmatprep.subr.bf16.mxu1 %v5158_v50 }
 0x1fb   : > { %3280 = vmatpush1.bf16.msra.mxu0 %v5153_v8  ;;  %v5156_v8 = vld [vmem:[%s6812_s5 + $0x200] ss:$8 sps:$4 sm:$0xff]  }
 0x245   : > { %v1741_v28 = vpop.f32.mrb[36].mxu1 }
 0x246   : > { %v4783_v52 = vpop.f32.mrb[37].mxu1 }
 0x247   : > { %v1744_v29 = vpop.f32.mrb[38].mxu1  ;;  %v5161_v52 = vld [vmem:[%s6812_s5 + $0x214] ss:$8 sps:$4 sm:$0xff]  }
 0x248   : > { %v4784_v27 = vpop.f32.mrb[39].mxu1 }
 0x249   : > { %v5159_v27 = vld [vmem:[%s6812_s5 + $0x210] ss:$8 sps:$4 sm:$0xff]  }
 0x251   : > { %v1673_v53 = vpop.f32.mrb[60].mxu0 }
 0x252   : > { %v1742_v56 = vadd.f32 %v1741_v28, %v1673_v53  ;;  %v4771_v57 = vpop.f32.mrb[61].mxu0  ;;  %v5164_v53 = vld [vmem:[%s6812_s5 + $0x224] ss:$8 sps:$4 sm:$0xff]  }
 0x253   : > { %v1676_v59 = vpop.f32.mrb[62].mxu0  ;;  %v5167_v57 = vld [vmem:[%s6812_s5 + $0x234] ss:$8 sps:$4 sm:$0xff]  }
 0x254   : > { %v1745_v60 = vadd.f32 %v1744_v29, %v1676_v59  ;;  %v4772_v19 = vpop.f32.mrb[63].mxu0  ;;  %v5165_v59 = vld [vmem:[%s6812_s5 + $0x230] ss:$8 sps:$4 sm:$0xff]  }
 0x255   : > { %v5168_v19 = vld [vmem:[%s6812_s5 + $0x240] ss:$8 sps:$4 sm:$0xff]  }
 0x259   : > { %v1909_v30 = vpop.f32.mrb[40].mxu1 }
 0x25a   : > { %v4807_v62 = vpop.f32.mrb[41].mxu1 }
 0x25b   : > { %v1912_v22 = vpop.f32.mrb[42].mxu1  ;;  %v5171_v62 = vld [vmem:[%s6812_s5 + $0x250] ss:$8 sps:$4 sm:$0xff]  }
 0x25c   : > { %v4808_v63 = vpop.f32.mrb[43].mxu1 }
 0x25d   : > { %v5174_v63 = vld [vmem:[%s6812_s5 + $0x260] ss:$8 sps:$4 sm:$0xff]  }
 0x261   : > { %v1821_v1 = vpop.f32.mrb[64].mxu0 }
 0x262   : > { %v1828_v2 = vadd.f32 %v1821_v1, %v1742_v56  ;;  %v4795_v4 = vpop.f32.mrb[65].mxu0  ;;  %v5162_v56 = vld [vmem:[%s6812_s5 + $0x220] ss:$8 sps:$4 sm:$0xff]   ;;  %v5179_v1 = vld [vmem:[%s6812_s5 + $0x274] ss:$8 sps:$4 sm:$0xff]  }
 0x263   : > { %v1824_v5 = vpop.f32.mrb[66].mxu0  ;;  %v5182_v4 = vld [vmem:[%s6812_s5 + $0x284] ss:$8 sps:$4 sm:$0xff]  }
 0x264   : > { %v1829_v36 = vadd.f32 %v1824_v5, %v1745_v60  ;;  %v4796_v9 = vpop.f32.mrb[67].mxu0  ;;  %v1916_v44 = vadd.f32 %v1909_v30, %v1828_v2  ;;  %v5170_v60 = vld [vmem:[%s6812_s5 + $0x244] ss:$8 sps:$4 sm:$0xff]   ;;  %v5173_v30 = vld [vmem:[%s6812_s5 + $0x254] ss:$8 sps:$4 sm:$0xff]  }
 0x265   : > { %v5177_v2 = vld [vmem:[%s6812_s5 + $0x270] ss:$8 sps:$4 sm:$0xff]   ;;  %v5180_v5 = vld [vmem:[%s6812_s5 + $0x280] ss:$8 sps:$4 sm:$0xff]  }
 0x266   : > { %v1917_v40 = vadd.f32 %v1912_v22, %v1829_v36  ;;  %v5176_v22 = vld [vmem:[%s6812_s5 + $0x264] ss:$8 sps:$4 sm:$0xff]   ;;  %v5185_v36 = vld [vmem:[%s6812_s5 + $0x294] ss:$8 sps:$4 sm:$0xff]   ;;  %v5183_v9 = vld [vmem:[%s6812_s5 + $0x290] ss:$8 sps:$4 sm:$0xff]  }
 0x269   : > { %v2079_v10 = vpop.f32.mrb[44].mxu1 }
 0x26a   : > { %v4831_v11 = vpop.f32.mrb[45].mxu1 }
 0x26b   : > { %v2082_v12 = vpop.f32.mrb[46].mxu1  ;;  %v5189_v11 = vld [vmem:[%s6812_s5 + $0x2b0] ss:$8 sps:$4 sm:$0xff]  }
 0x26c   : > { %v4832_v45 = vpop.f32.mrb[47].mxu1 }
 0x26d   : > { %v5192_v45 = vld [vmem:[%s6812_s5 + $0x2c0] ss:$8 sps:$4 sm:$0xff]  }
 0x271   : > { %v1991_v14 = vpop.f32.mrb[68].mxu0 }
 0x272   : > { %v1998_v16 = vadd.f32 %v1991_v14, %v1916_v44  ;;  %v4819_v17 = vpop.f32.mrb[69].mxu0  ;;  %v5188_v44 = vld [vmem:[%s6812_s5 + $0x2a4] ss:$8 sps:$4 sm:$0xff]   ;;  %v5197_v14 = vld [vmem:[%s6812_s5 + $0x2d4] ss:$8 sps:$4 sm:$0xff]  }
 0x273   : > { %v1994_v61 = vpop.f32.mrb[70].mxu0  ;;  %v5200_v17 = vld [vmem:[%s6812_s5 + $0x2e4] ss:$8 sps:$4 sm:$0xff]  }
 0x274   : > { %v1999_v0 = vadd.f32 %v1994_v61, %v1917_v40  ;;  %v4820_v18 = vpop.f32.mrb[71].mxu0  ;;  %v2086_v20 = vadd.f32 %v2079_v10, %v1998_v16  ;;  %v5186_v40 = vld [vmem:[%s6812_s5 + $0x2a0] ss:$8 sps:$4 sm:$0xff]   ;;  %v5191_v10 = vld [vmem:[%s6812_s5 + $0x2b4] ss:$8 sps:$4 sm:$0xff]  }
 0x275   : > { %v5195_v16 = vld [vmem:[%s6812_s5 + $0x2d0] ss:$8 sps:$4 sm:$0xff]   ;;  %v5198_v61 = vld [vmem:[%s6812_s5 + $0x2e0] ss:$8 sps:$4 sm:$0xff]  }
 0x276   : > { %v2087_v21 = vadd.f32 %v2082_v12, %v1999_v0  ;;  %v5194_v12 = vld [vmem:[%s6812_s5 + $0x2c4] ss:$8 sps:$4 sm:$0xff]   ;;  %v5203_v0 = vld [vmem:[%s6812_s5 + $0x2f4] ss:$8 sps:$4 sm:$0xff]   ;;  %v5201_v18 = vld [vmem:[%s6812_s5 + $0x2f0] ss:$8 sps:$4 sm:$0xff]  }
 0x279   : > { %v2249_v23 = vpop.f32.mrb[48].mxu1 }
 0x27a   : > { %v4855_v24 = vpop.f32.mrb[49].mxu1 }
 0x27b   : > { %v2252_v25 = vpop.f32.mrb[50].mxu1  ;;  %v5204_v24 = vld [vmem:[%s6812_s5 + $0x300] ss:$8 sps:$4 sm:$0xff]  }
 0x27c   : > { %v4856_v26 = vpop.f32.mrb[51].mxu1 }
 0x27d   : > { %v5209_v26 = vld [vmem:[%s6812_s5 + $0x314] ss:$8 sps:$4 sm:$0xff]  }
 0x281   : > { %v2161_v55 = vpop.f32.mrb[72].mxu0 }
 0x282   : > { %v2168_v58 = vadd.f32 %v2161_v55, %v2086_v20  ;;  %v4843_v51 = vpop.f32.mrb[73].mxu0 }
 0x283   : > { %v2164_v54 = vpop.f32.mrb[74].mxu0  ;;  %v5212_v51 = vld [vmem:[%s6812_s5 + $0x324] ss:$8 sps:$4 sm:$0xff]  }
 0x284   : > { %v2169_v31 = vadd.f32 %v2164_v54, %v2087_v21  ;;  %v4844_v32 = vpop.f32.mrb[75].mxu0  ;;  %v2256_v33 = vadd.f32 %v2249_v23, %v2168_v58  ;;  %v5206_v21 = vld [vmem:[%s6812_s5 + $0x304] ss:$8 sps:$4 sm:$0xff]   ;;  %v5207_v58 = vld [vmem:[%s6812_s5 + $0x310] ss:$8 sps:$4 sm:$0xff]  }
 0x285   : > { %v5210_v54 = vld [vmem:[%s6812_s5 + $0x320] ss:$8 sps:$4 sm:$0xff]   ;;  %v5213_v32 = vld [vmem:[%s6812_s5 + $0x330] ss:$8 sps:$4 sm:$0xff]  }
 0x286   : > { %v2257_v34 = vadd.f32 %v2252_v25, %v2169_v31  ;;  %v5215_v31 = vld [vmem:[%s6812_s5 + $0x334] ss:$8 sps:$4 sm:$0xff]  }
 0x291   : > { %v2329_v35 = vpop.f32.mrb[76].mxu0 }
 0x292   : > { %v2336_v39 = vadd.f32 %v2329_v35, %v2256_v33  ;;  %v4867_v7 = vpop.f32.mrb[77].mxu0  ;;  %v5218_v33 = vld [vmem:[%s6812_s5 + $0x344] ss:$8 sps:$4 sm:$0xff]   ;;  %v5221_v35 = vld [vmem:[%s6812_s5 + $0x354] ss:$8 sps:$4 sm:$0xff]  }
 0x293   : > { %v2332_v41 = vpop.f32.mrb[78].mxu0  ;;  %v5222_v7 = vld [vmem:[%s6812_s5 + $0x360] ss:$8 sps:$4 sm:$0xff]  }
 0x294   : > { %v2345_v42 = vadd.f32 %v4288_v37, %v2336_v39  ;;  %v2337_v43 = vadd.f32 %v2332_v41, %v2257_v34  ;;  %v4868_v3 = vpop.f32.mrb[79].mxu0  ;;  %v5216_v34 = vld [vmem:[%s6812_s5 + $0x340] ss:$8 sps:$4 sm:$0xff]   ;;  %v5224_v39 = vld [vmem:[%s6812_s5 + $0x364] ss:$8 sps:$4 sm:$0xff]  }
 0x295   : > { %v5227_v41 = vld [vmem:[%s6812_s5 + $0x374] ss:$8 sps:$4 sm:$0xff]  }
 0x296   : > { %v6302_v38 = vmax.f32 %v2345_v42, 0.0  ;;  %v6304_v6 = vadd.f32 %v4288_v37, %v2337_v43  ;;  %v5219_v37 = vld [vmem:[%s6812_s5 + $0x350] ss:$8 sps:$4 sm:$0xff]   ;;  %v5276_v42 = vld [vmem:[%s6814_s7] ss:$8 sps:$4 sm:$0xff]  }
 0x297   : > { %v5278_v43 = vld [vmem:[%s6814_s7 + $0x4] ss:$8 sps:$4 sm:$0xff]   ;;  %v5281_v3 = vld [vmem:[%s6814_s7 + $0x14] ss:$8 sps:$4 sm:$0xff]  }
 0x298   : > { %v2350_v46 = vrot.slane %v6302_v38, 1  ;;  %v2354_v13 = vrot.slane %v6302_v38, 3  ;;  %v2352_v15 = vrot.slane %v6302_v38, 2  ;;  %v2358_v47 = vrot.slane %v6302_v38, 5  ;;  %3662 = vmatprep.subr.bf16.mxu0 %v5278_v43 }
 0x299   : > { %v2364_v50 = vpack.c.bf16 %v6302_v38, %v6302_v38  ;;  %v2356_v20 = vrot.slane %v6302_v38, 4  ;;  %v2362_v23 = vrot.slane %v6302_v38, 7  ;;  %v2348_v43 = vmax.f32 %v6304_v6, 0.0  ;;  %v5323_v6 = vld [vmem:[%s6814_s7 + $0xf4] ss:$8 sps:$4 sm:$0xff]  }
 0x29a   : > { %v2365_v48 = vpack.c.bf16 %v2350_v46, %v2350_v46  ;;  %v2367_v49 = vpack.c.bf16 %v2354_v13, %v2354_v13  ;;  %v2366_v28 = vpack.c.bf16 %v2352_v15, %v2352_v15  ;;  %v2369_v29 = vpack.c.bf16 %v2358_v47, %v2358_v47  ;;  %v5225_v46 = vld [vmem:[%s6812_s5 + $0x370] ss:$8 sps:$4 sm:$0xff]   ;;  %v5230_v15 = vld [vmem:[%s6812_s5 + $0x384] ss:$8 sps:$4 sm:$0xff]  }
 0x29b   : > { %v2368_v25 = vpack.c.bf16 %v2356_v20, %v2356_v20  ;;  %v2371_v55 = vpack.c.bf16 %v2362_v23, %v2362_v23  ;;  %v5279_v13 = vld [vmem:[%s6814_s7 + $0x10] ss:$8 sps:$4 sm:$0xff]   ;;  %v5284_v47 = vld [vmem:[%s6814_s7 + $0x24] ss:$8 sps:$4 sm:$0xff]   ;;  %v5311_v20 = vld [vmem:[%s6814_s7 + $0xb4] ss:$8 sps:$4 sm:$0xff]  }
 0x29c   : > { %3281 = vmatprep.mubr.bf16.mxu0 %v2365_v48  ;;  %3322 = vmatprep.mubr.bf16.mxu1 %v2367_v49  ;;  %v5228_v48 = vld [vmem:[%s6812_s5 + $0x380] ss:$8 sps:$4 sm:$0xff]   ;;  %v5448_v23 = vmov 0  }
 0x29d   : > { %3282 = vmatmul.mubr.bf16.vlgmr.msra.gmra.mrb[80].mxu0 %v2364_v50  ;;  %3323 = vmatmul.mubr.bf16.vlgmr.msra.gmra.mrb[52].mxu1 %v2366_v28  ;;  %v5282_v49 = vld [vmem:[%s6814_s7 + $0x20] ss:$8 sps:$4 sm:$0xff]   ;;  %v5287_v50 = vld [vmem:[%s6814_s7 + $0x34] ss:$8 sps:$4 sm:$0xff]   ;;  %v5231_v28 = vld [vmem:[%s6812_s5 + $0x390] ss:$8 sps:$4 sm:$0xff]  }
 0x29e   : > { %3332 = vmatpush1.bf16.msra.mxu1 %v5156_v8  ;;  %3363 = vmatprep.mubr.bf16.mxu1 %v2369_v29  ;;  %v5233_v8 = vld [vmem:[%s6812_s5 + $0x394] ss:$8 sps:$4 sm:$0xff]   ;;  %v5236_v29 = vld [vmem:[%s6812_s5 + $0x3a4] ss:$8 sps:$4 sm:$0xff]  }
 0x29f   : > { %3333 = vmatprep.subr.bf16.mxu1 %v5161_v52  ;;  %3663 = vmatpush1.bf16.msra.mxu0 %v5276_v42  ;;  %v5285_v52 = vld [vmem:[%s6814_s7 + $0x30] ss:$8 sps:$4 sm:$0xff]  }
 0x2a0   : > { %3664 = vmatprep.subr.bf16.mxu0 %v5281_v3  ;;  %v5273_v42 = vld [vmem:[%s6812_s5 + $0x470] ss:$8 sps:$4 sm:$0xff]   ;;  %v2372_v3 = vpack.c.bf16 %v2348_v43, %v2348_v43 }
 0x2a2   : > { %3334 = vmatpush1.bf16.msra.mxu1 %v5159_v27  ;;  %v5290_v27 = vld [vmem:[%s6814_s7 + $0x44] ss:$8 sps:$4 sm:$0xff]  }
 0x2a3   : > { %3335 = vmatprep.subr.bf16.mxu1 %v5164_v53  ;;  %3665 = vmatpush1.bf16.msra.mxu0 %v5279_v13  ;;  %v5234_v53 = vld [vmem:[%s6812_s5 + $0x3a0] ss:$8 sps:$4 sm:$0xff]  }
 0x2a4   : > { %3666 = vmatprep.subr.bf16.mxu0 %v5284_v47 }
 0x2a6   : > { %3336 = vmatpush1.bf16.msra.mxu1 %v5162_v56  ;;  %v5288_v56 = vld [vmem:[%s6814_s7 + $0x40] ss:$8 sps:$4 sm:$0xff]  }
 0x2a7   : > { %3337 = vmatprep.subr.bf16.mxu1 %v5167_v57  ;;  %3667 = vmatpush1.bf16.msra.mxu0 %v5282_v49  ;;  %v5239_v57 = vld [vmem:[%s6812_s5 + $0x3b4] ss:$8 sps:$4 sm:$0xff]   ;;  %v5318_v49 = vld [vmem:[%s6814_s7 + $0xe0] ss:$8 sps:$4 sm:$0xff]  }
 0x2a8   : > { %3668 = vmatprep.subr.bf16.mxu0 %v5287_v50  ;;  %v5324_v50 = vld [vmem:[%s6816_s9 + $0x40] sm:$0xff]  }
 0x2aa   : > { %3338 = vmatpush1.bf16.msra.mxu1 %v5165_v59  ;;  %v5293_v59 = vld [vmem:[%s6814_s7 + $0x54] ss:$8 sps:$4 sm:$0xff]  }
 0x2ab   : > { %3339 = vmatprep.subr.bf16.mxu1 %v5170_v60  ;;  %3669 = vmatpush1.bf16.msra.mxu0 %v5285_v52  ;;  %v5237_v60 = vld [vmem:[%s6812_s5 + $0x3b0] ss:$8 sps:$4 sm:$0xff]  }
 0x2ac   : > { %3670 = vmatprep.subr.bf16.mxu0 %v5290_v27  ;;  %v2517_v27 = vld [vmem:[%s6813_s6] sm:$0x3] }
 0x2ae   : > { %3340 = vmatpush1.bf16.msra.mxu1 %v5168_v19  ;;  %v5291_v19 = vld [vmem:[%s6814_s7 + $0x50] ss:$8 sps:$4 sm:$0xff]  }
 0x2af   : > { %3341 = vmatprep.subr.bf16.mxu1 %v5173_v30  ;;  %3671 = vmatpush1.bf16.msra.mxu0 %v5288_v56  ;;  %v5242_v30 = vld [vmem:[%s6812_s5 + $0x3c4] ss:$8 sps:$4 sm:$0xff]  }
 0x2b0   : > { %3672 = vmatprep.subr.bf16.mxu0 %v5293_v59 }
 0x2b2   : > { %3342 = vmatpush1.bf16.msra.mxu1 %v5171_v62  ;;  %v5296_v62 = vld [vmem:[%s6814_s7 + $0x64] ss:$8 sps:$4 sm:$0xff]  }
 0x2b3   : > { %3343 = vmatprep.subr.bf16.mxu1 %v5176_v22  ;;  %v5240_v22 = vld [vmem:[%s6812_s5 + $0x3c0] ss:$8 sps:$4 sm:$0xff]   ;;  %3673 = vmatpush1.bf16.msra.mxu0 %v5291_v19 }
 0x2b4   : > { %3674 = vmatprep.subr.bf16.mxu0 %v5296_v62 }
 0x2b6   : > { %3344 = vmatpush1.bf16.msra.mxu1 %v5174_v63  ;;  %v5294_v63 = vld [vmem:[%s6814_s7 + $0x60] ss:$8 sps:$4 sm:$0xff]  }
 0x2b7   : > { %3345 = vmatprep.subr.bf16.mxu1 %v5179_v1  ;;  %v5245_v1 = vld [vmem:[%s6812_s5 + $0x3d4] ss:$8 sps:$4 sm:$0xff]   ;;  %3675 = vmatpush1.bf16.msra.mxu0 %v5294_v63 }
 0x2ba   : > { %3346 = vmatpush1.bf16.msra.mxu1 %v5177_v2  ;;  %v5299_v2 = vld [vmem:[%s6814_s7 + $0x74] ss:$8 sps:$4 sm:$0xff]  }
 0x2bb   : > { %3347 = vmatprep.subr.bf16.mxu1 %v5182_v4  ;;  %v5243_v4 = vld [vmem:[%s6812_s5 + $0x3d0] ss:$8 sps:$4 sm:$0xff]   ;;  %3676 = vmatprep.subr.bf16.mxu0 %v5299_v2 }
 0x2be   : > { %3348 = vmatpush1.bf16.msra.mxu1 %v5180_v5  ;;  %v5297_v5 = vld [vmem:[%s6814_s7 + $0x70] ss:$8 sps:$4 sm:$0xff]  }
 0x2bf   : > { %3349 = vmatprep.subr.bf16.mxu1 %v5185_v36  ;;  %v5248_v36 = vld [vmem:[%s6812_s5 + $0x3e4] ss:$8 sps:$4 sm:$0xff]   ;;  %3677 = vmatpush1.bf16.msra.mxu0 %v5297_v5 }
 0x2c2   : > { %3350 = vmatpush1.bf16.msra.mxu1 %v5183_v9  ;;  %v5302_v9 = vld [vmem:[%s6814_s7 + $0x84] ss:$8 sps:$4 sm:$0xff]  }
 0x2c3   : > { %3351 = vmatprep.subr.bf16.mxu1 %v5188_v44  ;;  %v5246_v44 = vld [vmem:[%s6812_s5 + $0x3e0] ss:$8 sps:$4 sm:$0xff]   ;;  %3678 = vmatprep.subr.bf16.mxu0 %v5302_v9 }
 0x2c6   : > { %3352 = vmatpush1.bf16.msra.mxu1 %v5186_v40  ;;  %v5300_v40 = vld [vmem:[%s6814_s7 + $0x80] ss:$8 sps:$4 sm:$0xff]  }
 0x2c7   : > { %3353 = vmatprep.subr.bf16.mxu1 %v5191_v10  ;;  %v5251_v10 = vld [vmem:[%s6812_s5 + $0x3f4] ss:$8 sps:$4 sm:$0xff]   ;;  %3679 = vmatpush1.bf16.msra.mxu0 %v5300_v40  ;;  %v5327_v40 = vld [vmem:[%s6816_s9 + $0x8] sm:$0xff]  }
 0x2ca   : > { %3354 = vmatpush1.bf16.msra.mxu1 %v5189_v11  ;;  %v5305_v11 = vld [vmem:[%s6814_s7 + $0x94] ss:$8 sps:$4 sm:$0xff]  }
 0x2cb   : > { %3355 = vmatprep.subr.bf16.mxu1 %v5194_v12  ;;  %v5249_v12 = vld [vmem:[%s6812_s5 + $0x3f0] ss:$8 sps:$4 sm:$0xff]   ;;  %3680 = vmatprep.subr.bf16.mxu0 %v5305_v11 }
 0x2cc   : > { %v5329_v11 = vld [vmem:[%s6816_s9 + $0x10] sm:$0xff]  }
 0x2ce   : > { %3356 = vmatpush1.bf16.msra.mxu1 %v5192_v45  ;;  %v5303_v45 = vld [vmem:[%s6814_s7 + $0x90] ss:$8 sps:$4 sm:$0xff]  }
 0x2cf   : > { %3357 = vmatprep.subr.bf16.mxu1 %v5197_v14  ;;  %v2360_v14 = vrot.slane %v6302_v38, 6  ;;  %3681 = vmatpush1.bf16.msra.mxu0 %v5303_v45  ;;  %v5257_v38 = vld [vmem:[%s6812_s5 + $0x414] ss:$8 sps:$4 sm:$0xff]  }
 0x2d0   : > { %v5331_v45 = vld [vmem:[%s6816_s9 + $0x18] sm:$0xff]  }
 0x2d2   : > { %3358 = vmatpush1.bf16.msra.mxu1 %v5195_v16  ;;  %v5254_v16 = vld [vmem:[%s6812_s5 + $0x404] ss:$8 sps:$4 sm:$0xff]  }
 0x2d3   : > { %3359 = vmatprep.subr.bf16.mxu1 %v5200_v17  ;;  %v5308_v17 = vld [vmem:[%s6814_s7 + $0xa4] ss:$8 sps:$4 sm:$0xff]  }
 0x2d4   : > { %3682 = vmatprep.subr.bf16.mxu0 %v5308_v17  ;;  %v5334_v17 = vld [vmem:[%s6816_s9 + $0x68] sm:$0xff]  }
 0x2d6   : > { %3360 = vmatpush1.bf16.msra.mxu1 %v5198_v61  ;;  %v5252_v61 = vld [vmem:[%s6812_s5 + $0x400] ss:$8 sps:$4 sm:$0xff]  }
 0x2d7   : > { %3361 = vmatprep.subr.bf16.mxu1 %v5203_v0  ;;  %v2370_v0 = vpack.c.bf16 %v2360_v14, %v2360_v14  ;;  %v5332_v14 = vld [vmem:[%s6816_s9 + $0x60] sm:$0xff]  }
 0x2da   : > { %3362 = vmatpush1.bf16.msra.mxu1 %v5201_v18  ;;  %v5306_v18 = vld [vmem:[%s6814_s7 + $0xa0] ss:$8 sps:$4 sm:$0xff]  }
 0x2db   : > { %3372 = vmatprep.subr.bf16.mxu1 %v5206_v21  ;;  %v5255_v21 = vld [vmem:[%s6812_s5 + $0x410] ss:$8 sps:$4 sm:$0xff]   ;;  %3683 = vmatpush1.bf16.msra.mxu0 %v5306_v18 }
 0x2dc   : > { %3684 = vmatprep.subr.bf16.mxu0 %v5311_v20  ;;  %v5338_v18 = vld [vmem:[%s6816_s9 + $0x78] sm:$0xff]  }
 0x2dd   : > { %3364 = vmatmul.mubr.bf16.vlgmr.msra.gmra.mrb[52].mxu1 %v2368_v25  ;;  %v5309_v25 = vld [vmem:[%s6814_s7 + $0xb0] ss:$8 sps:$4 sm:$0xff]  }
 0x2de   : > { %3373 = vmatpush1.bf16.msra.mxu1 %v5204_v24  ;;  %3404 = vmatprep.mubr.bf16.mxu1 %v2371_v55  ;;  %v5260_v24 = vld [vmem:[%s6812_s5 + $0x424] ss:$8 sps:$4 sm:$0xff]   ;;  %v5258_v55 = vld [vmem:[%s6812_s5 + $0x420] ss:$8 sps:$4 sm:$0xff]   ;;  %v5339_v20 = vld [vmem:[%s6816_s9 + $0x38] sm:$0xff]  }
 0x2df   : > { %3374 = vmatprep.subr.bf16.mxu1 %v5209_v26  ;;  %v5314_v26 = vld [vmem:[%s6814_s7 + $0xc4] ss:$8 sps:$4 sm:$0xff]   ;;  %3685 = vmatpush1.bf16.msra.mxu0 %v5309_v25 }
 0x2e0   : > { %3686 = vmatprep.subr.bf16.mxu0 %v5314_v26 }
 0x2e2   : > { %3375 = vmatpush1.bf16.msra.mxu1 %v5207_v58  ;;  %v5263_v58 = vld [vmem:[%s6812_s5 + $0x434] ss:$8 sps:$4 sm:$0xff]  }
 0x2e3   : > { %3376 = vmatprep.subr.bf16.mxu1 %v5212_v51  ;;  %v5312_v51 = vld [vmem:[%s6814_s7 + $0xc0] ss:$8 sps:$4 sm:$0xff]  }
 0x2e4   : > { %3687 = vmatpush1.bf16.msra.mxu0 %v5312_v51 }
 0x2e6   : > { %3377 = vmatpush1.bf16.msra.mxu1 %v5210_v54  ;;  %v5317_v54 = vld [vmem:[%s6814_s7 + $0xd4] ss:$8 sps:$4 sm:$0xff]  }
 0x2e7   : > { %3378 = vmatprep.subr.bf16.mxu1 %v5215_v31  ;;  %v5261_v31 = vld [vmem:[%s6812_s5 + $0x430] ss:$8 sps:$4 sm:$0xff]   ;;  %3688 = vmatprep.subr.bf16.mxu0 %v5317_v54 }
 0x2ea   : > { %3379 = vmatpush1.bf16.msra.mxu1 %v5213_v32  ;;  %v5266_v32 = vld [vmem:[%s6812_s5 + $0x444] ss:$8 sps:$4 sm:$0xff]  }
 0x2eb   : > { %3380 = vmatprep.subr.bf16.mxu1 %v5218_v33  ;;  %v5315_v33 = vld [vmem:[%s6814_s7 + $0xd0] ss:$8 sps:$4 sm:$0xff]  }
 0x2ec   : > { %3689 = vmatpush1.bf16.msra.mxu0 %v5315_v33 }
 0x2ee   : > { %3381 = vmatpush1.bf16.msra.mxu1 %v5216_v34  ;;  %v5264_v34 = vld [vmem:[%s6812_s5 + $0x440] ss:$8 sps:$4 sm:$0xff]  }
 0x2ef   : > { %3382 = vmatprep.subr.bf16.mxu1 %v5221_v35  ;;  %v5269_v35 = vld [vmem:[%s6812_s5 + $0x454] ss:$8 sps:$4 sm:$0xff]  }
 0x2f2   : > { %3383 = vmatpush1.bf16.msra.mxu1 %v5219_v37  ;;  %v5267_v37 = vld [vmem:[%s6812_s5 + $0x450] ss:$8 sps:$4 sm:$0xff]  }
 0x2f3   : > { %3384 = vmatprep.subr.bf16.mxu1 %v5224_v39  ;;  %v5272_v39 = vld [vmem:[%s6812_s5 + $0x464] ss:$8 sps:$4 sm:$0xff]  }
 0x2f6   : > { %3385 = vmatpush1.bf16.msra.mxu1 %v5222_v7  ;;  %v5270_v7 = vld [vmem:[%s6812_s5 + $0x460] ss:$8 sps:$4 sm:$0xff]  }
 0x2f7   : > { %3386 = vmatprep.subr.bf16.mxu1 %v5227_v41  ;;  %v5275_v41 = vld [vmem:[%s6812_s5 + $0x474] ss:$8 sps:$4 sm:$0xff]  }
 0x2fa   : > { %3387 = vmatpush1.bf16.msra.mxu1 %v5225_v46 }
 0x2fb   : > { %3388 = vmatprep.subr.bf16.mxu1 %v5230_v15 }
 0x2fe   : > { %3389 = vmatpush1.bf16.msra.mxu1 %v5228_v48  ;;  %v5320_v48 = vld [vmem:[%s6814_s7 + $0xe4] ss:$8 sps:$4 sm:$0xff]  }
 0x2ff   : > { %3390 = vmatprep.subr.bf16.mxu1 %v5233_v8  ;;  %3690 = vmatprep.subr.bf16.mxu0 %v5320_v48  ;;  %v5321_v8 = vld [vmem:[%s6814_s7 + $0xf0] ss:$8 sps:$4 sm:$0xff]  }
 0x300   : > { %3691 = vmatpush1.bf16.msra.mxu0 %v5318_v49 }
 0x301   : > { %3692 = vmatprep.subr.bf16.mxu0 %v5323_v6 }
 0x302   : > { %3391 = vmatpush1.bf16.msra.mxu1 %v5231_v28  ;;  %v3239_v28 = vlaneseq }
 0x303   : > { %3392 = vmatprep.subr.bf16.mxu1 %v5236_v29 }
 0x304   : > { %3693 = vmatpush1.bf16.msra.mxu0 %v5321_v8  ;;  %v6652_v52 = vshrl.u32 %v3239_v28, 7 }
 0x305   : > { %4739 = vmatprep.subr.bf16.mxu0 %v5324_v50 }
 0x306   : > { %3393 = vmatpush1.bf16.msra.mxu1 %v5234_v53  ;;  %v3241_v29 = vsub.s32 0, %v6652_v52  ;;  %v3245_v53 = vsub.s32 1, %v6652_v52 }
 0x307   : > { %3394 = vmatprep.subr.bf16.mxu1 %v5239_v57 }
 0x308   : > { %v3242_v56 = vrot.slane %v2517_v27, %v3241_v29  ;;  %v3246_v57 = vrot.slane %v2517_v27, %v3245_v53 }
 0x30a   : > { %3395 = vmatpush1.bf16.msra.mxu1 %v5237_v60 }
 0x30b   : > { %3396 = vmatprep.subr.bf16.mxu1 %v5242_v30 }
 0x30e   : > { %3397 = vmatpush1.bf16.msra.mxu1 %v5240_v22 }
 0x30f   : > { %3398 = vmatprep.subr.bf16.mxu1 %v5245_v1 }
 0x312   : > { %3399 = vmatpush1.bf16.msra.mxu1 %v5243_v4 }
 0x313   : > { %3400 = vmatprep.subr.bf16.mxu1 %v5248_v36  ;;  %v5325_v36 = vld [vmem:[%s6816_s9] sm:$0xff]  }
 0x316   : > { %3401 = vmatpush1.bf16.msra.mxu1 %v5246_v44  ;;  %v5326_v44 = vld [vmem:[%s6816_s9 + $0x48] sm:$0xff]  }
 0x317   : > { %3402 = vmatprep.subr.bf16.mxu1 %v5251_v10  ;;  %v5328_v10 = vld [vmem:[%s6816_s9 + $0x50] sm:$0xff]  }
 0x31a   : > { %3403 = vmatpush1.bf16.msra.mxu1 %v5249_v12  ;;  %v5330_v12 = vld [vmem:[%s6816_s9 + $0x58] sm:$0xff]  }
 0x31b   : > { %3413 = vmatprep.subr.bf16.mxu1 %v5254_v16  ;;  %v5333_v16 = vld [vmem:[%s6816_s9 + $0x20] sm:$0xff]  }
 0x31d   : > { %3405 = vmatmul.mubr.bf16.vlgmr.msra.gmra.mrb[52].mxu1 %v2370_v0  ;;  %v5336_v0 = vld [vmem:[%s6816_s9 + $0x70] sm:$0xff]  }
 0x31e   : > { %3414 = vmatpush1.bf16.msra.mxu1 %v5252_v61  ;;  %3445 = vmatprep.mubr.bf16.mxu1 %v5448_v23  ;;  %v5335_v61 = vld [vmem:[%s6816_s9 + $0x28] sm:$0xff]  }
 0x31f   : > { %3415 = vmatprep.subr.bf16.mxu1 %v5257_v38  ;;  %v5337_v38 = vld [vmem:[%s6816_s9 + $0x30] sm:$0xff]  }
 0x322   : > { %3416 = vmatpush1.bf16.msra.mxu1 %v5255_v21  ;;  %v6708_v21 = vld [vmem:[%s461_s14] sm:$0x1] }
 0x323   : > { %3417 = vmatprep.subr.bf16.mxu1 %v5260_v24  ;;  %v3895_v23 = vrot.slane %v6708_v21, %v3241_v29  ;;  %v3490_v24 = vld [vmem:[%s6815_s8] sm:$0x3] }
 0x324   : > { %v3655_v25 = vrot.slane %v3490_v24, %v3241_v29  ;;  %v3659_v26 = vrot.slane %v3490_v24, %v3245_v53 }
 0x325   : > { %3896 = vrot.lane.b32.xlu0 %v3895_v23, %s5449_s30  ;;  %s6728_s30 = scalar_lea.hbm %s6819_s12, %s6825_s17 }
 0x326   : > { %3418 = vmatpush1.bf16.msra.mxu1 %v5258_v55 }
 0x327   : > { %3419 = vmatprep.subr.bf16.mxu1 %v5263_v58 }
 0x32a   : > { %3420 = vmatpush1.bf16.msra.mxu1 %v5261_v31 }
 0x32b   : > { %3421 = vmatprep.subr.bf16.mxu1 %v5266_v32 }
 0x32e   : > { %3422 = vmatpush1.bf16.msra.mxu1 %v5264_v34 }
 0x32f   : > { %3423 = vmatprep.subr.bf16.mxu1 %v5269_v35 }
 0x332   : > { %3424 = vmatpush1.bf16.msra.mxu1 %v5267_v37 }
 0x333   : > { %3425 = vmatprep.subr.bf16.mxu1 %v5272_v39 }
 0x336   : > { %3426 = vmatpush1.bf16.msra.mxu1 %v5270_v7  ;;  %v3739_v7 = vld [vmem:[%s6817_s10] sm:$0x1] }
 0x337   : > { %3427 = vmatprep.subr.bf16.mxu1 %v5275_v41 }
 0x33a   : > { %3428 = vmatpush1.bf16.msra.mxu1 %v5273_v42 }
 0x33d   : > { %3446 = vmatmul.mubr.bf16.vlgmr.msra.gmra.mrb[52].mxu1 %v2372_v3 }
 0x370   : > { %v3283_v46 = vpop.f32.mrb[80].mxu0 }
 0x371   : > { %v3285_v13 = vpop.f32.mrb[81].mxu0  ;;  %v3284_v59 = vadd.f32 %v3283_v46, %v3242_v56 }
 0x372   : > { %v3287_v15 = vpop.f32.mrb[82].mxu0  ;;  %v3286_v60 = vadd.f32 %v3285_v13, %v3246_v57 }
 0x373   : > { %v3288_v47 = vpop.f32.mrb[83].mxu0 }
 0x397   : > { %v3897_v27 = vpop.permute.xlu0 %3896 }
 0x410   : > { %v3447_v19 = vpop.f32.mrb[52].mxu1 }
 0x411   : > { %v4886_v30 = vadd.f32 %v3447_v19, %v3284_v59  ;;  %v3449_v62 = vpop.f32.mrb[53].mxu1  ;;  %v5450_v59 = vmov 1966171168  }
 0x412   : > { %v4888_v22 = vadd.f32 %v3449_v62, %v3286_v60  ;;  %v3451_v63 = vpop.f32.mrb[54].mxu1  ;;  %v3911_v60 = vunpack.c.l.s4 %v5450_v59 }
 0x413   : > { %v3454_v1 = vmax.f32 %v4886_v30, 0.0  ;;  %v3452_v2 = vpop.f32.mrb[55].mxu1 }
 0x414   : > { %v3455_v4 = vmax.f32 %v4888_v22, 0.0  ;;  %v3912_v19 = vunpack.c.0.s8 %v3911_v60 }
 0x415   : > { %v3456_v9 = vpack.c.bf16 %v3454_v1, %v3454_v1 }
 0x416   : > { %v3457_v5 = vpack.c.bf16 %v3455_v4, %v3455_v4  ;;  %v3915_v30 = vsub.s32 %v3912_v19, %v6652_v52 }
 0x418   : > { %3694 = vmatprep.mubr.bf16.mxu0 %v3457_v5 }
 0x419   : > { %3695 = vmatmul.mubr.bf16.vlgmr.msra.gmra.mrb[84].mxu0 %v3456_v9 }
 0x41a   : > { %4740 = vmatpush3.bf16.msra.mxu0 %v5325_v36 }
 0x41b   : > { %4741 = vmatprep.subr.bf16.mxu0 %v5326_v44 }
 0x41e   : > { %4742 = vmatpush3.bf16.msra.mxu0 %v5327_v40 }
 0x41f   : > { %4743 = vmatprep.subr.bf16.mxu0 %v5328_v10 }
 0x422   : > { %4744 = vmatpush3.bf16.msra.mxu0 %v5329_v11 }
 0x423   : > { %4745 = vmatprep.subr.bf16.mxu0 %v5330_v12 }
 0x426   : > { %4746 = vmatpush3.bf16.msra.mxu0 %v5331_v45 }
 0x427   : > { %4747 = vmatprep.subr.bf16.mxu0 %v5332_v14 }
 0x42a   : > { %4748 = vmatpush3.bf16.msra.mxu0 %v5333_v16 }
 0x42b   : > { %4749 = vmatprep.subr.bf16.mxu0 %v5334_v17 }
 0x42e   : > { %4750 = vmatpush3.bf16.msra.mxu0 %v5335_v61 }
 0x42f   : > { %4751 = vmatprep.subr.bf16.mxu0 %v5336_v0 }
 0x432   : > { %4752 = vmatpush3.bf16.msra.mxu0 %v5337_v38 }
 0x433   : > { %4753 = vmatprep.subr.bf16.mxu0 %v5338_v18 }
 0x436   : > { %4754 = vmatpush3.bf16.msra.mxu0 %v5339_v20 }
 0x4ec   : > { %v3696_v55 = vpop.f32.mrb[84].mxu0 }
 0x4ed   : > { %v3697_v58 = vadd.f32 %v3696_v55, %v3655_v25  ;;  %v3698_v51 = vpop.f32.mrb[85].mxu0 }
 0x4ee   : > { %v3699_v54 = vadd.f32 %v3698_v51, %v3659_v26  ;;  %v3700_v31 = vpop.f32.mrb[86].mxu0 }
 0x4ef   : > { %v3703_v32 = vmax.f32 %v3697_v58, 0.0  ;;  %v3701_v33 = vpop.f32.mrb[87].mxu0 }
 0x4f0   : > { %v3704_v34 = vmax.f32 %v3699_v54, 0.0 }
 0x4f1   : > { %v3705_v37 = vpack.c.bf16 %v3703_v32, %v3703_v32 }
 0x4f2   : > { %v3706_v35 = vpack.c.bf16 %v3704_v34, %v3704_v34 }
 0x4f4   : > { %3868 = vmatprep.mubr.bf16.mxu0 %v3706_v35 }
 0x4f5   : > { %3869 = vmatmul.mubr.bf16.vlgmr.msra.gmra.mrb[88].mxu0 %v3705_v37 }
 0x5c8   : > { %v4755_v39 = vpop.f32.mrb[88].mxu0 }
 0x5c9   : > { %v4756_v41 = vpop.f32.mrb[89].mxu0 }
 0x5ca   : > { %v4757_v42 = vadd.f32 %v4756_v41, %v4755_v39  ;;  %v4758_v43 = vpop.f32.mrb[90].mxu0 }
 0x5cb   : > { %v4759_v3 = vpop.f32.mrb[91].mxu0 }
 0x5cc   : > { %v3871_v46 = vadd.f32 %v4757_v42, %v3739_v7 }
 0x5ce   : > { %v3877_v13 = vmin.f32 %v3871_v46, 20.0  ;;  %vm3876_vm3 = vcmp.gt.f32.partialorder %v3871_v46, 20.0 }
 0x5d0   : > { %v3878_v15 = vmul.f32 1.442695, %v3877_v13 }
 0x5d2   : > { %5340 = vpow2.f32 %v3878_v15 }
 0x5dc   : > { %v5341_v47 = vpop.eup %5340 }
 0x5dd   : > { %v3880_v48 = vadd.f32 1.0, %v5341_v47  ;;  %v3883_v49 = vmul.f32 -0.5, %v5341_v47  ;;  %v3886_v8 = vand.u32 2147483647, %v5341_v47 }
 0x5df   : > { %5342 = vlog2.f32 %v3880_v48  ;;  %v3884_v6 = vadd.f32 1.0, %v3883_v49  ;;  %vm3887_vm2 = vcmp.lt.f32.partialorder %v3886_v8, 0.0004427343 }
 0x5e1   : > { %v3885_v29 = vmul.f32 %v5341_v47, %v3884_v6 }
 0x5e9   : > { %v5343_v50 = vpop.eup %5342 }
 0x5ea   : > { %v3882_v28 = vmul.f32 0.6931472, %v5343_v50 }
 0x5ec   : > { %v3888_v53 = vsel %vm3887_vm2, %v3885_v29, %v3882_v28 }
 0x5ed   : > { %v3889_v56 = vsel %vm3876_vm3, %v3871_v46, %v3888_v53 }
 0x5ee   : > { %v3899_v57 = vmul.f32 %v3897_v27, %v3889_v56  ;;  %5344 = vlog2.f32 %v3889_v56 }
 0x5f0   : > { %3901 = vrot.lane.b32.xlu0 %v3899_v57, %s5451_s16 }
 0x5f8   : > { %v5345_v62 = vpop.eup %5344 }
 0x5f9   : > { %v3908_v22 = vmul.f32 0.6931472, %v5345_v62 }
 0x5fb   : > { %v3916_v63 = vrot.slane %v3908_v22, %v3915_v30 }
 0x5fd   : > { %v3923_v1 = vrot.slane %v3916_v63, %v3915_v30 }
 0x5ff   : > { %3924 = vrot.lane.b32.xlu1 %v3923_v1, %s5451_s16  ;;  %s5356_s16 = scalar_lea.vmem %s5355_s21, 32 }
 0x600   : > { %p5358_p1 = scmp.lt.s32.totalorder %s5356_s16, %s5350_s19 }
 0x602   : > { %p5359_p2 = por %p5358_p1, %p5357_p0 }
 0x604   : > { %p5360_p3 = pnand %p5359_p2, %p5353_p13 }
 0x662   : > { %v3902_v2 = vpop.permute.xlu0 %3901 }
 0x663   : > { %v3904_v4 = vadd.f32 %v3902_v2, %v3871_v46 }
 0x665   : > { %5346 = vtanh.f32 %v3904_v4 }
 0x66f   : > { %v5347_v52 = vpop.eup %5346 }
 0x670   : > { %v3930_v5 = vmul.f32 %v5347_v52, %v5347_v52  ;;  %3937 = vst.msk [vmem:[%s447_s20] sm:$0x1] %vm3936_vm4, %v5347_v52 }
 0x671   : > { %5363 = shalt.err (!%p5360_p3)
}
 0x672   : > { %s5364_s20 = scalar_lea.hbm %s6728_s30, 16  ;;  %s5368_s22 = scalar_lea.hbm %s6819_s12, 32 }
 0x673   : > { %p5365_p4 = scmp.ne.s32.totalorder %s6728_s30, %s5364_s20  ;;  %p5369_p9 = scmp.lt.u32.totalorder %s6728_s30, %s6819_s12 }
 0x674   : > { %p5370_p10 = scmp.lt.u32.totalorder %s5368_s22, %s5364_s20  ;;  %p5372_p12 = scmp.lt.u32.totalorder %s5364_s20, %s6728_s30 }
 0x675   : > { %p5366_p7 = pnand %p5365_p4, %p5562_p5 }
 0x676   : > { %p5371_p11 = por %p5370_p10, %p5369_p9 }
 0x677   : > { %p5367_p8 = pneg %p5366_p7 }
 0x678   : > { %p5373_p13 = por %p5372_p12, %p5371_p11 }
 0x67a   : > { %p5374_p0 = pnand %p5373_p13, %p5367_p8 }
 0x67c   : > { %5377 = shalt.err (!%p5374_p0)
}
 0x67d   : > { %4902 = dma.vmem_to_hbm [thread:$0]  (%p5562_p5), %s6730_s23, 16, %s6728_s30, %s3940_s15   ;;  %v3931_v36 = vsub.f32 1.0, %v3930_v5  ;;  %v3905_v44 = vmul.f32 -0.5, %v6708_v21  ;;  %v3925_v10 = vpop.permute.xlu1 %3924 }
 0x67e   : > { %s453_s17 = scalar_lea.vmem [#allocation4], %s6719_s27  ;;  %s6832_s16 = sshll.u32 %s5545_s29, 4 }
 0x67f   : > { %v3932_v9 = vadd.f32 1e-07, %v3931_v36  ;;  %v3906_v40 = vmul.f32 %v3905_v44, %v6708_v21  ;;  %s3969_s19 = sshll.u32 %s453_s17, 4  ;;  %s6763_s30 = scalar_lea.hbm %s6820_s13, %s6832_s16  ;;  %s6765_s19 = int_to_ptr.vmem [resolvable:$true] %s3969_s19 }
 0x680   : > { %s3944_s15 = scalar_lea.sflag [#allocation5], %s6719_s27  ;;  %s5378_s24 = scalar_lea.vmem %s6765_s19, 16 }
 0x681   : > { %5348 = vlog2.f32 %v3932_v9  ;;  %v3927_v11 = vsub.f32 %v3906_v40, %v3925_v10  ;;  %p5379_p1 = scmp.ne.s32.totalorder %s6765_s19, %s5378_s24  ;;  %s5453_s14 = smov [#allocation4]  }
 0x682   : > { %s5382_s29 = sshll.u32 %s5453_s14, 4  ;;  %s5383_s29 = int_to_ptr.vmem [resolvable:$false] %s5382_s29 }
 0x683   : > { %v4481_v45 = vadd.f32 -0.9189385, %v3927_v11  ;;  %p5380_p2 = pnand %p5379_p1, %p5562_p5  ;;  %s5384_s22 = scalar_lea.vmem %s5383_s29, 32 }
 0x684   : > { %p5385_p4 = scmp.lt.s32.totalorder %s6765_s19, %s5383_s29  ;;  %p5386_p7 = scmp.lt.s32.totalorder %s5384_s22, %s5378_s24 }
 0x685   : > { %p5381_p3 = pneg %p5380_p2 }
 0x686   : > { %p5387_p8 = por %p5386_p7, %p5385_p4 }
 0x688   : > { %p5388_p9 = pnand %p5387_p8, %p5381_p3 }
 0x68b   : > { %v5349_v12 = vpop.eup %5348 }
 0x68c   : > { %v3934_v14 = vmul.f32 0.6931472, %v5349_v12 }
 0x68e   : > { %v3935_v16 = vsub.f32 %v4481_v45, %v3934_v14 }
 0x690   : > { %3938 = vst.msk [vmem:[%s453_s17] sm:$0x1] %vm3936_vm4, %v3935_v16 }
 0x691   : > { %5391 = shalt.err (!%p5388_p9)
}
 0x692   : > { %s5392_s27 = scalar_lea.hbm %s6763_s30, 16  ;;  %s5396_s16 = scalar_lea.hbm %s6820_s13, 32 }
 0x693   : > { %p5393_p10 = scmp.ne.s32.totalorder %s6763_s30, %s5392_s27  ;;  %p5397_p13 = scmp.lt.u32.totalorder %s6763_s30, %s6820_s13 }
 0x694   : > { %p5398_p0 = scmp.lt.u32.totalorder %s5396_s16, %s5392_s27  ;;  %p5400_p2 = scmp.lt.u32.totalorder %s5392_s27, %s6763_s30 }
 0x695   : > { %p5394_p11 = pnand %p5393_p10, %p5562_p5 }
 0x696   : > { %p5399_p1 = por %p5398_p0, %p5397_p13 }
 0x697   : > { %p5395_p12 = pneg %p5394_p11 }
 0x698   : > { %p5401_p3 = por %p5400_p2, %p5399_p1 }
 0x69a   : > { %p5402_p4 = pnand %p5401_p3, %p5395_p12 }
 0x69c   : > { %5405 = shalt.err (!%p5402_p4)
}
 0x69d   : > { %4903 = dma.vmem_to_hbm [thread:$0]  (%p5562_p5), %s6765_s19, 16, %s6763_s30, %s3944_s15  }
 0x69e PF: > { %p4913_p7 = scmp.ge.s32.totalorder %s5444_s28, 2  ;;  %s3981_s14 = sand.u32 1, %s5432_s25  }
 0x69f   : > { %s3982_s29 = scalar_lea.sflag [#allocation3], %s3981_s14 }
 0x6a0   : > { %p4907_p8 = pnand %p4913_p7, %p5566_p6 }
 0x6a2   : > { %5423 = dma.done.wait (!%p4907_p8), %s3982_s29, 16  }
 0x6a3   : > { %5425 = vsyncadd (!%p4907_p8), %s3982_s29, 4294967280  ;;  %s3990_s22 = scalar_lea.sflag [#allocation5], %s3981_s14 }
 0x6a4   : > { %5427 = dma.done.wait (!%p4907_p8), %s3990_s22, 16  }
 0x6a5   : > { %5429 = vsyncadd (!%p4907_p8), %s3990_s22, 4294967280  ;;  %s6834_s28 = sld [smem:[#allocation9_spill]]  ;;  %s6835_s18 = sld [smem:[#allocation8_spill]] }
 0x6a6   : > { %s6836_s27 = sld [smem:[#allocation10_spill]]  ;;  %s6837_s25 = smov %s5436_s26 }
 0x6ab   : > { %p27_p5 = scmp.ge.s32.totalorder %s6834_s28, 4   ;;  %s6838_s26 = smov %s6835_s18 }
 0x6ad   :  { %29 = sbr.rel (!%p27_p5) target bundleno = 5 (0x5), region = 131 }
 0x6b4   :  { %3994 = vsyncpa [#allocation3], 1 }
 0x6b5   :  { %3996 = vsyncpa [#allocation3 + $0x1], 1 }
 0x6b6   :  { %3997 = vsyncpa [#allocation5], 1 }
 0x6b7   :  { %3999 = vsyncpa [#allocation5 + $0x1], 1 }

</bundles_post_ra>
